<compile_context>
chip_gen: v6e
topology: v6e:2x2x1
jax: 0.10.0
libtpu: 0.0.40
codegen_flags: <defaults>
</compile_context>

<pallas_src>
import functools
import math

import numpy as np

import jax
import jax.numpy as jnp
from jax import lax
from jax.experimental import pallas as pl
from jax.experimental.pallas import tpu as pltpu


# ----------------------------------------------------------------------------
# Fused encoder kernel (one batch sample per grid step)
# ----------------------------------------------------------------------------
def _encoder_fused_kernel(p1_ref, w1_ref, b1_ref, g2_ref, w2_ref, b2_ref,
                          wfc_ref, bfc_ref, wh_ref, bh_ref, out_ref, h2_ref):
    n_taps = g2_ref.shape[0]          # k*k = 16
    n_pos2 = wfc_ref.shape[0]         # lh*lw (conv2 output positions)

    # ---- conv1 (im2col patches precomputed by wrapper) + LeakyReLU ---------
    h1 = jnp.dot(p1_ref[0], w1_ref[...], preferred_element_type=jnp.float32)
    h1 = h1 + b1_ref[...]
    h1 = jnp.where(h1 >= 0, h1, 0.01 * h1)                  # (H1*W1, 64)

    # ---- conv2: k*k accumulating MXU matmuls; stride / shift / zero-padding
    #      folded into the 0/1 tap-selection matrices (in-VMEM im2col) -------
    acc = jnp.zeros((g2_ref.shape[1], w2_ref.shape[2]), jnp.float32)
    for g in range(n_taps):
        patch = jnp.dot(g2_ref[g], h1,
                        preferred_element_type=jnp.float32)  # (H2*W2, 64)
        acc = acc + jnp.dot(patch, w2_ref[g],
                            preferred_element_type=jnp.float32)
    h2 = acc + b2_ref[...]
    h2_ref[...] = jnp.where(h2 >= 0, h2, 0.01 * h2)          # (H2*W2, 128)

    # ---- flatten + fc(-> 1024) + LeakyReLU: accumulate one matmul per
    #      spatial position (no in-kernel reshape) ---------------------------
    h3 = jnp.zeros((1, wfc_ref.shape[2]), jnp.float32)
    for p in range(n_pos2):
        h3 = h3 + jnp.dot(h2_ref[p:p + 1, :], wfc_ref[p],
                          preferred_element_type=jnp.float32)
    h3 = h3 + bfc_ref[...]
    h3 = jnp.where(h3 >= 0, h3, 0.01 * h3)                   # (1, 1024)

    # ---- fused [mu | logvar] heads (single lane-dense 128-wide store) ------
    out = jnp.dot(h3, wh_ref[...], preferred_element_type=jnp.float32)
    out = out + bh_ref[...]
    out_ref[0] = out.astype(out_ref.dtype)


# ----------------------------------------------------------------------------
# im2col glue for conv1 only (plain JAX on the raw, tiny network input)
# (B,H,W,C) -> (B, Ho*Wo, k*k*C) with column order (ki, kj, c)
# ----------------------------------------------------------------------------
def im2col_nhwc(x, k, stride, pad):
    B, H, W, C = x.shape
    xp = jnp.pad(x, ((0, 0), (pad, pad), (pad, pad), (0, 0)))
    Ho = (H + 2 * pad - k) // stride + 1
    Wo = (W + 2 * pad - k) // stride + 1
    cols = []
    for i in range(k):
        for j in range(k):
            cols.append(xp[:, i:i + stride * Ho:stride,
                           j:j + stride * Wo:stride, :])
    patches = jnp.stack(cols, axis=3)                 # (B, Ho, Wo, k*k, C)
    return patches.reshape(B, Ho * Wo, k * k * C), Ho, Wo


# ----------------------------------------------------------------------------
# Parameters: PyTorch layout at init, converted ONCE to kernel layout
# ----------------------------------------------------------------------------
def get_layer_size(h, w, layer_num):
    for _ in range(layer_num):
        h = math.floor(h / 2)
        w = math.floor(w / 2)
    return h, w


def init_encoder_params(key, z_dim, input_channels, input_dim):
    h, w = input_dim
    lh, lw = get_layer_size(h, w, 2)
    flat = 128 * lh * lw
    ks = jax.random.split(key, 10)
    s = 0.05
    return {
        "conv1_w": jax.random.normal(ks[0], (64, input_channels, 4, 4), jnp.float32) * s,
        "conv1_b": jax.random.normal(ks[1], (64,), jnp.float32) * s,
        "conv2_w": jax.random.normal(ks[2], (128, 64, 4, 4), jnp.float32) * s,
        "conv2_b": jax.random.normal(ks[3], (128,), jnp.float32) * s,
        "fc_w": jax.random.normal(ks[4], (1024, flat), jnp.float32) * s,   # PyTorch (out,in)
        "fc_b": jax.random.normal(ks[5], (1024,), jnp.float32) * s,
        "mu_w": jax.random.normal(ks[6], (z_dim, 1024), jnp.float32) * s,
        "mu_b": jax.random.normal(ks[7], (z_dim,), jnp.float32) * s,
        "logvar_w": jax.random.normal(ks[8], (z_dim, 1024), jnp.float32) * s,
        "logvar_b": jax.random.normal(ks[9], (z_dim,), jnp.float32) * s,
    }


def _conv_tap_selectors(h_in, w_in, h_out, w_out, k, stride, pad):
    """0/1 matrices: sel[g] @ x(flat spatial, C) gathers the shifted/strided
    rows for conv tap g=(ki*k+kj); out-of-bounds (padding) rows are zero."""
    sel = np.zeros((k * k, h_out * w_out, h_in * w_in), np.float32)
    for ki in range(k):
        for kj in range(k):
            g = ki * k + kj
            for i in range(h_out):
                r = stride * i + ki - pad
                if not (0 <= r < h_in):
                    continue
                for j in range(w_out):
                    c = stride * j + kj - pad
                    if not (0 <= c < w_in):
                        continue
                    sel[g, i * w_out + j, r * w_in + c] = 1.0
    return sel


def prepare_params(p, input_hw):
    """One-time conversion of PyTorch-layout weights to kernel layout."""
    h, w = input_hw
    h1, w1 = get_layer_size(h, w, 1)      # conv1 output spatial
    h2, w2 = get_layer_size(h, w, 2)      # conv2 output spatial
    c1 = p["conv1_w"].shape[0]            # 64
    c2 = p["conv2_w"].shape[0]            # 128

    # conv1 (C_out, C_in, kh, kw) -> (kh*kw*C_in, C_out), matching im2col cols.
    conv1_w = jnp.transpose(p["conv1_w"], (2, 3, 1, 0)).reshape(-1, c1)
    # conv2 per-tap slices: (k*k, C_in, C_out).
    conv2_w = jnp.transpose(p["conv2_w"], (2, 3, 1, 0)).reshape(16, c1, c2)
    # 0/1 tap-selection matrices for in-kernel conv2 im2col (exact in bf16).
    g2 = jnp.asarray(_conv_tap_selectors(h1, w1, h2, w2, 4, 2, 1), jnp.bfloat16)
    # fc (1024, C*lh*lw) PyTorch NCHW-flatten -> (lh*lw, C, 1024) so the kernel
    # contracts one spatial position at a time with no reshape; stream as bf16.
    fc_w = p["fc_w"].reshape(1024, c2, h2 * w2)
    fc_w = jnp.transpose(fc_w, (2, 1, 0)).astype(jnp.bfloat16)
    # Heads fused into one matrix, zero-padded to a 128-lane multiple.
    heads_w = jnp.concatenate([p["mu_w"].T, p["logvar_w"].T], axis=1)  # (1024, 2z)
    heads_b = jnp.concatenate([p["mu_b"], p["logvar_b"]])
    n = heads_w.shape[1]
    n_pad = ((n + 127) // 128) * 128
    if n_pad > n:
        heads_w = jnp.pad(heads_w, ((0, 0), (0, n_pad - n)))
        heads_b = jnp.pad(heads_b, ((0, n_pad - n),))
    return {
        "conv1_w": conv1_w, "conv1_b": p["conv1_b"].reshape(1, -1),
        "g2": g2,
        "conv2_w": conv2_w, "conv2_b": p["conv2_b"].reshape(1, -1),
        "fc_w": fc_w, "fc_b": p["fc_b"].reshape(1, -1),
        "heads_w": heads_w, "heads_b": heads_b.reshape(1, -1),
    }


# ----------------------------------------------------------------------------
# Forward pass (takes prepared / kernel-layout params)
# ----------------------------------------------------------------------------
@functools.partial(jax.jit, static_argnames=("z_dim",))
def encoder_forward(kp, x, z_dim):
    # x: (B, C, H, W) NCHW f32 (PyTorch interface).
    B = x.shape[0]
    x_nhwc = jnp.transpose(x, (0, 2, 3, 1))
    p1, _, _ = im2col_nhwc(x_nhwc, k=4, stride=2, pad=1)   # (B, H1*W1, k*k*C)

    n_pos2 = kp["fc_w"].shape[0]        # lh*lw
    c2 = kp["conv2_w"].shape[2]         # 128
    nheads = kp["heads_w"].shape[1]     # padded 2*z_dim

    out = pl.pallas_call(
        _encoder_fused_kernel,
        out_shape=jax.ShapeDtypeStruct((B, 1, nheads), jnp.float32),
        grid=(B,),
        in_specs=[
            pl.BlockSpec((1,) + p1.shape[1:], lambda b: (b, 0, 0)),
            pl.BlockSpec(kp["conv1_w"].shape, lambda b: (0, 0)),
            pl.BlockSpec(kp["conv1_b"].shape, lambda b: (0, 0)),
            pl.BlockSpec(kp["g2"].shape, lambda b: (0, 0, 0)),
            pl.BlockSpec(kp["conv2_w"].shape, lambda b: (0, 0, 0)),
            pl.BlockSpec(kp["conv2_b"].shape, lambda b: (0, 0)),
            pl.BlockSpec(kp["fc_w"].shape, lambda b: (0, 0, 0)),
            pl.BlockSpec(kp["fc_b"].shape, lambda b: (0, 0)),
            pl.BlockSpec(kp["heads_w"].shape, lambda b: (0, 0)),
            pl.BlockSpec(kp["heads_b"].shape, lambda b: (0, 0)),
        ],
        out_specs=pl.BlockSpec((1, 1, nheads), lambda b: (b, 0, 0)),
        scratch_shapes=[pltpu.VMEM((n_pos2, c2), jnp.float32)],
        compiler_params=pltpu.CompilerParams(
            dimension_semantics=("parallel",),
            vmem_limit_bytes=32 * 1024 * 1024),
    )(p1, kp["conv1_w"], kp["conv1_b"], kp["g2"], kp["conv2_w"], kp["conv2_b"],
      kp["fc_w"], kp["fc_b"], kp["heads_w"], kp["heads_b"])

    out2d = out.reshape(B, nheads)
    mu = out2d[:, :z_dim]
    logvar = out2d[:, z_dim:2 * z_dim]
    return mu, logvar


# ----------------------------------------------------------------------------
# Pure-JAX reference (PyTorch-layout params, high precision) for correctness
# ----------------------------------------------------------------------------
def encoder_forward_ref(params, x):
    def conv(x, w, b):
        y = lax.conv_general_dilated(
            x, w, window_strides=(2, 2), padding=((1, 1), (1, 1)),
            dimension_numbers=("NCHW", "OIHW", "NCHW"),
            precision=lax.Precision.HIGHEST)
        return y + b[None, :, None, None]

    def leaky(v):
        return jnp.where(v >= 0, v, 0.01 * v)

    B = x.shape[0]
    h1 = leaky(conv(x, params["conv1_w"], params["conv1_b"]))
    h2 = leaky(conv(h1, params["conv2_w"], params["conv2_b"]))
    flat = h2.reshape(B, -1)
    h3 = leaky(jnp.dot(flat, params["fc_w"].T, precision=lax.Precision.HIGHEST)
               + params["fc_b"])
    mu = jnp.dot(h3, params["mu_w"].T, precision=lax.Precision.HIGHEST) + params["mu_b"]
    logvar = (jnp.dot(h3, params["logvar_w"].T, precision=lax.Precision.HIGHEST)
              + params["logvar_b"])
    return mu, logvar


if __name__ == "__main__":
    B, C, H, W = 2, 4, 16, 16
    z_dim = 32

    key = jax.random.PRNGKey(0)
    kx, kp = jax.random.split(key)
    x = jax.random.normal(kx, (B, C, H, W), jnp.float32)
    params = init_encoder_params(kp, z_dim, C, (H, W))

    kparams = prepare_params(params, (H, W))                 # one-time layout prep
    kparams = jax.tree_util.tree_map(lambda a: a.block_until_ready(), kparams)

    mu, logvar = encoder_forward(kparams, x, z_dim)
    mu = jax.block_until_ready(mu)
    logvar = jax.block_until_ready(logvar)

    mu_ref, logvar_ref = encoder_forward_ref(params, x)
    assert mu.shape == (B, z_dim) and logvar.shape == (B, z_dim)
    # Tolerance 1e-2: fc weights are streamed in bf16 (accumulation stays f32).
    assert jnp.allclose(mu, mu_ref, atol=1e-2, rtol=1e-2), \
        float(jnp.max(jnp.abs(mu - mu_ref)))
    assert jnp.allclose(logvar, logvar_ref, atol=1e-2, rtol=1e-2), \
        float(jnp.max(jnp.abs(logvar - logvar_ref)))

    print("KERNEL_OK")
</pallas_src>

<mosaic_0001>
module attributes {stable_mosaic.version = 11 : i64} {
  func.func @_encoder_fused_kernel(%arg0: i32, %arg1: memref<1x64x64xf32, #tpu.memory_space<vmem>>, %arg2: memref<64x64xf32, #tpu.memory_space<vmem>>, %arg3: memref<1x64xf32, #tpu.memory_space<vmem>>, %arg4: memref<16x16x64xbf16, #tpu.memory_space<vmem>>, %arg5: memref<16x64x128xf32, #tpu.memory_space<vmem>>, %arg6: memref<1x128xf32, #tpu.memory_space<vmem>>, %arg7: memref<16x128x1024xbf16, #tpu.memory_space<vmem>>, %arg8: memref<1x1024xf32, #tpu.memory_space<vmem>>, %arg9: memref<1024x128xf32, #tpu.memory_space<vmem>>, %arg10: memref<1x128xf32, #tpu.memory_space<vmem>>, %arg11: memref<1x1x128xf32, #tpu.memory_space<vmem>>, %arg12: memref<16x128xf32, #tpu.memory_space<vmem>>) attributes {dimension_semantics = [#tpu.dimension_semantics<parallel>], iteration_bounds = array<i64: 2>, scalar_prefetch = 0 : i64, scratch_operands = 1 : i64, tpu.core_type = #tpu.core_type<tc>, window_params = [{transform_indices = @transform_0, window_bounds = array<i64: 1, 64, 64>}, {pipeline_mode = #tpu.pipeline_mode<synchronous>, transform_indices = @transform_1, window_bounds = array<i64: 64, 64>}, {pipeline_mode = #tpu.pipeline_mode<synchronous>, transform_indices = @transform_2, window_bounds = array<i64: 1, 64>}, {pipeline_mode = #tpu.pipeline_mode<synchronous>, transform_indices = @transform_3, window_bounds = array<i64: 16, 16, 64>}, {pipeline_mode = #tpu.pipeline_mode<synchronous>, transform_indices = @transform_4, window_bounds = array<i64: 16, 64, 128>}, {pipeline_mode = #tpu.pipeline_mode<synchronous>, transform_indices = @transform_5, window_bounds = array<i64: 1, 128>}, {pipeline_mode = #tpu.pipeline_mode<synchronous>, transform_indices = @transform_6, window_bounds = array<i64: 16, 128, 1024>}, {pipeline_mode = #tpu.pipeline_mode<synchronous>, transform_indices = @transform_7, window_bounds = array<i64: 1, 1024>}, {pipeline_mode = #tpu.pipeline_mode<synchronous>, transform_indices = @transform_8, window_bounds = array<i64: 1024, 128>}, {pipeline_mode = #tpu.pipeline_mode<synchronous>, transform_indices = @transform_9, window_bounds = array<i64: 1, 128>}, {transform_indices = @transform_10, window_bounds = array<i64: 1, 1, 128>}]} {
    %c0 = arith.constant 0 : index
    %c0_0 = arith.constant 0 : index
    %c0_1 = arith.constant 0 : index
    %0 = vector.load %arg1[%c0, %c0_0, %c0_1] : memref<1x64x64xf32, #tpu.memory_space<vmem>>, vector<1x64x64xf32>
    %1 = vector.shape_cast %0 : vector<1x64x64xf32> to vector<64x64xf32>
    %c0_2 = arith.constant 0 : index
    %c0_3 = arith.constant 0 : index
    %2 = vector.load %arg2[%c0_2, %c0_3] : memref<64x64xf32, #tpu.memory_space<vmem>>, vector<64x64xf32>
    %cst = arith.constant dense<0.000000e+00> : vector<64x64xf32>
    %3 = tpu.matmul %1, %2, %cst {dimension_numbers = #tpu.dot_dimension_numbers<[1], [0], [0], [1], [0, 0, 1, 1], [], []>} : vector<64x64xf32>, vector<64x64xf32>, vector<64x64xf32> -> vector<64x64xf32>
    %c0_4 = arith.constant 0 : index
    %c0_5 = arith.constant 0 : index
    %4 = vector.load %arg3[%c0_4, %c0_5] : memref<1x64xf32, #tpu.memory_space<vmem>>, vector<1x64xf32>
    %5 = vector.broadcast %4 : vector<1x64xf32> to vector<64x64xf32>
    %6 = arith.addf %3, %5 : vector<64x64xf32>
    %cst_6 = arith.constant 0.000000e+00 : f32
    %7 = vector.broadcast %cst_6 : f32 to vector<64x64xf32>
    %8 = arith.cmpf oge, %6, %7 : vector<64x64xf32>
    %cst_7 = arith.constant 0.00999999977 : f32
    %9 = vector.broadcast %cst_7 : f32 to vector<64x64xf32>
    %10 = arith.mulf %9, %6 : vector<64x64xf32>
    %11 = arith.select %8, %6, %10 : vector<64x64xi1>, vector<64x64xf32>
    %cst_8 = arith.constant 0.000000e+00 : f32
    %12 = vector.broadcast %cst_8 : f32 to vector<16x128xf32>
    %c0_9 = arith.constant 0 : index
    %c0_10 = arith.constant 0 : index
    %c0_11 = arith.constant 0 : index
    %13 = vector.load %arg4[%c0_9, %c0_10, %c0_11] : memref<16x16x64xbf16, #tpu.memory_space<vmem>>, vector<1x16x64xbf16>
    %14 = vector.shape_cast %13 : vector<1x16x64xbf16> to vector<16x64xbf16>
    %cst_12 = arith.constant dense<0.000000e+00> : vector<16x64xf32>
    %15 = tpu.matmul %14, %11, %cst_12 {dimension_numbers = #tpu.dot_dimension_numbers<[1], [0], [0], [1], [0, 0, 1, 1], [], []>} : vector<16x64xbf16>, vector<64x64xf32>, vector<16x64xf32> -> vector<16x64xf32>
    %c0_13 = arith.constant 0 : index
    %c0_14 = arith.constant 0 : index
    %c0_15 = arith.constant 0 : index
    %16 = vector.load %arg5[%c0_13, %c0_14, %c0_15] : memref<16x64x128xf32, #tpu.memory_space<vmem>>, vector<1x64x128xf32>
    %17 = vector.shape_cast %16 : vector<1x64x128xf32> to vector<64x128xf32>
    %cst_16 = arith.constant dense<0.000000e+00> : vector<16x128xf32>
    %18 = tpu.matmul %15, %17, %cst_16 {dimension_numbers = #tpu.dot_dimension_numbers<[1], [0], [0], [1], [0, 0, 1, 1], [], []>} : vector<16x64xf32>, vector<64x128xf32>, vector<16x128xf32> -> vector<16x128xf32>
    %19 = arith.addf %12, %18 : vector<16x128xf32>
    %c1 = arith.constant 1 : index
    %c0_17 = arith.constant 0 : index
    %c0_18 = arith.constant 0 : index
    %20 = vector.load %arg4[%c1, %c0_17, %c0_18] : memref<16x16x64xbf16, #tpu.memory_space<vmem>>, vector<1x16x64xbf16>
    %21 = vector.shape_cast %20 : vector<1x16x64xbf16> to vector<16x64xbf16>
    %cst_19 = arith.constant dense<0.000000e+00> : vector<16x64xf32>
    %22 = tpu.matmul %21, %11, %cst_19 {dimension_numbers = #tpu.dot_dimension_numbers<[1], [0], [0], [1], [0, 0, 1, 1], [], []>} : vector<16x64xbf16>, vector<64x64xf32>, vector<16x64xf32> -> vector<16x64xf32>
    %c1_20 = arith.constant 1 : index
    %c0_21 = arith.constant 0 : index
    %c0_22 = arith.constant 0 : index
    %23 = vector.load %arg5[%c1_20, %c0_21, %c0_22] : memref<16x64x128xf32, #tpu.memory_space<vmem>>, vector<1x64x128xf32>
    %24 = vector.shape_cast %23 : vector<1x64x128xf32> to vector<64x128xf32>
    %cst_23 = arith.constant dense<0.000000e+00> : vector<16x128xf32>
    %25 = tpu.matmul %22, %24, %cst_23 {dimension_numbers = #tpu.dot_dimension_numbers<[1], [0], [0], [1], [0, 0, 1, 1], [], []>} : vector<16x64xf32>, vector<64x128xf32>, vector<16x128xf32> -> vector<16x128xf32>
    %26 = arith.addf %19, %25 : vector<16x128xf32>
    %c2 = arith.constant 2 : index
    %c0_24 = arith.constant 0 : index
    %c0_25 = arith.constant 0 : index
    %27 = vector.load %arg4[%c2, %c0_24, %c0_25] : memref<16x16x64xbf16, #tpu.memory_space<vmem>>, vector<1x16x64xbf16>
    %28 = vector.shape_cast %27 : vector<1x16x64xbf16> to vector<16x64xbf16>
    %cst_26 = arith.constant dense<0.000000e+00> : vector<16x64xf32>
    %29 = tpu.matmul %28, %11, %cst_26 {dimension_numbers = #tpu.dot_dimension_numbers<[1], [0], [0], [1], [0, 0, 1, 1], [], []>} : vector<16x64xbf16>, vector<64x64xf32>, vector<16x64xf32> -> vector<16x64xf32>
    %c2_27 = arith.constant 2 : index
    %c0_28 = arith.constant 0 : index
    %c0_29 = arith.constant 0 : index
    %30 = vector.load %arg5[%c2_27, %c0_28, %c0_29] : memref<16x64x128xf32, #tpu.memory_space<vmem>>, vector<1x64x128xf32>
    %31 = vector.shape_cast %30 : vector<1x64x128xf32> to vector<64x128xf32>
    %cst_30 = arith.constant dense<0.000000e+00> : vector<16x128xf32>
    %32 = tpu.matmul %29, %31, %cst_30 {dimension_numbers = #tpu.dot_dimension_numbers<[1], [0], [0], [1], [0, 0, 1, 1], [], []>} : vector<16x64xf32>, vector<64x128xf32>, vector<16x128xf32> -> vector<16x128xf32>
    %33 = arith.addf %26, %32 : vector<16x128xf32>
    %c3 = arith.constant 3 : index
    %c0_31 = arith.constant 0 : index
    %c0_32 = arith.constant 0 : index
    %34 = vector.load %arg4[%c3, %c0_31, %c0_32] : memref<16x16x64xbf16, #tpu.memory_space<vmem>>, vector<1x16x64xbf16>
    %35 = vector.shape_cast %34 : vector<1x16x64xbf16> to vector<16x64xbf16>
    %cst_33 = arith.constant dense<0.000000e+00> : vector<16x64xf32>
    %36 = tpu.matmul %35, %11, %cst_33 {dimension_numbers = #tpu.dot_dimension_numbers<[1], [0], [0], [1], [0, 0, 1, 1], [], []>} : vector<16x64xbf16>, vector<64x64xf32>, vector<16x64xf32> -> vector<16x64xf32>
    %c3_34 = arith.constant 3 : index
    %c0_35 = arith.constant 0 : index
    %c0_36 = arith.constant 0 : index
    %37 = vector.load %arg5[%c3_34, %c0_35, %c0_36] : memref<16x64x128xf32, #tpu.memory_space<vmem>>, vector<1x64x128xf32>
    %38 = vector.shape_cast %37 : vector<1x64x128xf32> to vector<64x128xf32>
    %cst_37 = arith.constant dense<0.000000e+00> : vector<16x128xf32>
    %39 = tpu.matmul %36, %38, %cst_37 {dimension_numbers = #tpu.dot_dimension_numbers<[1], [0], [0], [1], [0, 0, 1, 1], [], []>} : vector<16x64xf32>, vector<64x128xf32>, vector<16x128xf32> -> vector<16x128xf32>
    %40 = arith.addf %33, %39 : vector<16x128xf32>
    %c4 = arith.constant 4 : index
    %c0_38 = arith.constant 0 : index
    %c0_39 = arith.constant 0 : index
    %41 = vector.load %arg4[%c4, %c0_38, %c0_39] : memref<16x16x64xbf16, #tpu.memory_space<vmem>>, vector<1x16x64xbf16>
    %42 = vector.shape_cast %41 : vector<1x16x64xbf16> to vector<16x64xbf16>
    %cst_40 = arith.constant dense<0.000000e+00> : vector<16x64xf32>
    %43 = tpu.matmul %42, %11, %cst_40 {dimension_numbers = #tpu.dot_dimension_numbers<[1], [0], [0], [1], [0, 0, 1, 1], [], []>} : vector<16x64xbf16>, vector<64x64xf32>, vector<16x64xf32> -> vector<16x64xf32>
    %c4_41 = arith.constant 4 : index
    %c0_42 = arith.constant 0 : index
    %c0_43 = arith.constant 0 : index
    %44 = vector.load %arg5[%c4_41, %c0_42, %c0_43] : memref<16x64x128xf32, #tpu.memory_space<vmem>>, vector<1x64x128xf32>
    %45 = vector.shape_cast %44 : vector<1x64x128xf32> to vector<64x128xf32>
    %cst_44 = arith.constant dense<0.000000e+00> : vector<16x128xf32>
    %46 = tpu.matmul %43, %45, %cst_44 {dimension_numbers = #tpu.dot_dimension_numbers<[1], [0], [0], [1], [0, 0, 1, 1], [], []>} : vector<16x64xf32>, vector<64x128xf32>, vector<16x128xf32> -> vector<16x128xf32>
    %47 = arith.addf %40, %46 : vector<16x128xf32>
    %c5 = arith.constant 5 : index
    %c0_45 = arith.constant 0 : index
    %c0_46 = arith.constant 0 : index
    %48 = vector.load %arg4[%c5, %c0_45, %c0_46] : memref<16x16x64xbf16, #tpu.memory_space<vmem>>, vector<1x16x64xbf16>
    %49 = vector.shape_cast %48 : vector<1x16x64xbf16> to vector<16x64xbf16>
    %cst_47 = arith.constant dense<0.000000e+00> : vector<16x64xf32>
    %50 = tpu.matmul %49, %11, %cst_47 {dimension_numbers = #tpu.dot_dimension_numbers<[1], [0], [0], [1], [0, 0, 1, 1], [], []>} : vector<16x64xbf16>, vector<64x64xf32>, vector<16x64xf32> -> vector<16x64xf32>
    %c5_48 = arith.constant 5 : index
    %c0_49 = arith.constant 0 : index
    %c0_50 = arith.constant 0 : index
    %51 = vector.load %arg5[%c5_48, %c0_49, %c0_50] : memref<16x64x128xf32, #tpu.memory_space<vmem>>, vector<1x64x128xf32>
    %52 = vector.shape_cast %51 : vector<1x64x128xf32> to vector<64x128xf32>
    %cst_51 = arith.constant dense<0.000000e+00> : vector<16x128xf32>
    %53 = tpu.matmul %50, %52, %cst_51 {dimension_numbers = #tpu.dot_dimension_numbers<[1], [0], [0], [1], [0, 0, 1, 1], [], []>} : vector<16x64xf32>, vector<64x128xf32>, vector<16x128xf32> -> vector<16x128xf32>
    %54 = arith.addf %47, %53 : vector<16x128xf32>
    %c6 = arith.constant 6 : index
    %c0_52 = arith.constant 0 : index
    %c0_53 = arith.constant 0 : index
    %55 = vector.load %arg4[%c6, %c0_52, %c0_53] : memref<16x16x64xbf16, #tpu.memory_space<vmem>>, vector<1x16x64xbf16>
    %56 = vector.shape_cast %55 : vector<1x16x64xbf16> to vector<16x64xbf16>
    %cst_54 = arith.constant dense<0.000000e+00> : vector<16x64xf32>
    %57 = tpu.matmul %56, %11, %cst_54 {dimension_numbers = #tpu.dot_dimension_numbers<[1], [0], [0], [1], [0, 0, 1, 1], [], []>} : vector<16x64xbf16>, vector<64x64xf32>, vector<16x64xf32> -> vector<16x64xf32>
    %c6_55 = arith.constant 6 : index
    %c0_56 = arith.constant 0 : index
    %c0_57 = arith.constant 0 : index
    %58 = vector.load %arg5[%c6_55, %c0_56, %c0_57] : memref<16x64x128xf32, #tpu.memory_space<vmem>>, vector<1x64x128xf32>
    %59 = vector.shape_cast %58 : vector<1x64x128xf32> to vector<64x128xf32>
    %cst_58 = arith.constant dense<0.000000e+00> : vector<16x128xf32>
    %60 = tpu.matmul %57, %59, %cst_58 {dimension_numbers = #tpu.dot_dimension_numbers<[1], [0], [0], [1], [0, 0, 1, 1], [], []>} : vector<16x64xf32>, vector<64x128xf32>, vector<16x128xf32> -> vector<16x128xf32>
    %61 = arith.addf %54, %60 : vector<16x128xf32>
    %c7 = arith.constant 7 : index
    %c0_59 = arith.constant 0 : index
    %c0_60 = arith.constant 0 : index
    %62 = vector.load %arg4[%c7, %c0_59, %c0_60] : memref<16x16x64xbf16, #tpu.memory_space<vmem>>, vector<1x16x64xbf16>
    %63 = vector.shape_cast %62 : vector<1x16x64xbf16> to vector<16x64xbf16>
    %cst_61 = arith.constant dense<0.000000e+00> : vector<16x64xf32>
    %64 = tpu.matmul %63, %11, %cst_61 {dimension_numbers = #tpu.dot_dimension_numbers<[1], [0], [0], [1], [0, 0, 1, 1], [], []>} : vector<16x64xbf16>, vector<64x64xf32>, vector<16x64xf32> -> vector<16x64xf32>
    %c7_62 = arith.constant 7 : index
    %c0_63 = arith.constant 0 : index
    %c0_64 = arith.constant 0 : index
    %65 = vector.load %arg5[%c7_62, %c0_63, %c0_64] : memref<16x64x128xf32, #tpu.memory_space<vmem>>, vector<1x64x128xf32>
    %66 = vector.shape_cast %65 : vector<1x64x128xf32> to vector<64x128xf32>
    %cst_65 = arith.constant dense<0.000000e+00> : vector<16x128xf32>
    %67 = tpu.matmul %64, %66, %cst_65 {dimension_numbers = #tpu.dot_dimension_numbers<[1], [0], [0], [1], [0, 0, 1, 1], [], []>} : vector<16x64xf32>, vector<64x128xf32>, vector<16x128xf32> -> vector<16x128xf32>
    %68 = arith.addf %61, %67 : vector<16x128xf32>
    %c8 = arith.constant 8 : index
    %c0_66 = arith.constant 0 : index
    %c0_67 = arith.constant 0 : index
    %69 = vector.load %arg4[%c8, %c0_66, %c0_67] : memref<16x16x64xbf16, #tpu.memory_space<vmem>>, vector<1x16x64xbf16>
    %70 = vector.shape_cast %69 : vector<1x16x64xbf16> to vector<16x64xbf16>
    %cst_68 = arith.constant dense<0.000000e+00> : vector<16x64xf32>
    %71 = tpu.matmul %70, %11, %cst_68 {dimension_numbers = #tpu.dot_dimension_numbers<[1], [0], [0], [1], [0, 0, 1, 1], [], []>} : vector<16x64xbf16>, vector<64x64xf32>, vector<16x64xf32> -> vector<16x64xf32>
    %c8_69 = arith.constant 8 : index
    %c0_70 = arith.constant 0 : index
    %c0_71 = arith.constant 0 : index
    %72 = vector.load %arg5[%c8_69, %c0_70, %c0_71] : memref<16x64x128xf32, #tpu.memory_space<vmem>>, vector<1x64x128xf32>
    %73 = vector.shape_cast %72 : vector<1x64x128xf32> to vector<64x128xf32>
    %cst_72 = arith.constant dense<0.000000e+00> : vector<16x128xf32>
    %74 = tpu.matmul %71, %73, %cst_72 {dimension_numbers = #tpu.dot_dimension_numbers<[1], [0], [0], [1], [0, 0, 1, 1], [], []>} : vector<16x64xf32>, vector<64x128xf32>, vector<16x128xf32> -> vector<16x128xf32>
    %75 = arith.addf %68, %74 : vector<16x128xf32>
    %c9 = arith.constant 9 : index
    %c0_73 = arith.constant 0 : index
    %c0_74 = arith.constant 0 : index
    %76 = vector.load %arg4[%c9, %c0_73, %c0_74] : memref<16x16x64xbf16, #tpu.memory_space<vmem>>, vector<1x16x64xbf16>
    %77 = vector.shape_cast %76 : vector<1x16x64xbf16> to vector<16x64xbf16>
    %cst_75 = arith.constant dense<0.000000e+00> : vector<16x64xf32>
    %78 = tpu.matmul %77, %11, %cst_75 {dimension_numbers = #tpu.dot_dimension_numbers<[1], [0], [0], [1], [0, 0, 1, 1], [], []>} : vector<16x64xbf16>, vector<64x64xf32>, vector<16x64xf32> -> vector<16x64xf32>
    %c9_76 = arith.constant 9 : index
    %c0_77 = arith.constant 0 : index
    %c0_78 = arith.constant 0 : index
    %79 = vector.load %arg5[%c9_76, %c0_77, %c0_78] : memref<16x64x128xf32, #tpu.memory_space<vmem>>, vector<1x64x128xf32>
    %80 = vector.shape_cast %79 : vector<1x64x128xf32> to vector<64x128xf32>
    %cst_79 = arith.constant dense<0.000000e+00> : vector<16x128xf32>
    %81 = tpu.matmul %78, %80, %cst_79 {dimension_numbers = #tpu.dot_dimension_numbers<[1], [0], [0], [1], [0, 0, 1, 1], [], []>} : vector<16x64xf32>, vector<64x128xf32>, vector<16x128xf32> -> vector<16x128xf32>
    %82 = arith.addf %75, %81 : vector<16x128xf32>
    %c10 = arith.constant 10 : index
    %c0_80 = arith.constant 0 : index
    %c0_81 = arith.constant 0 : index
    %83 = vector.load %arg4[%c10, %c0_80, %c0_81] : memref<16x16x64xbf16, #tpu.memory_space<vmem>>, vector<1x16x64xbf16>
    %84 = vector.shape_cast %83 : vector<1x16x64xbf16> to vector<16x64xbf16>
    %cst_82 = arith.constant dense<0.000000e+00> : vector<16x64xf32>
    %85 = tpu.matmul %84, %11, %cst_82 {dimension_numbers = #tpu.dot_dimension_numbers<[1], [0], [0], [1], [0, 0, 1, 1], [], []>} : vector<16x64xbf16>, vector<64x64xf32>, vector<16x64xf32> -> vector<16x64xf32>
    %c10_83 = arith.constant 10 : index
    %c0_84 = arith.constant 0 : index
    %c0_85 = arith.constant 0 : index
    %86 = vector.load %arg5[%c10_83, %c0_84, %c0_85] : memref<16x64x128xf32, #tpu.memory_space<vmem>>, vector<1x64x128xf32>
    %87 = vector.shape_cast %86 : vector<1x64x128xf32> to vector<64x128xf32>
    %cst_86 = arith.constant dense<0.000000e+00> : vector<16x128xf32>
    %88 = tpu.matmul %85, %87, %cst_86 {dimension_numbers = #tpu.dot_dimension_numbers<[1], [0], [0], [1], [0, 0, 1, 1], [], []>} : vector<16x64xf32>, vector<64x128xf32>, vector<16x128xf32> -> vector<16x128xf32>
    %89 = arith.addf %82, %88 : vector<16x128xf32>
    %c11 = arith.constant 11 : index
    %c0_87 = arith.constant 0 : index
    %c0_88 = arith.constant 0 : index
    %90 = vector.load %arg4[%c11, %c0_87, %c0_88] : memref<16x16x64xbf16, #tpu.memory_space<vmem>>, vector<1x16x64xbf16>
    %91 = vector.shape_cast %90 : vector<1x16x64xbf16> to vector<16x64xbf16>
    %cst_89 = arith.constant dense<0.000000e+00> : vector<16x64xf32>
    %92 = tpu.matmul %91, %11, %cst_89 {dimension_numbers = #tpu.dot_dimension_numbers<[1], [0], [0], [1], [0, 0, 1, 1], [], []>} : vector<16x64xbf16>, vector<64x64xf32>, vector<16x64xf32> -> vector<16x64xf32>
    %c11_90 = arith.constant 11 : index
    %c0_91 = arith.constant 0 : index
    %c0_92 = arith.constant 0 : index
    %93 = vector.load %arg5[%c11_90, %c0_91, %c0_92] : memref<16x64x128xf32, #tpu.memory_space<vmem>>, vector<1x64x128xf32>
    %94 = vector.shape_cast %93 : vector<1x64x128xf32> to vector<64x128xf32>
    %cst_93 = arith.constant dense<0.000000e+00> : vector<16x128xf32>
    %95 = tpu.matmul %92, %94, %cst_93 {dimension_numbers = #tpu.dot_dimension_numbers<[1], [0], [0], [1], [0, 0, 1, 1], [], []>} : vector<16x64xf32>, vector<64x128xf32>, vector<16x128xf32> -> vector<16x128xf32>
    %96 = arith.addf %89, %95 : vector<16x128xf32>
    %c12 = arith.constant 12 : index
    %c0_94 = arith.constant 0 : index
    %c0_95 = arith.constant 0 : index
    %97 = vector.load %arg4[%c12, %c0_94, %c0_95] : memref<16x16x64xbf16, #tpu.memory_space<vmem>>, vector<1x16x64xbf16>
    %98 = vector.shape_cast %97 : vector<1x16x64xbf16> to vector<16x64xbf16>
    %cst_96 = arith.constant dense<0.000000e+00> : vector<16x64xf32>
    %99 = tpu.matmul %98, %11, %cst_96 {dimension_numbers = #tpu.dot_dimension_numbers<[1], [0], [0], [1], [0, 0, 1, 1], [], []>} : vector<16x64xbf16>, vector<64x64xf32>, vector<16x64xf32> -> vector<16x64xf32>
    %c12_97 = arith.constant 12 : index
    %c0_98 = arith.constant 0 : index
    %c0_99 = arith.constant 0 : index
    %100 = vector.load %arg5[%c12_97, %c0_98, %c0_99] : memref<16x64x128xf32, #tpu.memory_space<vmem>>, vector<1x64x128xf32>
    %101 = vector.shape_cast %100 : vector<1x64x128xf32> to vector<64x128xf32>
    %cst_100 = arith.constant dense<0.000000e+00> : vector<16x128xf32>
    %102 = tpu.matmul %99, %101, %cst_100 {dimension_numbers = #tpu.dot_dimension_numbers<[1], [0], [0], [1], [0, 0, 1, 1], [], []>} : vector<16x64xf32>, vector<64x128xf32>, vector<16x128xf32> -> vector<16x128xf32>
    %103 = arith.addf %96, %102 : vector<16x128xf32>
    %c13 = arith.constant 13 : index
    %c0_101 = arith.constant 0 : index
    %c0_102 = arith.constant 0 : index
    %104 = vector.load %arg4[%c13, %c0_101, %c0_102] : memref<16x16x64xbf16, #tpu.memory_space<vmem>>, vector<1x16x64xbf16>
    %105 = vector.shape_cast %104 : vector<1x16x64xbf16> to vector<16x64xbf16>
    %cst_103 = arith.constant dense<0.000000e+00> : vector<16x64xf32>
    %106 = tpu.matmul %105, %11, %cst_103 {dimension_numbers = #tpu.dot_dimension_numbers<[1], [0], [0], [1], [0, 0, 1, 1], [], []>} : vector<16x64xbf16>, vector<64x64xf32>, vector<16x64xf32> -> vector<16x64xf32>
    %c13_104 = arith.constant 13 : index
    %c0_105 = arith.constant 0 : index
    %c0_106 = arith.constant 0 : index
    %107 = vector.load %arg5[%c13_104, %c0_105, %c0_106] : memref<16x64x128xf32, #tpu.memory_space<vmem>>, vector<1x64x128xf32>
    %108 = vector.shape_cast %107 : vector<1x64x128xf32> to vector<64x128xf32>
    %cst_107 = arith.constant dense<0.000000e+00> : vector<16x128xf32>
    %109 = tpu.matmul %106, %108, %cst_107 {dimension_numbers = #tpu.dot_dimension_numbers<[1], [0], [0], [1], [0, 0, 1, 1], [], []>} : vector<16x64xf32>, vector<64x128xf32>, vector<16x128xf32> -> vector<16x128xf32>
    %110 = arith.addf %103, %109 : vector<16x128xf32>
    %c14 = arith.constant 14 : index
    %c0_108 = arith.constant 0 : index
    %c0_109 = arith.constant 0 : index
    %111 = vector.load %arg4[%c14, %c0_108, %c0_109] : memref<16x16x64xbf16, #tpu.memory_space<vmem>>, vector<1x16x64xbf16>
    %112 = vector.shape_cast %111 : vector<1x16x64xbf16> to vector<16x64xbf16>
    %cst_110 = arith.constant dense<0.000000e+00> : vector<16x64xf32>
    %113 = tpu.matmul %112, %11, %cst_110 {dimension_numbers = #tpu.dot_dimension_numbers<[1], [0], [0], [1], [0, 0, 1, 1], [], []>} : vector<16x64xbf16>, vector<64x64xf32>, vector<16x64xf32> -> vector<16x64xf32>
    %c14_111 = arith.constant 14 : index
    %c0_112 = arith.constant 0 : index
    %c0_113 = arith.constant 0 : index
    %114 = vector.load %arg5[%c14_111, %c0_112, %c0_113] : memref<16x64x128xf32, #tpu.memory_space<vmem>>, vector<1x64x128xf32>
    %115 = vector.shape_cast %114 : vector<1x64x128xf32> to vector<64x128xf32>
    %cst_114 = arith.constant dense<0.000000e+00> : vector<16x128xf32>
    %116 = tpu.matmul %113, %115, %cst_114 {dimension_numbers = #tpu.dot_dimension_numbers<[1], [0], [0], [1], [0, 0, 1, 1], [], []>} : vector<16x64xf32>, vector<64x128xf32>, vector<16x128xf32> -> vector<16x128xf32>
    %117 = arith.addf %110, %116 : vector<16x128xf32>
    %c15 = arith.constant 15 : index
    %c0_115 = arith.constant 0 : index
    %c0_116 = arith.constant 0 : index
    %118 = vector.load %arg4[%c15, %c0_115, %c0_116] : memref<16x16x64xbf16, #tpu.memory_space<vmem>>, vector<1x16x64xbf16>
    %119 = vector.shape_cast %118 : vector<1x16x64xbf16> to vector<16x64xbf16>
    %cst_117 = arith.constant dense<0.000000e+00> : vector<16x64xf32>
    %120 = tpu.matmul %119, %11, %cst_117 {dimension_numbers = #tpu.dot_dimension_numbers<[1], [0], [0], [1], [0, 0, 1, 1], [], []>} : vector<16x64xbf16>, vector<64x64xf32>, vector<16x64xf32> -> vector<16x64xf32>
    %c15_118 = arith.constant 15 : index
    %c0_119 = arith.constant 0 : index
    %c0_120 = arith.constant 0 : index
    %121 = vector.load %arg5[%c15_118, %c0_119, %c0_120] : memref<16x64x128xf32, #tpu.memory_space<vmem>>, vector<1x64x128xf32>
    %122 = vector.shape_cast %121 : vector<1x64x128xf32> to vector<64x128xf32>
    %cst_121 = arith.constant dense<0.000000e+00> : vector<16x128xf32>
    %123 = tpu.matmul %120, %122, %cst_121 {dimension_numbers = #tpu.dot_dimension_numbers<[1], [0], [0], [1], [0, 0, 1, 1], [], []>} : vector<16x64xf32>, vector<64x128xf32>, vector<16x128xf32> -> vector<16x128xf32>
    %124 = arith.addf %117, %123 : vector<16x128xf32>
    %c0_122 = arith.constant 0 : index
    %c0_123 = arith.constant 0 : index
    %125 = vector.load %arg6[%c0_122, %c0_123] : memref<1x128xf32, #tpu.memory_space<vmem>>, vector<1x128xf32>
    %126 = vector.broadcast %125 : vector<1x128xf32> to vector<16x128xf32>
    %127 = arith.addf %124, %126 : vector<16x128xf32>
    %cst_124 = arith.constant 0.000000e+00 : f32
    %128 = vector.broadcast %cst_124 : f32 to vector<16x128xf32>
    %129 = arith.cmpf oge, %127, %128 : vector<16x128xf32>
    %cst_125 = arith.constant 0.00999999977 : f32
    %130 = vector.broadcast %cst_125 : f32 to vector<16x128xf32>
    %131 = arith.mulf %130, %127 : vector<16x128xf32>
    %132 = arith.select %129, %127, %131 : vector<16x128xi1>, vector<16x128xf32>
    %c0_126 = arith.constant 0 : index
    %c0_127 = arith.constant 0 : index
    %133 = vector.load %arg12[%c0_126, %c0_127] : memref<16x128xf32, #tpu.memory_space<vmem>>, vector<16x128xf32>
    tpu.vector_store %arg12[%c0_126, %c0_127], %132 {strides = array<i32>} : memref<16x128xf32, #tpu.memory_space<vmem>>, vector<16x128xf32>,
    %cst_128 = arith.constant 0.000000e+00 : f32
    %134 = vector.broadcast %cst_128 : f32 to vector<1x1024xf32>
    %c0_129 = arith.constant 0 : index
    %c0_130 = arith.constant 0 : index
    %135 = vector.load %arg12[%c0_129, %c0_130] : memref<16x128xf32, #tpu.memory_space<vmem>>, vector<1x128xf32>
    %c0_131 = arith.constant 0 : index
    %c0_132 = arith.constant 0 : index
    %c0_133 = arith.constant 0 : index
    %136 = vector.load %arg7[%c0_131, %c0_132, %c0_133] : memref<16x128x1024xbf16, #tpu.memory_space<vmem>>, vector<1x128x1024xbf16>
    %137 = vector.shape_cast %136 : vector<1x128x1024xbf16> to vector<128x1024xbf16>
    %cst_134 = arith.constant dense<0.000000e+00> : vector<1x1024xf32>
    %138 = tpu.matmul %135, %137, %cst_134 {dimension_numbers = #tpu.dot_dimension_numbers<[1], [0], [0], [1], [0, 0, 1, 1], [], []>} : vector<1x128xf32>, vector<128x1024xbf16>, vector<1x1024xf32> -> vector<1x1024xf32>
    %139 = arith.addf %134, %138 : vector<1x1024xf32>
    %c1_135 = arith.constant 1 : index
    %c0_136 = arith.constant 0 : index
    %140 = vector.load %arg12[%c1_135, %c0_136] : memref<16x128xf32, #tpu.memory_space<vmem>>, vector<1x128xf32>
    %c1_137 = arith.constant 1 : index
    %c0_138 = arith.constant 0 : index
    %c0_139 = arith.constant 0 : index
    %141 = vector.load %arg7[%c1_137, %c0_138, %c0_139] : memref<16x128x1024xbf16, #tpu.memory_space<vmem>>, vector<1x128x1024xbf16>
    %142 = vector.shape_cast %141 : vector<1x128x1024xbf16> to vector<128x1024xbf16>
    %cst_140 = arith.constant dense<0.000000e+00> : vector<1x1024xf32>
    %143 = tpu.matmul %140, %142, %cst_140 {dimension_numbers = #tpu.dot_dimension_numbers<[1], [0], [0], [1], [0, 0, 1, 1], [], []>} : vector<1x128xf32>, vector<128x1024xbf16>, vector<1x1024xf32> -> vector<1x1024xf32>
    %144 = arith.addf %139, %143 : vector<1x1024xf32>
    %c2_141 = arith.constant 2 : index
    %c0_142 = arith.constant 0 : index
    %145 = vector.load %arg12[%c2_141, %c0_142] : memref<16x128xf32, #tpu.memory_space<vmem>>, vector<1x128xf32>
    %c2_143 = arith.constant 2 : index
    %c0_144 = arith.constant 0 : index
    %c0_145 = arith.constant 0 : index
    %146 = vector.load %arg7[%c2_143, %c0_144, %c0_145] : memref<16x128x1024xbf16, #tpu.memory_space<vmem>>, vector<1x128x1024xbf16>
    %147 = vector.shape_cast %146 : vector<1x128x1024xbf16> to vector<128x1024xbf16>
    %cst_146 = arith.constant dense<0.000000e+00> : vector<1x1024xf32>
    %148 = tpu.matmul %145, %147, %cst_146 {dimension_numbers = #tpu.dot_dimension_numbers<[1], [0], [0], [1], [0, 0, 1, 1], [], []>} : vector<1x128xf32>, vector<128x1024xbf16>, vector<1x1024xf32> -> vector<1x1024xf32>
    %149 = arith.addf %144, %148 : vector<1x1024xf32>
    %c3_147 = arith.constant 3 : index
    %c0_148 = arith.constant 0 : index
    %150 = vector.load %arg12[%c3_147, %c0_148] : memref<16x128xf32, #tpu.memory_space<vmem>>, vector<1x128xf32>
    %c3_149 = arith.constant 3 : index
    %c0_150 = arith.constant 0 : index
    %c0_151 = arith.constant 0 : index
    %151 = vector.load %arg7[%c3_149, %c0_150, %c0_151] : memref<16x128x1024xbf16, #tpu.memory_space<vmem>>, vector<1x128x1024xbf16>
    %152 = vector.shape_cast %151 : vector<1x128x1024xbf16> to vector<128x1024xbf16>
    %cst_152 = arith.constant dense<0.000000e+00> : vector<1x1024xf32>
    %153 = tpu.matmul %150, %152, %cst_152 {dimension_numbers = #tpu.dot_dimension_numbers<[1], [0], [0], [1], [0, 0, 1, 1], [], []>} : vector<1x128xf32>, vector<128x1024xbf16>, vector<1x1024xf32> -> vector<1x1024xf32>
    %154 = arith.addf %149, %153 : vector<1x1024xf32>
    %c4_153 = arith.constant 4 : index
    %c0_154 = arith.constant 0 : index
    %155 = vector.load %arg12[%c4_153, %c0_154] : memref<16x128xf32, #tpu.memory_space<vmem>>, vector<1x128xf32>
    %c4_155 = arith.constant 4 : index
    %c0_156 = arith.constant 0 : index
    %c0_157 = arith.constant 0 : index
    %156 = vector.load %arg7[%c4_155, %c0_156, %c0_157] : memref<16x128x1024xbf16, #tpu.memory_space<vmem>>, vector<1x128x1024xbf16>
    %157 = vector.shape_cast %156 : vector<1x128x1024xbf16> to vector<128x1024xbf16>
    %cst_158 = arith.constant dense<0.000000e+00> : vector<1x1024xf32>
    %158 = tpu.matmul %155, %157, %cst_158 {dimension_numbers = #tpu.dot_dimension_numbers<[1], [0], [0], [1], [0, 0, 1, 1], [], []>} : vector<1x128xf32>, vector<128x1024xbf16>, vector<1x1024xf32> -> vector<1x1024xf32>
    %159 = arith.addf %154, %158 : vector<1x1024xf32>
    %c5_159 = arith.constant 5 : index
    %c0_160 = arith.constant 0 : index
    %160 = vector.load %arg12[%c5_159, %c0_160] : memref<16x128xf32, #tpu.memory_space<vmem>>, vector<1x128xf32>
    %c5_161 = arith.constant 5 : index
    %c0_162 = arith.constant 0 : index
    %c0_163 = arith.constant 0 : index
    %161 = vector.load %arg7[%c5_161, %c0_162, %c0_163] : memref<16x128x1024xbf16, #tpu.memory_space<vmem>>, vector<1x128x1024xbf16>
    %162 = vector.shape_cast %161 : vector<1x128x1024xbf16> to vector<128x1024xbf16>
    %cst_164 = arith.constant dense<0.000000e+00> : vector<1x1024xf32>
    %163 = tpu.matmul %160, %162, %cst_164 {dimension_numbers = #tpu.dot_dimension_numbers<[1], [0], [0], [1], [0, 0, 1, 1], [], []>} : vector<1x128xf32>, vector<128x1024xbf16>, vector<1x1024xf32> -> vector<1x1024xf32>
    %164 = arith.addf %159, %163 : vector<1x1024xf32>
    %c6_165 = arith.constant 6 : index
    %c0_166 = arith.constant 0 : index
    %165 = vector.load %arg12[%c6_165, %c0_166] : memref<16x128xf32, #tpu.memory_space<vmem>>, vector<1x128xf32>
    %c6_167 = arith.constant 6 : index
    %c0_168 = arith.constant 0 : index
    %c0_169 = arith.constant 0 : index
    %166 = vector.load %arg7[%c6_167, %c0_168, %c0_169] : memref<16x128x1024xbf16, #tpu.memory_space<vmem>>, vector<1x128x1024xbf16>
    %167 = vector.shape_cast %166 : vector<1x128x1024xbf16> to vector<128x1024xbf16>
    %cst_170 = arith.constant dense<0.000000e+00> : vector<1x1024xf32>
    %168 = tpu.matmul %165, %167, %cst_170 {dimension_numbers = #tpu.dot_dimension_numbers<[1], [0], [0], [1], [0, 0, 1, 1], [], []>} : vector<1x128xf32>, vector<128x1024xbf16>, vector<1x1024xf32> -> vector<1x1024xf32>
    %169 = arith.addf %164, %168 : vector<1x1024xf32>
    %c7_171 = arith.constant 7 : index
    %c0_172 = arith.constant 0 : index
    %170 = vector.load %arg12[%c7_171, %c0_172] : memref<16x128xf32, #tpu.memory_space<vmem>>, vector<1x128xf32>
    %c7_173 = arith.constant 7 : index
    %c0_174 = arith.constant 0 : index
    %c0_175 = arith.constant 0 : index
    %171 = vector.load %arg7[%c7_173, %c0_174, %c0_175] : memref<16x128x1024xbf16, #tpu.memory_space<vmem>>, vector<1x128x1024xbf16>
    %172 = vector.shape_cast %171 : vector<1x128x1024xbf16> to vector<128x1024xbf16>
    %cst_176 = arith.constant dense<0.000000e+00> : vector<1x1024xf32>
    %173 = tpu.matmul %170, %172, %cst_176 {dimension_numbers = #tpu.dot_dimension_numbers<[1], [0], [0], [1], [0, 0, 1, 1], [], []>} : vector<1x128xf32>, vector<128x1024xbf16>, vector<1x1024xf32> -> vector<1x1024xf32>
    %174 = arith.addf %169, %173 : vector<1x1024xf32>
    %c8_177 = arith.constant 8 : index
    %c0_178 = arith.constant 0 : index
    %175 = vector.load %arg12[%c8_177, %c0_178] : memref<16x128xf32, #tpu.memory_space<vmem>>, vector<1x128xf32>
    %c8_179 = arith.constant 8 : index
    %c0_180 = arith.constant 0 : index
    %c0_181 = arith.constant 0 : index
    %176 = vector.load %arg7[%c8_179, %c0_180, %c0_181] : memref<16x128x1024xbf16, #tpu.memory_space<vmem>>, vector<1x128x1024xbf16>
    %177 = vector.shape_cast %176 : vector<1x128x1024xbf16> to vector<128x1024xbf16>
    %cst_182 = arith.constant dense<0.000000e+00> : vector<1x1024xf32>
    %178 = tpu.matmul %175, %177, %cst_182 {dimension_numbers = #tpu.dot_dimension_numbers<[1], [0], [0], [1], [0, 0, 1, 1], [], []>} : vector<1x128xf32>, vector<128x1024xbf16>, vector<1x1024xf32> -> vector<1x1024xf32>
    %179 = arith.addf %174, %178 : vector<1x1024xf32>
    %c9_183 = arith.constant 9 : index
    %c0_184 = arith.constant 0 : index
    %180 = vector.load %arg12[%c9_183, %c0_184] : memref<16x128xf32, #tpu.memory_space<vmem>>, vector<1x128xf32>
    %c9_185 = arith.constant 9 : index
    %c0_186 = arith.constant 0 : index
    %c0_187 = arith.constant 0 : index
    %181 = vector.load %arg7[%c9_185, %c0_186, %c0_187] : memref<16x128x1024xbf16, #tpu.memory_space<vmem>>, vector<1x128x1024xbf16>
    %182 = vector.shape_cast %181 : vector<1x128x1024xbf16> to vector<128x1024xbf16>
    %cst_188 = arith.constant dense<0.000000e+00> : vector<1x1024xf32>
    %183 = tpu.matmul %180, %182, %cst_188 {dimension_numbers = #tpu.dot_dimension_numbers<[1], [0], [0], [1], [0, 0, 1, 1], [], []>} : vector<1x128xf32>, vector<128x1024xbf16>, vector<1x1024xf32> -> vector<1x1024xf32>
    %184 = arith.addf %179, %183 : vector<1x1024xf32>
    %c10_189 = arith.constant 10 : index
    %c0_190 = arith.constant 0 : index
    %185 = vector.load %arg12[%c10_189, %c0_190] : memref<16x128xf32, #tpu.memory_space<vmem>>, vector<1x128xf32>
    %c10_191 = arith.constant 10 : index
    %c0_192 = arith.constant 0 : index
    %c0_193 = arith.constant 0 : index
    %186 = vector.load %arg7[%c10_191, %c0_192, %c0_193] : memref<16x128x1024xbf16, #tpu.memory_space<vmem>>, vector<1x128x1024xbf16>
    %187 = vector.shape_cast %186 : vector<1x128x1024xbf16> to vector<128x1024xbf16>
    %cst_194 = arith.constant dense<0.000000e+00> : vector<1x1024xf32>
    %188 = tpu.matmul %185, %187, %cst_194 {dimension_numbers = #tpu.dot_dimension_numbers<[1], [0], [0], [1], [0, 0, 1, 1], [], []>} : vector<1x128xf32>, vector<128x1024xbf16>, vector<1x1024xf32> -> vector<1x1024xf32>
    %189 = arith.addf %184, %188 : vector<1x1024xf32>
    %c11_195 = arith.constant 11 : index
    %c0_196 = arith.constant 0 : index
    %190 = vector.load %arg12[%c11_195, %c0_196] : memref<16x128xf32, #tpu.memory_space<vmem>>, vector<1x128xf32>
    %c11_197 = arith.constant 11 : index
    %c0_198 = arith.constant 0 : index
    %c0_199 = arith.constant 0 : index
    %191 = vector.load %arg7[%c11_197, %c0_198, %c0_199] : memref<16x128x1024xbf16, #tpu.memory_space<vmem>>, vector<1x128x1024xbf16>
    %192 = vector.shape_cast %191 : vector<1x128x1024xbf16> to vector<128x1024xbf16>
    %cst_200 = arith.constant dense<0.000000e+00> : vector<1x1024xf32>
    %193 = tpu.matmul %190, %192, %cst_200 {dimension_numbers = #tpu.dot_dimension_numbers<[1], [0], [0], [1], [0, 0, 1, 1], [], []>} : vector<1x128xf32>, vector<128x1024xbf16>, vector<1x1024xf32> -> vector<1x1024xf32>
    %194 = arith.addf %189, %193 : vector<1x1024xf32>
    %c12_201 = arith.constant 12 : index
    %c0_202 = arith.constant 0 : index
    %195 = vector.load %arg12[%c12_201, %c0_202] : memref<16x128xf32, #tpu.memory_space<vmem>>, vector<1x128xf32>
    %c12_203 = arith.constant 12 : index
    %c0_204 = arith.constant 0 : index
    %c0_205 = arith.constant 0 : index
    %196 = vector.load %arg7[%c12_203, %c0_204, %c0_205] : memref<16x128x1024xbf16, #tpu.memory_space<vmem>>, vector<1x128x1024xbf16>
    %197 = vector.shape_cast %196 : vector<1x128x1024xbf16> to vector<128x1024xbf16>
    %cst_206 = arith.constant dense<0.000000e+00> : vector<1x1024xf32>
    %198 = tpu.matmul %195, %197, %cst_206 {dimension_numbers = #tpu.dot_dimension_numbers<[1], [0], [0], [1], [0, 0, 1, 1], [], []>} : vector<1x128xf32>, vector<128x1024xbf16>, vector<1x1024xf32> -> vector<1x1024xf32>
    %199 = arith.addf %194, %198 : vector<1x1024xf32>
    %c13_207 = arith.constant 13 : index
    %c0_208 = arith.constant 0 : index
    %200 = vector.load %arg12[%c13_207, %c0_208] : memref<16x128xf32, #tpu.memory_space<vmem>>, vector<1x128xf32>
    %c13_209 = arith.constant 13 : index
    %c0_210 = arith.constant 0 : index
    %c0_211 = arith.constant 0 : index
    %201 = vector.load %arg7[%c13_209, %c0_210, %c0_211] : memref<16x128x1024xbf16, #tpu.memory_space<vmem>>, vector<1x128x1024xbf16>
    %202 = vector.shape_cast %201 : vector<1x128x1024xbf16> to vector<128x1024xbf16>
    %cst_212 = arith.constant dense<0.000000e+00> : vector<1x1024xf32>
    %203 = tpu.matmul %200, %202, %cst_212 {dimension_numbers = #tpu.dot_dimension_numbers<[1], [0], [0], [1], [0, 0, 1, 1], [], []>} : vector<1x128xf32>, vector<128x1024xbf16>, vector<1x1024xf32> -> vector<1x1024xf32>
    %204 = arith.addf %199, %203 : vector<1x1024xf32>
    %c14_213 = arith.constant 14 : index
    %c0_214 = arith.constant 0 : index
    %205 = vector.load %arg12[%c14_213, %c0_214] : memref<16x128xf32, #tpu.memory_space<vmem>>, vector<1x128xf32>
    %c14_215 = arith.constant 14 : index
    %c0_216 = arith.constant 0 : index
    %c0_217 = arith.constant 0 : index
    %206 = vector.load %arg7[%c14_215, %c0_216, %c0_217] : memref<16x128x1024xbf16, #tpu.memory_space<vmem>>, vector<1x128x1024xbf16>
    %207 = vector.shape_cast %206 : vector<1x128x1024xbf16> to vector<128x1024xbf16>
    %cst_218 = arith.constant dense<0.000000e+00> : vector<1x1024xf32>
    %208 = tpu.matmul %205, %207, %cst_218 {dimension_numbers = #tpu.dot_dimension_numbers<[1], [0], [0], [1], [0, 0, 1, 1], [], []>} : vector<1x128xf32>, vector<128x1024xbf16>, vector<1x1024xf32> -> vector<1x1024xf32>
    %209 = arith.addf %204, %208 : vector<1x1024xf32>
    %c15_219 = arith.constant 15 : index
    %c0_220 = arith.constant 0 : index
    %210 = vector.load %arg12[%c15_219, %c0_220] : memref<16x128xf32, #tpu.memory_space<vmem>>, vector<1x128xf32>
    %c15_221 = arith.constant 15 : index
    %c0_222 = arith.constant 0 : index
    %c0_223 = arith.constant 0 : index
    %211 = vector.load %arg7[%c15_221, %c0_222, %c0_223] : memref<16x128x1024xbf16, #tpu.memory_space<vmem>>, vector<1x128x1024xbf16>
    %212 = vector.shape_cast %211 : vector<1x128x1024xbf16> to vector<128x1024xbf16>
    %cst_224 = arith.constant dense<0.000000e+00> : vector<1x1024xf32>
    %213 = tpu.matmul %210, %212, %cst_224 {dimension_numbers = #tpu.dot_dimension_numbers<[1], [0], [0], [1], [0, 0, 1, 1], [], []>} : vector<1x128xf32>, vector<128x1024xbf16>, vector<1x1024xf32> -> vector<1x1024xf32>
    %214 = arith.addf %209, %213 : vector<1x1024xf32>
    %c0_225 = arith.constant 0 : index
    %c0_226 = arith.constant 0 : index
    %215 = vector.load %arg8[%c0_225, %c0_226] : memref<1x1024xf32, #tpu.memory_space<vmem>>, vector<1x1024xf32>
    %216 = arith.addf %214, %215 : vector<1x1024xf32>
    %cst_227 = arith.constant 0.000000e+00 : f32
    %217 = vector.broadcast %cst_227 : f32 to vector<1x1024xf32>
    %218 = arith.cmpf oge, %216, %217 : vector<1x1024xf32>
    %cst_228 = arith.constant 0.00999999977 : f32
    %219 = vector.broadcast %cst_228 : f32 to vector<1x1024xf32>
    %220 = arith.mulf %219, %216 : vector<1x1024xf32>
    %221 = arith.select %218, %216, %220 : vector<1x1024xi1>, vector<1x1024xf32>
    %c0_229 = arith.constant 0 : index
    %c0_230 = arith.constant 0 : index
    %222 = vector.load %arg9[%c0_229, %c0_230] : memref<1024x128xf32, #tpu.memory_space<vmem>>, vector<1024x128xf32>
    %cst_231 = arith.constant dense<0.000000e+00> : vector<1x128xf32>
    %223 = tpu.matmul %221, %222, %cst_231 {dimension_numbers = #tpu.dot_dimension_numbers<[1], [0], [0], [1], [0, 0, 1, 1], [], []>} : vector<1x1024xf32>, vector<1024x128xf32>, vector<1x128xf32> -> vector<1x128xf32>
    %c0_232 = arith.constant 0 : index
    %c0_233 = arith.constant 0 : index
    %224 = vector.load %arg10[%c0_232, %c0_233] : memref<1x128xf32, #tpu.memory_space<vmem>>, vector<1x128xf32>
    %225 = arith.addf %223, %224 : vector<1x128xf32>
    %c0_234 = arith.constant 0 : index
    %c0_235 = arith.constant 0 : index
    %c0_236 = arith.constant 0 : index
    %226 = vector.load %arg11[%c0_234, %c0_235, %c0_236] : memref<1x1x128xf32, #tpu.memory_space<vmem>>, vector<1x1x128xf32>
    %227 = vector.shape_cast %226 : vector<1x1x128xf32> to vector<1x128xf32>
    %228 = vector.shape_cast %225 : vector<1x128xf32> to vector<1x1x128xf32>
    tpu.vector_store %arg11[%c0_234, %c0_235, %c0_236], %228 {strides = array<i32>} : memref<1x1x128xf32, #tpu.memory_space<vmem>>, vector<1x1x128xf32>,
    return
  }
  func.func @transform_0(%arg0: i32) -> (i32, i32, i32) {
    %c0_i32 = arith.constant 0 : i32
    %c0_i32_0 = arith.constant 0 : i32
    %c0_i32_1 = arith.constant 0 : i32
    return %arg0, %c0_i32, %c0_i32_0 : i32, i32, i32
  }
  func.func @transform_1(%arg0: i32) -> (i32, i32) {
    %c0_i32 = arith.constant 0 : i32
    %c0_i32_0 = arith.constant 0 : i32
    %c0_i32_1 = arith.constant 0 : i32
    return %c0_i32, %c0_i32_0 : i32, i32
  }
  func.func @transform_2(%arg0: i32) -> (i32, i32) {
    %c0_i32 = arith.constant 0 : i32
    %c0_i32_0 = arith.constant 0 : i32
    %c0_i32_1 = arith.constant 0 : i32
    return %c0_i32, %c0_i32_0 : i32, i32
  }
  func.func @transform_3(%arg0: i32) -> (i32, i32, i32) {
    %c0_i32 = arith.constant 0 : i32
    %c0_i32_0 = arith.constant 0 : i32
    %c0_i32_1 = arith.constant 0 : i32
    %c0_i32_2 = arith.constant 0 : i32
    return %c0_i32, %c0_i32_0, %c0_i32_1 : i32, i32, i32
  }
  func.func @transform_4(%arg0: i32) -> (i32, i32, i32) {
    %c0_i32 = arith.constant 0 : i32
    %c0_i32_0 = arith.constant 0 : i32
    %c0_i32_1 = arith.constant 0 : i32
    %c0_i32_2 = arith.constant 0 : i32
    return %c0_i32, %c0_i32_0, %c0_i32_1 : i32, i32, i32
  }
  func.func @transform_5(%arg0: i32) -> (i32, i32) {
    %c0_i32 = arith.constant 0 : i32
    %c0_i32_0 = arith.constant 0 : i32
    %c0_i32_1 = arith.constant 0 : i32
    return %c0_i32, %c0_i32_0 : i32, i32
  }
  func.func @transform_6(%arg0: i32) -> (i32, i32, i32) {
    %c0_i32 = arith.constant 0 : i32
    %c0_i32_0 = arith.constant 0 : i32
    %c0_i32_1 = arith.constant 0 : i32
    %c0_i32_2 = arith.constant 0 : i32
    return %c0_i32, %c0_i32_0, %c0_i32_1 : i32, i32, i32
  }
  func.func @transform_7(%arg0: i32) -> (i32, i32) {
    %c0_i32 = arith.constant 0 : i32
    %c0_i32_0 = arith.constant 0 : i32
    %c0_i32_1 = arith.constant 0 : i32
    return %c0_i32, %c0_i32_0 : i32, i32
  }
  func.func @transform_8(%arg0: i32) -> (i32, i32) {
    %c0_i32 = arith.constant 0 : i32
    %c0_i32_0 = arith.constant 0 : i32
    %c0_i32_1 = arith.constant 0 : i32
    return %c0_i32, %c0_i32_0 : i32, i32
  }
  func.func @transform_9(%arg0: i32) -> (i32, i32) {
    %c0_i32 = arith.constant 0 : i32
    %c0_i32_0 = arith.constant 0 : i32
    %c0_i32_1 = arith.constant 0 : i32
    return %c0_i32, %c0_i32_0 : i32, i32
  }
  func.func @transform_10(%arg0: i32) -> (i32, i32, i32) {
    %c0_i32 = arith.constant 0 : i32
    %c0_i32_0 = arith.constant 0 : i32
    %c0_i32_1 = arith.constant 0 : i32
    return %arg0, %c0_i32, %c0_i32_0 : i32, i32, i32
  }
}

</mosaic_0001>

<bundles_post_ra>
// kernel: encoder_forward.1
= control target key start
LH: loop header
LB: loop body
LE: loop exit
PB: predicated region body
PF: predicated region fallthrough
CT: control target
= control target key end

     0   :  { %15 = vsyncpa [#allocation4], 0  ;;  %s17342_s0 = inlined_call_operand.vmem [shape: f32[2,64,64], index: 0, kind: input, shape index: {}]   ;;  %s17343_s1 = inlined_call_operand.hbm [shape: f32[64,64], index: 1, kind: input, shape index: {}]   ;;  %s17344_s2 = inlined_call_operand.hbm [shape: f32[1,64], index: 2, kind: input, shape index: {}]   ;;  %s17345_s3 = inlined_call_operand.hbm [shape: bf16[16,16,64], index: 3, kind: input, shape index: {}]   ;;  %s17346_s4 = inlined_call_operand.vmem [shape: f32[16,64,128], index: 4, kind: input, shape index: {}]   ;;  %s17347_s5 = inlined_call_operand.hbm [shape: f32[1,128], index: 5, kind: input, shape index: {}]   ;;  %s17348_s6 = inlined_call_operand.hbm [shape: bf16[16,128,1024], index: 6, kind: input, shape index: {}]   ;;  %s17349_s7 = inlined_call_operand.hbm [shape: f32[1,1024], index: 7, kind: input, shape index: {}]   ;;  %s17350_s8 = inlined_call_operand.vmem [shape: f32[1024,128], index: 8, kind: input, shape index: {}]   ;;  %s17351_s9 = inlined_call_operand.hbm [shape: f32[1,128], index: 9, kind: input, shape index: {}]   ;;  %s17352_s10 = inlined_call_operand.vmem [shape: f32[2,1,128], index: 10, kind: output, shape index: {}]  }
   0x1   :  { %16 = vsyncpa [#allocation6], 0 }
   0x2   :  { %17 = vsyncpa [#allocation9], 0 }
   0x3   :  { %18 = vsyncpa [#allocation12], 0  ;;  %s15571_s13 = smov 0  }
   0x4 LB: > { %s15501_s14 = smov [#allocation5]   ;;  %s15577_s16 = sadd.s32 4294967295, %s15499_s13   ;;  %s15499_s13 = sphi %s15571_s13, %s24_s13  }
   0x5   : > { %s296_s15 = sshll.u32 %s15501_s14, 4  ;;  %p12840_p0 = scmp.ge.s32.totalorder %s15499_s13, 1  ;;  %s297_s15 = int_to_ptr.vmem [resolvable:$true] %s296_s15 }
   0x6   : > { %p270_p1 = scmp.lt.s32.totalorder %s15499_s13, 3  ;;  %p15242_p2 = scmp.eq.s32.totalorder %s15577_s16, 0 }
   0x7   : > { %s15502_s18 = smov [#allocation8]   ;;  %s15503_s20 = smov [#allocation11]  }
   0x8   : > { %p15582_p3 = pnand %p12840_p0, %p270_p1  ;;  %s323_s19 = sshll.u32 %s15502_s18, 4  ;;  %s15588_s19 = int_to_ptr.vmem [resolvable:$true] %s323_s19 }
   0x9   : > { %s347_s21 = sshll.u32 %s15503_s20, 4  ;;  %s15504_s23 = smov [#allocation3]   ;;  %s15596_s21 = int_to_ptr.vmem [resolvable:$true] %s347_s21 }
   0xa   : > { %p15220_p4 = pneg %p15582_p3  ;;  %s282_s24 = sshll.u32 %s15504_s23, 4  ;;  %s15598_s24 = int_to_ptr.vmem [resolvable:$true] %s282_s24 }
   0xb   : > { %s15306_s26 = scalar_lea.vmem %s297_s15, 16  ;;  %s15313_s27 = scalar_lea.vmem %s297_s15, 32 }
   0xc   : > { %p15592_p5 = pnand %p15242_p2, %p15220_p4  ;;  %p15307_p7 = scmp.ne.s32.totalorder %s297_s15, %s15306_s26 }
   0xd   : > { %p15314_p10 = scmp.lt.s32.totalorder %s297_s15, %s297_s15  ;;  %p15315_p11 = scmp.lt.s32.totalorder %s15313_s27, %s15306_s26 }
   0xe   : > { %p15602_p6 = pneg %p15592_p5 }
   0xf   : > { %p15316_p12 = por %p15315_p11, %p15314_p10 }
  0x10   : > { %p15309_p8 = pnand %p15307_p7, %p15602_p6 }
  0x12   : > { %p15310_p9 = pneg %p15309_p8 }
  0x14   : > { %p15317_p13 = pnand %p15316_p12, %p15310_p9 }
  0x16   : > { %15320 = shalt.err (!%p15317_p13)
}
  0x17   : > { %15226 = dma.hbm_to_vmem [thread:$0]  (!%p15592_p5), %s17344_s2, 16, %s297_s15, [#allocation6]  }
  0x18   : > { %s15332_s30 = scalar_lea.vmem %s15588_s19, 16  ;;  %s15339_s11 = scalar_lea.vmem %s15588_s19, 32 }
  0x19   : > { %p15333_p0 = scmp.ne.s32.totalorder %s15588_s19, %s15332_s30  ;;  %p15340_p7 = scmp.lt.s32.totalorder %s15588_s19, %s15588_s19 }
  0x1a   : > { %p15341_p8 = scmp.lt.s32.totalorder %s15339_s11, %s15332_s30 }
  0x1b   : > { %p15335_p1 = pnand %p15333_p0, %p15602_p6 }
  0x1c   : > { %p15342_p9 = por %p15341_p8, %p15340_p7 }
  0x1d   : > { %p15336_p4 = pneg %p15335_p1 }
  0x1f   : > { %p15343_p10 = pnand %p15342_p9, %p15336_p4 }
  0x21   : > { %15346 = shalt.err (!%p15343_p10)
}
  0x22   : > { %15232 = dma.hbm_to_vmem [thread:$0]  (!%p15592_p5), %s17347_s5, 16, %s15588_s19, [#allocation9]  }
  0x23   : > { %s15358_s15 = scalar_lea.vmem %s15596_s21, 128  ;;  %p15366_p0 = scmp.lt.s32.totalorder %s15596_s21, %s15596_s21 }
  0x24   : > { %p15359_p11 = scmp.ne.s32.totalorder %s15596_s21, %s15358_s15  ;;  %p15367_p1 = scmp.lt.s32.totalorder %s15358_s15, %s15358_s15 }
  0x26   : > { %p15361_p12 = pnand %p15359_p11, %p15602_p6  ;;  %p15368_p4 = por %p15367_p1, %p15366_p0 }
  0x28   : > { %p15362_p13 = pneg %p15361_p12 }
  0x2a   : > { %p15369_p7 = pnand %p15368_p4, %p15362_p13 }
  0x2c   : > { %15372 = shalt.err (!%p15369_p7)
}
  0x2d   : > { %15238 = dma.hbm_to_vmem [thread:$0]  (!%p15592_p5), %s17349_s7, 128, %s15596_s21, [#allocation12]  }
  0x2e   : > { %s15384_s19 = scalar_lea.vmem %s15598_s24, 1024  ;;  %p15392_p11 = scmp.lt.s32.totalorder %s15598_s24, %s15598_s24 }
  0x2f   : > { %p15385_p8 = scmp.ne.s32.totalorder %s15598_s24, %s15384_s19  ;;  %p15393_p12 = scmp.lt.s32.totalorder %s15384_s19, %s15384_s19 }
  0x31   : > { %p15387_p9 = pnand %p15385_p8, %p15602_p6  ;;  %p15394_p13 = por %p15393_p12, %p15392_p11 }
  0x33   : > { %p15388_p10 = pneg %p15387_p9 }
  0x35   : > { %p15395_p0 = pnand %p15394_p13, %p15388_p10 }
  0x37   : > { %15398 = shalt.err (!%p15395_p0)
}
  0x38   : > { %s15505_s23 = smov 128   ;;  %s15506_s26 = smov 8  }
  0x39   : > { %15223 = dma.hbm_to_vmem [thread:$0]  (!%p15592_p5), %s17343_s1, 1024, %s15598_s24, [#allocation4], %s15505_s23, %s15505_s23, %s15506_s26  }
  0x3a   : > { %s15507_s21 = smov [#allocation7]  }
  0x3b   : > { %s306_s29 = sshll.u32 %s15507_s21, 4  ;;  %s307_s29 = int_to_ptr.vmem [resolvable:$true] %s306_s29 }
  0x3c   : > { %s15410_s30 = scalar_lea.vmem %s307_s29, 2048  ;;  %p15418_p8 = scmp.lt.s32.totalorder %s307_s29, %s307_s29 }
  0x3d   : > { %p15411_p1 = scmp.ne.s32.totalorder %s307_s29, %s15410_s30  ;;  %p15419_p9 = scmp.lt.s32.totalorder %s15410_s30, %s15410_s30 }
  0x3f   : > { %p15413_p4 = pnand %p15411_p1, %p15602_p6  ;;  %p15420_p10 = por %p15419_p9, %p15418_p8 }
  0x41   : > { %p15414_p7 = pneg %p15413_p4 }
  0x43   : > { %p15421_p11 = pnand %p15420_p10, %p15414_p7 }
  0x45   : > { %15424 = shalt.err (!%p15421_p11)
}
  0x46   : > { %s15508_s11 = smov 64   ;;  %s15509_s12 = smov 4  }
  0x47   : > { %15229 = dma.hbm_to_vmem [thread:$0]  (!%p15592_p5), %s17345_s3, 2048, %s307_s29, [#allocation6], %s15508_s11, %s15508_s11, %s15509_s12  }
  0x48   : > { %s15510_s15 = smov [#allocation10]  }
  0x49   : > { %s333_s18 = sshll.u32 %s15510_s15, 4  ;;  %s334_s18 = int_to_ptr.vmem [resolvable:$true] %s333_s18 }
  0x4a   : > { %s15436_s20 = scalar_lea.vmem %s334_s18, 131072  ;;  %p15444_p1 = scmp.lt.s32.totalorder %s334_s18, %s334_s18 }
  0x4b   : > { %p15437_p12 = scmp.ne.s32.totalorder %s334_s18, %s15436_s20  ;;  %p15445_p4 = scmp.lt.s32.totalorder %s15436_s20, %s15436_s20 }
  0x4d   : > { %p15439_p13 = pnand %p15437_p12, %p15602_p6  ;;  %p15446_p7 = por %p15445_p4, %p15444_p1 }
  0x4f   : > { %p15440_p0 = pneg %p15439_p13 }
  0x51   : > { %p15447_p8 = pnand %p15446_p7, %p15440_p0 }
  0x53   : > { %15450 = shalt.err (!%p15447_p8)
}
  0x54   : > { %s15511_s19 = smov 512   ;;  %s15512_s23 = smov 32  }
  0x55   : > { %15235 = dma.hbm_to_vmem [thread:$0]  (!%p15592_p5), %s17348_s6, 131072, %s334_s18, [#allocation9], %s15511_s19, %s15511_s19, %s15512_s23  }
  0x56   : > { %s15513_s28 = smov [#allocation13]  }
  0x57   : > { %s361_s21 = sshll.u32 %s15513_s28, 4  ;;  %s362_s21 = int_to_ptr.vmem [resolvable:$true] %s361_s21 }
  0x58   : > { %s15462_s29 = scalar_lea.vmem %s362_s21, 16  ;;  %s15469_s30 = scalar_lea.vmem %s362_s21, 32 }
  0x59   : > { %p15463_p9 = scmp.ne.s32.totalorder %s362_s21, %s15462_s29  ;;  %p15470_p12 = scmp.lt.s32.totalorder %s362_s21, %s362_s21 }
  0x5a   : > { %p15471_p13 = scmp.lt.s32.totalorder %s15469_s30, %s15462_s29 }
  0x5b   : > { %p15465_p10 = pnand %p15463_p9, %p15602_p6 }
  0x5c   : > { %p15472_p0 = por %p15471_p13, %p15470_p12 }
  0x5d   : > { %p15466_p11 = pneg %p15465_p10 }
  0x5f   : > { %p15473_p1 = pnand %p15472_p0, %p15466_p11 }
  0x61   : > { %15476 = shalt.err (!%p15473_p1)
}
  0x62   : > { %15241 = dma.hbm_to_vmem [thread:$0]  (!%p15592_p5), %s17351_s9, 16, %s362_s21, [#allocation12]  }
  0x63   : > { %382 = sbr.rel (%p15582_p3) target bundleno = 2579 (0xa13), region = 60 }
  0x68   : > { %15482 = dma.done.wait (%p15242_p2), [#allocation4], 1024  }
  0x69   : > { %15484 = vsyncadd (%p15242_p2), [#allocation4], 4294966272 }
  0x6a   : > { %15486 = dma.done.wait (%p15242_p2), [#allocation6], 2064  }
  0x6b   : > { %15488 = vsyncadd (%p15242_p2), [#allocation6], 4294965232 }
  0x6c   : > { %15490 = dma.done.wait (%p15242_p2), [#allocation9], 131088  }
  0x6d   : > { %15492 = vsyncadd (%p15242_p2), [#allocation9], 4294836208 }
  0x6e   : > { %15494 = dma.done.wait (%p15242_p2), [#allocation12], 144  }
  0x6f   : > { %15496 = vsyncadd (%p15242_p2), [#allocation12], 4294967152  ;;  %p442_p3 = scmp.lt.s32.totalorder %s15577_s16, 1  ;;  %v466_v0 = vld [vmem:[#allocation3 + $0x38] sm:$0xff]  ;;  %v465_v1 = vld [vmem:[#allocation3 + $0x30] sm:$0xff]  ;;  %vm474_vm0 = vcmask 523264  }
  0x70   : > { %14540 = vmatprep.subr.mxu0 %v466_v0  ;;  %v464_v2 = vld [vmem:[#allocation3 + $0x28] sm:$0xff]  ;;  %v463_v4 = vld [vmem:[#allocation3 + $0x20] sm:$0xff]  ;;  %v462_v5 = vld [vmem:[#allocation3 + $0x18] sm:$0xff]  ;;  %v15514_v16 = vmov 0.0   ;;  %vm15515_vm1 = vmmov 0  }
  0x71   : > { %s17359_s16 = smov (!%p442_p3, %s15577_s16), 1  ;;  %14541 = vmatpush3.msra.mxu0 %v466_v0  ;;  %v461_v6 = vld [vmem:[#allocation3 + $0x10] sm:$0xff]  ;;  %v460_v7 = vld [vmem:[#allocation3 + $0x8] sm:$0xff]  ;;  %v459_v8 = vld [vmem:[#allocation3] sm:$0xff]  ;;  %14568 = vmatprep.subr.mxu1 %v15514_v16 }
  0x72   : > { %s14079_s17 = sshll.u32 %s17359_s16, 6  ;;  %14542 = vmatprep.subr.mxu0 %v465_v1  ;;  %14584 = vmatprep.mubr.msk.bf16.mxu1 %vm15515_vm1, %v15514_v16  ;;  %v12859_v23 = vld [vmem:[#allocation5] ss:$0 sm:$0xff]  ;;  %v15279_v49 = vld [vmem:[#allocation7] sm:$0xff]   ;;  %v15280_v50 = vld [vmem:[#allocation7 + $0x8] sm:$0xff]   ;;  %s449_s29 = scalar_lea.vmem %s17352_s10, %s17359_s16 }
  0x73   : > { %s15697_s14 = scalar_lea.vmem %s17342_s0, %s14079_s17  ;;  %14543 = vmatpush3.msra.mxu0 %v465_v1  ;;  %v12879_v52 = vld [vmem:[%s17346_s4 + $0x78] sm:$0xff]  ;;  %v12878_v54 = vld [vmem:[%s17346_s4 + $0x70] sm:$0xff]  ;;  %v12877_v56 = vld [vmem:[%s17346_s4 + $0x68] sm:$0xff] }
  0x74   : > { %v451_v3 = vld [vmem:[%s15697_s14] sm:$0xff]  ;;  %14544 = vmatprep.subr.mxu0 %v464_v2  ;;  %v452_v9 = vld [vmem:[%s15697_s14 + $0x8] sm:$0xff]  ;;  %v453_v10 = vld [vmem:[%s15697_s14 + $0x10] sm:$0xff] }
  0x75   : > { %14556 = vmatprep.mubr.msk.f32.mxu0 %vm474_vm0, %v451_v3  ;;  %14545 = vmatpush3.msra.mxu0 %v464_v2  ;;  %v454_v11 = vld [vmem:[%s15697_s14 + $0x18] sm:$0xff]  ;;  %v455_v12 = vld [vmem:[%s15697_s14 + $0x20] sm:$0xff]  ;;  %v456_v13 = vld [vmem:[%s15697_s14 + $0x28] sm:$0xff] }
  0x76   : > { %14546 = vmatprep.subr.mxu0 %v463_v4  ;;  %v457_v14 = vld [vmem:[%s15697_s14 + $0x30] sm:$0xff]  ;;  %v458_v15 = vld [vmem:[%s15697_s14 + $0x38] sm:$0xff]  ;;  %v716_v57 = vld [vmem:[%s17346_s4 + $0x28] sm:$0xff] }
  0x77   : > { %14547 = vmatpush3.msra.mxu0 %v463_v4  ;;  %v718_v53 = vld [vmem:[%s17346_s4 + $0x38] sm:$0xff]  ;;  %v717_v55 = vld [vmem:[%s17346_s4 + $0x30] sm:$0xff]  ;;  %v12876_v58 = vld [vmem:[%s17346_s4 + $0x60] sm:$0xff] }
  0x78   : > { %14548 = vmatprep.subr.mxu0 %v462_v5  ;;  %v715_v59 = vld [vmem:[%s17346_s4 + $0x20] sm:$0xff]  ;;  %v12875_v60 = vld [vmem:[%s17346_s4 + $0x58] sm:$0xff]  ;;  %v12874_v62 = vld [vmem:[%s17346_s4 + $0x50] sm:$0xff] }
  0x79   : > { %14549 = vmatpush3.msra.mxu0 %v462_v5  ;;  %v714_v61 = vld [vmem:[%s17346_s4 + $0x18] sm:$0xff]  ;;  %v713_v63 = vld [vmem:[%s17346_s4 + $0x10] sm:$0xff]  ;;  %v12873_v0 = vld [vmem:[%s17346_s4 + $0x48] sm:$0xff] }
  0x7a   : > { %14550 = vmatprep.subr.mxu0 %v461_v6  ;;  %v712_v1 = vld [vmem:[%s17346_s4 + $0x8] sm:$0xff]  ;;  %v12872_v2 = vld [vmem:[%s17346_s4 + $0x40] sm:$0xff] }
  0x7b   : > { %14551 = vmatpush3.msra.mxu0 %v461_v6  ;;  %v711_v3 = vld [vmem:[%s17346_s4] sm:$0xff] }
  0x7c   : > { %14552 = vmatprep.subr.mxu0 %v460_v7 }
  0x7d   : > { %14553 = vmatpush3.msra.mxu0 %v460_v7 }
  0x7e   : > { %14554 = vmatprep.subr.mxu0 %v459_v8 }
  0x7f   : > { %14555 = vmatpush3.msra.mxu0 %v459_v8 }
  0x80   : > { %14557 = vmatmul.mubr.msk.f32.vlgmr.msra.gmra.mxu0 %vm474_vm0, %v452_v9  ;;  %14588 = vmatprep.subr.mxu0 %v15514_v16 }
  0x81   : > { %14559 = vmatprep.mubr.msk.f32.mxu0 %vm474_vm0, %v453_v10 }
  0x84   : > { %14560 = vmatmul.mubr.msk.f32.gmra.mxu0 %vm474_vm0, %v454_v11 }
  0x85   : > { %14562 = vmatprep.mubr.msk.f32.mxu0 %vm474_vm0, %v455_v12  ;;  %v15281_v12 = vld [vmem:[#allocation7 + $0x10] sm:$0xff]  }
  0x88   : > { %14563 = vmatmul.mubr.msk.f32.gmra.mxu0 %vm474_vm0, %v456_v13  ;;  %v15282_v13 = vld [vmem:[#allocation7 + $0x18] sm:$0xff]  }
  0x89   : > { %14565 = vmatprep.mubr.msk.f32.mxu0 %vm474_vm0, %v457_v14  ;;  %v15283_v14 = vld [vmem:[#allocation7 + $0x20] sm:$0xff]  }
  0x8c   : > { %14566 = vmatmul.mubr.msk.f32.gmra.mxu0 %vm474_vm0, %v458_v15  ;;  %v15284_v15 = vld [vmem:[#allocation7 + $0x28] sm:$0xff]  }
  0x8d   : > { %14604 = vmatprep.mubr.msk.bf16.mxu0 %vm15515_vm1, %v15514_v16 }
 0x140   : > { %v14558_v17 = vpop.f32.mrf.mxu0 }
 0x141   : > { %v571_v38 = vadd.f32 %v14558_v17, %v12859_v23  ;;  %v12893_v17 = vld [vmem:[%s17346_s4 + $0xb8] sm:$0xff] }
 0x142   : > { %v565_v18 = vpop.f32.mrf.mxu0 }
 0x143   : > { %v566_v41 = vadd.f32 %v12859_v23, %v565_v18  ;;  %v613_v44 = vmul.f32 0.01, %v571_v38  ;;  %vm605_vm8 = vcmp.ge.f32.partialorder %v571_v38, 0.0  ;;  %v12892_v18 = vld [vmem:[%s17346_s4 + $0xb0] sm:$0xff] }
 0x144   : > { %v14561_v19 = vpop.f32.mrf.mxu0 }
 0x145   : > { %v581_v31 = vadd.f32 %v14561_v19, %v12859_v23  ;;  %v612_v46 = vmul.f32 0.01, %v566_v41  ;;  %vm604_vm9 = vcmp.ge.f32.partialorder %v566_v41, 0.0  ;;  %v15755_v48 = vsel %vm605_vm8, %v571_v38, %v613_v44  ;;  %v12891_v19 = vld [vmem:[%s17346_s4 + $0xa8] sm:$0xff]  ;;  %v12904_v44 = vld [vmem:[%s17346_s4 + $0xf0] sm:$0xff] }
 0x146   : > { %v575_v20 = vpop.f32.mrf.mxu0 }
 0x147   : > { %v576_v35 = vadd.f32 %v12859_v23, %v575_v20  ;;  %v615_v39 = vmul.f32 0.01, %v581_v31  ;;  %vm607_vm6 = vcmp.ge.f32.partialorder %v581_v31, 0.0  ;;  %v15761_v51 = vsel %vm604_vm9, %v566_v41, %v612_v46  ;;  %v12890_v20 = vld [vmem:[%s17346_s4 + $0xa0] sm:$0xff] }
 0x148   : > { %v14564_v21 = vpop.f32.mrf.mxu0  ;;  %v12902_v46 = vld [vmem:[%s17346_s4 + $0xe0] sm:$0xff] }
 0x149   : > { %v591_v25 = vadd.f32 %v14564_v21, %v12859_v23  ;;  %v614_v42 = vmul.f32 0.01, %v576_v35  ;;  %vm606_vm7 = vcmp.ge.f32.partialorder %v576_v35, 0.0  ;;  %v15743_v45 = vsel %vm607_vm6, %v581_v31, %v615_v39  ;;  %v15285_v21 = vld [vmem:[#allocation7 + $0x30] sm:$0xff]   ;;  %v15290_v31 = vld [vmem:[#allocation7 + $0x58] sm:$0xff]  }
 0x14a   : > { %v585_v22 = vpop.f32.mrf.mxu0 }
 0x14b   : > { %v586_v28 = vadd.f32 %v12859_v23, %v585_v22  ;;  %v617_v32 = vmul.f32 0.01, %v591_v25  ;;  %vm609_vm4 = vcmp.ge.f32.partialorder %v591_v25, 0.0  ;;  %v15749_v47 = vsel %vm606_vm7, %v576_v35, %v614_v42  ;;  %v12889_v22 = vld [vmem:[%s17346_s4 + $0x98] sm:$0xff] }
 0x14c   : > { %v14567_v24 = vpop.f32.mrf.mxu0 }
 0x14d   : > { %v601_v26 = vadd.f32 %v14567_v24, %v12859_v23  ;;  %v616_v36 = vmul.f32 0.01, %v586_v28  ;;  %vm608_vm5 = vcmp.ge.f32.partialorder %v586_v28, 0.0  ;;  %v15731_v40 = vsel %vm609_vm4, %v591_v25, %v617_v32  ;;  %v12887_v24 = vld [vmem:[%s17346_s4 + $0x88] sm:$0xff]  ;;  %v12886_v25 = vld [vmem:[%s17346_s4 + $0x80] sm:$0xff]  ;;  %v15291_v32 = vld [vmem:[#allocation7 + $0x60] sm:$0xff]  }
 0x14e   : > { %v595_v27 = vpop.f32.mrf.mxu0 }
 0x14f   : > { %vm611_vm2 = vcmp.ge.f32.partialorder %v601_v26, 0.0  ;;  %v619_v29 = vmul.f32 0.01, %v601_v26  ;;  %v596_v30 = vadd.f32 %v12859_v23, %v595_v27  ;;  %v15737_v43 = vsel %vm608_vm5, %v586_v28, %v616_v36  ;;  %v12888_v23 = vld [vmem:[%s17346_s4 + $0x90] sm:$0xff]  ;;  %v15293_v36 = vld [vmem:[#allocation7 + $0x70] sm:$0xff]  }
 0x150   : > { %v15286_v27 = vld [vmem:[#allocation7 + $0x38] sm:$0xff]   ;;  %v15287_v28 = vld [vmem:[#allocation7 + $0x40] sm:$0xff]  }
 0x151   : > { %v15721_v33 = vsel %vm611_vm2, %v601_v26, %v619_v29  ;;  %vm610_vm3 = vcmp.ge.f32.partialorder %v596_v30, 0.0  ;;  %v618_v34 = vmul.f32 0.01, %v596_v30  ;;  %v15950_v26 = vld [vmem:[%s17346_s4 + $0xf8] sm:$0xff] }
 0x152   : > { %14569 = vmatpush3.msra.mxu1 %v15721_v33  ;;  %14589 = vmatpush3.msra.mxu0 %v15721_v33  ;;  %v15288_v29 = vld [vmem:[#allocation7 + $0x48] sm:$0xff]  }
 0x153   : > { %v15725_v37 = vsel %vm610_vm3, %v596_v30, %v618_v34  ;;  %14570 = vmatprep.subr.mxu1 %v15514_v16  ;;  %14590 = vmatprep.subr.mxu0 %v15514_v16  ;;  %v15289_v30 = vld [vmem:[#allocation7 + $0x50] sm:$0xff]   ;;  %v15292_v34 = vld [vmem:[#allocation7 + $0x68] sm:$0xff]  }
 0x154   : > { %14571 = vmatpush3.msra.mxu1 %v15725_v37  ;;  %14591 = vmatpush3.msra.mxu0 %v15725_v37 }
 0x155   : > { %14572 = vmatprep.subr.mxu1 %v15514_v16  ;;  %14592 = vmatprep.subr.mxu0 %v15514_v16 }
 0x156   : > { %14573 = vmatpush3.msra.mxu1 %v15731_v40  ;;  %14593 = vmatpush3.msra.mxu0 %v15731_v40 }
 0x157   : > { %14574 = vmatprep.subr.mxu1 %v15514_v16  ;;  %14594 = vmatprep.subr.mxu0 %v15514_v16 }
 0x158   : > { %14575 = vmatpush3.msra.mxu1 %v15737_v43  ;;  %14595 = vmatpush3.msra.mxu0 %v15737_v43 }
 0x159   : > { %14576 = vmatprep.subr.mxu1 %v15514_v16  ;;  %14596 = vmatprep.subr.mxu0 %v15514_v16 }
 0x15a   : > { %14577 = vmatpush3.msra.mxu1 %v15743_v45  ;;  %14597 = vmatpush3.msra.mxu0 %v15743_v45 }
 0x15b   : > { %14578 = vmatprep.subr.mxu1 %v15514_v16  ;;  %14598 = vmatprep.subr.mxu0 %v15514_v16 }
 0x15c   : > { %14579 = vmatpush3.msra.mxu1 %v15749_v47  ;;  %14599 = vmatpush3.msra.mxu0 %v15749_v47 }
 0x15d   : > { %14580 = vmatprep.subr.mxu1 %v15514_v16  ;;  %14600 = vmatprep.subr.mxu0 %v15514_v16 }
 0x15e   : > { %14581 = vmatpush3.msra.mxu1 %v15755_v48  ;;  %14601 = vmatpush3.msra.mxu0 %v15755_v48 }
 0x15f   : > { %14582 = vmatprep.subr.mxu1 %v15514_v16  ;;  %14602 = vmatprep.subr.mxu0 %v15514_v16 }
 0x160   : > { %14583 = vmatpush3.msra.mxu1 %v15761_v51  ;;  %14603 = vmatpush3.msra.mxu0 %v15761_v51 }
 0x161   : > { %14585 = vmatmul.mubr.msk.bf16.vlgmr.msra.gmra.mxu1 %vm474_vm0, %v15279_v49  ;;  %14605 = vmatmul.mubr.msk.bf16.vlgmr.msra.gmra.mxu0 %vm474_vm0, %v15280_v50  ;;  %v15294_v49 = vld [vmem:[#allocation7 + $0x78] sm:$0xff]   ;;  %v12898_v50 = vld [vmem:[%s17346_s4 + $0xc0] sm:$0xff] }
 0x162   : > { %14608 = vmatprep.subr.mxu1 %v12879_v52  ;;  %14627 = vmatprep.subr.mxu0 %v718_v53 }
 0x163   : > { %14609 = vmatpush3.msra.mxu1 %v12879_v52  ;;  %14628 = vmatpush3.msra.mxu0 %v718_v53  ;;  %v12917_v52 = vld [vmem:[%s17346_s4 + $0x138] sm:$0xff]  ;;  %v12916_v53 = vld [vmem:[%s17346_s4 + $0x130] sm:$0xff] }
 0x164   : > { %14610 = vmatprep.subr.mxu1 %v12878_v54  ;;  %14629 = vmatprep.subr.mxu0 %v717_v55 }
 0x165   : > { %14611 = vmatpush3.msra.mxu1 %v12878_v54  ;;  %14630 = vmatpush3.msra.mxu0 %v717_v55  ;;  %v12915_v55 = vld [vmem:[%s17346_s4 + $0x128] sm:$0xff] }
 0x166   : > { %14612 = vmatprep.subr.mxu1 %v12877_v56  ;;  %14631 = vmatprep.subr.mxu0 %v716_v57 }
 0x167   : > { %14613 = vmatpush3.msra.mxu1 %v12877_v56  ;;  %14632 = vmatpush3.msra.mxu0 %v716_v57  ;;  %v12914_v56 = vld [vmem:[%s17346_s4 + $0x120] sm:$0xff]  ;;  %v12913_v57 = vld [vmem:[%s17346_s4 + $0x118] sm:$0xff] }
 0x168   : > { %14614 = vmatprep.subr.mxu1 %v12876_v58  ;;  %14633 = vmatprep.subr.mxu0 %v715_v59 }
 0x169   : > { %14615 = vmatpush3.msra.mxu1 %v12876_v58  ;;  %14634 = vmatpush3.msra.mxu0 %v715_v59  ;;  %v12912_v58 = vld [vmem:[%s17346_s4 + $0x110] sm:$0xff]  ;;  %v12911_v59 = vld [vmem:[%s17346_s4 + $0x108] sm:$0xff] }
 0x16a   : > { %14616 = vmatprep.subr.mxu1 %v12875_v60  ;;  %14635 = vmatprep.subr.mxu0 %v714_v61 }
 0x16b   : > { %14617 = vmatpush3.msra.mxu1 %v12875_v60  ;;  %14636 = vmatpush3.msra.mxu0 %v714_v61  ;;  %v12910_v61 = vld [vmem:[%s17346_s4 + $0x100] sm:$0xff] }
 0x16c   : > { %14618 = vmatprep.subr.mxu1 %v12874_v62  ;;  %14637 = vmatprep.subr.mxu0 %v713_v63 }
 0x16d   : > { %14619 = vmatpush3.msra.mxu1 %v12874_v62  ;;  %14638 = vmatpush3.msra.mxu0 %v713_v63  ;;  %v12929_v63 = vld [vmem:[%s17346_s4 + $0x178] sm:$0xff] }
 0x16e   : > { %14620 = vmatprep.subr.mxu1 %v12873_v0  ;;  %14639 = vmatprep.subr.mxu0 %v712_v1 }
 0x16f   : > { %14621 = vmatpush3.msra.mxu1 %v12873_v0  ;;  %14640 = vmatpush3.msra.mxu0 %v712_v1  ;;  %v12928_v1 = vld [vmem:[%s17346_s4 + $0x170] sm:$0xff] }
 0x170   : > { %14622 = vmatprep.subr.mxu1 %v12872_v2  ;;  %14641 = vmatprep.subr.mxu0 %v711_v3 }
 0x171   : > { %14623 = vmatpush3.msra.mxu1 %v12872_v2  ;;  %14642 = vmatpush3.msra.mxu0 %v711_v3  ;;  %v12927_v3 = vld [vmem:[%s17346_s4 + $0x168] sm:$0xff] }
 0x172   : > { %14646 = vmatprep.subr.mxu1 %v15514_v16  ;;  %14666 = vmatprep.subr.mxu0 %v12893_v17 }
 0x221   : > { %v704_v4 = vpop.f32.mrf.mxu1  ;;  %v796_v5 = vpop.f32.mrf.mxu0 }
 0x222   : > { %14624 = vmatprep.mubr.msk.f32.mxu1 %vm474_vm0, %v796_v5  ;;  %14643 = vmatprep.mubr.msk.f32.mxu0 %vm474_vm0, %v704_v4  ;;  %v12926_v4 = vld [vmem:[%s17346_s4 + $0x160] sm:$0xff]  ;;  %v12925_v5 = vld [vmem:[%s17346_s4 + $0x158] sm:$0xff] }
 0x223   : > { %v14586_v6 = vpop.f32.mrf.mxu1  ;;  %v14606_v7 = vpop.f32.mrf.mxu0 }
 0x224   : > { %v12924_v6 = vld [vmem:[%s17346_s4 + $0x150] sm:$0xff]  ;;  %v12923_v7 = vld [vmem:[%s17346_s4 + $0x148] sm:$0xff] }
 0x225   : > { %v707_v8 = vpop.f32.mrf.mxu1  ;;  %v799_v9 = vpop.f32.mrf.mxu0 }
 0x226   : > { %14625 = vmatmul.mubr.msk.f32.vlgmr.msra.gmra.mxu1 %vm474_vm0, %v799_v9  ;;  %14644 = vmatmul.mubr.msk.f32.vlgmr.msra.gmra.mxu0 %vm474_vm0, %v707_v8  ;;  %v12922_v9 = vld [vmem:[%s17346_s4 + $0x140] sm:$0xff] }
 0x227   : > { %14647 = vmatpush3.msra.mxu1 %v15721_v33  ;;  %v14607_v10 = vpop.f32.mrf.mxu0  ;;  %14662 = vmatprep.mubr.msk.bf16.mxu1 %vm15515_vm1, %v15514_v16  ;;  %v14587_v11 = vpop.f32.mrf.mxu1 }
 0x228   : > { %14648 = vmatprep.subr.mxu1 %v15514_v16  ;;  %14667 = vmatpush3.msra.mxu0 %v12893_v17  ;;  %v12941_v11 = vld [vmem:[%s17346_s4 + $0x1b8] sm:$0xff]  ;;  %v12938_v17 = vld [vmem:[%s17346_s4 + $0x1a0] sm:$0xff] }
 0x229   : > { %14649 = vmatpush3.msra.mxu1 %v15725_v37  ;;  %14668 = vmatprep.subr.mxu0 %v12892_v18 }
 0x22a   : > { %14650 = vmatprep.subr.mxu1 %v15514_v16  ;;  %14669 = vmatpush3.msra.mxu0 %v12892_v18  ;;  %v12937_v18 = vld [vmem:[%s17346_s4 + $0x198] sm:$0xff] }
 0x22b   : > { %14651 = vmatpush3.msra.mxu1 %v15731_v40  ;;  %14670 = vmatprep.subr.mxu0 %v12891_v19 }
 0x22c   : > { %14652 = vmatprep.subr.mxu1 %v15514_v16  ;;  %14671 = vmatpush3.msra.mxu0 %v12891_v19  ;;  %v12936_v19 = vld [vmem:[%s17346_s4 + $0x190] sm:$0xff] }
 0x22d   : > { %14653 = vmatpush3.msra.mxu1 %v15737_v43  ;;  %14672 = vmatprep.subr.mxu0 %v12890_v20 }
 0x22e   : > { %14654 = vmatprep.subr.mxu1 %v15514_v16  ;;  %14673 = vmatpush3.msra.mxu0 %v12890_v20  ;;  %v12935_v20 = vld [vmem:[%s17346_s4 + $0x188] sm:$0xff] }
 0x22f   : > { %14655 = vmatpush3.msra.mxu1 %v15743_v45  ;;  %14674 = vmatprep.subr.mxu0 %v12889_v22 }
 0x230   : > { %14656 = vmatprep.subr.mxu1 %v15514_v16  ;;  %14675 = vmatpush3.msra.mxu0 %v12889_v22  ;;  %v12934_v22 = vld [vmem:[%s17346_s4 + $0x180] sm:$0xff] }
 0x231   : > { %14657 = vmatpush3.msra.mxu1 %v15749_v47  ;;  %14676 = vmatprep.subr.mxu0 %v12888_v23 }
 0x232   : > { %14658 = vmatprep.subr.mxu1 %v15514_v16  ;;  %14677 = vmatpush3.msra.mxu0 %v12888_v23 }
 0x233   : > { %14659 = vmatpush3.msra.mxu1 %v15755_v48  ;;  %14678 = vmatprep.subr.mxu0 %v12887_v24 }
 0x234   : > { %14660 = vmatprep.subr.mxu1 %v15514_v16  ;;  %14679 = vmatpush3.msra.mxu0 %v12887_v24  ;;  %v12953_v24 = vld [vmem:[%s17346_s4 + $0x1f8] sm:$0xff] }
 0x235   : > { %14661 = vmatpush3.msra.mxu1 %v15761_v51  ;;  %14680 = vmatprep.subr.mxu0 %v12886_v25 }
 0x236   : > { %14663 = vmatmul.mubr.msk.bf16.vlgmr.msra.gmra.mxu1 %vm474_vm0, %v15281_v12  ;;  %14685 = vmatprep.subr.mxu1 %v15514_v16 }
 0x237   : > { %14686 = vmatpush3.msra.mxu1 %v15721_v33  ;;  %14701 = vmatprep.mubr.msk.bf16.mxu1 %vm15515_vm1, %v15514_v16 }
 0x238   : > { %14687 = vmatprep.subr.mxu1 %v15514_v16  ;;  %14681 = vmatpush3.msra.mxu0 %v12886_v25 }
 0x239   : > { %14688 = vmatpush3.msra.mxu1 %v15725_v37  ;;  %14705 = vmatprep.subr.mxu0 %v15950_v26 }
 0x23a   : > { %14689 = vmatprep.subr.mxu1 %v15514_v16 }
 0x23b   : > { %14690 = vmatpush3.msra.mxu1 %v15731_v40 }
 0x23c   : > { %14691 = vmatprep.subr.mxu1 %v15514_v16 }
 0x23d   : > { %14692 = vmatpush3.msra.mxu1 %v15737_v43 }
 0x23e   : > { %14693 = vmatprep.subr.mxu1 %v15514_v16 }
 0x23f   : > { %14694 = vmatpush3.msra.mxu1 %v15743_v45 }
 0x240   : > { %14695 = vmatprep.subr.mxu1 %v15514_v16 }
 0x241   : > { %14696 = vmatpush3.msra.mxu1 %v15749_v47 }
 0x242   : > { %14697 = vmatprep.subr.mxu1 %v15514_v16 }
 0x243   : > { %14698 = vmatpush3.msra.mxu1 %v15755_v48 }
 0x244   : > { %14699 = vmatprep.subr.mxu1 %v15514_v16 }
 0x245   : > { %14700 = vmatpush3.msra.mxu1 %v15761_v51 }
 0x246   : > { %14702 = vmatmul.mubr.msk.bf16.vlgmr.msra.gmra.mxu1 %vm474_vm0, %v15282_v13  ;;  %14724 = vmatprep.subr.mxu1 %v15514_v16  ;;  %v12940_v13 = vld [vmem:[%s17346_s4 + $0x1b0] sm:$0xff] }
 0x247   : > { %14725 = vmatpush3.msra.mxu1 %v15721_v33  ;;  %14740 = vmatprep.mubr.msk.bf16.mxu1 %vm15515_vm1, %v15514_v16 }
 0x248   : > { %14726 = vmatprep.subr.mxu1 %v15514_v16 }
 0x249   : > { %14727 = vmatpush3.msra.mxu1 %v15725_v37 }
 0x24a   : > { %14728 = vmatprep.subr.mxu1 %v15514_v16 }
 0x24b   : > { %14729 = vmatpush3.msra.mxu1 %v15731_v40 }
 0x24c   : > { %14730 = vmatprep.subr.mxu1 %v15514_v16 }
 0x24d   : > { %14731 = vmatpush3.msra.mxu1 %v15737_v43 }
 0x24e   : > { %14732 = vmatprep.subr.mxu1 %v15514_v16 }
 0x24f   : > { %14733 = vmatpush3.msra.mxu1 %v15743_v45 }
 0x250   : > { %14734 = vmatprep.subr.mxu1 %v15514_v16 }
 0x251   : > { %14735 = vmatpush3.msra.mxu1 %v15749_v47 }
 0x252   : > { %14736 = vmatprep.subr.mxu1 %v15514_v16 }
 0x253   : > { %14737 = vmatpush3.msra.mxu1 %v15755_v48 }
 0x254   : > { %14738 = vmatprep.subr.mxu1 %v15514_v16 }
 0x255   : > { %14739 = vmatpush3.msra.mxu1 %v15761_v51 }
 0x256   : > { %14741 = vmatmul.mubr.msk.bf16.vlgmr.msra.gmra.mxu1 %vm474_vm0, %v15283_v14  ;;  %14763 = vmatprep.subr.mxu1 %v15514_v16 }
 0x257   : > { %14764 = vmatpush3.msra.mxu1 %v15721_v33  ;;  %14779 = vmatprep.mubr.msk.bf16.mxu1 %vm15515_vm1, %v15514_v16 }
 0x258   : > { %14765 = vmatprep.subr.mxu1 %v15514_v16 }
 0x259   : > { %14766 = vmatpush3.msra.mxu1 %v15725_v37 }
 0x25a   : > { %14767 = vmatprep.subr.mxu1 %v15514_v16 }
 0x25b   : > { %14768 = vmatpush3.msra.mxu1 %v15731_v40 }
 0x25c   : > { %14769 = vmatprep.subr.mxu1 %v15514_v16 }
 0x25d   : > { %14770 = vmatpush3.msra.mxu1 %v15737_v43 }
 0x25e   : > { %14771 = vmatprep.subr.mxu1 %v15514_v16 }
 0x25f   : > { %14772 = vmatpush3.msra.mxu1 %v15743_v45 }
 0x260   : > { %14773 = vmatprep.subr.mxu1 %v15514_v16 }
 0x261   : > { %14774 = vmatpush3.msra.mxu1 %v15749_v47 }
 0x262   : > { %14775 = vmatprep.subr.mxu1 %v15514_v16 }
 0x263   : > { %14776 = vmatpush3.msra.mxu1 %v15755_v48 }
 0x264   : > { %14777 = vmatprep.subr.mxu1 %v15514_v16 }
 0x265   : > { %14778 = vmatpush3.msra.mxu1 %v15761_v51 }
 0x266   : > { %14780 = vmatmul.mubr.msk.bf16.vlgmr.msra.gmra.mxu1 %vm474_vm0, %v15284_v15  ;;  %14802 = vmatprep.subr.mxu1 %v15514_v16  ;;  %v12939_v15 = vld [vmem:[%s17346_s4 + $0x1a8] sm:$0xff] }
 0x267   : > { %14803 = vmatpush3.msra.mxu1 %v15721_v33  ;;  %14818 = vmatprep.mubr.msk.bf16.mxu1 %vm15515_vm1, %v15514_v16 }
 0x268   : > { %14804 = vmatprep.subr.mxu1 %v15514_v16 }
 0x269   : > { %14805 = vmatpush3.msra.mxu1 %v15725_v37 }
 0x26a   : > { %14806 = vmatprep.subr.mxu1 %v15514_v16 }
 0x26b   : > { %14807 = vmatpush3.msra.mxu1 %v15731_v40 }
 0x26c   : > { %14808 = vmatprep.subr.mxu1 %v15514_v16 }
 0x26d   : > { %14809 = vmatpush3.msra.mxu1 %v15737_v43 }
 0x26e   : > { %14810 = vmatprep.subr.mxu1 %v15514_v16 }
 0x26f   : > { %14811 = vmatpush3.msra.mxu1 %v15743_v45 }
 0x270   : > { %14812 = vmatprep.subr.mxu1 %v15514_v16 }
 0x271   : > { %14813 = vmatpush3.msra.mxu1 %v15749_v47 }
 0x272   : > { %14814 = vmatprep.subr.mxu1 %v15514_v16 }
 0x273   : > { %14815 = vmatpush3.msra.mxu1 %v15755_v48 }
 0x274   : > { %14816 = vmatprep.subr.mxu1 %v15514_v16 }
 0x275   : > { %14817 = vmatpush3.msra.mxu1 %v15761_v51 }
 0x276   : > { %14819 = vmatmul.mubr.msk.bf16.vlgmr.msra.gmra.mxu1 %vm474_vm0, %v15285_v21  ;;  %14841 = vmatprep.subr.mxu1 %v15514_v16 }
 0x277   : > { %14842 = vmatpush3.msra.mxu1 %v15721_v33  ;;  %14857 = vmatprep.mubr.msk.bf16.mxu1 %vm15515_vm1, %v15514_v16 }
 0x278   : > { %14843 = vmatprep.subr.mxu1 %v15514_v16 }
 0x279   : > { %14844 = vmatpush3.msra.mxu1 %v15725_v37 }
 0x27a   : > { %14845 = vmatprep.subr.mxu1 %v15514_v16 }
 0x27b   : > { %14846 = vmatpush3.msra.mxu1 %v15731_v40 }
 0x27c   : > { %14847 = vmatprep.subr.mxu1 %v15514_v16 }
 0x27d   : > { %14848 = vmatpush3.msra.mxu1 %v15737_v43 }
 0x27e   : > { %14849 = vmatprep.subr.mxu1 %v15514_v16 }
 0x27f   : > { %14850 = vmatpush3.msra.mxu1 %v15743_v45 }
 0x280   : > { %14851 = vmatprep.subr.mxu1 %v15514_v16 }
 0x281   : > { %14852 = vmatpush3.msra.mxu1 %v15749_v47 }
 0x282   : > { %14853 = vmatprep.subr.mxu1 %v15514_v16 }
 0x283   : > { %14854 = vmatpush3.msra.mxu1 %v15755_v48 }
 0x284   : > { %14855 = vmatprep.subr.mxu1 %v15514_v16 }
 0x285   : > { %14856 = vmatpush3.msra.mxu1 %v15761_v51 }
 0x286   : > { %14858 = vmatmul.mubr.msk.bf16.vlgmr.msra.gmra.mxu1 %vm474_vm0, %v15286_v27  ;;  %14880 = vmatprep.subr.mxu1 %v15514_v16 }
 0x287   : > { %14881 = vmatpush3.msra.mxu1 %v15721_v33  ;;  %14896 = vmatprep.mubr.msk.bf16.mxu1 %vm15515_vm1, %v15514_v16 }
 0x288   : > { %14882 = vmatprep.subr.mxu1 %v15514_v16 }
 0x289   : > { %14883 = vmatpush3.msra.mxu1 %v15725_v37 }
 0x28a   : > { %14884 = vmatprep.subr.mxu1 %v15514_v16 }
 0x28b   : > { %14885 = vmatpush3.msra.mxu1 %v15731_v40 }
 0x28c   : > { %14886 = vmatprep.subr.mxu1 %v15514_v16 }
 0x28d   : > { %14887 = vmatpush3.msra.mxu1 %v15737_v43 }
 0x28e   : > { %14888 = vmatprep.subr.mxu1 %v15514_v16 }
 0x28f   : > { %14889 = vmatpush3.msra.mxu1 %v15743_v45 }
 0x290   : > { %14890 = vmatprep.subr.mxu1 %v15514_v16 }
 0x291   : > { %14891 = vmatpush3.msra.mxu1 %v15749_v47 }
 0x292   : > { %14892 = vmatprep.subr.mxu1 %v15514_v16 }
 0x293   : > { %14893 = vmatpush3.msra.mxu1 %v15755_v48 }
 0x294   : > { %14894 = vmatprep.subr.mxu1 %v15514_v16 }
 0x295   : > { %14895 = vmatpush3.msra.mxu1 %v15761_v51 }
 0x296   : > { %14897 = vmatmul.mubr.msk.bf16.vlgmr.msra.gmra.mxu1 %vm474_vm0, %v15287_v28  ;;  %14919 = vmatprep.subr.mxu1 %v15514_v16  ;;  %v12951_v28 = vld [vmem:[%s17346_s4 + $0x1e8] sm:$0xff] }
 0x297   : > { %14920 = vmatpush3.msra.mxu1 %v15721_v33  ;;  %14935 = vmatprep.mubr.msk.bf16.mxu1 %vm15515_vm1, %v15514_v16 }
 0x298   : > { %14921 = vmatprep.subr.mxu1 %v15514_v16 }
 0x299   : > { %14922 = vmatpush3.msra.mxu1 %v15725_v37 }
 0x29a   : > { %14923 = vmatprep.subr.mxu1 %v15514_v16 }
 0x29b   : > { %14924 = vmatpush3.msra.mxu1 %v15731_v40 }
 0x29c   : > { %14925 = vmatprep.subr.mxu1 %v15514_v16 }
 0x29d   : > { %14926 = vmatpush3.msra.mxu1 %v15737_v43 }
 0x29e   : > { %14927 = vmatprep.subr.mxu1 %v15514_v16 }
 0x29f   : > { %14928 = vmatpush3.msra.mxu1 %v15743_v45 }
 0x2a0   : > { %14929 = vmatprep.subr.mxu1 %v15514_v16 }
 0x2a1   : > { %14930 = vmatpush3.msra.mxu1 %v15749_v47 }
 0x2a2   : > { %14931 = vmatprep.subr.mxu1 %v15514_v16 }
 0x2a3   : > { %14932 = vmatpush3.msra.mxu1 %v15755_v48 }
 0x2a4   : > { %14933 = vmatprep.subr.mxu1 %v15514_v16 }
 0x2a5   : > { %14934 = vmatpush3.msra.mxu1 %v15761_v51 }
 0x2a6   : > { %14936 = vmatmul.mubr.msk.bf16.vlgmr.msra.gmra.mxu1 %vm474_vm0, %v15288_v29  ;;  %14958 = vmatprep.subr.mxu1 %v15514_v16  ;;  %v12950_v29 = vld [vmem:[%s17346_s4 + $0x1e0] sm:$0xff] }
 0x2a7   : > { %14959 = vmatpush3.msra.mxu1 %v15721_v33  ;;  %14974 = vmatprep.mubr.msk.bf16.mxu1 %vm15515_vm1, %v15514_v16 }
 0x2a8   : > { %14960 = vmatprep.subr.mxu1 %v15514_v16 }
 0x2a9   : > { %14961 = vmatpush3.msra.mxu1 %v15725_v37 }
 0x2aa   : > { %14962 = vmatprep.subr.mxu1 %v15514_v16 }
 0x2ab   : > { %14963 = vmatpush3.msra.mxu1 %v15731_v40 }
 0x2ac   : > { %14964 = vmatprep.subr.mxu1 %v15514_v16 }
 0x2ad   : > { %14965 = vmatpush3.msra.mxu1 %v15737_v43 }
 0x2ae   : > { %14966 = vmatprep.subr.mxu1 %v15514_v16 }
 0x2af   : > { %14967 = vmatpush3.msra.mxu1 %v15743_v45 }
 0x2b0   : > { %14968 = vmatprep.subr.mxu1 %v15514_v16 }
 0x2b1   : > { %14969 = vmatpush3.msra.mxu1 %v15749_v47 }
 0x2b2   : > { %14970 = vmatprep.subr.mxu1 %v15514_v16 }
 0x2b3   : > { %14971 = vmatpush3.msra.mxu1 %v15755_v48 }
 0x2b4   : > { %14972 = vmatprep.subr.mxu1 %v15514_v16 }
 0x2b5   : > { %14973 = vmatpush3.msra.mxu1 %v15761_v51 }
 0x2b6   : > { %14975 = vmatmul.mubr.msk.bf16.vlgmr.msra.gmra.mxu1 %vm474_vm0, %v15289_v30  ;;  %14997 = vmatprep.subr.mxu1 %v15514_v16  ;;  %v12949_v30 = vld [vmem:[%s17346_s4 + $0x1d8] sm:$0xff] }
 0x2b7   : > { %14998 = vmatpush3.msra.mxu1 %v15721_v33  ;;  %15013 = vmatprep.mubr.msk.bf16.mxu1 %vm15515_vm1, %v15514_v16 }
 0x2b8   : > { %14999 = vmatprep.subr.mxu1 %v15514_v16 }
 0x2b9   : > { %15000 = vmatpush3.msra.mxu1 %v15725_v37 }
 0x2ba   : > { %15001 = vmatprep.subr.mxu1 %v15514_v16 }
 0x2bb   : > { %15002 = vmatpush3.msra.mxu1 %v15731_v40 }
 0x2bc   : > { %15003 = vmatprep.subr.mxu1 %v15514_v16 }
 0x2bd   : > { %15004 = vmatpush3.msra.mxu1 %v15737_v43 }
 0x2be   : > { %15005 = vmatprep.subr.mxu1 %v15514_v16 }
 0x2bf   : > { %15006 = vmatpush3.msra.mxu1 %v15743_v45 }
 0x2c0   : > { %15007 = vmatprep.subr.mxu1 %v15514_v16 }
 0x2c1   : > { %15008 = vmatpush3.msra.mxu1 %v15749_v47 }
 0x2c2   : > { %15009 = vmatprep.subr.mxu1 %v15514_v16 }
 0x2c3   : > { %15010 = vmatpush3.msra.mxu1 %v15755_v48 }
 0x2c4   : > { %15011 = vmatprep.subr.mxu1 %v15514_v16 }
 0x2c5   : > { %15012 = vmatpush3.msra.mxu1 %v15761_v51 }
 0x2c6   : > { %15014 = vmatmul.mubr.msk.bf16.vlgmr.msra.gmra.mxu1 %vm474_vm0, %v15290_v31  ;;  %15036 = vmatprep.subr.mxu1 %v15514_v16  ;;  %v12948_v31 = vld [vmem:[%s17346_s4 + $0x1d0] sm:$0xff] }
 0x2c7   : > { %15037 = vmatpush3.msra.mxu1 %v15721_v33  ;;  %15052 = vmatprep.mubr.msk.bf16.mxu1 %vm15515_vm1, %v15514_v16 }
 0x2c8   : > { %15038 = vmatprep.subr.mxu1 %v15514_v16 }
 0x2c9   : > { %15039 = vmatpush3.msra.mxu1 %v15725_v37 }
 0x2ca   : > { %15040 = vmatprep.subr.mxu1 %v15514_v16 }
 0x2cb   : > { %15041 = vmatpush3.msra.mxu1 %v15731_v40 }
 0x2cc   : > { %15042 = vmatprep.subr.mxu1 %v15514_v16 }
 0x2cd   : > { %15043 = vmatpush3.msra.mxu1 %v15737_v43 }
 0x2ce   : > { %15044 = vmatprep.subr.mxu1 %v15514_v16 }
 0x2cf   : > { %15045 = vmatpush3.msra.mxu1 %v15743_v45 }
 0x2d0   : > { %15046 = vmatprep.subr.mxu1 %v15514_v16 }
 0x2d1   : > { %15047 = vmatpush3.msra.mxu1 %v15749_v47 }
 0x2d2   : > { %15048 = vmatprep.subr.mxu1 %v15514_v16 }
 0x2d3   : > { %15049 = vmatpush3.msra.mxu1 %v15755_v48 }
 0x2d4   : > { %15050 = vmatprep.subr.mxu1 %v15514_v16 }
 0x2d5   : > { %15051 = vmatpush3.msra.mxu1 %v15761_v51 }
 0x2d6   : > { %15053 = vmatmul.mubr.msk.bf16.vlgmr.msra.gmra.mxu1 %vm474_vm0, %v15291_v32  ;;  %15075 = vmatprep.subr.mxu1 %v15514_v16  ;;  %v12947_v32 = vld [vmem:[%s17346_s4 + $0x1c8] sm:$0xff] }
 0x2d7   : > { %15076 = vmatpush3.msra.mxu1 %v15721_v33  ;;  %15091 = vmatprep.mubr.msk.bf16.mxu1 %vm15515_vm1, %v15514_v16 }
 0x2d8   : > { %15077 = vmatprep.subr.mxu1 %v15514_v16 }
 0x2d9   : > { %15078 = vmatpush3.msra.mxu1 %v15725_v37 }
 0x2da   : > { %15079 = vmatprep.subr.mxu1 %v15514_v16 }
 0x2db   : > { %15080 = vmatpush3.msra.mxu1 %v15731_v40 }
 0x2dc   : > { %15081 = vmatprep.subr.mxu1 %v15514_v16 }
 0x2dd   : > { %15082 = vmatpush3.msra.mxu1 %v15737_v43 }
 0x2de   : > { %15083 = vmatprep.subr.mxu1 %v15514_v16 }
 0x2df   : > { %15084 = vmatpush3.msra.mxu1 %v15743_v45 }
 0x2e0   : > { %15085 = vmatprep.subr.mxu1 %v15514_v16 }
 0x2e1   : > { %15086 = vmatpush3.msra.mxu1 %v15749_v47 }
 0x2e2   : > { %15087 = vmatprep.subr.mxu1 %v15514_v16 }
 0x2e3   : > { %15088 = vmatpush3.msra.mxu1 %v15755_v48 }
 0x2e4   : > { %15089 = vmatprep.subr.mxu1 %v15514_v16 }
 0x2e5   : > { %15090 = vmatpush3.msra.mxu1 %v15761_v51 }
 0x2e6   : > { %15092 = vmatmul.mubr.msk.bf16.vlgmr.msra.gmra.mxu1 %vm474_vm0, %v15292_v34  ;;  %15114 = vmatprep.subr.mxu1 %v15514_v16  ;;  %v16091_v35 = vpop.f32.mrf.mxu1 }
 0x2e7   : > { %15115 = vmatpush3.msra.mxu1 %v15721_v33  ;;  %15130 = vmatprep.mubr.msk.bf16.mxu1 %vm15515_vm1, %v15514_v16 }
 0x2e8   : > { %15116 = vmatprep.subr.mxu1 %v15514_v16  ;;  %v16097_v38 = vpop.f32.mrf.mxu1 }
 0x2e9   : > { %15117 = vmatpush3.msra.mxu1 %v15725_v37 }
 0x2ea   : > { %15118 = vmatprep.subr.mxu1 %v15514_v16 }
 0x2eb   : > { %15119 = vmatpush3.msra.mxu1 %v15731_v40 }
 0x2ec   : > { %15120 = vmatprep.subr.mxu1 %v15514_v16 }
 0x2ed   : > { %15121 = vmatpush3.msra.mxu1 %v15737_v43 }
 0x2ee   : > { %15122 = vmatprep.subr.mxu1 %v15514_v16 }
 0x2ef   : > { %15123 = vmatpush3.msra.mxu1 %v15743_v45 }
 0x2f0   : > { %15124 = vmatprep.subr.mxu1 %v15514_v16 }
 0x2f1   : > { %15125 = vmatpush3.msra.mxu1 %v15749_v47 }
 0x2f2   : > { %15126 = vmatprep.subr.mxu1 %v15514_v16 }
 0x2f3   : > { %15127 = vmatpush3.msra.mxu1 %v15755_v48 }
 0x2f4   : > { %15128 = vmatprep.subr.mxu1 %v15514_v16 }
 0x2f5   : > { %15129 = vmatpush3.msra.mxu1 %v15761_v51 }
 0x2f6   : > { %v1051_v39 = vpop.f32.mrf.mxu1  ;;  %15131 = vmatmul.mubr.msk.bf16.vlgmr.msra.gmra.mxu1 %vm474_vm0, %v15293_v36  ;;  %15153 = vmatprep.subr.mxu1 %v15514_v16  ;;  %v12946_v36 = vld [vmem:[%s17346_s4 + $0x1c0] sm:$0xff] }
 0x2f7   : > { %15154 = vmatpush3.msra.mxu1 %v15721_v33  ;;  %14682 = vmatprep.mubr.msk.f32.mxu0 %vm474_vm0, %v1051_v39 }
 0x2f8   : > { %v14664_v41 = vpop.f32.mrf.mxu1  ;;  %15155 = vmatprep.subr.mxu1 %v15514_v16  ;;  %15169 = vmatprep.mubr.msk.bf16.mxu1 %vm15515_vm1, %v15514_v16 }
 0x2f9   : > { %15156 = vmatpush3.msra.mxu1 %v15725_v37  ;;  %v12903_v37 = vld [vmem:[%s17346_s4 + $0xe8] sm:$0xff]  ;;  %v12965_v41 = vld [vmem:[%s17346_s4 + $0x238] sm:$0xff] }
 0x2fa   : > { %v1054_v42 = vpop.f32.mrf.mxu1  ;;  %15157 = vmatprep.subr.mxu1 %v15514_v16 }
 0x2fb   : > { %14683 = vmatmul.mubr.msk.f32.vlgmr.msra.gmra.mxu0 %vm474_vm0, %v1054_v42  ;;  %15158 = vmatpush3.msra.mxu1 %v15731_v40  ;;  %v12901_v40 = vld [vmem:[%s17346_s4 + $0xd8] sm:$0xff] }
 0x2fc   : > { %v14665_v33 = vpop.f32.mrf.mxu1  ;;  %14706 = vmatpush3.msra.mxu0 %v15950_v26  ;;  %15159 = vmatprep.subr.mxu1 %v15514_v16  ;;  %v12952_v26 = vld [vmem:[%s17346_s4 + $0x1f0] sm:$0xff] }
 0x2fd   : > { %14707 = vmatprep.subr.mxu0 %v12904_v44  ;;  %15160 = vmatpush3.msra.mxu1 %v15737_v43  ;;  %v12900_v43 = vld [vmem:[%s17346_s4 + $0xd0] sm:$0xff] }
 0x2fe   : > { %14708 = vmatpush3.msra.mxu0 %v12904_v44  ;;  %15161 = vmatprep.subr.mxu1 %v15514_v16  ;;  %v12964_v44 = vld [vmem:[%s17346_s4 + $0x230] sm:$0xff] }
 0x2ff   : > { %14709 = vmatprep.subr.mxu0 %v12903_v37  ;;  %15162 = vmatpush3.msra.mxu1 %v15743_v45  ;;  %v12899_v45 = vld [vmem:[%s17346_s4 + $0xc8] sm:$0xff] }
 0x300   : > { %14710 = vmatpush3.msra.mxu0 %v12903_v37  ;;  %15163 = vmatprep.subr.mxu1 %v15514_v16  ;;  %v12963_v37 = vld [vmem:[%s17346_s4 + $0x228] sm:$0xff] }
 0x301   : > { %14711 = vmatprep.subr.mxu0 %v12902_v46  ;;  %15164 = vmatpush3.msra.mxu1 %v15749_v47 }
 0x302   : > { %14712 = vmatpush3.msra.mxu0 %v12902_v46  ;;  %15165 = vmatprep.subr.mxu1 %v15514_v16  ;;  %v12962_v46 = vld [vmem:[%s17346_s4 + $0x220] sm:$0xff] }
 0x303   : > { %14713 = vmatprep.subr.mxu0 %v12901_v40  ;;  %15166 = vmatpush3.msra.mxu1 %v15755_v48 }
 0x304   : > { %14714 = vmatpush3.msra.mxu0 %v12901_v40  ;;  %15167 = vmatprep.subr.mxu1 %v15514_v16  ;;  %v12961_v40 = vld [vmem:[%s17346_s4 + $0x218] sm:$0xff] }
 0x305   : > { %14715 = vmatprep.subr.mxu0 %v12900_v43  ;;  %15168 = vmatpush3.msra.mxu1 %v15761_v51 }
 0x306   : > { %v1227_v47 = vpop.f32.mrf.mxu1  ;;  %14716 = vmatpush3.msra.mxu0 %v12900_v43  ;;  %15170 = vmatmul.mubr.msk.bf16.vlgmr.msra.gmra.mxu1 %vm474_vm0, %v15294_v49  ;;  %v12960_v43 = vld [vmem:[%s17346_s4 + $0x210] sm:$0xff]  ;;  %v12959_v49 = vld [vmem:[%s17346_s4 + $0x208] sm:$0xff] }
 0x307   : > { %14717 = vmatprep.subr.mxu0 %v12899_v45  ;;  %14721 = vmatprep.mubr.msk.f32.mxu0 %vm474_vm0, %v1227_v47  ;;  %v12958_v47 = vld [vmem:[%s17346_s4 + $0x200] sm:$0xff] }
 0x308   : > { %v14703_v48 = vpop.f32.mrf.mxu1  ;;  %14718 = vmatpush3.msra.mxu0 %v12899_v45  ;;  %3938 = vmatprep.mubr.f32.mxu1 %v15514_v16 }
 0x309   : > { %14719 = vmatprep.subr.mxu0 %v12898_v50  ;;  %v12977_v48 = vld [vmem:[%s17346_s4 + $0x278] sm:$0xff] }
 0x30a   : > { %v1230_v51 = vpop.f32.mrf.mxu1  ;;  %14720 = vmatpush3.msra.mxu0 %v12898_v50 }
 0x30b   : > { %14722 = vmatmul.mubr.msk.f32.vlgmr.msra.gmra.mxu0 %vm474_vm0, %v1230_v51  ;;  %14744 = vmatprep.subr.mxu0 %v12917_v52  ;;  %v12976_v51 = vld [vmem:[%s17346_s4 + $0x270] sm:$0xff] }
 0x30c   : > { %v14704_v54 = vpop.f32.mrf.mxu1  ;;  %14745 = vmatpush3.msra.mxu0 %v12917_v52 }
 0x30d   : > { %14746 = vmatprep.subr.mxu0 %v12916_v53  ;;  %v12975_v54 = vld [vmem:[%s17346_s4 + $0x268] sm:$0xff] }
 0x30e   : > { %14747 = vmatpush3.msra.mxu0 %v12916_v53 }
 0x30f   : > { %14748 = vmatprep.subr.mxu0 %v12915_v55 }
 0x310   : > { %14749 = vmatpush3.msra.mxu0 %v12915_v55  ;;  %v12974_v55 = vld [vmem:[%s17346_s4 + $0x260] sm:$0xff] }
 0x311   : > { %14750 = vmatprep.subr.mxu0 %v12914_v56 }
 0x312   : > { %14751 = vmatpush3.msra.mxu0 %v12914_v56  ;;  %v12973_v56 = vld [vmem:[%s17346_s4 + $0x258] sm:$0xff] }
 0x313   : > { %14752 = vmatprep.subr.mxu0 %v12913_v57 }
 0x314   : > { %14753 = vmatpush3.msra.mxu0 %v12913_v57  ;;  %v12972_v57 = vld [vmem:[%s17346_s4 + $0x250] sm:$0xff] }
 0x315   : > { %14754 = vmatprep.subr.mxu0 %v12912_v58 }
 0x316   : > { %v1403_v60 = vpop.f32.mrf.mxu1  ;;  %14755 = vmatpush3.msra.mxu0 %v12912_v58  ;;  %v12971_v58 = vld [vmem:[%s17346_s4 + $0x248] sm:$0xff] }
 0x317   : > { %14756 = vmatprep.subr.mxu0 %v12911_v59  ;;  %14760 = vmatprep.mubr.msk.f32.mxu0 %vm474_vm0, %v1403_v60  ;;  %v12970_v60 = vld [vmem:[%s17346_s4 + $0x240] sm:$0xff] }
 0x318   : > { %v14742_v62 = vpop.f32.mrf.mxu1  ;;  %14757 = vmatpush3.msra.mxu0 %v12911_v59 }
 0x319   : > { %14758 = vmatprep.subr.mxu0 %v12910_v61  ;;  %v12989_v62 = vld [vmem:[%s17346_s4 + $0x2b8] sm:$0xff] }
 0x31a   : > { %v1406_v0 = vpop.f32.mrf.mxu1  ;;  %14759 = vmatpush3.msra.mxu0 %v12910_v61 }
 0x31b   : > { %14761 = vmatmul.mubr.msk.f32.vlgmr.msra.gmra.mxu0 %vm474_vm0, %v1406_v0  ;;  %14783 = vmatprep.subr.mxu0 %v12929_v63  ;;  %v12988_v0 = vld [vmem:[%s17346_s4 + $0x2b0] sm:$0xff] }
 0x31c   : > { %v14743_v2 = vpop.f32.mrf.mxu1  ;;  %14784 = vmatpush3.msra.mxu0 %v12929_v63 }
 0x31d   : > { %14785 = vmatprep.subr.mxu0 %v12928_v1  ;;  %v12987_v2 = vld [vmem:[%s17346_s4 + $0x2a8] sm:$0xff] }
 0x31e   : > { %14786 = vmatpush3.msra.mxu0 %v12928_v1 }
 0x31f   : > { %14787 = vmatprep.subr.mxu0 %v12927_v3 }
 0x320   : > { %14788 = vmatpush3.msra.mxu0 %v12927_v3  ;;  %v12986_v3 = vld [vmem:[%s17346_s4 + $0x2a0] sm:$0xff] }
 0x321   : > { %14789 = vmatprep.subr.mxu0 %v12926_v4 }
 0x322   : > { %14790 = vmatpush3.msra.mxu0 %v12926_v4  ;;  %v12985_v4 = vld [vmem:[%s17346_s4 + $0x298] sm:$0xff] }
 0x323   : > { %14791 = vmatprep.subr.mxu0 %v12925_v5 }
 0x324   : > { %14792 = vmatpush3.msra.mxu0 %v12925_v5  ;;  %v12984_v5 = vld [vmem:[%s17346_s4 + $0x290] sm:$0xff] }
 0x325   : > { %14793 = vmatprep.subr.mxu0 %v12924_v6 }
 0x326   : > { %v1579_v8 = vpop.f32.mrf.mxu1  ;;  %14794 = vmatpush3.msra.mxu0 %v12924_v6  ;;  %v12983_v6 = vld [vmem:[%s17346_s4 + $0x288] sm:$0xff] }
 0x327   : > { %14795 = vmatprep.subr.mxu0 %v12923_v7  ;;  %14799 = vmatprep.mubr.msk.f32.mxu0 %vm474_vm0, %v1579_v8  ;;  %v12982_v8 = vld [vmem:[%s17346_s4 + $0x280] sm:$0xff] }
 0x328   : > { %v14781_v10 = vpop.f32.mrf.mxu1  ;;  %14796 = vmatpush3.msra.mxu0 %v12923_v7 }
 0x329   : > { %14797 = vmatprep.subr.mxu0 %v12922_v9  ;;  %v13001_v10 = vld [vmem:[%s17346_s4 + $0x2f8] sm:$0xff] }
 0x32a   : > { %v1582_v12 = vpop.f32.mrf.mxu1  ;;  %14798 = vmatpush3.msra.mxu0 %v12922_v9 }
 0x32b   : > { %14800 = vmatmul.mubr.msk.f32.vlgmr.msra.gmra.mxu0 %vm474_vm0, %v1582_v12  ;;  %14822 = vmatprep.subr.mxu0 %v12941_v11  ;;  %v13000_v12 = vld [vmem:[%s17346_s4 + $0x2f0] sm:$0xff] }
 0x32c   : > { %v14782_v14 = vpop.f32.mrf.mxu1  ;;  %14823 = vmatpush3.msra.mxu0 %v12941_v11 }
 0x32d   : > { %14824 = vmatprep.subr.mxu0 %v12940_v13  ;;  %v12999_v14 = vld [vmem:[%s17346_s4 + $0x2e8] sm:$0xff] }
 0x32e   : > { %14825 = vmatpush3.msra.mxu0 %v12940_v13 }
 0x32f   : > { %14826 = vmatprep.subr.mxu0 %v12939_v15 }
 0x330   : > { %14827 = vmatpush3.msra.mxu0 %v12939_v15  ;;  %v12998_v15 = vld [vmem:[%s17346_s4 + $0x2e0] sm:$0xff] }
 0x331   : > { %14828 = vmatprep.subr.mxu0 %v12938_v17 }
 0x332   : > { %14829 = vmatpush3.msra.mxu0 %v12938_v17  ;;  %v12997_v17 = vld [vmem:[%s17346_s4 + $0x2d8] sm:$0xff] }
 0x333   : > { %14830 = vmatprep.subr.mxu0 %v12937_v18 }
 0x334   : > { %14831 = vmatpush3.msra.mxu0 %v12937_v18  ;;  %v12996_v18 = vld [vmem:[%s17346_s4 + $0x2d0] sm:$0xff] }
 0x335   : > { %14832 = vmatprep.subr.mxu0 %v12936_v19 }
 0x336   : > { %v1755_v21 = vpop.f32.mrf.mxu1  ;;  %14833 = vmatpush3.msra.mxu0 %v12936_v19  ;;  %v12995_v19 = vld [vmem:[%s17346_s4 + $0x2c8] sm:$0xff] }
 0x337   : > { %14834 = vmatprep.subr.mxu0 %v12935_v20  ;;  %14838 = vmatprep.mubr.msk.f32.mxu0 %vm474_vm0, %v1755_v21  ;;  %v12994_v21 = vld [vmem:[%s17346_s4 + $0x2c0] sm:$0xff] }
 0x338   : > { %v14820_v23 = vpop.f32.mrf.mxu1  ;;  %14835 = vmatpush3.msra.mxu0 %v12935_v20 }
 0x339   : > { %14836 = vmatprep.subr.mxu0 %v12934_v22  ;;  %v13013_v23 = vld [vmem:[%s17346_s4 + $0x338] sm:$0xff] }
 0x33a   : > { %v1758_v25 = vpop.f32.mrf.mxu1  ;;  %14837 = vmatpush3.msra.mxu0 %v12934_v22 }
 0x33b   : > { %14839 = vmatmul.mubr.msk.f32.vlgmr.msra.gmra.mxu0 %vm474_vm0, %v1758_v25  ;;  %14861 = vmatprep.subr.mxu0 %v12953_v24  ;;  %v13012_v25 = vld [vmem:[%s17346_s4 + $0x330] sm:$0xff] }
 0x33c   : > { %v14821_v27 = vpop.f32.mrf.mxu1  ;;  %14862 = vmatpush3.msra.mxu0 %v12953_v24 }
 0x33d   : > { %14863 = vmatprep.subr.mxu0 %v12952_v26  ;;  %v13011_v27 = vld [vmem:[%s17346_s4 + $0x328] sm:$0xff] }
 0x33e   : > { %14864 = vmatpush3.msra.mxu0 %v12952_v26 }
 0x33f   : > { %14865 = vmatprep.subr.mxu0 %v12951_v28 }
 0x340   : > { %14866 = vmatpush3.msra.mxu0 %v12951_v28  ;;  %v13010_v28 = vld [vmem:[%s17346_s4 + $0x320] sm:$0xff] }
 0x341   : > { %14867 = vmatprep.subr.mxu0 %v12950_v29 }
 0x342   : > { %14868 = vmatpush3.msra.mxu0 %v12950_v29  ;;  %v13009_v29 = vld [vmem:[%s17346_s4 + $0x318] sm:$0xff] }
 0x343   : > { %14869 = vmatprep.subr.mxu0 %v12949_v30 }
 0x344   : > { %14870 = vmatpush3.msra.mxu0 %v12949_v30  ;;  %v13008_v30 = vld [vmem:[%s17346_s4 + $0x310] sm:$0xff] }
 0x345   : > { %14871 = vmatprep.subr.mxu0 %v12948_v31 }
 0x346   : > { %v1931_v34 = vpop.f32.mrf.mxu1  ;;  %14872 = vmatpush3.msra.mxu0 %v12948_v31  ;;  %v13007_v31 = vld [vmem:[%s17346_s4 + $0x308] sm:$0xff] }
 0x347   : > { %14873 = vmatprep.subr.mxu0 %v12947_v32  ;;  %14877 = vmatprep.mubr.msk.f32.mxu0 %vm474_vm0, %v1931_v34  ;;  %v13006_v34 = vld [vmem:[%s17346_s4 + $0x300] sm:$0xff] }
 0x348   : > { %v14859_v39 = vpop.f32.mrf.mxu1  ;;  %14874 = vmatpush3.msra.mxu0 %v12947_v32 }
 0x349   : > { %14875 = vmatprep.subr.mxu0 %v12946_v36  ;;  %v13025_v39 = vld [vmem:[%s17346_s4 + $0x378] sm:$0xff] }
 0x34a   : > { %v1934_v42 = vpop.f32.mrf.mxu1  ;;  %14876 = vmatpush3.msra.mxu0 %v12946_v36 }
 0x34b   : > { %14878 = vmatmul.mubr.msk.f32.vlgmr.msra.gmra.mxu0 %vm474_vm0, %v1934_v42  ;;  %14900 = vmatprep.subr.mxu0 %v12965_v41  ;;  %v13024_v42 = vld [vmem:[%s17346_s4 + $0x370] sm:$0xff] }
 0x34c   : > { %v14860_v33 = vpop.f32.mrf.mxu1  ;;  %14901 = vmatpush3.msra.mxu0 %v12965_v41 }
 0x34d   : > { %14902 = vmatprep.subr.mxu0 %v12964_v44  ;;  %v13023_v33 = vld [vmem:[%s17346_s4 + $0x368] sm:$0xff] }
 0x34e   : > { %14903 = vmatpush3.msra.mxu0 %v12964_v44 }
 0x34f   : > { %14904 = vmatprep.subr.mxu0 %v12963_v37 }
 0x350   : > { %14905 = vmatpush3.msra.mxu0 %v12963_v37  ;;  %v13022_v37 = vld [vmem:[%s17346_s4 + $0x360] sm:$0xff] }
 0x351   : > { %14906 = vmatprep.subr.mxu0 %v12962_v46 }
 0x352   : > { %14907 = vmatpush3.msra.mxu0 %v12962_v46  ;;  %v13021_v46 = vld [vmem:[%s17346_s4 + $0x358] sm:$0xff] }
 0x353   : > { %14908 = vmatprep.subr.mxu0 %v12961_v40 }
 0x354   : > { %14909 = vmatpush3.msra.mxu0 %v12961_v40  ;;  %v13020_v40 = vld [vmem:[%s17346_s4 + $0x350] sm:$0xff] }
 0x355   : > { %14910 = vmatprep.subr.mxu0 %v12960_v43 }
 0x356   : > { %v2107_v45 = vpop.f32.mrf.mxu1  ;;  %14911 = vmatpush3.msra.mxu0 %v12960_v43  ;;  %v13019_v43 = vld [vmem:[%s17346_s4 + $0x348] sm:$0xff] }
 0x357   : > { %14912 = vmatprep.subr.mxu0 %v12959_v49  ;;  %14916 = vmatprep.mubr.msk.f32.mxu0 %vm474_vm0, %v2107_v45  ;;  %v13018_v45 = vld [vmem:[%s17346_s4 + $0x340] sm:$0xff] }
 0x358   : > { %v14898_v50 = vpop.f32.mrf.mxu1  ;;  %14913 = vmatpush3.msra.mxu0 %v12959_v49 }
 0x359   : > { %14914 = vmatprep.subr.mxu0 %v12958_v47  ;;  %v13037_v50 = vld [vmem:[%s17346_s4 + $0x3b8] sm:$0xff] }
 0x35a   : > { %v2110_v52 = vpop.f32.mrf.mxu1  ;;  %14915 = vmatpush3.msra.mxu0 %v12958_v47 }
 0x35b   : > { %14917 = vmatmul.mubr.msk.f32.vlgmr.msra.gmra.mxu0 %vm474_vm0, %v2110_v52  ;;  %14939 = vmatprep.subr.mxu0 %v12977_v48  ;;  %v13036_v52 = vld [vmem:[%s17346_s4 + $0x3b0] sm:$0xff] }
 0x35c   : > { %v14899_v53 = vpop.f32.mrf.mxu1  ;;  %14940 = vmatpush3.msra.mxu0 %v12977_v48 }
 0x35d   : > { %14941 = vmatprep.subr.mxu0 %v12976_v51  ;;  %v13035_v53 = vld [vmem:[%s17346_s4 + $0x3a8] sm:$0xff] }
 0x35e   : > { %14942 = vmatpush3.msra.mxu0 %v12976_v51 }
 0x35f   : > { %14943 = vmatprep.subr.mxu0 %v12975_v54 }
 0x360   : > { %14944 = vmatpush3.msra.mxu0 %v12975_v54  ;;  %v13034_v54 = vld [vmem:[%s17346_s4 + $0x3a0] sm:$0xff] }
 0x361   : > { %14945 = vmatprep.subr.mxu0 %v12974_v55 }
 0x362   : > { %14946 = vmatpush3.msra.mxu0 %v12974_v55  ;;  %v13033_v55 = vld [vmem:[%s17346_s4 + $0x398] sm:$0xff] }
 0x363   : > { %14947 = vmatprep.subr.mxu0 %v12973_v56 }
 0x364   : > { %14948 = vmatpush3.msra.mxu0 %v12973_v56  ;;  %v13032_v56 = vld [vmem:[%s17346_s4 + $0x390] sm:$0xff] }
 0x365   : > { %14949 = vmatprep.subr.mxu0 %v12972_v57 }
 0x366   : > { %v2283_v59 = vpop.f32.mrf.mxu1  ;;  %14950 = vmatpush3.msra.mxu0 %v12972_v57  ;;  %v13031_v57 = vld [vmem:[%s17346_s4 + $0x388] sm:$0xff] }
 0x367   : > { %14951 = vmatprep.subr.mxu0 %v12971_v58  ;;  %14955 = vmatprep.mubr.msk.f32.mxu0 %vm474_vm0, %v2283_v59  ;;  %v13030_v59 = vld [vmem:[%s17346_s4 + $0x380] sm:$0xff] }
 0x368   : > { %v14937_v61 = vpop.f32.mrf.mxu1  ;;  %14952 = vmatpush3.msra.mxu0 %v12971_v58 }
 0x369   : > { %14953 = vmatprep.subr.mxu0 %v12970_v60  ;;  %v13049_v61 = vld [vmem:[%s17346_s4 + $0x3f8] sm:$0xff] }
 0x36a   : > { %v2286_v63 = vpop.f32.mrf.mxu1  ;;  %14954 = vmatpush3.msra.mxu0 %v12970_v60 }
 0x36b   : > { %14956 = vmatmul.mubr.msk.f32.vlgmr.msra.gmra.mxu0 %vm474_vm0, %v2286_v63  ;;  %14978 = vmatprep.subr.mxu0 %v12989_v62  ;;  %v13048_v63 = vld [vmem:[%s17346_s4 + $0x3f0] sm:$0xff] }
 0x36c   : > { %v14938_v1 = vpop.f32.mrf.mxu1  ;;  %14979 = vmatpush3.msra.mxu0 %v12989_v62 }
 0x36d   : > { %14980 = vmatprep.subr.mxu0 %v12988_v0  ;;  %v13047_v1 = vld [vmem:[%s17346_s4 + $0x3e8] sm:$0xff] }
 0x36e   : > { %14981 = vmatpush3.msra.mxu0 %v12988_v0 }
 0x36f   : > { %14982 = vmatprep.subr.mxu0 %v12987_v2 }
 0x370   : > { %14983 = vmatpush3.msra.mxu0 %v12987_v2  ;;  %v13046_v2 = vld [vmem:[%s17346_s4 + $0x3e0] sm:$0xff] }
 0x371   : > { %14984 = vmatprep.subr.mxu0 %v12986_v3 }
 0x372   : > { %14985 = vmatpush3.msra.mxu0 %v12986_v3  ;;  %v13045_v3 = vld [vmem:[%s17346_s4 + $0x3d8] sm:$0xff] }
 0x373   : > { %14986 = vmatprep.subr.mxu0 %v12985_v4 }
 0x374   : > { %14987 = vmatpush3.msra.mxu0 %v12985_v4  ;;  %v13044_v4 = vld [vmem:[%s17346_s4 + $0x3d0] sm:$0xff] }
 0x375   : > { %14988 = vmatprep.subr.mxu0 %v12984_v5 }
 0x376   : > { %v2459_v7 = vpop.f32.mrf.mxu1  ;;  %14989 = vmatpush3.msra.mxu0 %v12984_v5  ;;  %v13043_v5 = vld [vmem:[%s17346_s4 + $0x3c8] sm:$0xff] }
 0x377   : > { %14990 = vmatprep.subr.mxu0 %v12983_v6  ;;  %14994 = vmatprep.mubr.msk.f32.mxu0 %vm474_vm0, %v2459_v7  ;;  %v13042_v7 = vld [vmem:[%s17346_s4 + $0x3c0] sm:$0xff] }
 0x378   : > { %v14976_v9 = vpop.f32.mrf.mxu1  ;;  %14991 = vmatpush3.msra.mxu0 %v12983_v6 }
 0x379   : > { %14992 = vmatprep.subr.mxu0 %v12982_v8 }
 0x37a   : > { %v2462_v11 = vpop.f32.mrf.mxu1  ;;  %14993 = vmatpush3.msra.mxu0 %v12982_v8 }
 0x37b   : > { %14995 = vmatmul.mubr.msk.f32.vlgmr.msra.gmra.mxu0 %vm474_vm0, %v2462_v11  ;;  %15017 = vmatprep.subr.mxu0 %v13001_v10  ;;  %v3578_v11 = vld [vmem:[#allocation10 + $0x3c0] sm:$0xff] }
 0x37c   : > { %v14977_v13 = vpop.f32.mrf.mxu1  ;;  %15018 = vmatpush3.msra.mxu0 %v13001_v10 }
 0x37d   : > { %15019 = vmatprep.subr.mxu0 %v13000_v12  ;;  %v3579_v13 = vld [vmem:[#allocation10 + $0x3c8] sm:$0xff] }
 0x37e   : > { %15020 = vmatpush3.msra.mxu0 %v13000_v12  ;;  %v3582_v12 = vld [vmem:[#allocation10 + $0x3e0] sm:$0xff] }
 0x37f   : > { %15021 = vmatprep.subr.mxu0 %v12999_v14 }
 0x380   : > { %15022 = vmatpush3.msra.mxu0 %v12999_v14  ;;  %v13110_v14 = vcombine.high %v3578_v11, %v3582_v12 }
 0x381   : > { %15023 = vmatprep.subr.mxu0 %v12998_v15 }
 0x382   : > { %15024 = vmatpush3.msra.mxu0 %v12998_v15  ;;  %v3583_v15 = vld [vmem:[#allocation10 + $0x3e8] sm:$0xff]  ;;  %3906 = vmatprep.subr.bf16.mxu1 %v13110_v14 }
 0x383   : > { %15025 = vmatprep.subr.mxu0 %v12997_v17 }
 0x384   : > { %15026 = vmatpush3.msra.mxu0 %v12997_v17  ;;  %v13109_v17 = vcombine.low %v3578_v11, %v3582_v12  ;;  %v3527_v11 = vld [vmem:[#allocation10 + $0x228] sm:$0xff]  ;;  %v16461_v12 = vld [vmem:[#allocation10 + $0x3d0] sm:$0xff] }
 0x385   : > { %15027 = vmatprep.subr.mxu0 %v12996_v18 }
 0x386   : > { %v2635_v20 = vpop.f32.mrf.mxu1  ;;  %15028 = vmatpush3.msra.mxu0 %v12996_v18  ;;  %v13111_v18 = vcombine.low %v3579_v13, %v3583_v15  ;;  %3907 = vmatpush1.bf16.msra.mxu1 %v13109_v17 }
 0x387   : > { %15029 = vmatprep.subr.mxu0 %v12995_v19  ;;  %15033 = vmatprep.mubr.msk.f32.mxu0 %vm474_vm0, %v2635_v20  ;;  %v3570_v20 = vld [vmem:[#allocation10 + $0x380] sm:$0xff] }
 0x388   : > { %v15015_v22 = vpop.f32.mrf.mxu1  ;;  %15030 = vmatpush3.msra.mxu0 %v12995_v19  ;;  %v13112_v19 = vcombine.high %v3579_v13, %v3583_v15  ;;  %v16463_v13 = vld [vmem:[#allocation10 + $0x3f0] sm:$0xff] }
 0x389   : > { %15031 = vmatprep.subr.mxu0 %v12994_v21  ;;  %v3571_v22 = vld [vmem:[#allocation10 + $0x388] sm:$0xff]  ;;  %v13113_v17 = vcombine.low %v16461_v12, %v16463_v13 }
 0x38a   : > { %v2638_v24 = vpop.f32.mrf.mxu1  ;;  %15032 = vmatpush3.msra.mxu0 %v12994_v21  ;;  %v3574_v21 = vld [vmem:[#allocation10 + $0x3a0] sm:$0xff] }
 0x38b   : > { %15034 = vmatmul.mubr.msk.f32.vlgmr.msra.gmra.mxu0 %vm474_vm0, %v2638_v24  ;;  %15056 = vmatprep.subr.mxu0 %v13013_v23  ;;  %v13102_v24 = vcombine.high %v3570_v20, %v3574_v21 }
 0x38c   : > { %v15016_v26 = vpop.f32.mrf.mxu1  ;;  %15057 = vmatpush3.msra.mxu0 %v13013_v23  ;;  %v13101_v23 = vcombine.low %v3570_v20, %v3574_v21  ;;  %v16471_v20 = vld [vmem:[#allocation10 + $0x3f8] sm:$0xff] }
 0x38d   : > { %15058 = vmatprep.subr.mxu0 %v13012_v25  ;;  %v3562_v26 = vld [vmem:[#allocation10 + $0x340] sm:$0xff]  ;;  %3908 = vmatprep.subr.bf16.mxu1 %v13102_v24 }
 0x38e   : > { %15059 = vmatpush3.msra.mxu0 %v13012_v25  ;;  %v3575_v25 = vld [vmem:[#allocation10 + $0x3a8] sm:$0xff]  ;;  %3909 = vmatpush1.bf16.msra.mxu1 %v13101_v23  ;;  %v14645_v23 = vpop.f32.mrf.mxu0 }
 0x38f   : > { %15060 = vmatprep.subr.mxu0 %v13011_v27 }
 0x390   : > { %15061 = vmatpush3.msra.mxu0 %v13011_v27  ;;  %v3566_v27 = vld [vmem:[#allocation10 + $0x360] sm:$0xff]  ;;  %v965_v24 = vpop.f32.mrf.mxu0 }
 0x391   : > { %15062 = vmatprep.subr.mxu0 %v13010_v28 }
 0x392   : > { %15063 = vmatpush3.msra.mxu0 %v13010_v28  ;;  %v13103_v28 = vcombine.low %v3571_v22, %v3575_v25 }
 0x393   : > { %15064 = vmatprep.subr.mxu0 %v13009_v29 }
 0x394   : > { %15065 = vmatpush3.msra.mxu0 %v13009_v29  ;;  %v13104_v29 = vcombine.high %v3571_v22, %v3575_v25 }
 0x395   : > { %15066 = vmatprep.subr.mxu0 %v13008_v30 }
 0x396   : > { %v2811_v32 = vpop.f32.mrf.mxu1  ;;  %15067 = vmatpush3.msra.mxu0 %v13008_v30  ;;  %v13094_v30 = vcombine.high %v3562_v26, %v3566_v27 }
 0x397   : > { %15068 = vmatprep.subr.mxu0 %v13007_v31  ;;  %15072 = vmatprep.mubr.msk.f32.mxu0 %vm474_vm0, %v2811_v32  ;;  %v3567_v32 = vld [vmem:[#allocation10 + $0x368] sm:$0xff] }
 0x398   : > { %v15054_v36 = vpop.f32.mrf.mxu1  ;;  %15069 = vmatpush3.msra.mxu0 %v13007_v31  ;;  %v3563_v31 = vld [vmem:[#allocation10 + $0x348] sm:$0xff]  ;;  %3910 = vmatprep.subr.bf16.mxu1 %v13094_v30 }
 0x399   : > { %15070 = vmatprep.subr.mxu0 %v13006_v34  ;;  %v13096_v36 = vcombine.high %v3563_v31, %v3567_v32 }
 0x39a   : > { %v2814_v41 = vpop.f32.mrf.mxu1  ;;  %15071 = vmatpush3.msra.mxu0 %v13006_v34  ;;  %v3554_v34 = vld [vmem:[#allocation10 + $0x300] sm:$0xff] }
 0x39b   : > { %15073 = vmatmul.mubr.msk.f32.vlgmr.msra.gmra.mxu0 %vm474_vm0, %v2814_v41  ;;  %15095 = vmatprep.subr.mxu0 %v13025_v39  ;;  %v3555_v41 = vld [vmem:[#allocation10 + $0x308] sm:$0xff] }
 0x39c   : > { %v15055_v44 = vpop.f32.mrf.mxu1  ;;  %15096 = vmatpush3.msra.mxu0 %v13025_v39  ;;  %v3558_v39 = vld [vmem:[#allocation10 + $0x320] sm:$0xff] }
 0x39d   : > { %15097 = vmatprep.subr.mxu0 %v13024_v42  ;;  %v13093_v44 = vcombine.low %v3562_v26, %v3566_v27 }
 0x39e   : > { %15098 = vmatpush3.msra.mxu0 %v13024_v42  ;;  %v3559_v42 = vld [vmem:[#allocation10 + $0x328] sm:$0xff] }
 0x39f   : > { %15099 = vmatprep.subr.mxu0 %v13023_v33  ;;  %3911 = vmatpush1.bf16.msra.mxu1 %v13093_v44 }
 0x3a0   : > { %15100 = vmatpush3.msra.mxu0 %v13023_v33  ;;  %v13095_v33 = vcombine.low %v3563_v31, %v3567_v32 }
 0x3a1   : > { %15101 = vmatprep.subr.mxu0 %v13022_v37 }
 0x3a2   : > { %15102 = vmatpush3.msra.mxu0 %v13022_v37  ;;  %v13086_v37 = vcombine.high %v3554_v34, %v3558_v39 }
 0x3a3   : > { %15103 = vmatprep.subr.mxu0 %v13021_v46 }
 0x3a4   : > { %15104 = vmatpush3.msra.mxu0 %v13021_v46  ;;  %v13088_v46 = vcombine.high %v3555_v41, %v3559_v42  ;;  %3912 = vmatprep.subr.bf16.mxu1 %v13086_v37 }
 0x3a5   : > { %15105 = vmatprep.subr.mxu0 %v13020_v40 }
 0x3a6   : > { %v2987_v49 = vpop.f32.mrf.mxu1  ;;  %15106 = vmatpush3.msra.mxu0 %v13020_v40  ;;  %v13085_v40 = vcombine.low %v3554_v34, %v3558_v39 }
 0x3a7   : > { %15107 = vmatprep.subr.mxu0 %v13019_v43  ;;  %15111 = vmatprep.mubr.msk.f32.mxu0 %vm474_vm0, %v2987_v49  ;;  %v3546_v49 = vld [vmem:[#allocation10 + $0x2c0] sm:$0xff] }
 0x3a8   : > { %v15093_v47 = vpop.f32.mrf.mxu1  ;;  %15108 = vmatpush3.msra.mxu0 %v13019_v43  ;;  %v13087_v43 = vcombine.low %v3555_v41, %v3559_v42  ;;  %3913 = vmatpush1.bf16.msra.mxu1 %v13085_v40  ;;  %v971_v40 = vadd.f32 %v14645_v23, %v16091_v35 }
 0x3a9   : > { %15109 = vmatprep.subr.mxu0 %v13018_v45  ;;  %v3547_v47 = vld [vmem:[#allocation10 + $0x2c8] sm:$0xff] }
 0x3aa   : > { %v2990_v48 = vpop.f32.mrf.mxu1  ;;  %15110 = vmatpush3.msra.mxu0 %v13018_v45  ;;  %v3550_v45 = vld [vmem:[#allocation10 + $0x2e0] sm:$0xff] }
 0x3ab   : > { %15112 = vmatmul.mubr.msk.f32.vlgmr.msra.gmra.mxu0 %vm474_vm0, %v2990_v48  ;;  %15134 = vmatprep.subr.mxu0 %v13037_v50  ;;  %v3551_v48 = vld [vmem:[#allocation10 + $0x2e8] sm:$0xff] }
 0x3ac   : > { %v15094_v51 = vpop.f32.mrf.mxu1  ;;  %15135 = vmatpush3.msra.mxu0 %v13037_v50  ;;  %v13078_v50 = vcombine.high %v3546_v49, %v3550_v45 }
 0x3ad   : > { %15136 = vmatprep.subr.mxu0 %v13036_v52  ;;  %v13079_v51 = vcombine.low %v3547_v47, %v3551_v48 }
 0x3ae   : > { %15137 = vmatpush3.msra.mxu0 %v13036_v52  ;;  %v13077_v52 = vcombine.low %v3546_v49, %v3550_v45  ;;  %3914 = vmatprep.subr.bf16.mxu1 %v13078_v50  ;;  %v966_v49 = vadd.f32 %v965_v24, %v16097_v38 }
 0x3af   : > { %15138 = vmatprep.subr.mxu0 %v13035_v53 }
 0x3b0   : > { %15139 = vmatpush3.msra.mxu0 %v13035_v53  ;;  %v13080_v53 = vcombine.high %v3547_v47, %v3551_v48  ;;  %3915 = vmatpush1.bf16.msra.mxu1 %v13077_v52 }
 0x3b1   : > { %15140 = vmatprep.subr.mxu0 %v13034_v54 }
 0x3b2   : > { %15141 = vmatpush3.msra.mxu0 %v13034_v54  ;;  %v3538_v54 = vld [vmem:[#allocation10 + $0x280] sm:$0xff] }
 0x3b3   : > { %15142 = vmatprep.subr.mxu0 %v13033_v55 }
 0x3b4   : > { %15143 = vmatpush3.msra.mxu0 %v13033_v55  ;;  %v3542_v55 = vld [vmem:[#allocation10 + $0x2a0] sm:$0xff] }
 0x3b5   : > { %15144 = vmatprep.subr.mxu0 %v13032_v56 }
 0x3b6   : > { %v3163_v58 = vpop.f32.mrf.mxu1  ;;  %15145 = vmatpush3.msra.mxu0 %v13032_v56  ;;  %v3539_v56 = vld [vmem:[#allocation10 + $0x288] sm:$0xff] }
 0x3b7   : > { %15146 = vmatprep.subr.mxu0 %v13031_v57  ;;  %15150 = vmatprep.mubr.msk.f32.mxu0 %vm474_vm0, %v3163_v58  ;;  %v3543_v58 = vld [vmem:[#allocation10 + $0x2a8] sm:$0xff] }
 0x3b8   : > { %v15132_v60 = vpop.f32.mrf.mxu1  ;;  %15147 = vmatpush3.msra.mxu0 %v13031_v57  ;;  %v13070_v57 = vcombine.high %v3538_v54, %v3542_v55 }
 0x3b9   : > { %15148 = vmatprep.subr.mxu0 %v13030_v59  ;;  %v13071_v60 = vcombine.low %v3539_v56, %v3543_v58 }
 0x3ba   : > { %v3166_v62 = vpop.f32.mrf.mxu1  ;;  %15149 = vmatpush3.msra.mxu0 %v13030_v59  ;;  %v13069_v59 = vcombine.low %v3538_v54, %v3542_v55  ;;  %3916 = vmatprep.subr.bf16.mxu1 %v13070_v57 }
 0x3bb   : > { %15151 = vmatmul.mubr.msk.f32.vlgmr.msra.gmra.mxu0 %vm474_vm0, %v3166_v62  ;;  %15173 = vmatprep.subr.mxu0 %v13049_v61  ;;  %v3530_v62 = vld [vmem:[#allocation10 + $0x240] sm:$0xff]  ;;  %v14684_v25 = vpop.f32.mrf.mxu0 }
 0x3bc   : > { %v15133_v0 = vpop.f32.mrf.mxu1  ;;  %15174 = vmatpush3.msra.mxu0 %v13049_v61  ;;  %v13072_v61 = vcombine.high %v3539_v56, %v3543_v58  ;;  %3917 = vmatpush1.bf16.msra.mxu1 %v13069_v59  ;;  %v1149_v45 = vadd.f32 %v14684_v25, %v971_v40  ;;  %v3565_v40 = vld [vmem:[#allocation10 + $0x358] sm:$0xff] }
 0x3bd   : > { %15175 = vmatprep.subr.mxu0 %v13048_v63  ;;  %v3531_v0 = vld [vmem:[#allocation10 + $0x248] sm:$0xff]  ;;  %v1139_v26 = vpop.f32.mrf.mxu0 }
 0x3be   : > { %15176 = vmatpush3.msra.mxu0 %v13048_v63  ;;  %v3534_v63 = vld [vmem:[#allocation10 + $0x260] sm:$0xff]  ;;  %v1148_v50 = vadd.f32 %v1139_v26, %v966_v49 }
 0x3bf   : > { %15177 = vmatprep.subr.mxu0 %v13047_v1 }
 0x3c0   : > { %15178 = vmatpush3.msra.mxu0 %v13047_v1  ;;  %v13062_v1 = vcombine.high %v3530_v62, %v3534_v63 }
 0x3c1   : > { %15179 = vmatprep.subr.mxu0 %v13046_v2 }
 0x3c2   : > { %15180 = vmatpush3.msra.mxu0 %v13046_v2  ;;  %v3535_v2 = vld [vmem:[#allocation10 + $0x268] sm:$0xff]  ;;  %3918 = vmatprep.subr.bf16.mxu1 %v13062_v1 }
 0x3c3   : > { %15181 = vmatprep.subr.mxu0 %v13045_v3 }
 0x3c4   : > { %15182 = vmatpush3.msra.mxu0 %v13045_v3  ;;  %v13061_v3 = vcombine.low %v3530_v62, %v3534_v63 }
 0x3c5   : > { %15183 = vmatprep.subr.mxu0 %v13044_v4 }
 0x3c6   : > { %v3339_v6 = vpop.f32.mrf.mxu1  ;;  %15184 = vmatpush3.msra.mxu0 %v13044_v4  ;;  %v13063_v4 = vcombine.low %v3531_v0, %v3535_v2  ;;  %3919 = vmatpush1.bf16.msra.mxu1 %v13061_v3 }
 0x3c7   : > { %15185 = vmatprep.subr.mxu0 %v13043_v5  ;;  %15189 = vmatprep.mubr.msk.f32.mxu0 %vm474_vm0, %v3339_v6  ;;  %v3522_v6 = vld [vmem:[#allocation10 + $0x200] sm:$0xff] }
 0x3c8   : > { %v15171_v8 = vpop.f32.mrf.mxu1  ;;  %15186 = vmatpush3.msra.mxu0 %v13043_v5  ;;  %v13064_v5 = vcombine.high %v3531_v0, %v3535_v2 }
 0x3c9   : > { %15187 = vmatprep.subr.mxu0 %v13042_v7  ;;  %v3523_v8 = vld [vmem:[#allocation10 + $0x208] sm:$0xff] }
 0x3ca   : > { %v3342_v9 = vpop.f32.mrf.mxu1  ;;  %15188 = vmatpush3.msra.mxu0 %v13042_v7  ;;  %v3526_v7 = vld [vmem:[#allocation10 + $0x220] sm:$0xff]  ;;  %v13055_v14 = vcombine.low %v3523_v8, %v3527_v11  ;;  %v13056_v15 = vcombine.high %v3523_v8, %v3527_v11 }
 0x3cb   : > { %15190 = vmatmul.mubr.msk.f32.vlgmr.msra.gmra.mxu0 %vm474_vm0, %v3342_v9  ;;  %3945 = vmatprep.subr.bf16.mxu0 %v13112_v19  ;;  %v13053_v9 = vcombine.low %v3522_v6, %v3526_v7  ;;  %v16469_v19 = vld [vmem:[#allocation10 + $0x3d8] sm:$0xff]  ;;  %v14723_v27 = vpop.f32.mrf.mxu0 }
 0x3cc   : > { %v15172_v10 = vpop.f32.mrf.mxu1  ;;  %3977 = vmatprep.mubr.f32.mxu0 %v15514_v16  ;;  %3946 = vmatpush1.bf16.msra.mxu0 %v13111_v18  ;;  %v13114_v18 = vcombine.high %v16461_v12, %v16463_v13  ;;  %v13115_v21 = vcombine.low %v16469_v19, %v16471_v20  ;;  %v13116_v22 = vcombine.high %v16469_v19, %v16471_v20  ;;  %v3548_v20 = vld [vmem:[#allocation10 + $0x2d0] sm:$0xff] }
 0x3cd   : > { %3947 = vmatprep.subr.bf16.mxu0 %v13104_v29  ;;  %v13054_v10 = vcombine.high %v3522_v6, %v3526_v7  ;;  %v1325_v48 = vadd.f32 %v14723_v27, %v1149_v45 }
 0x3cf   : > { %3920 = vmatprep.subr.bf16.mxu1 %v13054_v10 }
 0x3d0   : > { %3948 = vmatpush1.bf16.msra.mxu0 %v13103_v28  ;;  %3921 = vmatpush1.bf16.msra.mxu1 %v13053_v9  ;;  %v1315_v28 = vpop.f32.mrf.mxu0 }
 0x3d1   : > { %3949 = vmatprep.subr.bf16.mxu0 %v13096_v36  ;;  %3984 = vmatprep.subr.bf16.mxu1 %v13114_v18  ;;  %v1324_v52 = vadd.f32 %v1315_v28, %v1148_v50 }
 0x3d4   : > { %3950 = vmatpush1.bf16.msra.mxu0 %v13095_v33 }
 0x3d5   : > { %3951 = vmatprep.subr.bf16.mxu0 %v13088_v46 }
 0x3d8   : > { %3952 = vmatpush1.bf16.msra.mxu0 %v13087_v43 }
 0x3d9   : > { %3953 = vmatprep.subr.bf16.mxu0 %v13080_v53 }
 0x3db   : > { %v14762_v29 = vpop.f32.mrf.mxu0 }
 0x3dc   : > { %3954 = vmatpush1.bf16.msra.mxu0 %v13079_v51  ;;  %v1501_v51 = vadd.f32 %v14762_v29, %v1325_v48  ;;  %v3556_v48 = vld [vmem:[#allocation10 + $0x310] sm:$0xff] }
 0x3dd   : > { %3955 = vmatprep.subr.bf16.mxu0 %v13072_v61  ;;  %v1491_v30 = vpop.f32.mrf.mxu0 }
 0x3de   : > { %v1500_v54 = vadd.f32 %v1491_v30, %v1324_v52  ;;  %v3560_v52 = vld [vmem:[#allocation10 + $0x330] sm:$0xff] }
 0x3e0   : > { %3956 = vmatpush1.bf16.msra.mxu0 %v13071_v60 }
 0x3e1   : > { %3957 = vmatprep.subr.bf16.mxu0 %v13064_v5 }
 0x3e4   : > { %3958 = vmatpush1.bf16.msra.mxu0 %v13063_v4 }
 0x3e5   : > { %3959 = vmatprep.subr.bf16.mxu0 %v13056_v15 }
 0x3e8   : > { %3960 = vmatpush1.bf16.msra.mxu0 %v13055_v14 }
 0x3e9   : > { %4023 = vmatprep.subr.bf16.mxu0 %v13116_v22  ;;  %v13052_v22 = vld [vmem:[#allocation8] ss:$0 sm:$0xff] }
 0x3eb   : > { %v14801_v31 = vpop.f32.mrf.mxu0 }
 0x3ec   : > { %v1677_v55 = vadd.f32 %v14801_v31, %v1501_v51  ;;  %v3557_v51 = vld [vmem:[#allocation10 + $0x318] sm:$0xff] }
 0x3ed   : > { %v1667_v32 = vpop.f32.mrf.mxu0 }
 0x3ee   : > { %v1676_v57 = vadd.f32 %v1667_v32, %v1500_v54  ;;  %v3549_v54 = vld [vmem:[#allocation10 + $0x2d8] sm:$0xff] }
 0x3fb   : > { %v14840_v34 = vpop.f32.mrf.mxu0 }
 0x3fc   : > { %v1853_v58 = vadd.f32 %v14840_v34, %v1677_v55  ;;  %v3572_v34 = vld [vmem:[#allocation10 + $0x390] sm:$0xff]  ;;  %v3553_v55 = vld [vmem:[#allocation10 + $0x2f8] sm:$0xff] }
 0x3fd   : > { %v1843_v36 = vpop.f32.mrf.mxu0 }
 0x3fe   : > { %v1852_v59 = vadd.f32 %v1843_v36, %v1676_v57  ;;  %v3576_v36 = vld [vmem:[#allocation10 + $0x3b0] sm:$0xff] }
 0x3ff   : > { %v13105_v49 = vcombine.low %v3572_v34, %v3576_v36 }
 0x40b   : > { %v14879_v39 = vpop.f32.mrf.mxu0 }
 0x40c   : > { %v2029_v60 = vadd.f32 %v14879_v39, %v1853_v58  ;;  %v3573_v39 = vld [vmem:[#allocation10 + $0x398] sm:$0xff] }
 0x40d   : > { %v2019_v41 = vpop.f32.mrf.mxu0 }
 0x40e   : > { %v2028_v62 = vadd.f32 %v2019_v41, %v1852_v59  ;;  %v3577_v41 = vld [vmem:[#allocation10 + $0x3b8] sm:$0xff]  ;;  %v13084_v59 = vcombine.high %v3549_v54, %v3553_v55 }
 0x40f   : > { %v13107_v45 = vcombine.low %v3573_v39, %v3577_v41 }
 0x41b   : > { %v14918_v42 = vpop.f32.mrf.mxu0 }
 0x41c   : > { %v2205_v35 = vadd.f32 %v14918_v42, %v2029_v60  ;;  %v13106_v42 = vcombine.high %v3572_v34, %v3576_v36  ;;  %v3540_v60 = vld [vmem:[#allocation10 + $0x290] sm:$0xff]  ;;  %v3504_v34 = vld [vmem:[#allocation10 + $0x180] sm:$0xff] }
 0x41d   : > { %v2195_v44 = vpop.f32.mrf.mxu0  ;;  %v3508_v36 = vld [vmem:[#allocation10 + $0x1a0] sm:$0xff] }
 0x41e   : > { %v2204_v0 = vadd.f32 %v2195_v44, %v2028_v62  ;;  %v13108_v44 = vcombine.high %v3573_v39, %v3577_v41  ;;  %v3541_v62 = vld [vmem:[#allocation10 + $0x298] sm:$0xff]  ;;  %v3505_v39 = vld [vmem:[#allocation10 + $0x188] sm:$0xff] }
 0x41f   : > { %v3509_v41 = vld [vmem:[#allocation10 + $0x1a8] sm:$0xff] }
 0x42b   : > { %v14957_v33 = vpop.f32.mrf.mxu0 }
 0x42c   : > { %v2381_v38 = vadd.f32 %v14957_v33, %v2205_v35  ;;  %v3564_v33 = vld [vmem:[#allocation10 + $0x350] sm:$0xff]  ;;  %v3545_v35 = vld [vmem:[#allocation10 + $0x2b8] sm:$0xff] }
 0x42d   : > { %v2371_v37 = vpop.f32.mrf.mxu0 }
 0x42e   : > { %v2380_v1 = vadd.f32 %v2371_v37, %v2204_v0  ;;  %v3568_v37 = vld [vmem:[#allocation10 + $0x370] sm:$0xff]  ;;  %v13083_v0 = vcombine.low %v3549_v54, %v3553_v55  ;;  %v3484_v54 = vld [vmem:[#allocation10 + $0xe0] sm:$0xff]  ;;  %v3481_v55 = vld [vmem:[#allocation10 + $0xc8] sm:$0xff] }
 0x42f   : > { %v13097_v12 = vcombine.low %v3564_v33, %v3568_v37 }
 0x43b   : > { %v14996_v46 = vpop.f32.mrf.mxu0 }
 0x43c   : > { %v2557_v2 = vadd.f32 %v14996_v46, %v2381_v38 }
 0x43d   : > { %v2547_v43 = vpop.f32.mrf.mxu0 }
 0x43e   : > { %v2556_v4 = vadd.f32 %v2547_v43, %v2380_v1  ;;  %v3569_v43 = vld [vmem:[#allocation10 + $0x378] sm:$0xff]  ;;  %v13076_v1 = vcombine.high %v3541_v62, %v3545_v35 }
 0x43f   : > { %v13100_v50 = vcombine.high %v3565_v40, %v3569_v43  ;;  %v13099_v13 = vcombine.low %v3565_v40, %v3569_v43  ;;  %v3496_v40 = vld [vmem:[#allocation10 + $0x140] sm:$0xff] }
 0x440   : > { %v3500_v43 = vld [vmem:[#allocation10 + $0x160] sm:$0xff] }
 0x44b   : > { %v15035_v47 = vpop.f32.mrf.mxu0 }
 0x44c   : > { %v2733_v5 = vadd.f32 %v15035_v47, %v2557_v2  ;;  %v13098_v47 = vcombine.high %v3564_v33, %v3568_v37  ;;  %v3532_v2 = vld [vmem:[#allocation10 + $0x250] sm:$0xff]  ;;  %v13166_v33 = vcombine.high %v3504_v34, %v3508_v36  ;;  %v13168_v37 = vcombine.high %v3505_v39, %v3509_v41 }
 0x44d   : > { %v2723_v53 = vpop.f32.mrf.mxu0 }
 0x44e   : > { %v2732_v7 = vadd.f32 %v2723_v53, %v2556_v4  ;;  %v3561_v53 = vld [vmem:[#allocation10 + $0x338] sm:$0xff] }
 0x44f   : > { %v13092_v19 = vcombine.high %v3557_v51, %v3561_v53  ;;  %v13091_v57 = vcombine.low %v3557_v51, %v3561_v53  ;;  %v3533_v4 = vld [vmem:[#allocation10 + $0x258] sm:$0xff]  ;;  %v3488_v51 = vld [vmem:[#allocation10 + $0x100] sm:$0xff] }
 0x450   : > { %v3492_v53 = vld [vmem:[#allocation10 + $0x120] sm:$0xff] }
 0x45b   : > { %v15074_v56 = vpop.f32.mrf.mxu0 }
 0x45c   : > { %v2909_v8 = vadd.f32 %v15074_v56, %v2733_v5  ;;  %v13089_v56 = vcombine.low %v3556_v48, %v3560_v52  ;;  %v3537_v5 = vld [vmem:[#allocation10 + $0x278] sm:$0xff] }
 0x45d   : > { %v2899_v61 = vpop.f32.mrf.mxu0 }
 0x45e   : > { %v2908_v9 = vadd.f32 %v2899_v61, %v2732_v7  ;;  %v3544_v61 = vld [vmem:[#allocation10 + $0x2b0] sm:$0xff]  ;;  %v13075_v7 = vcombine.low %v3541_v62, %v3545_v35  ;;  %v3476_v62 = vld [vmem:[#allocation10 + $0xa0] sm:$0xff]  ;;  %v3473_v35 = vld [vmem:[#allocation10 + $0x88] sm:$0xff] }
 0x45f   : > { %v13074_v38 = vcombine.high %v3540_v60, %v3544_v61 }
 0x46b   : > { %v15113_v63 = vpop.f32.mrf.mxu0 }
 0x46c   : > { %v3085_v10 = vadd.f32 %v15113_v63, %v2909_v8 }
 0x46d   : > { %v3075_v3 = vpop.f32.mrf.mxu0 }
 0x46e   : > { %v3084_v14 = vadd.f32 %v3075_v3, %v2908_v9  ;;  %v3536_v3 = vld [vmem:[#allocation10 + $0x270] sm:$0xff]  ;;  %v13068_v9 = vcombine.high %v3533_v4, %v3537_v5 }
 0x46f   : > { %v13066_v8 = vcombine.high %v3532_v2, %v3536_v3 }
 0x47b   : > { %v15152_v6 = vpop.f32.mrf.mxu0 }
 0x47c   : > { %v3261_v15 = vadd.f32 %v15152_v6, %v3085_v10  ;;  %v13073_v6 = vcombine.low %v3540_v60, %v3544_v61  ;;  %v3524_v10 = vld [vmem:[#allocation10 + $0x210] sm:$0xff]  ;;  %v3472_v61 = vld [vmem:[#allocation10 + $0x80] sm:$0xff] }
 0x47d   : > { %v3251_v11 = vpop.f32.mrf.mxu0 }
 0x47e   : > { %v3260_v23 = vadd.f32 %v3251_v11, %v3084_v14  ;;  %v3528_v11 = vld [vmem:[#allocation10 + $0x230] sm:$0xff]  ;;  %v3525_v14 = vld [vmem:[#allocation10 + $0x218] sm:$0xff] }
 0x48b   : > { %v15191_v18 = vpop.f32.mrf.mxu0 }
 0x48c   : > { %v3437_v24 = vadd.f32 %v15191_v18, %v3261_v15  ;;  %v3529_v15 = vld [vmem:[#allocation10 + $0x238] sm:$0xff]  ;;  %v13065_v18 = vcombine.low %v3532_v2, %v3536_v3  ;;  %v3464_v3 = vld [vmem:[#allocation10 + $0x40] sm:$0xff] }
 0x48d   : > { %v3427_v25 = vpop.f32.mrf.mxu0 }
 0x48e   : > { %v3446_v26 = vadd.f32 %v13052_v22, %v3437_v24  ;;  %v3436_v27 = vadd.f32 %v3427_v25, %v3260_v23  ;;  %v13058_v23 = vcombine.high %v3524_v10, %v3528_v11  ;;  %v13060_v24 = vcombine.high %v3525_v14, %v3529_v15  ;;  %v3512_v25 = vld [vmem:[#allocation10 + $0x1c0] sm:$0xff] }
 0x490   : > { %vm3448_vm10 = vcmp.ge.f32.partialorder %v3446_v26, 0.0  ;;  %v3450_v28 = vmul.f32 0.01, %v3446_v26  ;;  %v3445_v29 = vadd.f32 %v13052_v22, %v3436_v27  ;;  %v13067_v22 = vcombine.low %v3533_v4, %v3537_v5  ;;  %v3513_v27 = vld [vmem:[#allocation10 + $0x1c8] sm:$0xff]  ;;  %v3468_v4 = vld [vmem:[#allocation10 + $0x60] sm:$0xff] }
 0x491   : > { %v3465_v5 = vld [vmem:[#allocation10 + $0x48] sm:$0xff] }
 0x492   : > { %v3452_v30 = vsel %vm3448_vm10, %v3446_v26, %v3450_v28  ;;  %vm3447_vm11 = vcmp.ge.f32.partialorder %v3445_v29, 0.0  ;;  %v3449_v31 = vmul.f32 0.01, %v3445_v29  ;;  %v3516_v26 = vld [vmem:[#allocation10 + $0x1e0] sm:$0xff]  ;;  %v3517_v28 = vld [vmem:[#allocation10 + $0x1e8] sm:$0xff] }
 0x493   : > { %3454 = vst [vmem:[#allocation2 + $0x8] sm:$0xff] %v3452_v30  ;;  %v13059_v30 = vcombine.low %v3525_v14, %v3529_v15  ;;  %v3460_v14 = vld [vmem:[#allocation10 + $0x20] sm:$0xff]  ;;  %v3457_v15 = vld [vmem:[#allocation10 + $0x8] sm:$0xff] }
 0x494   : > { %v3451_v32 = vsel %vm3447_vm11, %v3445_v29, %v3449_v31  ;;  %v13057_v29 = vcombine.low %v3524_v10, %v3528_v11  ;;  %v13174_v31 = vcombine.high %v3512_v25, %v3516_v26  ;;  %v3456_v11 = vld [vmem:[#allocation10] sm:$0xff] }
 0x495   : > { %3453 = vst [vmem:[#allocation2] sm:$0xff] %v3451_v32  ;;  %v13176_v32 = vcombine.high %v3513_v27, %v3517_v28 }
 0x49c   : > { %v16479_v46 = vld [vmem:[#allocation2 + $0x1] sm:$0x1] }
 0x49d   : > { %3939 = vmatmul.mubr.f32.vlgmr.msra.gmra.mxu1 %v16479_v46  ;;  %3978 = vmatmul.mubr.f32.vlgmr.msra.gmra.mxu0 %v16479_v46 }
 0x49e   : > { %3985 = vmatpush1.bf16.msra.mxu1 %v13113_v17  ;;  %4024 = vmatpush1.bf16.msra.mxu0 %v13115_v21  ;;  %v13090_v17 = vcombine.high %v3556_v48, %v3560_v52  ;;  %v3552_v21 = vld [vmem:[#allocation10 + $0x2f0] sm:$0xff]  ;;  %v13158_v48 = vcombine.high %v3496_v40, %v3500_v43 }
 0x49f   : > { %3986 = vmatprep.subr.bf16.mxu1 %v13106_v42  ;;  %4025 = vmatprep.subr.bf16.mxu0 %v13108_v44  ;;  %v13082_v58 = vcombine.high %v3548_v20, %v3552_v21  ;;  %v13081_v63 = vcombine.low %v3548_v20, %v3552_v21  ;;  %v13173_v42 = vcombine.low %v3512_v25, %v3516_v26  ;;  %v3480_v21 = vld [vmem:[#allocation10 + $0xc0] sm:$0xff]  ;;  %v3514_v26 = vld [vmem:[#allocation10 + $0x1d0] sm:$0xff] }
 0x4a0   : > { %4016 = vmatprep.mubr.f32.mxu1 %v15514_v16  ;;  %4055 = vmatprep.mubr.f32.mxu0 %v15514_v16  ;;  %v13175_v44 = vcombine.low %v3513_v27, %v3517_v28  ;;  %v3518_v27 = vld [vmem:[#allocation10 + $0x1f0] sm:$0xff]  ;;  %v3515_v28 = vld [vmem:[#allocation10 + $0x1d8] sm:$0xff] }
 0x4a2   : > { %3987 = vmatpush1.bf16.msra.mxu1 %v13105_v49  ;;  %4026 = vmatpush1.bf16.msra.mxu0 %v13107_v45  ;;  %v3497_v49 = vld [vmem:[#allocation10 + $0x148] sm:$0xff] }
 0x4a3   : > { %3988 = vmatprep.subr.bf16.mxu1 %v13098_v47  ;;  %4027 = vmatprep.subr.bf16.mxu0 %v13100_v50  ;;  %v3501_v45 = vld [vmem:[#allocation10 + $0x168] sm:$0xff]  ;;  %v13165_v47 = vcombine.low %v3504_v34, %v3508_v36  ;;  %v13167_v50 = vcombine.low %v3505_v39, %v3509_v41  ;;  %v3506_v36 = vld [vmem:[#allocation10 + $0x190] sm:$0xff]  ;;  %v3507_v41 = vld [vmem:[#allocation10 + $0x198] sm:$0xff] }
 0x4a4   : > { %v13160_v52 = vcombine.high %v3497_v49, %v3501_v45  ;;  %v3510_v39 = vld [vmem:[#allocation10 + $0x1b0] sm:$0xff] }
 0x4a6   : > { %3989 = vmatpush1.bf16.msra.mxu1 %v13097_v12  ;;  %4028 = vmatpush1.bf16.msra.mxu0 %v13099_v13  ;;  %v3489_v12 = vld [vmem:[#allocation10 + $0x108] sm:$0xff] }
 0x4a7   : > { %3990 = vmatprep.subr.bf16.mxu1 %v13090_v17  ;;  %4029 = vmatprep.subr.bf16.mxu0 %v13092_v19  ;;  %v3493_v13 = vld [vmem:[#allocation10 + $0x128] sm:$0xff]  ;;  %v13157_v17 = vcombine.low %v3496_v40, %v3500_v43  ;;  %v13150_v19 = vcombine.high %v3488_v51, %v3492_v53  ;;  %v3498_v43 = vld [vmem:[#allocation10 + $0x150] sm:$0xff] }
 0x4a8   : > { %v13152_v20 = vcombine.high %v3489_v12, %v3493_v13 }
 0x4aa   : > { %3991 = vmatpush1.bf16.msra.mxu1 %v13089_v56  ;;  %4030 = vmatpush1.bf16.msra.mxu0 %v13091_v57  ;;  %v3485_v56 = vld [vmem:[#allocation10 + $0xe8] sm:$0xff]  ;;  %v13149_v57 = vcombine.low %v3488_v51, %v3492_v53 }
 0x4ab   : > { %3992 = vmatprep.subr.bf16.mxu1 %v13082_v58  ;;  %4031 = vmatprep.subr.bf16.mxu0 %v13084_v59  ;;  %v13151_v58 = vcombine.low %v3489_v12, %v3493_v13  ;;  %v13142_v59 = vcombine.high %v3480_v21, %v3484_v54  ;;  %v13144_v60 = vcombine.high %v3481_v55, %v3485_v56  ;;  %v3490_v12 = vld [vmem:[#allocation10 + $0x110] sm:$0xff] }
 0x4ac   : > { %v3494_v13 = vld [vmem:[#allocation10 + $0x130] sm:$0xff] }
 0x4ae   : > { %3993 = vmatpush1.bf16.msra.mxu1 %v13081_v63  ;;  %4032 = vmatpush1.bf16.msra.mxu0 %v13083_v0  ;;  %v3477_v63 = vld [vmem:[#allocation10 + $0xa8] sm:$0xff]  ;;  %v13141_v0 = vcombine.low %v3480_v21, %v3484_v54  ;;  %v13154_v21 = vcombine.high %v3490_v12, %v3494_v13 }
 0x4af   : > { %3994 = vmatprep.subr.bf16.mxu1 %v13074_v38  ;;  %4033 = vmatprep.subr.bf16.mxu0 %v13076_v1  ;;  %v13143_v38 = vcombine.low %v3481_v55, %v3485_v56  ;;  %v13134_v1 = vcombine.high %v3472_v61, %v3476_v62  ;;  %v13136_v2 = vcombine.high %v3473_v35, %v3477_v63  ;;  %v3482_v55 = vld [vmem:[#allocation10 + $0xd0] sm:$0xff] }
 0x4b0   : > { %v3486_v56 = vld [vmem:[#allocation10 + $0xf0] sm:$0xff] }
 0x4b2   : > { %3995 = vmatpush1.bf16.msra.mxu1 %v13073_v6  ;;  %4034 = vmatpush1.bf16.msra.mxu0 %v13075_v7  ;;  %v3469_v6 = vld [vmem:[#allocation10 + $0x68] sm:$0xff]  ;;  %v13133_v7 = vcombine.low %v3472_v61, %v3476_v62  ;;  %v13146_v61 = vcombine.high %v3482_v55, %v3486_v56 }
 0x4b3   : > { %3996 = vmatprep.subr.bf16.mxu1 %v13066_v8  ;;  %4035 = vmatprep.subr.bf16.mxu0 %v13068_v9  ;;  %v13135_v8 = vcombine.low %v3473_v35, %v3477_v63  ;;  %v13126_v9 = vcombine.high %v3464_v3, %v3468_v4  ;;  %v13128_v10 = vcombine.high %v3465_v5, %v3469_v6  ;;  %v3474_v35 = vld [vmem:[#allocation10 + $0x90] sm:$0xff] }
 0x4b4   : > { %v3478_v63 = vld [vmem:[#allocation10 + $0xb0] sm:$0xff] }
 0x4b6   : > { %3997 = vmatpush1.bf16.msra.mxu1 %v13065_v18  ;;  %4036 = vmatpush1.bf16.msra.mxu0 %v13067_v22  ;;  %v3461_v18 = vld [vmem:[#allocation10 + $0x28] sm:$0xff]  ;;  %v13125_v22 = vcombine.low %v3464_v3, %v3468_v4  ;;  %v13138_v3 = vcombine.high %v3474_v35, %v3478_v63 }
 0x4b7   : > { %3998 = vmatprep.subr.bf16.mxu1 %v13058_v23  ;;  %4037 = vmatprep.subr.bf16.mxu0 %v13060_v24  ;;  %v13127_v23 = vcombine.low %v3465_v5, %v3469_v6  ;;  %v13118_v24 = vcombine.high %v3456_v11, %v3460_v14  ;;  %v13120_v25 = vcombine.high %v3457_v15, %v3461_v18  ;;  %v3466_v5 = vld [vmem:[#allocation10 + $0x50] sm:$0xff] }
 0x4b8   : > { %v3470_v6 = vld [vmem:[#allocation10 + $0x70] sm:$0xff] }
 0x4ba   : > { %3999 = vmatpush1.bf16.msra.mxu1 %v13057_v29  ;;  %4038 = vmatpush1.bf16.msra.mxu0 %v13059_v30  ;;  %v3519_v29 = vld [vmem:[#allocation10 + $0x1f8] sm:$0xff]  ;;  %v13117_v30 = vcombine.low %v3456_v11, %v3460_v14  ;;  %v13130_v11 = vcombine.high %v3466_v5, %v3470_v6 }
 0x4bb   : > { %4382 = vmatprep.subr.bf16.mxu1 %v13174_v31  ;;  %4421 = vmatprep.subr.bf16.mxu0 %v13176_v32  ;;  %v13119_v31 = vcombine.low %v3457_v15, %v3461_v18  ;;  %v13178_v32 = vcombine.high %v3514_v26, %v3518_v27  ;;  %v13180_v34 = vcombine.high %v3515_v28, %v3519_v29  ;;  %v3458_v15 = vld [vmem:[#allocation10 + $0x10] sm:$0xff] }
 0x4bc   : > { %v3462_v18 = vld [vmem:[#allocation10 + $0x30] sm:$0xff] }
 0x4bd   : > { %4017 = vmatmul.mubr.f32.vlgmr.msra.gmra.mxu1 %v16479_v46  ;;  %4056 = vmatmul.mubr.f32.vlgmr.msra.gmra.mxu0 %v16479_v46  ;;  %v13159_v46 = vcombine.low %v3497_v49, %v3501_v45  ;;  %v3502_v49 = vld [vmem:[#allocation10 + $0x170] sm:$0xff]  ;;  %v16495_v45 = vld [vmem:[#allocation2] sm:$0x1] }
 0x4be   : > { %4383 = vmatpush1.bf16.msra.mxu1 %v13173_v42  ;;  %4422 = vmatpush1.bf16.msra.mxu0 %v13175_v44  ;;  %v3511_v42 = vld [vmem:[#allocation10 + $0x1b8] sm:$0xff]  ;;  %v13177_v44 = vcombine.low %v3514_v26, %v3518_v27  ;;  %v13162_v51 = vcombine.high %v3498_v43, %v3502_v49  ;;  %v13122_v26 = vcombine.high %v3458_v15, %v3462_v18 }
 0x4bf   : > { %4384 = vmatprep.subr.bf16.mxu1 %v13166_v33  ;;  %4423 = vmatprep.subr.bf16.mxu0 %v13168_v37  ;;  %v13179_v33 = vcombine.low %v3515_v28, %v3519_v29  ;;  %v13170_v37 = vcombine.high %v3506_v36, %v3510_v39  ;;  %v13172_v40 = vcombine.high %v3507_v41, %v3511_v42  ;;  %v4596_v28 = vld [vmem:[#allocation10 + $0x5c0] sm:$0xff] }
 0x4c0   : > { %4414 = vmatprep.mubr.f32.mxu1 %v15514_v16  ;;  %4453 = vmatprep.mubr.f32.mxu0 %v15514_v16  ;;  %v4600_v29 = vld [vmem:[#allocation10 + $0x5e0] sm:$0xff] }
 0x4c2   : > { %4385 = vmatpush1.bf16.msra.mxu1 %v13165_v47  ;;  %4424 = vmatpush1.bf16.msra.mxu0 %v13167_v50  ;;  %v3499_v47 = vld [vmem:[#allocation10 + $0x158] sm:$0xff] }
 0x4c3   : > { %4386 = vmatprep.subr.bf16.mxu1 %v13158_v48  ;;  %4425 = vmatprep.subr.bf16.mxu0 %v13160_v52  ;;  %v3503_v50 = vld [vmem:[#allocation10 + $0x178] sm:$0xff]  ;;  %v13169_v48 = vcombine.low %v3506_v36, %v3510_v39  ;;  %v13171_v52 = vcombine.low %v3507_v41, %v3511_v42  ;;  %v13238_v36 = vcombine.high %v4596_v28, %v4600_v29  ;;  %v4588_v41 = vld [vmem:[#allocation10 + $0x580] sm:$0xff] }
 0x4c4   : > { %v13164_v53 = vcombine.high %v3499_v47, %v3503_v50  ;;  %v4592_v42 = vld [vmem:[#allocation10 + $0x5a0] sm:$0xff] }
 0x4c6   : > { %4387 = vmatpush1.bf16.msra.mxu1 %v13157_v17  ;;  %4426 = vmatpush1.bf16.msra.mxu0 %v13159_v46  ;;  %v3491_v17 = vld [vmem:[#allocation10 + $0x118] sm:$0xff] }
 0x4c7   : > { %4388 = vmatprep.subr.bf16.mxu1 %v13150_v19  ;;  %4427 = vmatprep.subr.bf16.mxu0 %v13152_v20  ;;  %v3495_v46 = vld [vmem:[#allocation10 + $0x138] sm:$0xff]  ;;  %v13161_v19 = vcombine.low %v3498_v43, %v3502_v49  ;;  %v13163_v20 = vcombine.low %v3499_v47, %v3503_v50  ;;  %v13230_v43 = vcombine.high %v4588_v41, %v4592_v42  ;;  %v4580_v47 = vld [vmem:[#allocation10 + $0x540] sm:$0xff] }
 0x4c8   : > { %v13156_v54 = vcombine.high %v3491_v17, %v3495_v46  ;;  %v4584_v50 = vld [vmem:[#allocation10 + $0x560] sm:$0xff] }
 0x4ca   : > { %4389 = vmatpush1.bf16.msra.mxu1 %v13149_v57  ;;  %4428 = vmatpush1.bf16.msra.mxu0 %v13151_v58  ;;  %v3483_v57 = vld [vmem:[#allocation10 + $0xd8] sm:$0xff] }
 0x4cb   : > { %4390 = vmatprep.subr.bf16.mxu1 %v13142_v59  ;;  %4429 = vmatprep.subr.bf16.mxu0 %v13144_v60  ;;  %v3487_v58 = vld [vmem:[#allocation10 + $0xf8] sm:$0xff]  ;;  %v13153_v59 = vcombine.low %v3490_v12, %v3494_v13  ;;  %v13155_v60 = vcombine.low %v3491_v17, %v3495_v46  ;;  %v13222_v12 = vcombine.high %v4580_v47, %v4584_v50  ;;  %v4572_v17 = vld [vmem:[#allocation10 + $0x500] sm:$0xff] }
 0x4cc   : > { %v13148_v62 = vcombine.high %v3483_v57, %v3487_v58  ;;  %v4576_v46 = vld [vmem:[#allocation10 + $0x520] sm:$0xff] }
 0x4ce   : > { %4391 = vmatpush1.bf16.msra.mxu1 %v13141_v0  ;;  %4430 = vmatpush1.bf16.msra.mxu0 %v13143_v38  ;;  %v3475_v0 = vld [vmem:[#allocation10 + $0x98] sm:$0xff] }
 0x4cf   : > { %4392 = vmatprep.subr.bf16.mxu1 %v13134_v1  ;;  %4431 = vmatprep.subr.bf16.mxu0 %v13136_v2  ;;  %v3479_v38 = vld [vmem:[#allocation10 + $0xb8] sm:$0xff]  ;;  %v13145_v1 = vcombine.low %v3482_v55, %v3486_v56  ;;  %v13147_v2 = vcombine.low %v3483_v57, %v3487_v58  ;;  %v4564_v56 = vld [vmem:[#allocation10 + $0x4c0] sm:$0xff]  ;;  %v4565_v58 = vld [vmem:[#allocation10 + $0x4c8] sm:$0xff] }
 0x4d0   : > { %v13140_v4 = vcombine.high %v3475_v0, %v3479_v38  ;;  %v4568_v57 = vld [vmem:[#allocation10 + $0x4e0] sm:$0xff] }
 0x4d2   : > { %4393 = vmatpush1.bf16.msra.mxu1 %v13133_v7  ;;  %4432 = vmatpush1.bf16.msra.mxu0 %v13135_v8  ;;  %v3467_v7 = vld [vmem:[#allocation10 + $0x58] sm:$0xff] }
 0x4d3   : > { %4394 = vmatprep.subr.bf16.mxu1 %v13126_v9  ;;  %4433 = vmatprep.subr.bf16.mxu0 %v13128_v10  ;;  %v3471_v8 = vld [vmem:[#allocation10 + $0x78] sm:$0xff]  ;;  %v13137_v9 = vcombine.low %v3474_v35, %v3478_v63  ;;  %v13139_v10 = vcombine.low %v3475_v0, %v3479_v38  ;;  %v4556_v63 = vld [vmem:[#allocation10 + $0x480] sm:$0xff]  ;;  %v4557_v38 = vld [vmem:[#allocation10 + $0x488] sm:$0xff] }
 0x4d4   : > { %v13132_v14 = vcombine.high %v3467_v7, %v3471_v8  ;;  %v4560_v0 = vld [vmem:[#allocation10 + $0x4a0] sm:$0xff] }
 0x4d6   : > { %4395 = vmatpush1.bf16.msra.mxu1 %v13125_v22  ;;  %4434 = vmatpush1.bf16.msra.mxu0 %v13127_v23  ;;  %v3459_v22 = vld [vmem:[#allocation10 + $0x18] sm:$0xff] }
 0x4d7   : > { %4396 = vmatprep.subr.bf16.mxu1 %v13118_v24  ;;  %4435 = vmatprep.subr.bf16.mxu0 %v13120_v25  ;;  %v3463_v23 = vld [vmem:[#allocation10 + $0x38] sm:$0xff]  ;;  %v13129_v24 = vcombine.low %v3466_v5, %v3470_v6  ;;  %v13131_v25 = vcombine.low %v3467_v7, %v3471_v8  ;;  %v4548_v6 = vld [vmem:[#allocation10 + $0x440] sm:$0xff]  ;;  %v4549_v8 = vld [vmem:[#allocation10 + $0x448] sm:$0xff] }
 0x4d8   : > { %v13124_v27 = vcombine.high %v3459_v22, %v3463_v23  ;;  %v4552_v7 = vld [vmem:[#allocation10 + $0x460] sm:$0xff] }
 0x4da   : > { %4397 = vmatpush1.bf16.msra.mxu1 %v13117_v30  ;;  %4436 = vmatpush1.bf16.msra.mxu0 %v13119_v31  ;;  %v4597_v30 = vld [vmem:[#allocation10 + $0x5c8] sm:$0xff] }
 0x4db   : > { %4460 = vmatprep.subr.bf16.mxu1 %v13178_v32  ;;  %4499 = vmatprep.subr.bf16.mxu0 %v13180_v34  ;;  %v4601_v31 = vld [vmem:[#allocation10 + $0x5e8] sm:$0xff]  ;;  %v13121_v32 = vcombine.low %v3458_v15, %v3462_v18  ;;  %v13123_v34 = vcombine.low %v3459_v22, %v3463_v23  ;;  %v4540_v18 = vld [vmem:[#allocation10 + $0x400] sm:$0xff] }
 0x4dc   : > { %v13240_v39 = vcombine.high %v4597_v30, %v4601_v31  ;;  %v4544_v22 = vld [vmem:[#allocation10 + $0x420] sm:$0xff]  ;;  %v4541_v23 = vld [vmem:[#allocation10 + $0x408] sm:$0xff] }
 0x4dd   : > { %4415 = vmatmul.mubr.f32.vlgmr.msra.gmra.mxu1 %v16495_v45  ;;  %4454 = vmatmul.mubr.f32.vlgmr.msra.gmra.mxu0 %v16495_v45 }
 0x4de   : > { %4461 = vmatpush1.bf16.msra.mxu1 %v13177_v44  ;;  %4500 = vmatpush1.bf16.msra.mxu0 %v13179_v33  ;;  %v4589_v44 = vld [vmem:[#allocation10 + $0x588] sm:$0xff] }
 0x4df   : > { %4462 = vmatprep.subr.bf16.mxu1 %v13170_v37  ;;  %4501 = vmatprep.subr.bf16.mxu0 %v13172_v40  ;;  %v4593_v33 = vld [vmem:[#allocation10 + $0x5a8] sm:$0xff]  ;;  %v13237_v37 = vcombine.low %v4596_v28, %v4600_v29  ;;  %v13239_v40 = vcombine.low %v4597_v30, %v4601_v31  ;;  %v4598_v29 = vld [vmem:[#allocation10 + $0x5d0] sm:$0xff]  ;;  %v4599_v31 = vld [vmem:[#allocation10 + $0x5d8] sm:$0xff] }
 0x4e0   : > { %4492 = vmatprep.mubr.f32.mxu1 %v15514_v16  ;;  %4531 = vmatprep.mubr.f32.mxu0 %v15514_v16  ;;  %v13232_v49 = vcombine.high %v4589_v44, %v4593_v33  ;;  %v4602_v30 = vld [vmem:[#allocation10 + $0x5f0] sm:$0xff] }
 0x4e2   : > { %4463 = vmatpush1.bf16.msra.mxu1 %v13169_v48  ;;  %4502 = vmatpush1.bf16.msra.mxu0 %v13171_v52  ;;  %v4581_v48 = vld [vmem:[#allocation10 + $0x548] sm:$0xff] }
 0x4e3   : > { %4464 = vmatprep.subr.bf16.mxu1 %v13162_v51  ;;  %4503 = vmatprep.subr.bf16.mxu0 %v13164_v53  ;;  %v4585_v52 = vld [vmem:[#allocation10 + $0x568] sm:$0xff]  ;;  %v13229_v51 = vcombine.low %v4588_v41, %v4592_v42  ;;  %v13231_v53 = vcombine.low %v4589_v44, %v4593_v33  ;;  %v4590_v42 = vld [vmem:[#allocation10 + $0x590] sm:$0xff]  ;;  %v4591_v33 = vld [vmem:[#allocation10 + $0x598] sm:$0xff] }
 0x4e4   : > { %v13224_v13 = vcombine.high %v4581_v48, %v4585_v52  ;;  %v4594_v44 = vld [vmem:[#allocation10 + $0x5b0] sm:$0xff] }
 0x4e6   : > { %4465 = vmatpush1.bf16.msra.mxu1 %v13161_v19  ;;  %4504 = vmatpush1.bf16.msra.mxu0 %v13163_v20  ;;  %v4573_v19 = vld [vmem:[#allocation10 + $0x508] sm:$0xff] }
 0x4e7   : > { %4466 = vmatprep.subr.bf16.mxu1 %v13154_v21  ;;  %4505 = vmatprep.subr.bf16.mxu0 %v13156_v54  ;;  %v4577_v20 = vld [vmem:[#allocation10 + $0x528] sm:$0xff]  ;;  %v13221_v21 = vcombine.low %v4580_v47, %v4584_v50  ;;  %v13214_v54 = vcombine.high %v4572_v17, %v4576_v46  ;;  %v13234_v47 = vcombine.high %v4590_v42, %v4594_v44 }
 0x4e8   : > { %v13216_v55 = vcombine.high %v4573_v19, %v4577_v20 }
 0x4ea   : > { %4467 = vmatpush1.bf16.msra.mxu1 %v13153_v59  ;;  %4506 = vmatpush1.bf16.msra.mxu0 %v13155_v60  ;;  %v4569_v59 = vld [vmem:[#allocation10 + $0x4e8] sm:$0xff]  ;;  %v13213_v60 = vcombine.low %v4572_v17, %v4576_v46 }
 0x4eb   : > { %4468 = vmatprep.subr.bf16.mxu1 %v13146_v61  ;;  %4507 = vmatprep.subr.bf16.mxu0 %v13148_v62  ;;  %v13215_v61 = vcombine.low %v4573_v19, %v4577_v20  ;;  %v13206_v62 = vcombine.high %v4564_v56, %v4568_v57  ;;  %v13208_v35 = vcombine.high %v4565_v58, %v4569_v59  ;;  %v4574_v19 = vld [vmem:[#allocation10 + $0x510] sm:$0xff] }
 0x4ec   : > { %v4578_v20 = vld [vmem:[#allocation10 + $0x530] sm:$0xff] }
 0x4ee   : > { %4469 = vmatpush1.bf16.msra.mxu1 %v13145_v1  ;;  %4508 = vmatpush1.bf16.msra.mxu0 %v13147_v2  ;;  %v4561_v1 = vld [vmem:[#allocation10 + $0x4a8] sm:$0xff]  ;;  %v13205_v2 = vcombine.low %v4564_v56, %v4568_v57  ;;  %v13218_v56 = vcombine.high %v4574_v19, %v4578_v20 }
 0x4ef   : > { %4470 = vmatprep.subr.bf16.mxu1 %v13138_v3  ;;  %4509 = vmatprep.subr.bf16.mxu0 %v13140_v4  ;;  %v13207_v3 = vcombine.low %v4565_v58, %v4569_v59  ;;  %v13198_v4 = vcombine.high %v4556_v63, %v4560_v0  ;;  %v13200_v5 = vcombine.high %v4557_v38, %v4561_v1  ;;  %v4566_v58 = vld [vmem:[#allocation10 + $0x4d0] sm:$0xff] }
 0x4f0   : > { %v4570_v59 = vld [vmem:[#allocation10 + $0x4f0] sm:$0xff] }
 0x4f2   : > { %4471 = vmatpush1.bf16.msra.mxu1 %v13137_v9  ;;  %4510 = vmatpush1.bf16.msra.mxu0 %v13139_v10  ;;  %v4553_v9 = vld [vmem:[#allocation10 + $0x468] sm:$0xff]  ;;  %v13197_v10 = vcombine.low %v4556_v63, %v4560_v0  ;;  %v13210_v63 = vcombine.high %v4566_v58, %v4570_v59 }
 0x4f3   : > { %4472 = vmatprep.subr.bf16.mxu1 %v13130_v11  ;;  %4511 = vmatprep.subr.bf16.mxu0 %v13132_v14  ;;  %v13199_v11 = vcombine.low %v4557_v38, %v4561_v1  ;;  %v13190_v14 = vcombine.high %v4548_v6, %v4552_v7  ;;  %v13192_v15 = vcombine.high %v4549_v8, %v4553_v9  ;;  %v4558_v38 = vld [vmem:[#allocation10 + $0x490] sm:$0xff] }
 0x4f4   : > { %v4562_v1 = vld [vmem:[#allocation10 + $0x4b0] sm:$0xff] }
 0x4f6   : > { %4473 = vmatpush1.bf16.msra.mxu1 %v13129_v24  ;;  %4512 = vmatpush1.bf16.msra.mxu0 %v13131_v25  ;;  %v4545_v24 = vld [vmem:[#allocation10 + $0x428] sm:$0xff]  ;;  %v13189_v25 = vcombine.low %v4548_v6, %v4552_v7  ;;  %v13202_v6 = vcombine.high %v4558_v38, %v4562_v1 }
 0x4f7   : > { %4474 = vmatprep.subr.bf16.mxu1 %v13122_v26  ;;  %4513 = vmatprep.subr.bf16.mxu0 %v13124_v27  ;;  %v13191_v26 = vcombine.low %v4549_v8, %v4553_v9  ;;  %v13182_v27 = vcombine.high %v4540_v18, %v4544_v22  ;;  %v13184_v28 = vcombine.high %v4541_v23, %v4545_v24  ;;  %v4550_v8 = vld [vmem:[#allocation10 + $0x450] sm:$0xff] }
 0x4f8   : > { %v4554_v9 = vld [vmem:[#allocation10 + $0x470] sm:$0xff] }
 0x4fa   : > { %4475 = vmatpush1.bf16.msra.mxu1 %v13121_v32  ;;  %4514 = vmatpush1.bf16.msra.mxu0 %v13123_v34  ;;  %v4603_v32 = vld [vmem:[#allocation10 + $0x5f8] sm:$0xff]  ;;  %v13181_v34 = vcombine.low %v4540_v18, %v4544_v22  ;;  %v13194_v18 = vcombine.high %v4550_v8, %v4554_v9 }
 0x4fb   : > { %4924 = vmatprep.subr.bf16.mxu1 %v13238_v36  ;;  %4963 = vmatprep.subr.bf16.mxu0 %v13240_v39  ;;  %v13183_v36 = vcombine.low %v4541_v23, %v4545_v24  ;;  %v13242_v39 = vcombine.high %v4598_v29, %v4602_v30  ;;  %v13244_v41 = vcombine.high %v4599_v31, %v4603_v32  ;;  %v4542_v23 = vld [vmem:[#allocation10 + $0x410] sm:$0xff] }
 0x4fc   : > { %v4546_v24 = vld [vmem:[#allocation10 + $0x430] sm:$0xff] }
 0x4fd   : > { %4493 = vmatmul.mubr.f32.vlgmr.msra.gmra.mxu1 %v16495_v45  ;;  %4532 = vmatmul.mubr.f32.vlgmr.msra.gmra.mxu0 %v16495_v45  ;;  %v13223_v45 = vcombine.low %v4581_v48, %v4585_v52  ;;  %v4582_v48 = vld [vmem:[#allocation10 + $0x550] sm:$0xff] }
 0x4fe   : > { %4925 = vmatpush1.bf16.msra.mxu1 %v13237_v37  ;;  %4964 = vmatpush1.bf16.msra.mxu0 %v13239_v40  ;;  %v4595_v37 = vld [vmem:[#allocation10 + $0x5b8] sm:$0xff]  ;;  %v13241_v40 = vcombine.low %v4598_v29, %v4602_v30  ;;  %v4586_v52 = vld [vmem:[#allocation10 + $0x570] sm:$0xff]  ;;  %v13186_v29 = vcombine.high %v4542_v23, %v4546_v24 }
 0x4ff   : > { %4926 = vmatprep.subr.bf16.mxu1 %v13230_v43  ;;  %4965 = vmatprep.subr.bf16.mxu0 %v13232_v49  ;;  %v13243_v43 = vcombine.low %v4599_v31, %v4603_v32  ;;  %v16505_v49 = vld [vmem:[#allocation2 + $0x2] sm:$0x1]  ;;  %v13236_v50 = vcombine.high %v4591_v33, %v4595_v37  ;;  %v13226_v17 = vcombine.high %v4582_v48, %v4586_v52  ;;  %v5146_v31 = vld [vmem:[#allocation10 + $0x7c0] sm:$0xff] }
 0x500   : > { %4956 = vmatprep.mubr.f32.mxu1 %v15514_v16  ;;  %4995 = vmatprep.mubr.f32.mxu0 %v15514_v16  ;;  %v5150_v32 = vld [vmem:[#allocation10 + $0x7e0] sm:$0xff] }
 0x502   : > { %4927 = vmatpush1.bf16.msra.mxu1 %v13229_v51  ;;  %4966 = vmatpush1.bf16.msra.mxu0 %v13231_v53  ;;  %v4583_v51 = vld [vmem:[#allocation10 + $0x558] sm:$0xff] }
 0x503   : > { %4928 = vmatprep.subr.bf16.mxu1 %v13222_v12  ;;  %4967 = vmatprep.subr.bf16.mxu0 %v13224_v13  ;;  %v4587_v53 = vld [vmem:[#allocation10 + $0x578] sm:$0xff]  ;;  %v13233_v12 = vcombine.low %v4590_v42, %v4594_v44  ;;  %v13235_v13 = vcombine.low %v4591_v33, %v4595_v37  ;;  %v13302_v42 = vcombine.high %v5146_v31, %v5150_v32  ;;  %v5138_v33 = vld [vmem:[#allocation10 + $0x780] sm:$0xff] }
 0x504   : > { %v13228_v46 = vcombine.high %v4583_v51, %v4587_v53  ;;  %v5142_v37 = vld [vmem:[#allocation10 + $0x7a0] sm:$0xff] }
 0x506   : > { %4929 = vmatpush1.bf16.msra.mxu1 %v13221_v21  ;;  %4968 = vmatpush1.bf16.msra.mxu0 %v13223_v45  ;;  %v4575_v21 = vld [vmem:[#allocation10 + $0x518] sm:$0xff] }
 0x507   : > { %4930 = vmatprep.subr.bf16.mxu1 %v13214_v54  ;;  %4969 = vmatprep.subr.bf16.mxu0 %v13216_v55  ;;  %v4579_v45 = vld [vmem:[#allocation10 + $0x538] sm:$0xff]  ;;  %v13225_v54 = vcombine.low %v4582_v48, %v4586_v52  ;;  %v13227_v55 = vcombine.low %v4583_v51, %v4587_v53  ;;  %v13294_v48 = vcombine.high %v5138_v33, %v5142_v37  ;;  %v5130_v51 = vld [vmem:[#allocation10 + $0x740] sm:$0xff] }
 0x508   : > { %v13220_v57 = vcombine.high %v4575_v21, %v4579_v45  ;;  %v5134_v53 = vld [vmem:[#allocation10 + $0x760] sm:$0xff] }
 0x50a   : > { %4931 = vmatpush1.bf16.msra.mxu1 %v13213_v60  ;;  %4970 = vmatpush1.bf16.msra.mxu0 %v13215_v61  ;;  %v4567_v60 = vld [vmem:[#allocation10 + $0x4d8] sm:$0xff] }
 0x50b   : > { %4932 = vmatprep.subr.bf16.mxu1 %v13206_v62  ;;  %4971 = vmatprep.subr.bf16.mxu0 %v13208_v35  ;;  %v4571_v61 = vld [vmem:[#allocation10 + $0x4f8] sm:$0xff]  ;;  %v13217_v62 = vcombine.low %v4574_v19, %v4578_v20  ;;  %v13219_v35 = vcombine.low %v4575_v21, %v4579_v45  ;;  %v13286_v19 = vcombine.high %v5130_v51, %v5134_v53  ;;  %v5122_v21 = vld [vmem:[#allocation10 + $0x700] sm:$0xff] }
 0x50c   : > { %v13212_v0 = vcombine.high %v4567_v60, %v4571_v61  ;;  %v5126_v45 = vld [vmem:[#allocation10 + $0x720] sm:$0xff] }
 0x50e   : > { %4933 = vmatpush1.bf16.msra.mxu1 %v13205_v2  ;;  %4972 = vmatpush1.bf16.msra.mxu0 %v13207_v3  ;;  %v4559_v2 = vld [vmem:[#allocation10 + $0x498] sm:$0xff] }
 0x50f   : > { %4934 = vmatprep.subr.bf16.mxu1 %v13198_v4  ;;  %4973 = vmatprep.subr.bf16.mxu0 %v13200_v5  ;;  %v4563_v3 = vld [vmem:[#allocation10 + $0x4b8] sm:$0xff]  ;;  %v13209_v4 = vcombine.low %v4566_v58, %v4570_v59  ;;  %v13211_v5 = vcombine.low %v4567_v60, %v4571_v61  ;;  %v5114_v59 = vld [vmem:[#allocation10 + $0x6c0] sm:$0xff]  ;;  %v5115_v61 = vld [vmem:[#allocation10 + $0x6c8] sm:$0xff] }
 0x510   : > { %v13204_v7 = vcombine.high %v4559_v2, %v4563_v3  ;;  %v5118_v60 = vld [vmem:[#allocation10 + $0x6e0] sm:$0xff] }
 0x512   : > { %4935 = vmatpush1.bf16.msra.mxu1 %v13197_v10  ;;  %4974 = vmatpush1.bf16.msra.mxu0 %v13199_v11  ;;  %v4551_v10 = vld [vmem:[#allocation10 + $0x458] sm:$0xff] }
 0x513   : > { %4936 = vmatprep.subr.bf16.mxu1 %v13190_v14  ;;  %4975 = vmatprep.subr.bf16.mxu0 %v13192_v15  ;;  %v4555_v11 = vld [vmem:[#allocation10 + $0x478] sm:$0xff]  ;;  %v13201_v14 = vcombine.low %v4558_v38, %v4562_v1  ;;  %v13203_v15 = vcombine.low %v4559_v2, %v4563_v3  ;;  %v5106_v1 = vld [vmem:[#allocation10 + $0x680] sm:$0xff]  ;;  %v5107_v3 = vld [vmem:[#allocation10 + $0x688] sm:$0xff] }
 0x514   : > { %v13196_v22 = vcombine.high %v4551_v10, %v4555_v11  ;;  %v5110_v2 = vld [vmem:[#allocation10 + $0x6a0] sm:$0xff] }
 0x516   : > { %4937 = vmatpush1.bf16.msra.mxu1 %v13189_v25  ;;  %4976 = vmatpush1.bf16.msra.mxu0 %v13191_v26  ;;  %v4543_v25 = vld [vmem:[#allocation10 + $0x418] sm:$0xff] }
 0x517   : > { %4938 = vmatprep.subr.bf16.mxu1 %v13182_v27  ;;  %4977 = vmatprep.subr.bf16.mxu0 %v13184_v28  ;;  %v4547_v26 = vld [vmem:[#allocation10 + $0x438] sm:$0xff]  ;;  %v13193_v27 = vcombine.low %v4550_v8, %v4554_v9  ;;  %v13195_v28 = vcombine.low %v4551_v10, %v4555_v11  ;;  %v5098_v9 = vld [vmem:[#allocation10 + $0x640] sm:$0xff]  ;;  %v5099_v11 = vld [vmem:[#allocation10 + $0x648] sm:$0xff] }
 0x518   : > { %v13188_v30 = vcombine.high %v4543_v25, %v4547_v26  ;;  %v5102_v10 = vld [vmem:[#allocation10 + $0x660] sm:$0xff] }
 0x51a   : > { %4939 = vmatpush1.bf16.msra.mxu1 %v13181_v34  ;;  %4978 = vmatpush1.bf16.msra.mxu0 %v13183_v36  ;;  %v5147_v34 = vld [vmem:[#allocation10 + $0x7c8] sm:$0xff] }
 0x51b   : > { %5002 = vmatprep.subr.bf16.mxu1 %v13242_v39  ;;  %5041 = vmatprep.subr.bf16.mxu0 %v13244_v41  ;;  %v5151_v36 = vld [vmem:[#allocation10 + $0x7e8] sm:$0xff]  ;;  %v13185_v39 = vcombine.low %v4542_v23, %v4546_v24  ;;  %v13187_v41 = vcombine.low %v4543_v25, %v4547_v26  ;;  %v5090_v24 = vld [vmem:[#allocation10 + $0x600] sm:$0xff] }
 0x51c   : > { %v13304_v44 = vcombine.high %v5147_v34, %v5151_v36  ;;  %v5094_v25 = vld [vmem:[#allocation10 + $0x620] sm:$0xff]  ;;  %v5091_v26 = vld [vmem:[#allocation10 + $0x608] sm:$0xff] }
 0x51d   : > { %4957 = vmatmul.mubr.f32.vlgmr.msra.gmra.mxu1 %v16505_v49  ;;  %4996 = vmatmul.mubr.f32.vlgmr.msra.gmra.mxu0 %v16505_v49 }
 0x51e   : > { %5003 = vmatpush1.bf16.msra.mxu1 %v13241_v40  ;;  %5042 = vmatpush1.bf16.msra.mxu0 %v13243_v43  ;;  %v5139_v40 = vld [vmem:[#allocation10 + $0x788] sm:$0xff] }
 0x51f   : > { %5004 = vmatprep.subr.bf16.mxu1 %v13234_v47  ;;  %5043 = vmatprep.subr.bf16.mxu0 %v13236_v50  ;;  %v5143_v43 = vld [vmem:[#allocation10 + $0x7a8] sm:$0xff]  ;;  %v13301_v47 = vcombine.low %v5146_v31, %v5150_v32  ;;  %v13303_v50 = vcombine.low %v5147_v34, %v5151_v36  ;;  %v5148_v32 = vld [vmem:[#allocation10 + $0x7d0] sm:$0xff]  ;;  %v5149_v36 = vld [vmem:[#allocation10 + $0x7d8] sm:$0xff] }
 0x520   : > { %5034 = vmatprep.mubr.f32.mxu1 %v15514_v16  ;;  %5073 = vmatprep.mubr.f32.mxu0 %v15514_v16  ;;  %v13296_v52 = vcombine.high %v5139_v40, %v5143_v43  ;;  %v5152_v34 = vld [vmem:[#allocation10 + $0x7f0] sm:$0xff] }
 0x522   : > { %5005 = vmatpush1.bf16.msra.mxu1 %v13233_v12  ;;  %5044 = vmatpush1.bf16.msra.mxu0 %v13235_v13  ;;  %v5131_v12 = vld [vmem:[#allocation10 + $0x748] sm:$0xff] }
 0x523   : > { %5006 = vmatprep.subr.bf16.mxu1 %v13226_v17  ;;  %5045 = vmatprep.subr.bf16.mxu0 %v13228_v46  ;;  %v5135_v13 = vld [vmem:[#allocation10 + $0x768] sm:$0xff]  ;;  %v13293_v17 = vcombine.low %v5138_v33, %v5142_v37  ;;  %v13295_v46 = vcombine.low %v5139_v40, %v5143_v43  ;;  %v5140_v37 = vld [vmem:[#allocation10 + $0x790] sm:$0xff]  ;;  %v5141_v43 = vld [vmem:[#allocation10 + $0x798] sm:$0xff] }
 0x524   : > { %v13288_v20 = vcombine.high %v5131_v12, %v5135_v13  ;;  %v5144_v40 = vld [vmem:[#allocation10 + $0x7b0] sm:$0xff] }
 0x526   : > { %5007 = vmatpush1.bf16.msra.mxu1 %v13225_v54  ;;  %5046 = vmatpush1.bf16.msra.mxu0 %v13227_v55  ;;  %v5123_v54 = vld [vmem:[#allocation10 + $0x708] sm:$0xff] }
 0x527   : > { %5008 = vmatprep.subr.bf16.mxu1 %v13218_v56  ;;  %5047 = vmatprep.subr.bf16.mxu0 %v13220_v57  ;;  %v5127_v55 = vld [vmem:[#allocation10 + $0x728] sm:$0xff]  ;;  %v13285_v56 = vcombine.low %v5130_v51, %v5134_v53  ;;  %v13278_v57 = vcombine.high %v5122_v21, %v5126_v45  ;;  %v13298_v51 = vcombine.high %v5140_v37, %v5144_v40 }
 0x528   : > { %v13280_v58 = vcombine.high %v5123_v54, %v5127_v55 }
 0x52a   : > { %5009 = vmatpush1.bf16.msra.mxu1 %v13217_v62  ;;  %5048 = vmatpush1.bf16.msra.mxu0 %v13219_v35  ;;  %v5119_v62 = vld [vmem:[#allocation10 + $0x6e8] sm:$0xff]  ;;  %v13277_v35 = vcombine.low %v5122_v21, %v5126_v45 }
 0x52b   : > { %5010 = vmatprep.subr.bf16.mxu1 %v13210_v63  ;;  %5049 = vmatprep.subr.bf16.mxu0 %v13212_v0  ;;  %v13279_v63 = vcombine.low %v5123_v54, %v5127_v55  ;;  %v13270_v0 = vcombine.high %v5114_v59, %v5118_v60  ;;  %v13272_v38 = vcombine.high %v5115_v61, %v5119_v62  ;;  %v5124_v54 = vld [vmem:[#allocation10 + $0x710] sm:$0xff] }
 0x52c   : > { %v5128_v55 = vld [vmem:[#allocation10 + $0x730] sm:$0xff] }
 0x52e   : > { %5011 = vmatpush1.bf16.msra.mxu1 %v13209_v4  ;;  %5050 = vmatpush1.bf16.msra.mxu0 %v13211_v5  ;;  %v5111_v4 = vld [vmem:[#allocation10 + $0x6a8] sm:$0xff]  ;;  %v13269_v5 = vcombine.low %v5114_v59, %v5118_v60  ;;  %v13282_v59 = vcombine.high %v5124_v54, %v5128_v55 }
 0x52f   : > { %5012 = vmatprep.subr.bf16.mxu1 %v13202_v6  ;;  %5051 = vmatprep.subr.bf16.mxu0 %v13204_v7  ;;  %v13271_v6 = vcombine.low %v5115_v61, %v5119_v62  ;;  %v13262_v7 = vcombine.high %v5106_v1, %v5110_v2  ;;  %v13264_v8 = vcombine.high %v5107_v3, %v5111_v4  ;;  %v5116_v61 = vld [vmem:[#allocation10 + $0x6d0] sm:$0xff] }
 0x530   : > { %v5120_v62 = vld [vmem:[#allocation10 + $0x6f0] sm:$0xff] }
 0x532   : > { %5013 = vmatpush1.bf16.msra.mxu1 %v13201_v14  ;;  %5052 = vmatpush1.bf16.msra.mxu0 %v13203_v15  ;;  %v5103_v14 = vld [vmem:[#allocation10 + $0x668] sm:$0xff]  ;;  %v13261_v15 = vcombine.low %v5106_v1, %v5110_v2  ;;  %v13274_v1 = vcombine.high %v5116_v61, %v5120_v62 }
 0x533   : > { %5014 = vmatprep.subr.bf16.mxu1 %v13194_v18  ;;  %5053 = vmatprep.subr.bf16.mxu0 %v13196_v22  ;;  %v13263_v18 = vcombine.low %v5107_v3, %v5111_v4  ;;  %v13254_v22 = vcombine.high %v5098_v9, %v5102_v10  ;;  %v13256_v23 = vcombine.high %v5099_v11, %v5103_v14  ;;  %v5108_v3 = vld [vmem:[#allocation10 + $0x690] sm:$0xff] }
 0x534   : > { %v5112_v4 = vld [vmem:[#allocation10 + $0x6b0] sm:$0xff] }
 0x536   : > { %5015 = vmatpush1.bf16.msra.mxu1 %v13193_v27  ;;  %5054 = vmatpush1.bf16.msra.mxu0 %v13195_v28  ;;  %v5095_v27 = vld [vmem:[#allocation10 + $0x628] sm:$0xff]  ;;  %v13253_v28 = vcombine.low %v5098_v9, %v5102_v10  ;;  %v13266_v9 = vcombine.high %v5108_v3, %v5112_v4 }
 0x537   : > { %5016 = vmatprep.subr.bf16.mxu1 %v13186_v29  ;;  %5055 = vmatprep.subr.bf16.mxu0 %v13188_v30  ;;  %v13255_v29 = vcombine.low %v5099_v11, %v5103_v14  ;;  %v13246_v30 = vcombine.high %v5090_v24, %v5094_v25  ;;  %v13248_v31 = vcombine.high %v5091_v26, %v5095_v27  ;;  %v5100_v11 = vld [vmem:[#allocation10 + $0x650] sm:$0xff] }
 0x538   : > { %v5104_v14 = vld [vmem:[#allocation10 + $0x670] sm:$0xff] }
 0x53a   : > { %5017 = vmatpush1.bf16.msra.mxu1 %v13185_v39  ;;  %5056 = vmatpush1.bf16.msra.mxu0 %v13187_v41  ;;  %v5153_v39 = vld [vmem:[#allocation10 + $0x7f8] sm:$0xff]  ;;  %v13245_v41 = vcombine.low %v5090_v24, %v5094_v25  ;;  %v13258_v24 = vcombine.high %v5100_v11, %v5104_v14 }
 0x53b   : > { %5474 = vmatprep.subr.bf16.mxu1 %v13302_v42  ;;  %5513 = vmatprep.subr.bf16.mxu0 %v13304_v44  ;;  %v13247_v42 = vcombine.low %v5091_v26, %v5095_v27  ;;  %v13306_v44 = vcombine.high %v5148_v32, %v5152_v34  ;;  %v13308_v33 = vcombine.high %v5149_v36, %v5153_v39  ;;  %v5092_v26 = vld [vmem:[#allocation10 + $0x610] sm:$0xff] }
 0x53c   : > { %v5096_v27 = vld [vmem:[#allocation10 + $0x630] sm:$0xff] }
 0x53d   : > { %5035 = vmatmul.mubr.f32.vlgmr.msra.gmra.mxu1 %v16505_v49  ;;  %5074 = vmatmul.mubr.f32.vlgmr.msra.gmra.mxu0 %v16505_v49  ;;  %v13287_v49 = vcombine.low %v5131_v12, %v5135_v13  ;;  %v5132_v12 = vld [vmem:[#allocation10 + $0x750] sm:$0xff] }
 0x53e   : > { %5475 = vmatpush1.bf16.msra.mxu1 %v13301_v47  ;;  %5514 = vmatpush1.bf16.msra.mxu0 %v13303_v50  ;;  %v5145_v47 = vld [vmem:[#allocation10 + $0x7b8] sm:$0xff]  ;;  %v13305_v50 = vcombine.low %v5148_v32, %v5152_v34  ;;  %v5136_v13 = vld [vmem:[#allocation10 + $0x770] sm:$0xff]  ;;  %v13250_v32 = vcombine.high %v5092_v26, %v5096_v27 }
 0x53f   : > { %5476 = vmatprep.subr.bf16.mxu1 %v13294_v48  ;;  %5515 = vmatprep.subr.bf16.mxu0 %v13296_v52  ;;  %v13307_v48 = vcombine.low %v5149_v36, %v5153_v39  ;;  %v16515_v52 = vld [vmem:[#allocation2 + $0x3] sm:$0x1]  ;;  %v13300_v53 = vcombine.high %v5141_v43, %v5145_v47  ;;  %v13290_v21 = vcombine.high %v5132_v12, %v5136_v13  ;;  %v5696_v36 = vld [vmem:[#allocation10 + $0x9c0] sm:$0xff] }
 0x540   : > { %5506 = vmatprep.mubr.f32.mxu1 %v15514_v16  ;;  %5545 = vmatprep.mubr.f32.mxu0 %v15514_v16  ;;  %v5700_v39 = vld [vmem:[#allocation10 + $0x9e0] sm:$0xff] }
 0x542   : > { %5477 = vmatpush1.bf16.msra.mxu1 %v13293_v17  ;;  %5516 = vmatpush1.bf16.msra.mxu0 %v13295_v46  ;;  %v5133_v17 = vld [vmem:[#allocation10 + $0x758] sm:$0xff] }
 0x543   : > { %5478 = vmatprep.subr.bf16.mxu1 %v13286_v19  ;;  %5517 = vmatprep.subr.bf16.mxu0 %v13288_v20  ;;  %v5137_v46 = vld [vmem:[#allocation10 + $0x778] sm:$0xff]  ;;  %v13297_v19 = vcombine.low %v5140_v37, %v5144_v40  ;;  %v13299_v20 = vcombine.low %v5141_v43, %v5145_v47  ;;  %v13366_v37 = vcombine.high %v5696_v36, %v5700_v39  ;;  %v5688_v43 = vld [vmem:[#allocation10 + $0x980] sm:$0xff] }
 0x544   : > { %v13292_v45 = vcombine.high %v5133_v17, %v5137_v46  ;;  %v5692_v47 = vld [vmem:[#allocation10 + $0x9a0] sm:$0xff] }
 0x546   : > { %5479 = vmatpush1.bf16.msra.mxu1 %v13285_v56  ;;  %5518 = vmatpush1.bf16.msra.mxu0 %v13287_v49  ;;  %v5125_v56 = vld [vmem:[#allocation10 + $0x718] sm:$0xff] }
 0x547   : > { %5480 = vmatprep.subr.bf16.mxu1 %v13278_v57  ;;  %5519 = vmatprep.subr.bf16.mxu0 %v13280_v58  ;;  %v5129_v49 = vld [vmem:[#allocation10 + $0x738] sm:$0xff]  ;;  %v13289_v57 = vcombine.low %v5132_v12, %v5136_v13  ;;  %v13291_v58 = vcombine.low %v5133_v17, %v5137_v46  ;;  %v13358_v12 = vcombine.high %v5688_v43, %v5692_v47  ;;  %v5680_v17 = vld [vmem:[#allocation10 + $0x940] sm:$0xff] }
 0x548   : > { %v13284_v60 = vcombine.high %v5125_v56, %v5129_v49  ;;  %v5684_v46 = vld [vmem:[#allocation10 + $0x960] sm:$0xff] }
 0x54a   : > { %5481 = vmatpush1.bf16.msra.mxu1 %v13277_v35  ;;  %5520 = vmatpush1.bf16.msra.mxu0 %v13279_v63  ;;  %v5117_v35 = vld [vmem:[#allocation10 + $0x6d8] sm:$0xff] }
 0x54b   : > { %5482 = vmatprep.subr.bf16.mxu1 %v13270_v0  ;;  %5521 = vmatprep.subr.bf16.mxu0 %v13272_v38  ;;  %v5121_v63 = vld [vmem:[#allocation10 + $0x6f8] sm:$0xff]  ;;  %v13281_v0 = vcombine.low %v5124_v54, %v5128_v55  ;;  %v13283_v38 = vcombine.low %v5125_v56, %v5129_v49  ;;  %v13350_v54 = vcombine.high %v5680_v17, %v5684_v46  ;;  %v5672_v56 = vld [vmem:[#allocation10 + $0x900] sm:$0xff] }
 0x54c   : > { %v13276_v2 = vcombine.high %v5117_v35, %v5121_v63  ;;  %v5676_v49 = vld [vmem:[#allocation10 + $0x920] sm:$0xff] }
 0x54e   : > { %5483 = vmatpush1.bf16.msra.mxu1 %v13269_v5  ;;  %5522 = vmatpush1.bf16.msra.mxu0 %v13271_v6  ;;  %v5109_v5 = vld [vmem:[#allocation10 + $0x698] sm:$0xff] }
 0x54f   : > { %5484 = vmatprep.subr.bf16.mxu1 %v13262_v7  ;;  %5523 = vmatprep.subr.bf16.mxu0 %v13264_v8  ;;  %v5113_v6 = vld [vmem:[#allocation10 + $0x6b8] sm:$0xff]  ;;  %v13273_v7 = vcombine.low %v5116_v61, %v5120_v62  ;;  %v13275_v8 = vcombine.low %v5117_v35, %v5121_v63  ;;  %v5664_v62 = vld [vmem:[#allocation10 + $0x8c0] sm:$0xff]  ;;  %v5665_v63 = vld [vmem:[#allocation10 + $0x8c8] sm:$0xff] }
 0x550   : > { %v13268_v10 = vcombine.high %v5109_v5, %v5113_v6  ;;  %v5668_v35 = vld [vmem:[#allocation10 + $0x8e0] sm:$0xff] }
 0x552   : > { %5485 = vmatpush1.bf16.msra.mxu1 %v13261_v15  ;;  %5524 = vmatpush1.bf16.msra.mxu0 %v13263_v18  ;;  %v5101_v15 = vld [vmem:[#allocation10 + $0x658] sm:$0xff] }
 0x553   : > { %5486 = vmatprep.subr.bf16.mxu1 %v13254_v22  ;;  %5525 = vmatprep.subr.bf16.mxu0 %v13256_v23  ;;  %v5105_v18 = vld [vmem:[#allocation10 + $0x678] sm:$0xff]  ;;  %v13265_v22 = vcombine.low %v5108_v3, %v5112_v4  ;;  %v13267_v23 = vcombine.low %v5109_v5, %v5113_v6  ;;  %v5656_v4 = vld [vmem:[#allocation10 + $0x880] sm:$0xff]  ;;  %v5657_v6 = vld [vmem:[#allocation10 + $0x888] sm:$0xff] }
 0x554   : > { %v13260_v25 = vcombine.high %v5101_v15, %v5105_v18  ;;  %v5660_v5 = vld [vmem:[#allocation10 + $0x8a0] sm:$0xff] }
 0x556   : > { %5487 = vmatpush1.bf16.msra.mxu1 %v13253_v28  ;;  %5526 = vmatpush1.bf16.msra.mxu0 %v13255_v29  ;;  %v5093_v28 = vld [vmem:[#allocation10 + $0x618] sm:$0xff] }
 0x557   : > { %5488 = vmatprep.subr.bf16.mxu1 %v13246_v30  ;;  %5527 = vmatprep.subr.bf16.mxu0 %v13248_v31  ;;  %v5097_v29 = vld [vmem:[#allocation10 + $0x638] sm:$0xff]  ;;  %v13257_v30 = vcombine.low %v5100_v11, %v5104_v14  ;;  %v13259_v31 = vcombine.low %v5101_v15, %v5105_v18  ;;  %v5648_v14 = vld [vmem:[#allocation10 + $0x840] sm:$0xff]  ;;  %v5649_v18 = vld [vmem:[#allocation10 + $0x848] sm:$0xff] }
 0x558   : > { %v13252_v34 = vcombine.high %v5093_v28, %v5097_v29  ;;  %v5652_v15 = vld [vmem:[#allocation10 + $0x860] sm:$0xff] }
 0x55a   : > { %5489 = vmatpush1.bf16.msra.mxu1 %v13245_v41  ;;  %5528 = vmatpush1.bf16.msra.mxu0 %v13247_v42  ;;  %v5697_v41 = vld [vmem:[#allocation10 + $0x9c8] sm:$0xff] }
 0x55b   : > { %5552 = vmatprep.subr.bf16.mxu1 %v13306_v44  ;;  %5591 = vmatprep.subr.bf16.mxu0 %v13308_v33  ;;  %v5701_v42 = vld [vmem:[#allocation10 + $0x9e8] sm:$0xff]  ;;  %v13249_v44 = vcombine.low %v5092_v26, %v5096_v27  ;;  %v13251_v33 = vcombine.low %v5093_v28, %v5097_v29  ;;  %v5640_v27 = vld [vmem:[#allocation10 + $0x800] sm:$0xff] }
 0x55c   : > { %v13368_v40 = vcombine.high %v5697_v41, %v5701_v42  ;;  %v5644_v28 = vld [vmem:[#allocation10 + $0x820] sm:$0xff]  ;;  %v5641_v29 = vld [vmem:[#allocation10 + $0x808] sm:$0xff] }
 0x55d   : > { %5507 = vmatmul.mubr.f32.vlgmr.msra.gmra.mxu1 %v16515_v52  ;;  %5546 = vmatmul.mubr.f32.vlgmr.msra.gmra.mxu0 %v16515_v52 }
 0x55e   : > { %5553 = vmatpush1.bf16.msra.mxu1 %v13305_v50  ;;  %5592 = vmatpush1.bf16.msra.mxu0 %v13307_v48  ;;  %v5689_v50 = vld [vmem:[#allocation10 + $0x988] sm:$0xff] }
 0x55f   : > { %5554 = vmatprep.subr.bf16.mxu1 %v13298_v51  ;;  %5593 = vmatprep.subr.bf16.mxu0 %v13300_v53  ;;  %v5693_v48 = vld [vmem:[#allocation10 + $0x9a8] sm:$0xff]  ;;  %v13365_v51 = vcombine.low %v5696_v36, %v5700_v39  ;;  %v13367_v53 = vcombine.low %v5697_v41, %v5701_v42  ;;  %v13310_v39 = vcombine.high %v5640_v27, %v5644_v28  ;;  %v5698_v42 = vld [vmem:[#allocation10 + $0x9d0] sm:$0xff] }
 0x560   : > { %5584 = vmatprep.mubr.f32.mxu1 %v15514_v16  ;;  %5623 = vmatprep.mubr.f32.mxu0 %v15514_v16  ;;  %v13360_v13 = vcombine.high %v5689_v50, %v5693_v48 }
 0x562   : > { %5555 = vmatpush1.bf16.msra.mxu1 %v13297_v19  ;;  %5594 = vmatpush1.bf16.msra.mxu0 %v13299_v20  ;;  %v5681_v19 = vld [vmem:[#allocation10 + $0x948] sm:$0xff] }
 0x563   : > { %5556 = vmatprep.subr.bf16.mxu1 %v13290_v21  ;;  %5595 = vmatprep.subr.bf16.mxu0 %v13292_v45  ;;  %v5685_v20 = vld [vmem:[#allocation10 + $0x968] sm:$0xff]  ;;  %v13357_v21 = vcombine.low %v5688_v43, %v5692_v47  ;;  %v13359_v45 = vcombine.low %v5689_v50, %v5693_v48  ;;  %v13309_v47 = vcombine.low %v5640_v27, %v5644_v28 }
 0x564   : > { %v13352_v55 = vcombine.high %v5681_v19, %v5685_v20 }
 0x566   : > { %5557 = vmatpush1.bf16.msra.mxu1 %v13289_v57  ;;  %5596 = vmatpush1.bf16.msra.mxu0 %v13291_v58  ;;  %v5673_v57 = vld [vmem:[#allocation10 + $0x908] sm:$0xff] }
 0x567   : > { %5558 = vmatprep.subr.bf16.mxu1 %v13282_v59  ;;  %5597 = vmatprep.subr.bf16.mxu0 %v13284_v60  ;;  %v5677_v58 = vld [vmem:[#allocation10 + $0x928] sm:$0xff]  ;;  %v13349_v59 = vcombine.low %v5680_v17, %v5684_v46  ;;  %v13342_v60 = vcombine.high %v5672_v56, %v5676_v49  ;;  %v5694_v17 = vld [vmem:[#allocation10 + $0x9b0] sm:$0xff]  ;;  %v5691_v46 = vld [vmem:[#allocation10 + $0x998] sm:$0xff] }
 0x568   : > { %v13344_v61 = vcombine.high %v5673_v57, %v5677_v58 }
 0x56a   : > { %5559 = vmatpush1.bf16.msra.mxu1 %v13281_v0  ;;  %5598 = vmatpush1.bf16.msra.mxu0 %v13283_v38  ;;  %v5669_v0 = vld [vmem:[#allocation10 + $0x8e8] sm:$0xff]  ;;  %v13341_v38 = vcombine.low %v5672_v56, %v5676_v49 }
 0x56b   : > { %5560 = vmatprep.subr.bf16.mxu1 %v13274_v1  ;;  %5599 = vmatprep.subr.bf16.mxu0 %v13276_v2  ;;  %v13343_v1 = vcombine.low %v5673_v57, %v5677_v58  ;;  %v13334_v2 = vcombine.high %v5664_v62, %v5668_v35  ;;  %v13336_v3 = vcombine.high %v5665_v63, %v5669_v0  ;;  %v5682_v57 = vld [vmem:[#allocation10 + $0x950] sm:$0xff] }
 0x56c   : > { %v5686_v58 = vld [vmem:[#allocation10 + $0x970] sm:$0xff] }
 0x56e   : > { %5561 = vmatpush1.bf16.msra.mxu1 %v13273_v7  ;;  %5600 = vmatpush1.bf16.msra.mxu0 %v13275_v8  ;;  %v5661_v7 = vld [vmem:[#allocation10 + $0x8a8] sm:$0xff]  ;;  %v13333_v8 = vcombine.low %v5664_v62, %v5668_v35 }
 0x56f   : > { %5562 = vmatprep.subr.bf16.mxu1 %v13266_v9  ;;  %5601 = vmatprep.subr.bf16.mxu0 %v13268_v10  ;;  %v13335_v9 = vcombine.low %v5665_v63, %v5669_v0  ;;  %v13326_v10 = vcombine.high %v5656_v4, %v5660_v5  ;;  %v13328_v11 = vcombine.high %v5657_v6, %v5661_v7 }
 0x572   : > { %5563 = vmatpush1.bf16.msra.mxu1 %v13265_v22  ;;  %5602 = vmatpush1.bf16.msra.mxu0 %v13267_v23  ;;  %v5653_v22 = vld [vmem:[#allocation10 + $0x868] sm:$0xff]  ;;  %v13325_v23 = vcombine.low %v5656_v4, %v5660_v5  ;;  %v5674_v4 = vld [vmem:[#allocation10 + $0x910] sm:$0xff] }
 0x573   : > { %5564 = vmatprep.subr.bf16.mxu1 %v13258_v24  ;;  %5603 = vmatprep.subr.bf16.mxu0 %v13260_v25  ;;  %v13327_v24 = vcombine.low %v5657_v6, %v5661_v7  ;;  %v13318_v25 = vcombine.high %v5648_v14, %v5652_v15  ;;  %v13320_v26 = vcombine.high %v5649_v18, %v5653_v22  ;;  %v5678_v7 = vld [vmem:[#allocation10 + $0x930] sm:$0xff] }
 0x574   : > { %v13319_v36 = vcombine.low %v5649_v18, %v5653_v22  ;;  %v5666_v18 = vld [vmem:[#allocation10 + $0x8d0] sm:$0xff] }
 0x575   : > { %v5670_v22 = vld [vmem:[#allocation10 + $0x8f0] sm:$0xff] }
 0x576   : > { %5565 = vmatpush1.bf16.msra.mxu1 %v13257_v30  ;;  %5604 = vmatpush1.bf16.msra.mxu0 %v13259_v31  ;;  %v5645_v30 = vld [vmem:[#allocation10 + $0x828] sm:$0xff]  ;;  %v3940_v31 = vpop.f32.mrf.mxu1  ;;  %v13338_v27 = vcombine.high %v5666_v18, %v5670_v22 }
 0x577   : > { %5566 = vmatprep.subr.bf16.mxu1 %v13250_v32  ;;  %5605 = vmatprep.subr.bf16.mxu0 %v13252_v34  ;;  %v3979_v32 = vpop.f32.mrf.mxu0  ;;  %v13317_v34 = vcombine.low %v5648_v14, %v5652_v15  ;;  %v13312_v41 = vcombine.high %v5641_v29, %v5645_v30  ;;  %v13311_v50 = vcombine.low %v5641_v29, %v5645_v30  ;;  %v5658_v29 = vld [vmem:[#allocation10 + $0x890] sm:$0xff] }
 0x578   : > { %v13346_v14 = vcombine.high %v5674_v4, %v5678_v7  ;;  %v5662_v30 = vld [vmem:[#allocation10 + $0x8b0] sm:$0xff] }
 0x579   : > { %v3981_v43 = vpop.f32.mrf.mxu0 }
 0x57a   : > { %5567 = vmatpush1.bf16.msra.mxu1 %v13249_v44  ;;  %5606 = vmatpush1.bf16.msra.mxu0 %v13251_v33  ;;  %v5702_v44 = vld [vmem:[#allocation10 + $0x9f0] sm:$0xff]  ;;  %v5699_v33 = vld [vmem:[#allocation10 + $0x9d8] sm:$0xff] }
 0x57b   : > { %6024 = vmatprep.subr.bf16.mxu1 %v13366_v37  ;;  %6063 = vmatprep.subr.bf16.mxu0 %v13368_v40  ;;  %v5703_v37 = vld [vmem:[#allocation10 + $0x9f8] sm:$0xff]  ;;  %v3942_v40 = vpop.f32.mrf.mxu1 }
 0x57d   : > { %5585 = vmatmul.mubr.f32.vlgmr.msra.gmra.mxu1 %v16515_v52  ;;  %5624 = vmatmul.mubr.f32.vlgmr.msra.gmra.mxu0 %v16515_v52  ;;  %v13351_v52 = vcombine.low %v5681_v19, %v5685_v20  ;;  %v16525_v48 = vpop.f32.mrf.mxu1  ;;  %v5695_v19 = vld [vmem:[#allocation10 + $0x9b8] sm:$0xff]  ;;  %v13369_v20 = vcombine.low %v5698_v42, %v5702_v44 }
 0x57e   : > { %6025 = vmatpush1.bf16.msra.mxu1 %v13365_v51  ;;  %6064 = vmatpush1.bf16.msra.mxu0 %v13367_v53  ;;  %v16527_v51 = vpop.f32.mrf.mxu0  ;;  %v13370_v53 = vcombine.high %v5698_v42, %v5702_v44  ;;  %v13364_v49 = vcombine.high %v5691_v46, %v5695_v19  ;;  %v13363_v0 = vcombine.low %v5691_v46, %v5695_v19  ;;  %v5650_v42 = vld [vmem:[#allocation10 + $0x850] sm:$0xff] }
 0x57f   : > { %6026 = vmatprep.subr.bf16.mxu1 %v13358_v12  ;;  %6065 = vmatprep.subr.bf16.mxu0 %v13360_v13  ;;  %v13372_v12 = vcombine.high %v5699_v33, %v5703_v37  ;;  %v5690_v13 = vld [vmem:[#allocation10 + $0x990] sm:$0xff] }
 0x580   : > { %6056 = vmatprep.mubr.f32.mxu1 %v15514_v16  ;;  %6095 = vmatprep.mubr.f32.mxu0 %v15514_v16  ;;  %v13362_v56 = vcombine.high %v5690_v13, %v5694_v17  ;;  %v13361_v62 = vcombine.low %v5690_v13, %v5694_v17  ;;  %v5654_v44 = vld [vmem:[#allocation10 + $0x870] sm:$0xff]  ;;  %v5643_v13 = vld [vmem:[#allocation10 + $0x818] sm:$0xff] }
 0x581   : > { %v5647_v17 = vld [vmem:[#allocation10 + $0x838] sm:$0xff]  ;;  %v13321_v46 = vcombine.low %v5650_v42, %v5654_v44 }
 0x582   : > { %6027 = vmatpush1.bf16.msra.mxu1 %v13357_v21  ;;  %6066 = vmatpush1.bf16.msra.mxu0 %v13359_v45  ;;  %v13371_v21 = vcombine.low %v5699_v33, %v5703_v37  ;;  %v16529_v45 = vpop.f32.mrf.mxu1  ;;  %v5651_v33 = vld [vmem:[#allocation10 + $0x858] sm:$0xff] }
 0x583   : > { %6028 = vmatprep.subr.bf16.mxu1 %v13350_v54  ;;  %6067 = vmatprep.subr.bf16.mxu0 %v13352_v55  ;;  %v16531_v54 = vpop.f32.mrf.mxu0  ;;  %v16533_v55 = vld [vmem:[#allocation2 + $0x4] sm:$0x1]  ;;  %v5655_v37 = vld [vmem:[#allocation10 + $0x878] sm:$0xff] }
 0x584   : > { %v13323_v19 = vcombine.low %v5651_v33, %v5655_v37 }
 0x586   : > { %6029 = vmatpush1.bf16.msra.mxu1 %v13349_v59  ;;  %6068 = vmatpush1.bf16.msra.mxu0 %v13351_v52  ;;  %v5683_v59 = vld [vmem:[#allocation10 + $0x958] sm:$0xff] }
 0x587   : > { %6030 = vmatprep.subr.bf16.mxu1 %v13342_v60  ;;  %6069 = vmatprep.subr.bf16.mxu0 %v13344_v61  ;;  %v5687_v52 = vld [vmem:[#allocation10 + $0x978] sm:$0xff] }
 0x58a   : > { %6031 = vmatpush1.bf16.msra.mxu1 %v13341_v38  ;;  %6070 = vmatpush1.bf16.msra.mxu0 %v13343_v1 }
 0x58b   : > { %6032 = vmatprep.subr.bf16.mxu1 %v13334_v2  ;;  %6071 = vmatprep.subr.bf16.mxu0 %v13336_v3  ;;  %v13354_v2 = vcombine.high %v5682_v57, %v5686_v58  ;;  %v13356_v3 = vcombine.high %v5683_v59, %v5687_v52 }
 0x58e   : > { %6033 = vmatpush1.bf16.msra.mxu1 %v13333_v8  ;;  %6072 = vmatpush1.bf16.msra.mxu0 %v13335_v9  ;;  %v5675_v8 = vld [vmem:[#allocation10 + $0x918] sm:$0xff] }
 0x58f   : > { %6034 = vmatprep.subr.bf16.mxu1 %v13326_v10  ;;  %6073 = vmatprep.subr.bf16.mxu0 %v13328_v11  ;;  %v5679_v9 = vld [vmem:[#allocation10 + $0x938] sm:$0xff]  ;;  %v13353_v10 = vcombine.low %v5682_v57, %v5686_v58  ;;  %v13355_v11 = vcombine.low %v5683_v59, %v5687_v52  ;;  %v6247_v57 = vld [vmem:[#allocation10 + $0xbc8] sm:$0xff]  ;;  %v13315_v52 = vcombine.low %v5643_v13, %v5647_v17 }
 0x590   : > { %v13348_v15 = vcombine.high %v5675_v8, %v5679_v9  ;;  %v6251_v58 = vld [vmem:[#allocation10 + $0xbe8] sm:$0xff] }
 0x592   : > { %6035 = vmatpush1.bf16.msra.mxu1 %v13325_v23  ;;  %6074 = vmatpush1.bf16.msra.mxu0 %v13327_v24  ;;  %v5667_v23 = vld [vmem:[#allocation10 + $0x8d8] sm:$0xff] }
 0x593   : > { %6036 = vmatprep.subr.bf16.mxu1 %v13318_v25  ;;  %6075 = vmatprep.subr.bf16.mxu0 %v13320_v26  ;;  %v5671_v24 = vld [vmem:[#allocation10 + $0x8f8] sm:$0xff]  ;;  %v13345_v25 = vcombine.low %v5674_v4, %v5678_v7  ;;  %v13347_v26 = vcombine.low %v5675_v8, %v5679_v9  ;;  %v6230_v8 = vld [vmem:[#allocation10 + $0xb40] sm:$0xff] }
 0x594   : > { %v13340_v28 = vcombine.high %v5667_v23, %v5671_v24  ;;  %v6234_v9 = vld [vmem:[#allocation10 + $0xb60] sm:$0xff] }
 0x596   : > { %6037 = vmatpush1.bf16.msra.mxu1 %v13317_v34  ;;  %6076 = vmatpush1.bf16.msra.mxu0 %v13319_v36  ;;  %v13337_v34 = vcombine.low %v5666_v18, %v5670_v22  ;;  %v13339_v36 = vcombine.low %v5667_v23, %v5671_v24 }
 0x597   : > { %6038 = vmatprep.subr.bf16.mxu1 %v13310_v39  ;;  %6077 = vmatprep.subr.bf16.mxu0 %v13312_v41  ;;  %v13330_v39 = vcombine.high %v5658_v29, %v5662_v30 }
 0x59a   : > { %6039 = vmatpush1.bf16.msra.mxu1 %v13309_v47  ;;  %6078 = vmatpush1.bf16.msra.mxu0 %v13311_v50  ;;  %v13322_v47 = vcombine.high %v5650_v42, %v5654_v44  ;;  %v13324_v50 = vcombine.high %v5651_v33, %v5655_v37  ;;  %v6215_v42 = vld [vmem:[#allocation10 + $0xac8] sm:$0xff] }
 0x59b   : > { %6102 = vmatprep.subr.bf16.mxu1 %v13370_v53  ;;  %6141 = vmatprep.subr.bf16.mxu0 %v13372_v12  ;;  %v5642_v53 = vld [vmem:[#allocation10 + $0x810] sm:$0xff] }
 0x59c   : > { %v5646_v12 = vld [vmem:[#allocation10 + $0x830] sm:$0xff] }
 0x59d   : > { %v4416_v60 = vpop.f32.mrf.mxu1  ;;  %v4455_v61 = vpop.f32.mrf.mxu0  ;;  %6057 = vmatmul.mubr.f32.vlgmr.msra.gmra.mxu1 %v16533_v55  ;;  %6096 = vmatmul.mubr.f32.vlgmr.msra.gmra.mxu0 %v16533_v55  ;;  %v13313_v59 = vcombine.low %v5642_v53, %v5646_v12 }
 0x59e   : > { %v16537_v35 = vadd.f32 %v4416_v60, %v3940_v31  ;;  %v16539_v63 = vadd.f32 %v4455_v61, %v3979_v32  ;;  %6103 = vmatpush1.bf16.msra.mxu1 %v13369_v20  ;;  %6142 = vmatpush1.bf16.msra.mxu0 %v13371_v21  ;;  %v5659_v31 = vld [vmem:[#allocation10 + $0x898] sm:$0xff]  ;;  %v13314_v20 = vcombine.high %v5642_v53, %v5646_v12  ;;  %v6211_v53 = vld [vmem:[#allocation10 + $0xaa8] sm:$0xff] }
 0x59f   : > { %v4418_v38 = vpop.f32.mrf.mxu1  ;;  %v4457_v1 = vpop.f32.mrf.mxu0  ;;  %6104 = vmatprep.subr.bf16.mxu1 %v13362_v56  ;;  %6143 = vmatprep.subr.bf16.mxu0 %v13364_v49  ;;  %v5663_v32 = vld [vmem:[#allocation10 + $0x8b8] sm:$0xff]  ;;  %v13316_v21 = vcombine.high %v5643_v13, %v5647_v17  ;;  %v6246_v56 = vld [vmem:[#allocation10 + $0xbc0] sm:$0xff]  ;;  %v13432_v61 = vcombine.high %v6247_v57, %v6251_v58 }
 0x5a0   : > { %v16541_v5 = vadd.f32 %v4418_v38, %v3942_v40  ;;  %v16543_v6 = vadd.f32 %v4457_v1, %v3981_v43  ;;  %6134 = vmatprep.mubr.f32.mxu1 %v15514_v16  ;;  %6173 = vmatprep.mubr.f32.mxu0 %v15514_v16  ;;  %v13332_v41 = vcombine.high %v5659_v31, %v5663_v32  ;;  %v6250_v49 = vld [vmem:[#allocation10 + $0xbe0] sm:$0xff]  ;;  %v6239_v38 = vld [vmem:[#allocation10 + $0xb88] sm:$0xff] }
 0x5a1   : > { %v13329_v40 = vcombine.low %v5658_v29, %v5662_v30  ;;  %v13331_v43 = vcombine.low %v5659_v31, %v5663_v32  ;;  %v13430_v60 = vcombine.high %v6246_v56, %v6250_v49  ;;  %v6243_v1 = vld [vmem:[#allocation10 + $0xba8] sm:$0xff]  ;;  %v6222_v29 = vld [vmem:[#allocation10 + $0xb00] sm:$0xff]  ;;  %v13413_v32 = vcombine.low %v6230_v8, %v6234_v9 }
 0x5a2   : > { %6105 = vmatpush1.bf16.msra.mxu1 %v13361_v62  ;;  %6144 = vmatpush1.bf16.msra.mxu0 %v13363_v0  ;;  %v6238_v62 = vld [vmem:[#allocation10 + $0xb80] sm:$0xff]  ;;  %v13424_v7 = vcombine.high %v6239_v38, %v6243_v1  ;;  %v13423_v24 = vcombine.low %v6239_v38, %v6243_v1  ;;  %v6223_v31 = vld [vmem:[#allocation10 + $0xb08] sm:$0xff] }
 0x5a3   : > { %6106 = vmatprep.subr.bf16.mxu1 %v13354_v2  ;;  %6145 = vmatprep.subr.bf16.mxu0 %v13356_v3  ;;  %v6242_v0 = vld [vmem:[#allocation10 + $0xba0] sm:$0xff]  ;;  %v13429_v2 = vcombine.low %v6246_v56, %v6250_v49  ;;  %v13431_v3 = vcombine.low %v6247_v57, %v6251_v58  ;;  %v6203_v56 = vld [vmem:[#allocation10 + $0xa68] sm:$0xff] }
 0x5a4   : > { %v13422_v4 = vcombine.high %v6238_v62, %v6242_v0  ;;  %v13421_v18 = vcombine.low %v6238_v62, %v6242_v0  ;;  %v6195_v62 = vld [vmem:[#allocation10 + $0xa28] sm:$0xff] }
 0x5a6   : > { %6107 = vmatpush1.bf16.msra.mxu1 %v13353_v10  ;;  %6146 = vmatpush1.bf16.msra.mxu0 %v13355_v11  ;;  %v6231_v10 = vld [vmem:[#allocation10 + $0xb48] sm:$0xff] }
 0x5a7   : > { %6108 = vmatprep.subr.bf16.mxu1 %v13346_v14  ;;  %6147 = vmatprep.subr.bf16.mxu0 %v13348_v15  ;;  %v6235_v11 = vld [vmem:[#allocation10 + $0xb68] sm:$0xff] }
 0x5aa   : > { %6109 = vmatpush1.bf16.msra.mxu1 %v13345_v25  ;;  %6148 = vmatpush1.bf16.msra.mxu0 %v13347_v26 }
 0x5ab   : > { %6110 = vmatprep.subr.bf16.mxu1 %v13338_v27  ;;  %6149 = vmatprep.subr.bf16.mxu0 %v13340_v28  ;;  %v13414_v27 = vcombine.high %v6230_v8, %v6234_v9  ;;  %v13416_v28 = vcombine.high %v6231_v10, %v6235_v11  ;;  %v6253_v8 = vld [vmem:[#allocation10 + $0xbf8] sm:$0xff] }
 0x5ae   : > { %6111 = vmatpush1.bf16.msra.mxu1 %v13337_v34  ;;  %6150 = vmatpush1.bf16.msra.mxu0 %v13339_v36  ;;  %v13415_v34 = vcombine.low %v6231_v10, %v6235_v11 }
 0x5af   : > { %6112 = vmatprep.subr.bf16.mxu1 %v13330_v39  ;;  %6151 = vmatprep.subr.bf16.mxu0 %v13332_v41  ;;  %v6218_v41 = vld [vmem:[#allocation10 + $0xae0] sm:$0xff] }
 0x5b2   : > { %6113 = vmatpush1.bf16.msra.mxu1 %v13329_v40  ;;  %6152 = vmatpush1.bf16.msra.mxu0 %v13331_v43  ;;  %v6206_v43 = vld [vmem:[#allocation10 + $0xa80] sm:$0xff] }
 0x5b3   : > { %6114 = vmatprep.subr.bf16.mxu1 %v13322_v47  ;;  %6153 = vmatprep.subr.bf16.mxu0 %v13324_v50  ;;  %v6210_v47 = vld [vmem:[#allocation10 + $0xaa0] sm:$0xff]  ;;  %v6207_v50 = vld [vmem:[#allocation10 + $0xa88] sm:$0xff] }
 0x5b4   : > { %v13390_v17 = vcombine.high %v6206_v43, %v6210_v47  ;;  %v13389_v49 = vcombine.low %v6206_v43, %v6210_v47  ;;  %v13391_v57 = vcombine.low %v6207_v50, %v6211_v53  ;;  %v6224_v43 = vld [vmem:[#allocation10 + $0xb10] sm:$0xff] }
 0x5b6   : > { %6115 = vmatpush1.bf16.msra.mxu1 %v13321_v46  ;;  %6154 = vmatpush1.bf16.msra.mxu0 %v13323_v19  ;;  %v13392_v46 = vcombine.high %v6207_v50, %v6211_v53  ;;  %v6198_v19 = vld [vmem:[#allocation10 + $0xa40] sm:$0xff]  ;;  %v6225_v53 = vld [vmem:[#allocation10 + $0xb18] sm:$0xff] }
 0x5b7   : > { %6116 = vmatprep.subr.bf16.mxu1 %v13314_v20  ;;  %6155 = vmatprep.subr.bf16.mxu0 %v13316_v21  ;;  %v6202_v20 = vld [vmem:[#allocation10 + $0xa60] sm:$0xff]  ;;  %v6199_v21 = vld [vmem:[#allocation10 + $0xa48] sm:$0xff] }
 0x5b8   : > { %v13382_v58 = vcombine.high %v6198_v19, %v6202_v20  ;;  %v13381_v0 = vcombine.low %v6198_v19, %v6202_v20  ;;  %v13383_v38 = vcombine.low %v6199_v21, %v6203_v56  ;;  %v6220_v19 = vld [vmem:[#allocation10 + $0xaf0] sm:$0xff]  ;;  %v6217_v20 = vld [vmem:[#allocation10 + $0xad8] sm:$0xff] }
 0x5ba   : > { %6117 = vmatpush1.bf16.msra.mxu1 %v13313_v59  ;;  %6156 = vmatpush1.bf16.msra.mxu0 %v13315_v52  ;;  %v13384_v59 = vcombine.high %v6199_v21, %v6203_v56  ;;  %v6190_v52 = vld [vmem:[#allocation10 + $0xa00] sm:$0xff] }
 0x5bb   : > { %6574 = vmatprep.subr.bf16.mxu1 %v13430_v60  ;;  %6613 = vmatprep.subr.bf16.mxu0 %v13432_v61  ;;  %v6194_v60 = vld [vmem:[#allocation10 + $0xa20] sm:$0xff]  ;;  %v6191_v61 = vld [vmem:[#allocation10 + $0xa08] sm:$0xff] }
 0x5bc   : > { %v13374_v1 = vcombine.high %v6190_v52, %v6194_v60  ;;  %v13373_v9 = vcombine.low %v6190_v52, %v6194_v60  ;;  %v13375_v10 = vcombine.low %v6191_v61, %v6195_v62  ;;  %v6209_v52 = vld [vmem:[#allocation10 + $0xa98] sm:$0xff] }
 0x5bd   : > { %v4494_v14 = vpop.f32.mrf.mxu1  ;;  %v4533_v15 = vpop.f32.mrf.mxu0  ;;  %6135 = vmatmul.mubr.f32.vlgmr.msra.gmra.mxu1 %v16533_v55  ;;  %6174 = vmatmul.mubr.f32.vlgmr.msra.gmra.mxu0 %v16533_v55  ;;  %v6213_v60 = vld [vmem:[#allocation10 + $0xab8] sm:$0xff] }
 0x5be   : > { %v16550_v22 = vadd.f32 %v4494_v14, %v16525_v48  ;;  %v16553_v23 = vadd.f32 %v4533_v15, %v16527_v51  ;;  %6575 = vmatpush1.bf16.msra.mxu1 %v13429_v2  ;;  %6614 = vmatpush1.bf16.msra.mxu0 %v13431_v3  ;;  %v6226_v48 = vld [vmem:[#allocation10 + $0xb20] sm:$0xff]  ;;  %v6227_v51 = vld [vmem:[#allocation10 + $0xb28] sm:$0xff]  ;;  %v13376_v2 = vcombine.high %v6191_v61, %v6195_v62  ;;  %v6248_v3 = vld [vmem:[#allocation10 + $0xbd0] sm:$0xff] }
 0x5bf   : > { %v4496_v25 = vpop.f32.mrf.mxu1  ;;  %v4535_v26 = vpop.f32.mrf.mxu0  ;;  %6576 = vmatprep.subr.bf16.mxu1 %v13422_v4  ;;  %6615 = vmatprep.subr.bf16.mxu0 %v13424_v7  ;;  %v13406_v36 = vcombine.high %v6222_v29, %v6226_v48  ;;  %v13408_v39 = vcombine.high %v6223_v31, %v6227_v51  ;;  %v13405_v44 = vcombine.low %v6222_v29, %v6226_v48  ;;  %v6252_v4 = vld [vmem:[#allocation10 + $0xbf0] sm:$0xff]  ;;  %v6249_v7 = vld [vmem:[#allocation10 + $0xbd8] sm:$0xff] }
 0x5c0   : > { %v16556_v30 = vadd.f32 %v4496_v25, %v16529_v45  ;;  %v16559_v55 = vadd.f32 %v4535_v26, %v16531_v54  ;;  %6606 = vmatprep.mubr.f32.mxu1 %v15514_v16  ;;  %6645 = vmatprep.mubr.f32.mxu0 %v15514_v16  ;;  %v6214_v45 = vld [vmem:[#allocation10 + $0xac0] sm:$0xff]  ;;  %v6219_v54 = vld [vmem:[#allocation10 + $0xae8] sm:$0xff]  ;;  %v13407_v33 = vcombine.low %v6223_v31, %v6227_v51  ;;  %v6240_v15 = vld [vmem:[#allocation10 + $0xb90] sm:$0xff] }
 0x5c1   : > { %v13398_v37 = vcombine.high %v6214_v45, %v6218_v41  ;;  %v13400_v40 = vcombine.high %v6215_v42, %v6219_v54  ;;  %v13397_v12 = vcombine.low %v6214_v45, %v6218_v41  ;;  %v13399_v13 = vcombine.low %v6215_v42, %v6219_v54  ;;  %v6245_v25 = vld [vmem:[#allocation10 + $0xbb8] sm:$0xff]  ;;  %v6232_v31 = vld [vmem:[#allocation10 + $0xb50] sm:$0xff] }
 0x5c2   : > { %6577 = vmatpush1.bf16.msra.mxu1 %v13421_v18  ;;  %6616 = vmatpush1.bf16.msra.mxu0 %v13423_v24  ;;  %v13434_v11 = vcombine.high %v6248_v3, %v6252_v4  ;;  %v13436_v14 = vcombine.high %v6249_v7, %v6253_v8  ;;  %v6244_v18 = vld [vmem:[#allocation10 + $0xbb0] sm:$0xff]  ;;  %v6241_v24 = vld [vmem:[#allocation10 + $0xb98] sm:$0xff]  ;;  %v13433_v26 = vcombine.low %v6248_v3, %v6252_v4 }
 0x5c3   : > { %6578 = vmatprep.subr.bf16.mxu1 %v13414_v27  ;;  %6617 = vmatprep.subr.bf16.mxu0 %v13416_v28  ;;  %v13435_v27 = vcombine.low %v6249_v7, %v6253_v8  ;;  %v16563_v28 = vld [vmem:[#allocation2 + $0x5] sm:$0x1]  ;;  %v13426_v29 = vcombine.high %v6240_v15, %v6244_v18  ;;  %v13428_v48 = vcombine.high %v6241_v24, %v6245_v25  ;;  %v6201_v3 = vld [vmem:[#allocation10 + $0xa58] sm:$0xff] }
 0x5c4   : > { %v6236_v51 = vld [vmem:[#allocation10 + $0xb70] sm:$0xff]  ;;  %v13425_v45 = vcombine.low %v6240_v15, %v6244_v18  ;;  %v13427_v54 = vcombine.low %v6241_v24, %v6245_v25  ;;  %v6205_v4 = vld [vmem:[#allocation10 + $0xa78] sm:$0xff]  ;;  %v13395_v8 = vcombine.low %v6209_v52, %v6213_v60 }
 0x5c5   : > { %v6193_v15 = vld [vmem:[#allocation10 + $0xa18] sm:$0xff]  ;;  %v13387_v25 = vcombine.low %v6201_v3, %v6205_v4 }
 0x5c6   : > { %6579 = vmatpush1.bf16.msra.mxu1 %v13413_v32  ;;  %6618 = vmatpush1.bf16.msra.mxu0 %v13415_v34  ;;  %v6233_v32 = vld [vmem:[#allocation10 + $0xb58] sm:$0xff] }
 0x5c7   : > { %6580 = vmatprep.subr.bf16.mxu1 %v13406_v36  ;;  %6619 = vmatprep.subr.bf16.mxu0 %v13408_v39  ;;  %v6237_v34 = vld [vmem:[#allocation10 + $0xb78] sm:$0xff] }
 0x5c8   : > { %v6197_v18 = vld [vmem:[#allocation10 + $0xa38] sm:$0xff] }
 0x5ca   : > { %6581 = vmatpush1.bf16.msra.mxu1 %v13405_v44  ;;  %6620 = vmatpush1.bf16.msra.mxu0 %v13407_v33 }
 0x5cb   : > { %6582 = vmatprep.subr.bf16.mxu1 %v13398_v37  ;;  %6621 = vmatprep.subr.bf16.mxu0 %v13400_v40  ;;  %v13418_v37 = vcombine.high %v6232_v31, %v6236_v51  ;;  %v13420_v40 = vcombine.high %v6233_v32, %v6237_v34 }
 0x5ce   : > { %6583 = vmatpush1.bf16.msra.mxu1 %v13397_v12  ;;  %6622 = vmatpush1.bf16.msra.mxu0 %v13399_v13  ;;  %v13417_v12 = vcombine.low %v6232_v31, %v6236_v51  ;;  %v13419_v13 = vcombine.low %v6233_v32, %v6237_v34  ;;  %v6797_v31 = vld [vmem:[#allocation10 + $0xdc8] sm:$0xff]  ;;  %v13379_v34 = vcombine.low %v6193_v15, %v6197_v18 }
 0x5cf   : > { %6584 = vmatprep.subr.bf16.mxu1 %v13390_v17  ;;  %6623 = vmatprep.subr.bf16.mxu0 %v13392_v46  ;;  %v6801_v51 = vld [vmem:[#allocation10 + $0xde8] sm:$0xff] }
 0x5d2   : > { %6585 = vmatpush1.bf16.msra.mxu1 %v13389_v49  ;;  %6624 = vmatpush1.bf16.msra.mxu0 %v13391_v57 }
 0x5d3   : > { %6586 = vmatprep.subr.bf16.mxu1 %v13382_v58  ;;  %6625 = vmatprep.subr.bf16.mxu0 %v13384_v59  ;;  %v6208_v58 = vld [vmem:[#allocation10 + $0xa90] sm:$0xff] }
 0x5d4   : > { %v6212_v59 = vld [vmem:[#allocation10 + $0xab0] sm:$0xff] }
 0x5d5   : > { %v13393_v7 = vcombine.low %v6208_v58, %v6212_v59 }
 0x5d6   : > { %6587 = vmatpush1.bf16.msra.mxu1 %v13381_v0  ;;  %6626 = vmatpush1.bf16.msra.mxu0 %v13383_v38  ;;  %v13394_v0 = vcombine.high %v6208_v58, %v6212_v59  ;;  %v13396_v38 = vcombine.high %v6209_v52, %v6213_v60  ;;  %v6772_v58 = vld [vmem:[#allocation10 + $0xd00] sm:$0xff]  ;;  %v6773_v52 = vld [vmem:[#allocation10 + $0xd08] sm:$0xff] }
 0x5d7   : > { %6588 = vmatprep.subr.bf16.mxu1 %v13374_v1  ;;  %6627 = vmatprep.subr.bf16.mxu0 %v13376_v2  ;;  %v6200_v1 = vld [vmem:[#allocation10 + $0xa50] sm:$0xff] }
 0x5d8   : > { %v6204_v2 = vld [vmem:[#allocation10 + $0xa70] sm:$0xff] }
 0x5d9   : > { %v13385_v24 = vcombine.low %v6200_v1, %v6204_v2 }
 0x5da   : > { %6589 = vmatpush1.bf16.msra.mxu1 %v13373_v9  ;;  %6628 = vmatpush1.bf16.msra.mxu0 %v13375_v10  ;;  %v13386_v9 = vcombine.high %v6200_v1, %v6204_v2  ;;  %v13388_v10 = vcombine.high %v6201_v3, %v6205_v4  ;;  %v6765_v1 = vld [vmem:[#allocation10 + $0xcc8] sm:$0xff] }
 0x5db   : > { %6652 = vmatprep.subr.bf16.mxu1 %v13434_v11  ;;  %6691 = vmatprep.subr.bf16.mxu0 %v13436_v14  ;;  %v6192_v11 = vld [vmem:[#allocation10 + $0xa10] sm:$0xff] }
 0x5dc   : > { %v6196_v14 = vld [vmem:[#allocation10 + $0xa30] sm:$0xff] }
 0x5dd   : > { %v4958_v36 = vpop.f32.mrf.mxu1  ;;  %v4997_v39 = vpop.f32.mrf.mxu0  ;;  %6607 = vmatmul.mubr.f32.vlgmr.msra.gmra.mxu1 %v16563_v28  ;;  %6646 = vmatmul.mubr.f32.vlgmr.msra.gmra.mxu0 %v16563_v28  ;;  %v13377_v32 = vcombine.low %v6192_v11, %v6196_v14 }
 0x5de   : > { %v16568_v41 = vadd.f32 %v4958_v36, %v16537_v35  ;;  %v16571_v42 = vadd.f32 %v4997_v39, %v16539_v63  ;;  %6653 = vmatpush1.bf16.msra.mxu1 %v13433_v26  ;;  %6692 = vmatpush1.bf16.msra.mxu0 %v13435_v27  ;;  %v6228_v35 = vld [vmem:[#allocation10 + $0xb30] sm:$0xff]  ;;  %v6229_v63 = vld [vmem:[#allocation10 + $0xb38] sm:$0xff]  ;;  %v13378_v26 = vcombine.high %v6192_v11, %v6196_v14  ;;  %v6761_v11 = vld [vmem:[#allocation10 + $0xca8] sm:$0xff] }
 0x5df   : > { %v4960_v44 = vpop.f32.mrf.mxu1  ;;  %v4999_v33 = vpop.f32.mrf.mxu0  ;;  %6654 = vmatprep.subr.bf16.mxu1 %v13426_v29  ;;  %6693 = vmatprep.subr.bf16.mxu0 %v13428_v48  ;;  %v13410_v17 = vcombine.high %v6224_v43, %v6228_v35  ;;  %v13412_v46 = vcombine.high %v6225_v53, %v6229_v63  ;;  %v13409_v21 = vcombine.low %v6224_v43, %v6228_v35  ;;  %v6796_v29 = vld [vmem:[#allocation10 + $0xdc0] sm:$0xff] }
 0x5e0   : > { %v16574_v47 = vadd.f32 %v4960_v44, %v16541_v5  ;;  %v16577_v50 = vadd.f32 %v4999_v33, %v16543_v6  ;;  %6684 = vmatprep.mubr.f32.mxu1 %v15514_v16  ;;  %6723 = vmatprep.mubr.f32.mxu0 %v15514_v16  ;;  %v6216_v5 = vld [vmem:[#allocation10 + $0xad0] sm:$0xff]  ;;  %v6221_v6 = vld [vmem:[#allocation10 + $0xaf8] sm:$0xff]  ;;  %v13411_v56 = vcombine.low %v6225_v53, %v6229_v63  ;;  %v6800_v48 = vld [vmem:[#allocation10 + $0xde0] sm:$0xff] }
 0x5e1   : > { %v13402_v49 = vcombine.high %v6216_v5, %v6220_v19  ;;  %v13404_v57 = vcombine.high %v6217_v20, %v6221_v6  ;;  %v13401_v61 = vcombine.low %v6216_v5, %v6220_v19  ;;  %v13403_v62 = vcombine.low %v6217_v20, %v6221_v6  ;;  %v6789_v44 = vld [vmem:[#allocation10 + $0xd88] sm:$0xff]  ;;  %v6780_v53 = vld [vmem:[#allocation10 + $0xd40] sm:$0xff] }
 0x5e2   : > { %6655 = vmatpush1.bf16.msra.mxu1 %v13425_v45  ;;  %6694 = vmatpush1.bf16.msra.mxu0 %v13427_v54  ;;  %v13380_v27 = vcombine.high %v6193_v15, %v6197_v18  ;;  %v13494_v36 = vcombine.high %v6796_v29, %v6800_v48  ;;  %v13496_v39 = vcombine.high %v6797_v31, %v6801_v51  ;;  %v6788_v45 = vld [vmem:[#allocation10 + $0xd80] sm:$0xff]  ;;  %v6793_v33 = vld [vmem:[#allocation10 + $0xda8] sm:$0xff] }
 0x5e3   : > { %6656 = vmatprep.subr.bf16.mxu1 %v13418_v37  ;;  %6695 = vmatprep.subr.bf16.mxu0 %v13420_v40  ;;  %v6792_v54 = vld [vmem:[#allocation10 + $0xda0] sm:$0xff]  ;;  %v13493_v37 = vcombine.low %v6796_v29, %v6800_v48  ;;  %v13495_v40 = vcombine.low %v6797_v31, %v6801_v51  ;;  %v13488_v35 = vcombine.high %v6789_v44, %v6793_v33  ;;  %v6753_v29 = vld [vmem:[#allocation10 + $0xc68] sm:$0xff] }
 0x5e4   : > { %v13486_v43 = vcombine.high %v6788_v45, %v6792_v54  ;;  %v6784_v63 = vld [vmem:[#allocation10 + $0xd60] sm:$0xff]  ;;  %v13485_v5 = vcombine.low %v6788_v45, %v6792_v54  ;;  %v13487_v6 = vcombine.low %v6789_v44, %v6793_v33  ;;  %v6745_v45 = vld [vmem:[#allocation10 + $0xc28] sm:$0xff] }
 0x5e5   : > { %v13477_v60 = vcombine.low %v6780_v53, %v6784_v63 }
 0x5e6   : > { %6657 = vmatpush1.bf16.msra.mxu1 %v13417_v12  ;;  %6696 = vmatpush1.bf16.msra.mxu0 %v13419_v13  ;;  %v6781_v12 = vld [vmem:[#allocation10 + $0xd48] sm:$0xff] }
 0x5e7   : > { %6658 = vmatprep.subr.bf16.mxu1 %v13410_v17  ;;  %6697 = vmatprep.subr.bf16.mxu0 %v13412_v46  ;;  %v6785_v13 = vld [vmem:[#allocation10 + $0xd68] sm:$0xff] }
 0x5ea   : > { %6659 = vmatpush1.bf16.msra.mxu1 %v13409_v21  ;;  %6698 = vmatpush1.bf16.msra.mxu0 %v13411_v56 }
 0x5eb   : > { %6660 = vmatprep.subr.bf16.mxu1 %v13402_v49  ;;  %6699 = vmatprep.subr.bf16.mxu0 %v13404_v57  ;;  %v13478_v49 = vcombine.high %v6780_v53, %v6784_v63  ;;  %v13480_v57 = vcombine.high %v6781_v12, %v6785_v13  ;;  %v6803_v53 = vld [vmem:[#allocation10 + $0xdf8] sm:$0xff] }
 0x5ee   : > { %6661 = vmatpush1.bf16.msra.mxu1 %v13401_v61  ;;  %6700 = vmatpush1.bf16.msra.mxu0 %v13403_v62  ;;  %v13479_v61 = vcombine.low %v6781_v12, %v6785_v13 }
 0x5ef   : > { %6662 = vmatprep.subr.bf16.mxu1 %v13394_v0  ;;  %6701 = vmatprep.subr.bf16.mxu0 %v13396_v38  ;;  %v6768_v38 = vld [vmem:[#allocation10 + $0xce0] sm:$0xff] }
 0x5f2   : > { %6663 = vmatpush1.bf16.msra.mxu1 %v13393_v7  ;;  %6702 = vmatpush1.bf16.msra.mxu0 %v13395_v8  ;;  %v6756_v8 = vld [vmem:[#allocation10 + $0xc80] sm:$0xff] }
 0x5f3   : > { %6664 = vmatprep.subr.bf16.mxu1 %v13386_v9  ;;  %6703 = vmatprep.subr.bf16.mxu0 %v13388_v10  ;;  %v6760_v9 = vld [vmem:[#allocation10 + $0xca0] sm:$0xff]  ;;  %v6757_v10 = vld [vmem:[#allocation10 + $0xc88] sm:$0xff] }
 0x5f4   : > { %v13454_v18 = vcombine.high %v6756_v8, %v6760_v9  ;;  %v13453_v48 = vcombine.low %v6756_v8, %v6760_v9  ;;  %v13455_v31 = vcombine.low %v6757_v10, %v6761_v11  ;;  %v6774_v8 = vld [vmem:[#allocation10 + $0xd10] sm:$0xff] }
 0x5f6   : > { %6665 = vmatpush1.bf16.msra.mxu1 %v13385_v24  ;;  %6704 = vmatpush1.bf16.msra.mxu0 %v13387_v25  ;;  %v13456_v24 = vcombine.high %v6757_v10, %v6761_v11  ;;  %v6748_v25 = vld [vmem:[#allocation10 + $0xc40] sm:$0xff]  ;;  %v6775_v11 = vld [vmem:[#allocation10 + $0xd18] sm:$0xff] }
 0x5f7   : > { %6666 = vmatprep.subr.bf16.mxu1 %v13378_v26  ;;  %6705 = vmatprep.subr.bf16.mxu0 %v13380_v27  ;;  %v6752_v26 = vld [vmem:[#allocation10 + $0xc60] sm:$0xff]  ;;  %v6749_v27 = vld [vmem:[#allocation10 + $0xc48] sm:$0xff] }
 0x5f8   : > { %v13446_v51 = vcombine.high %v6748_v25, %v6752_v26  ;;  %v13445_v54 = vcombine.low %v6748_v25, %v6752_v26  ;;  %v13447_v44 = vcombine.low %v6749_v27, %v6753_v29  ;;  %v6770_v25 = vld [vmem:[#allocation10 + $0xcf0] sm:$0xff]  ;;  %v6767_v26 = vld [vmem:[#allocation10 + $0xcd8] sm:$0xff] }
 0x5fa   : > { %6667 = vmatpush1.bf16.msra.mxu1 %v13377_v32  ;;  %6706 = vmatpush1.bf16.msra.mxu0 %v13379_v34  ;;  %v13448_v32 = vcombine.high %v6749_v27, %v6753_v29  ;;  %v6740_v34 = vld [vmem:[#allocation10 + $0xc00] sm:$0xff] }
 0x5fb   : > { %7124 = vmatprep.subr.bf16.mxu1 %v13494_v36  ;;  %7163 = vmatprep.subr.bf16.mxu0 %v13496_v39  ;;  %v6744_v36 = vld [vmem:[#allocation10 + $0xc20] sm:$0xff]  ;;  %v6741_v39 = vld [vmem:[#allocation10 + $0xc08] sm:$0xff] }
 0x5fc   : > { %v13438_v33 = vcombine.high %v6740_v34, %v6744_v36  ;;  %v13437_v63 = vcombine.low %v6740_v34, %v6744_v36  ;;  %v13439_v12 = vcombine.low %v6741_v39, %v6745_v45  ;;  %v6759_v34 = vld [vmem:[#allocation10 + $0xc98] sm:$0xff] }
 0x5fd   : > { %v5036_v17 = vpop.f32.mrf.mxu1  ;;  %v5075_v46 = vpop.f32.mrf.mxu0  ;;  %6685 = vmatmul.mubr.f32.vlgmr.msra.gmra.mxu1 %v16563_v28  ;;  %6724 = vmatmul.mubr.f32.vlgmr.msra.gmra.mxu0 %v16563_v28  ;;  %v6763_v36 = vld [vmem:[#allocation10 + $0xcb8] sm:$0xff] }
 0x5fe   : > { %v16584_v19 = vadd.f32 %v5036_v17, %v16550_v22  ;;  %v16587_v20 = vadd.f32 %v5075_v46, %v16553_v23  ;;  %7125 = vmatpush1.bf16.msra.mxu1 %v13493_v37  ;;  %7164 = vmatpush1.bf16.msra.mxu0 %v13495_v40  ;;  %v6776_v22 = vld [vmem:[#allocation10 + $0xd20] sm:$0xff]  ;;  %v6777_v23 = vld [vmem:[#allocation10 + $0xd28] sm:$0xff]  ;;  %v13440_v37 = vcombine.high %v6741_v39, %v6745_v45  ;;  %v6798_v40 = vld [vmem:[#allocation10 + $0xdd0] sm:$0xff] }
 0x5ff   : > { %v5038_v21 = vpop.f32.mrf.mxu1  ;;  %v5077_v56 = vpop.f32.mrf.mxu0  ;;  %7126 = vmatprep.subr.bf16.mxu1 %v13486_v43  ;;  %7165 = vmatprep.subr.bf16.mxu0 %v13488_v35  ;;  %v13470_v62 = vcombine.high %v6772_v58, %v6776_v22  ;;  %v13472_v0 = vcombine.high %v6773_v52, %v6777_v23  ;;  %v13469_v2 = vcombine.low %v6772_v58, %v6776_v22  ;;  %v6802_v43 = vld [vmem:[#allocation10 + $0xdf0] sm:$0xff]  ;;  %v6799_v35 = vld [vmem:[#allocation10 + $0xdd8] sm:$0xff] }
 0x600   : > { %v16590_v59 = vadd.f32 %v5038_v21, %v16556_v30  ;;  %v16593_v28 = vadd.f32 %v5077_v56, %v16559_v55  ;;  %7156 = vmatprep.mubr.f32.mxu1 %v15514_v16  ;;  %7195 = vmatprep.mubr.f32.mxu0 %v15514_v16  ;;  %v6764_v30 = vld [vmem:[#allocation10 + $0xcc0] sm:$0xff]  ;;  %v6769_v55 = vld [vmem:[#allocation10 + $0xce8] sm:$0xff]  ;;  %v13471_v3 = vcombine.low %v6773_v52, %v6777_v23  ;;  %v6790_v46 = vld [vmem:[#allocation10 + $0xd90] sm:$0xff] }
 0x601   : > { %v13462_v4 = vcombine.high %v6764_v30, %v6768_v38  ;;  %v13464_v7 = vcombine.high %v6765_v1, %v6769_v55  ;;  %v13461_v14 = vcombine.low %v6764_v30, %v6768_v38  ;;  %v13463_v15 = vcombine.low %v6765_v1, %v6769_v55  ;;  %v6795_v21 = vld [vmem:[#allocation10 + $0xdb8] sm:$0xff]  ;;  %v6782_v52 = vld [vmem:[#allocation10 + $0xd50] sm:$0xff] }
 0x602   : > { %7127 = vmatpush1.bf16.msra.mxu1 %v13485_v5  ;;  %7166 = vmatpush1.bf16.msra.mxu0 %v13487_v6  ;;  %v13498_v13 = vcombine.high %v6798_v40, %v6802_v43  ;;  %v13500_v17 = vcombine.high %v6799_v35, %v6803_v53  ;;  %v6794_v5 = vld [vmem:[#allocation10 + $0xdb0] sm:$0xff]  ;;  %v6791_v6 = vld [vmem:[#allocation10 + $0xd98] sm:$0xff]  ;;  %v13497_v56 = vcombine.low %v6798_v40, %v6802_v43 }
 0x603   : > { %7128 = vmatprep.subr.bf16.mxu1 %v13478_v49  ;;  %7167 = vmatprep.subr.bf16.mxu0 %v13480_v57  ;;  %v13499_v49 = vcombine.low %v6799_v35, %v6803_v53  ;;  %v16597_v57 = vld [vmem:[#allocation2 + $0x6] sm:$0x1]  ;;  %v13490_v58 = vcombine.high %v6790_v46, %v6794_v5  ;;  %v13492_v22 = vcombine.high %v6791_v6, %v6795_v21  ;;  %v6751_v40 = vld [vmem:[#allocation10 + $0xc58] sm:$0xff] }
 0x604   : > { %v6786_v23 = vld [vmem:[#allocation10 + $0xd70] sm:$0xff]  ;;  %v13489_v30 = vcombine.low %v6790_v46, %v6794_v5  ;;  %v13491_v55 = vcombine.low %v6791_v6, %v6795_v21  ;;  %v6755_v43 = vld [vmem:[#allocation10 + $0xc78] sm:$0xff]  ;;  %v13459_v53 = vcombine.low %v6759_v34, %v6763_v36 }
 0x605   : > { %v6743_v46 = vld [vmem:[#allocation10 + $0xc18] sm:$0xff]  ;;  %v13451_v21 = vcombine.low %v6751_v40, %v6755_v43 }
 0x606   : > { %7129 = vmatpush1.bf16.msra.mxu1 %v13477_v60  ;;  %7168 = vmatpush1.bf16.msra.mxu0 %v13479_v61  ;;  %v6783_v60 = vld [vmem:[#allocation10 + $0xd58] sm:$0xff] }
 0x607   : > { %7130 = vmatprep.subr.bf16.mxu1 %v13470_v62  ;;  %7169 = vmatprep.subr.bf16.mxu0 %v13472_v0  ;;  %v6787_v61 = vld [vmem:[#allocation10 + $0xd78] sm:$0xff] }
 0x608   : > { %v6747_v5 = vld [vmem:[#allocation10 + $0xc38] sm:$0xff] }
 0x60a   : > { %7131 = vmatpush1.bf16.msra.mxu1 %v13469_v2  ;;  %7170 = vmatpush1.bf16.msra.mxu0 %v13471_v3 }
 0x60b   : > { %7132 = vmatprep.subr.bf16.mxu1 %v13462_v4  ;;  %7171 = vmatprep.subr.bf16.mxu0 %v13464_v7  ;;  %v13482_v4 = vcombine.high %v6782_v52, %v6786_v23  ;;  %v13484_v7 = vcombine.high %v6783_v60, %v6787_v61 }
 0x60e   : > { %7133 = vmatpush1.bf16.msra.mxu1 %v13461_v14  ;;  %7172 = vmatpush1.bf16.msra.mxu0 %v13463_v15  ;;  %v13481_v14 = vcombine.low %v6782_v52, %v6786_v23  ;;  %v13483_v15 = vcombine.low %v6783_v60, %v6787_v61  ;;  %v7347_v52 = vld [vmem:[#allocation10 + $0xfc8] sm:$0xff]  ;;  %v13443_v61 = vcombine.low %v6743_v46, %v6747_v5 }
 0x60f   : > { %7134 = vmatprep.subr.bf16.mxu1 %v13454_v18  ;;  %7173 = vmatprep.subr.bf16.mxu0 %v13456_v24  ;;  %v7351_v23 = vld [vmem:[#allocation10 + $0xfe8] sm:$0xff] }
 0x612   : > { %7135 = vmatpush1.bf16.msra.mxu1 %v13453_v48  ;;  %7174 = vmatpush1.bf16.msra.mxu0 %v13455_v31 }
 0x613   : > { %7136 = vmatprep.subr.bf16.mxu1 %v13446_v51  ;;  %7175 = vmatprep.subr.bf16.mxu0 %v13448_v32  ;;  %v6758_v51 = vld [vmem:[#allocation10 + $0xc90] sm:$0xff] }
 0x614   : > { %v6762_v32 = vld [vmem:[#allocation10 + $0xcb0] sm:$0xff] }
 0x615   : > { %v13457_v35 = vcombine.low %v6758_v51, %v6762_v32 }
 0x616   : > { %7137 = vmatpush1.bf16.msra.mxu1 %v13445_v54  ;;  %7176 = vmatpush1.bf16.msra.mxu0 %v13447_v44  ;;  %v13458_v54 = vcombine.high %v6758_v51, %v6762_v32  ;;  %v13460_v44 = vcombine.high %v6759_v34, %v6763_v36  ;;  %v7322_v51 = vld [vmem:[#allocation10 + $0xf00] sm:$0xff]  ;;  %v7323_v34 = vld [vmem:[#allocation10 + $0xf08] sm:$0xff] }
 0x617   : > { %7138 = vmatprep.subr.bf16.mxu1 %v13438_v33  ;;  %7177 = vmatprep.subr.bf16.mxu0 %v13440_v37  ;;  %v6750_v33 = vld [vmem:[#allocation10 + $0xc50] sm:$0xff] }
 0x618   : > { %v6754_v37 = vld [vmem:[#allocation10 + $0xc70] sm:$0xff] }
 0x619   : > { %v13449_v6 = vcombine.low %v6750_v33, %v6754_v37 }
 0x61a   : > { %7139 = vmatpush1.bf16.msra.mxu1 %v13437_v63  ;;  %7178 = vmatpush1.bf16.msra.mxu0 %v13439_v12  ;;  %v13450_v63 = vcombine.high %v6750_v33, %v6754_v37  ;;  %v13452_v12 = vcombine.high %v6751_v40, %v6755_v43  ;;  %v7315_v33 = vld [vmem:[#allocation10 + $0xec8] sm:$0xff] }
 0x61b   : > { %7202 = vmatprep.subr.bf16.mxu1 %v13498_v13  ;;  %7241 = vmatprep.subr.bf16.mxu0 %v13500_v17  ;;  %v6742_v13 = vld [vmem:[#allocation10 + $0xc10] sm:$0xff] }
 0x61c   : > { %v6746_v17 = vld [vmem:[#allocation10 + $0xc30] sm:$0xff] }
 0x61d   : > { %v5508_v62 = vpop.f32.mrf.mxu1  ;;  %v5547_v0 = vpop.f32.mrf.mxu0  ;;  %7157 = vmatmul.mubr.f32.vlgmr.msra.gmra.mxu1 %v16597_v57  ;;  %7196 = vmatmul.mubr.f32.vlgmr.msra.gmra.mxu0 %v16597_v57  ;;  %v13441_v60 = vcombine.low %v6742_v13, %v6746_v17 }
 0x61e   : > { %v16602_v38 = vadd.f32 %v5508_v62, %v16568_v41  ;;  %v16605_v1 = vadd.f32 %v5547_v0, %v16571_v42  ;;  %7203 = vmatpush1.bf16.msra.mxu1 %v13497_v56  ;;  %7242 = vmatpush1.bf16.msra.mxu0 %v13499_v49  ;;  %v6778_v41 = vld [vmem:[#allocation10 + $0xd30] sm:$0xff]  ;;  %v6779_v42 = vld [vmem:[#allocation10 + $0xd38] sm:$0xff]  ;;  %v13442_v56 = vcombine.high %v6742_v13, %v6746_v17  ;;  %v7311_v13 = vld [vmem:[#allocation10 + $0xea8] sm:$0xff] }
 0x61f   : > { %v5510_v2 = vpop.f32.mrf.mxu1  ;;  %v5549_v3 = vpop.f32.mrf.mxu0  ;;  %7204 = vmatprep.subr.bf16.mxu1 %v13490_v58  ;;  %7243 = vmatprep.subr.bf16.mxu0 %v13492_v22  ;;  %v13474_v18 = vcombine.high %v6774_v8, %v6778_v41  ;;  %v13476_v24 = vcombine.high %v6775_v11, %v6779_v42  ;;  %v13473_v27 = vcombine.low %v6774_v8, %v6778_v41  ;;  %v7346_v58 = vld [vmem:[#allocation10 + $0xfc0] sm:$0xff] }
 0x620   : > { %v16608_v9 = vadd.f32 %v5510_v2, %v16574_v47  ;;  %v16611_v10 = vadd.f32 %v5549_v3, %v16577_v50  ;;  %7234 = vmatprep.mubr.f32.mxu1 %v15514_v16  ;;  %7273 = vmatprep.mubr.f32.mxu0 %v15514_v16  ;;  %v6766_v47 = vld [vmem:[#allocation10 + $0xcd0] sm:$0xff]  ;;  %v6771_v50 = vld [vmem:[#allocation10 + $0xcf8] sm:$0xff]  ;;  %v13475_v29 = vcombine.low %v6775_v11, %v6779_v42  ;;  %v7350_v22 = vld [vmem:[#allocation10 + $0xfe0] sm:$0xff] }
 0x621   : > { %v13466_v48 = vcombine.high %v6766_v47, %v6770_v25  ;;  %v13468_v31 = vcombine.high %v6767_v26, %v6771_v50  ;;  %v13465_v39 = vcombine.low %v6766_v47, %v6770_v25  ;;  %v13467_v45 = vcombine.low %v6767_v26, %v6771_v50  ;;  %v7339_v2 = vld [vmem:[#allocation10 + $0xf88] sm:$0xff]  ;;  %v7330_v11 = vld [vmem:[#allocation10 + $0xf40] sm:$0xff] }
 0x622   : > { %7205 = vmatpush1.bf16.msra.mxu1 %v13489_v30  ;;  %7244 = vmatpush1.bf16.msra.mxu0 %v13491_v55  ;;  %v13444_v49 = vcombine.high %v6743_v46, %v6747_v5  ;;  %v13558_v62 = vcombine.high %v7346_v58, %v7350_v22  ;;  %v13560_v0 = vcombine.high %v7347_v52, %v7351_v23  ;;  %v7338_v30 = vld [vmem:[#allocation10 + $0xf80] sm:$0xff]  ;;  %v7343_v3 = vld [vmem:[#allocation10 + $0xfa8] sm:$0xff] }
 0x623   : > { %7206 = vmatprep.subr.bf16.mxu1 %v13482_v4  ;;  %7245 = vmatprep.subr.bf16.mxu0 %v13484_v7  ;;  %v7342_v55 = vld [vmem:[#allocation10 + $0xfa0] sm:$0xff]  ;;  %v13557_v4 = vcombine.low %v7346_v58, %v7350_v22  ;;  %v13559_v7 = vcombine.low %v7347_v52, %v7351_v23  ;;  %v13552_v41 = vcombine.high %v7339_v2, %v7343_v3  ;;  %v7303_v58 = vld [vmem:[#allocation10 + $0xe68] sm:$0xff] }
 0x624   : > { %v13550_v8 = vcombine.high %v7338_v30, %v7342_v55  ;;  %v7334_v42 = vld [vmem:[#allocation10 + $0xf60] sm:$0xff]  ;;  %v13549_v47 = vcombine.low %v7338_v30, %v7342_v55  ;;  %v13551_v50 = vcombine.low %v7339_v2, %v7343_v3  ;;  %v7295_v30 = vld [vmem:[#allocation10 + $0xe28] sm:$0xff] }
 0x625   : > { %v13541_v36 = vcombine.low %v7330_v11, %v7334_v42 }
 0x626   : > { %7207 = vmatpush1.bf16.msra.mxu1 %v13481_v14  ;;  %7246 = vmatpush1.bf16.msra.mxu0 %v13483_v15  ;;  %v7331_v14 = vld [vmem:[#allocation10 + $0xf48] sm:$0xff] }
 0x627   : > { %7208 = vmatprep.subr.bf16.mxu1 %v13474_v18  ;;  %7247 = vmatprep.subr.bf16.mxu0 %v13476_v24  ;;  %v7335_v15 = vld [vmem:[#allocation10 + $0xf68] sm:$0xff] }
 0x62a   : > { %7209 = vmatpush1.bf16.msra.mxu1 %v13473_v27  ;;  %7248 = vmatpush1.bf16.msra.mxu0 %v13475_v29 }
 0x62b   : > { %7210 = vmatprep.subr.bf16.mxu1 %v13466_v48  ;;  %7249 = vmatprep.subr.bf16.mxu0 %v13468_v31  ;;  %v13542_v48 = vcombine.high %v7330_v11, %v7334_v42  ;;  %v13544_v31 = vcombine.high %v7331_v14, %v7335_v15  ;;  %v7353_v11 = vld [vmem:[#allocation10 + $0xff8] sm:$0xff] }
 0x62e   : > { %7211 = vmatpush1.bf16.msra.mxu1 %v13465_v39  ;;  %7250 = vmatpush1.bf16.msra.mxu0 %v13467_v45  ;;  %v13543_v39 = vcombine.low %v7331_v14, %v7335_v15 }
 0x62f   : > { %7212 = vmatprep.subr.bf16.mxu1 %v13458_v54  ;;  %7251 = vmatprep.subr.bf16.mxu0 %v13460_v44  ;;  %v7318_v44 = vld [vmem:[#allocation10 + $0xee0] sm:$0xff] }
 0x632   : > { %7213 = vmatpush1.bf16.msra.mxu1 %v13457_v35  ;;  %7252 = vmatpush1.bf16.msra.mxu0 %v13459_v53  ;;  %v7306_v53 = vld [vmem:[#allocation10 + $0xe80] sm:$0xff] }
 0x633   : > { %7214 = vmatprep.subr.bf16.mxu1 %v13450_v63  ;;  %7253 = vmatprep.subr.bf16.mxu0 %v13452_v12  ;;  %v7310_v63 = vld [vmem:[#allocation10 + $0xea0] sm:$0xff]  ;;  %v7307_v12 = vld [vmem:[#allocation10 + $0xe88] sm:$0xff] }
 0x634   : > { %v13518_v5 = vcombine.high %v7306_v53, %v7310_v63  ;;  %v13517_v22 = vcombine.low %v7306_v53, %v7310_v63  ;;  %v13519_v52 = vcombine.low %v7307_v12, %v7311_v13  ;;  %v7324_v53 = vld [vmem:[#allocation10 + $0xf10] sm:$0xff] }
 0x636   : > { %7215 = vmatpush1.bf16.msra.mxu1 %v13449_v6  ;;  %7254 = vmatpush1.bf16.msra.mxu0 %v13451_v21  ;;  %v13520_v6 = vcombine.high %v7307_v12, %v7311_v13  ;;  %v7298_v21 = vld [vmem:[#allocation10 + $0xe40] sm:$0xff]  ;;  %v7325_v13 = vld [vmem:[#allocation10 + $0xf18] sm:$0xff] }
 0x637   : > { %7216 = vmatprep.subr.bf16.mxu1 %v13442_v56  ;;  %7255 = vmatprep.subr.bf16.mxu0 %v13444_v49  ;;  %v7302_v56 = vld [vmem:[#allocation10 + $0xe60] sm:$0xff]  ;;  %v7299_v49 = vld [vmem:[#allocation10 + $0xe48] sm:$0xff] }
 0x638   : > { %v13510_v23 = vcombine.high %v7298_v21, %v7302_v56  ;;  %v13509_v55 = vcombine.low %v7298_v21, %v7302_v56  ;;  %v13511_v2 = vcombine.low %v7299_v49, %v7303_v58  ;;  %v7320_v21 = vld [vmem:[#allocation10 + $0xef0] sm:$0xff]  ;;  %v7317_v56 = vld [vmem:[#allocation10 + $0xed8] sm:$0xff] }
 0x63a   : > { %7217 = vmatpush1.bf16.msra.mxu1 %v13441_v60  ;;  %7256 = vmatpush1.bf16.msra.mxu0 %v13443_v61  ;;  %v13512_v60 = vcombine.high %v7299_v49, %v7303_v58  ;;  %v7290_v61 = vld [vmem:[#allocation10 + $0xe00] sm:$0xff] }
 0x63b   : > { %7674 = vmatprep.subr.bf16.mxu1 %v13558_v62  ;;  %7713 = vmatprep.subr.bf16.mxu0 %v13560_v0  ;;  %v7294_v62 = vld [vmem:[#allocation10 + $0xe20] sm:$0xff]  ;;  %v7291_v0 = vld [vmem:[#allocation10 + $0xe08] sm:$0xff] }
 0x63c   : > { %v13502_v3 = vcombine.high %v7290_v61, %v7294_v62  ;;  %v13501_v42 = vcombine.low %v7290_v61, %v7294_v62  ;;  %v13503_v14 = vcombine.low %v7291_v0, %v7295_v30  ;;  %v7309_v61 = vld [vmem:[#allocation10 + $0xe98] sm:$0xff] }
 0x63d   : > { %v5586_v18 = vpop.f32.mrf.mxu1  ;;  %v5625_v24 = vpop.f32.mrf.mxu0  ;;  %7235 = vmatmul.mubr.f32.vlgmr.msra.gmra.mxu1 %v16597_v57  ;;  %7274 = vmatmul.mubr.f32.vlgmr.msra.gmra.mxu0 %v16597_v57  ;;  %v7313_v62 = vld [vmem:[#allocation10 + $0xeb8] sm:$0xff] }
 0x63e   : > { %v16618_v25 = vadd.f32 %v5586_v18, %v16584_v19  ;;  %v16621_v26 = vadd.f32 %v5625_v24, %v16587_v20  ;;  %7675 = vmatpush1.bf16.msra.mxu1 %v13557_v4  ;;  %7714 = vmatpush1.bf16.msra.mxu0 %v13559_v7  ;;  %v7326_v19 = vld [vmem:[#allocation10 + $0xf20] sm:$0xff]  ;;  %v7327_v20 = vld [vmem:[#allocation10 + $0xf28] sm:$0xff]  ;;  %v13504_v4 = vcombine.high %v7291_v0, %v7295_v30  ;;  %v7348_v7 = vld [vmem:[#allocation10 + $0xfd0] sm:$0xff] }
 0x63f   : > { %v5588_v27 = vpop.f32.mrf.mxu1  ;;  %v5627_v29 = vpop.f32.mrf.mxu0  ;;  %7676 = vmatprep.subr.bf16.mxu1 %v13550_v8  ;;  %7715 = vmatprep.subr.bf16.mxu0 %v13552_v41  ;;  %v13534_v45 = vcombine.high %v7322_v51, %v7326_v19  ;;  %v13536_v54 = vcombine.high %v7323_v34, %v7327_v20  ;;  %v13533_v37 = vcombine.low %v7322_v51, %v7326_v19  ;;  %v7352_v8 = vld [vmem:[#allocation10 + $0xff0] sm:$0xff]  ;;  %v7349_v41 = vld [vmem:[#allocation10 + $0xfd8] sm:$0xff] }
 0x640   : > { %v16624_v32 = vadd.f32 %v5588_v27, %v16590_v59  ;;  %v16627_v57 = vadd.f32 %v5627_v29, %v16593_v28  ;;  %7706 = vmatprep.mubr.f32.mxu1 %v15514_v16  ;;  %7745 = vmatprep.mubr.f32.mxu0 %v15514_v16  ;;  %v7314_v59 = vld [vmem:[#allocation10 + $0xec0] sm:$0xff]  ;;  %v7319_v28 = vld [vmem:[#allocation10 + $0xee8] sm:$0xff]  ;;  %v13535_v40 = vcombine.low %v7323_v34, %v7327_v20  ;;  %v7340_v24 = vld [vmem:[#allocation10 + $0xf90] sm:$0xff] }
 0x641   : > { %v13526_v43 = vcombine.high %v7314_v59, %v7318_v44  ;;  %v13528_v35 = vcombine.high %v7315_v33, %v7319_v28  ;;  %v13525_v17 = vcombine.low %v7314_v59, %v7318_v44  ;;  %v13527_v46 = vcombine.low %v7315_v33, %v7319_v28  ;;  %v7345_v27 = vld [vmem:[#allocation10 + $0xfb8] sm:$0xff]  ;;  %v7332_v34 = vld [vmem:[#allocation10 + $0xf50] sm:$0xff] }
 0x642   : > { %7677 = vmatpush1.bf16.msra.mxu1 %v13549_v47  ;;  %7716 = vmatpush1.bf16.msra.mxu0 %v13551_v50  ;;  %v13562_v15 = vcombine.high %v7348_v7, %v7352_v8  ;;  %v13564_v18 = vcombine.high %v7349_v41, %v7353_v11  ;;  %v7344_v47 = vld [vmem:[#allocation10 + $0xfb0] sm:$0xff]  ;;  %v7341_v50 = vld [vmem:[#allocation10 + $0xf98] sm:$0xff]  ;;  %v13561_v29 = vcombine.low %v7348_v7, %v7352_v8 }
 0x643   : > { %7678 = vmatprep.subr.bf16.mxu1 %v13542_v48  ;;  %7717 = vmatprep.subr.bf16.mxu0 %v13544_v31  ;;  %v13563_v48 = vcombine.low %v7349_v41, %v7353_v11  ;;  %v16631_v31 = vld [vmem:[#allocation2 + $0x7] sm:$0x1]  ;;  %v13554_v51 = vcombine.high %v7340_v24, %v7344_v47  ;;  %v13556_v19 = vcombine.high %v7341_v50, %v7345_v27  ;;  %v7301_v7 = vld [vmem:[#allocation10 + $0xe58] sm:$0xff] }
 0x644   : > { %v7336_v20 = vld [vmem:[#allocation10 + $0xf70] sm:$0xff]  ;;  %v13553_v59 = vcombine.low %v7340_v24, %v7344_v47  ;;  %v13555_v28 = vcombine.low %v7341_v50, %v7345_v27  ;;  %v7305_v8 = vld [vmem:[#allocation10 + $0xe78] sm:$0xff]  ;;  %v13523_v11 = vcombine.low %v7309_v61, %v7313_v62 }
 0x645   : > { %v7293_v24 = vld [vmem:[#allocation10 + $0xe18] sm:$0xff]  ;;  %v13515_v27 = vcombine.low %v7301_v7, %v7305_v8 }
 0x646   : > { %7679 = vmatpush1.bf16.msra.mxu1 %v13541_v36  ;;  %7718 = vmatpush1.bf16.msra.mxu0 %v13543_v39  ;;  %v7333_v36 = vld [vmem:[#allocation10 + $0xf58] sm:$0xff] }
 0x647   : > { %7680 = vmatprep.subr.bf16.mxu1 %v13534_v45  ;;  %7719 = vmatprep.subr.bf16.mxu0 %v13536_v54  ;;  %v7337_v39 = vld [vmem:[#allocation10 + $0xf78] sm:$0xff] }
 0x648   : > { %v7297_v47 = vld [vmem:[#allocation10 + $0xe38] sm:$0xff] }
 0x64a   : > { %7681 = vmatpush1.bf16.msra.mxu1 %v13533_v37  ;;  %7720 = vmatpush1.bf16.msra.mxu0 %v13535_v40 }
 0x64b   : > { %7682 = vmatprep.subr.bf16.mxu1 %v13526_v43  ;;  %7721 = vmatprep.subr.bf16.mxu0 %v13528_v35  ;;  %v13546_v43 = vcombine.high %v7332_v34, %v7336_v20  ;;  %v13548_v35 = vcombine.high %v7333_v36, %v7337_v39 }
 0x64e   : > { %7683 = vmatpush1.bf16.msra.mxu1 %v13525_v17  ;;  %7722 = vmatpush1.bf16.msra.mxu0 %v13527_v46  ;;  %v13545_v17 = vcombine.low %v7332_v34, %v7336_v20  ;;  %v13547_v46 = vcombine.low %v7333_v36, %v7337_v39  ;;  %v7897_v34 = vld [vmem:[#allocation10 + $0x11c8] sm:$0xff]  ;;  %v13507_v39 = vcombine.low %v7293_v24, %v7297_v47 }
 0x64f   : > { %7684 = vmatprep.subr.bf16.mxu1 %v13518_v5  ;;  %7723 = vmatprep.subr.bf16.mxu0 %v13520_v6  ;;  %v7901_v20 = vld [vmem:[#allocation10 + $0x11e8] sm:$0xff] }
 0x652   : > { %7685 = vmatpush1.bf16.msra.mxu1 %v13517_v22  ;;  %7724 = vmatpush1.bf16.msra.mxu0 %v13519_v52 }
 0x653   : > { %7686 = vmatprep.subr.bf16.mxu1 %v13510_v23  ;;  %7725 = vmatprep.subr.bf16.mxu0 %v13512_v60  ;;  %v7308_v23 = vld [vmem:[#allocation10 + $0xe90] sm:$0xff] }
 0x654   : > { %v7312_v60 = vld [vmem:[#allocation10 + $0xeb0] sm:$0xff] }
 0x655   : > { %v13521_v41 = vcombine.low %v7308_v23, %v7312_v60 }
 0x656   : > { %7687 = vmatpush1.bf16.msra.mxu1 %v13509_v55  ;;  %7726 = vmatpush1.bf16.msra.mxu0 %v13511_v2  ;;  %v13522_v55 = vcombine.high %v7308_v23, %v7312_v60  ;;  %v13524_v2 = vcombine.high %v7309_v61, %v7313_v62  ;;  %v7872_v23 = vld [vmem:[#allocation10 + $0x1100] sm:$0xff]  ;;  %v7873_v61 = vld [vmem:[#allocation10 + $0x1108] sm:$0xff] }
 0x657   : > { %7688 = vmatprep.subr.bf16.mxu1 %v13502_v3  ;;  %7727 = vmatprep.subr.bf16.mxu0 %v13504_v4  ;;  %v7300_v3 = vld [vmem:[#allocation10 + $0xe50] sm:$0xff] }
 0x658   : > { %v7304_v4 = vld [vmem:[#allocation10 + $0xe70] sm:$0xff] }
 0x659   : > { %v13513_v50 = vcombine.low %v7300_v3, %v7304_v4 }
 0x65a   : > { %7689 = vmatpush1.bf16.msra.mxu1 %v13501_v42  ;;  %7728 = vmatpush1.bf16.msra.mxu0 %v13503_v14  ;;  %v13514_v42 = vcombine.high %v7300_v3, %v7304_v4  ;;  %v13516_v14 = vcombine.high %v7301_v7, %v7305_v8  ;;  %v7865_v3 = vld [vmem:[#allocation10 + $0x10c8] sm:$0xff] }
 0x65b   : > { %7752 = vmatprep.subr.bf16.mxu1 %v13562_v15  ;;  %7791 = vmatprep.subr.bf16.mxu0 %v13564_v18  ;;  %v7292_v15 = vld [vmem:[#allocation10 + $0xe10] sm:$0xff] }
 0x65c   : > { %v7296_v18 = vld [vmem:[#allocation10 + $0xe30] sm:$0xff] }
 0x65d   : > { %v6058_v45 = vpop.f32.mrf.mxu1  ;;  %v6097_v54 = vpop.f32.mrf.mxu0  ;;  %7707 = vmatmul.mubr.f32.vlgmr.msra.gmra.mxu1 %v16631_v31  ;;  %7746 = vmatmul.mubr.f32.vlgmr.msra.gmra.mxu0 %v16631_v31  ;;  %v13505_v36 = vcombine.low %v7292_v15, %v7296_v18 }
 0x65e   : > { %v16636_v44 = vadd.f32 %v6058_v45, %v16602_v38  ;;  %v16639_v33 = vadd.f32 %v6097_v54, %v16605_v1  ;;  %7753 = vmatpush1.bf16.msra.mxu1 %v13561_v29  ;;  %7792 = vmatpush1.bf16.msra.mxu0 %v13563_v48  ;;  %v7328_v38 = vld [vmem:[#allocation10 + $0xf30] sm:$0xff]  ;;  %v7329_v1 = vld [vmem:[#allocation10 + $0xf38] sm:$0xff]  ;;  %v13506_v29 = vcombine.high %v7292_v15, %v7296_v18  ;;  %v7861_v15 = vld [vmem:[#allocation10 + $0x10a8] sm:$0xff] }
 0x65f   : > { %v6060_v37 = vpop.f32.mrf.mxu1  ;;  %v6099_v40 = vpop.f32.mrf.mxu0  ;;  %7754 = vmatprep.subr.bf16.mxu1 %v13554_v51  ;;  %7793 = vmatprep.subr.bf16.mxu0 %v13556_v19  ;;  %v13538_v5 = vcombine.high %v7324_v53, %v7328_v38  ;;  %v13540_v6 = vcombine.high %v7325_v13, %v7329_v1  ;;  %v13537_v49 = vcombine.low %v7324_v53, %v7328_v38  ;;  %v7896_v51 = vld [vmem:[#allocation10 + $0x11c0] sm:$0xff] }
 0x660   : > { %v16642_v63 = vadd.f32 %v6060_v37, %v16608_v9  ;;  %v16645_v12 = vadd.f32 %v6099_v40, %v16611_v10  ;;  %7784 = vmatprep.mubr.f32.mxu1 %v15514_v16  ;;  %7823 = vmatprep.mubr.f32.mxu0 %v15514_v16  ;;  %v7316_v9 = vld [vmem:[#allocation10 + $0xed0] sm:$0xff]  ;;  %v7321_v10 = vld [vmem:[#allocation10 + $0xef8] sm:$0xff]  ;;  %v13539_v58 = vcombine.low %v7325_v13, %v7329_v1  ;;  %v7900_v19 = vld [vmem:[#allocation10 + $0x11e0] sm:$0xff] }
 0x661   : > { %v13530_v22 = vcombine.high %v7316_v9, %v7320_v21  ;;  %v13532_v52 = vcombine.high %v7317_v56, %v7321_v10  ;;  %v13529_v0 = vcombine.low %v7316_v9, %v7320_v21  ;;  %v13531_v30 = vcombine.low %v7317_v56, %v7321_v10  ;;  %v7889_v37 = vld [vmem:[#allocation10 + $0x1188] sm:$0xff]  ;;  %v7880_v13 = vld [vmem:[#allocation10 + $0x1140] sm:$0xff] }
 0x662   : > { %7755 = vmatpush1.bf16.msra.mxu1 %v13553_v59  ;;  %7794 = vmatpush1.bf16.msra.mxu0 %v13555_v28  ;;  %v13508_v48 = vcombine.high %v7293_v24, %v7297_v47  ;;  %v13622_v45 = vcombine.high %v7896_v51, %v7900_v19  ;;  %v13624_v54 = vcombine.high %v7897_v34, %v7901_v20  ;;  %v7888_v59 = vld [vmem:[#allocation10 + $0x1180] sm:$0xff]  ;;  %v7893_v40 = vld [vmem:[#allocation10 + $0x11a8] sm:$0xff] }
 0x663   : > { %7756 = vmatprep.subr.bf16.mxu1 %v13546_v43  ;;  %7795 = vmatprep.subr.bf16.mxu0 %v13548_v35  ;;  %v7892_v28 = vld [vmem:[#allocation10 + $0x11a0] sm:$0xff]  ;;  %v13621_v43 = vcombine.low %v7896_v51, %v7900_v19  ;;  %v13623_v35 = vcombine.low %v7897_v34, %v7901_v20  ;;  %v13616_v38 = vcombine.high %v7889_v37, %v7893_v40  ;;  %v7853_v51 = vld [vmem:[#allocation10 + $0x1068] sm:$0xff] }
 0x664   : > { %v13614_v53 = vcombine.high %v7888_v59, %v7892_v28  ;;  %v7884_v1 = vld [vmem:[#allocation10 + $0x1160] sm:$0xff]  ;;  %v13613_v9 = vcombine.low %v7888_v59, %v7892_v28  ;;  %v13615_v10 = vcombine.low %v7889_v37, %v7893_v40  ;;  %v7845_v59 = vld [vmem:[#allocation10 + $0x1028] sm:$0xff] }
 0x665   : > { %v13605_v62 = vcombine.low %v7880_v13, %v7884_v1 }
 0x666   : > { %7757 = vmatpush1.bf16.msra.mxu1 %v13545_v17  ;;  %7796 = vmatpush1.bf16.msra.mxu0 %v13547_v46  ;;  %v7881_v17 = vld [vmem:[#allocation10 + $0x1148] sm:$0xff] }
 0x667   : > { %7758 = vmatprep.subr.bf16.mxu1 %v13538_v5  ;;  %7797 = vmatprep.subr.bf16.mxu0 %v13540_v6  ;;  %v7885_v46 = vld [vmem:[#allocation10 + $0x1168] sm:$0xff] }
 0x66a   : > { %7759 = vmatpush1.bf16.msra.mxu1 %v13537_v49  ;;  %7798 = vmatpush1.bf16.msra.mxu0 %v13539_v58 }
 0x66b   : > { %7760 = vmatprep.subr.bf16.mxu1 %v13530_v22  ;;  %7799 = vmatprep.subr.bf16.mxu0 %v13532_v52  ;;  %v13606_v22 = vcombine.high %v7880_v13, %v7884_v1  ;;  %v13608_v52 = vcombine.high %v7881_v17, %v7885_v46  ;;  %v7903_v13 = vld [vmem:[#allocation10 + $0x11f8] sm:$0xff] }
 0x66e   : > { %7761 = vmatpush1.bf16.msra.mxu1 %v13529_v0  ;;  %7800 = vmatpush1.bf16.msra.mxu0 %v13531_v30  ;;  %v13607_v0 = vcombine.low %v7881_v17, %v7885_v46 }
 0x66f   : > { %7762 = vmatprep.subr.bf16.mxu1 %v13522_v55  ;;  %7801 = vmatprep.subr.bf16.mxu0 %v13524_v2  ;;  %v7868_v2 = vld [vmem:[#allocation10 + $0x10e0] sm:$0xff] }
 0x672   : > { %7763 = vmatpush1.bf16.msra.mxu1 %v13521_v41  ;;  %7802 = vmatpush1.bf16.msra.mxu0 %v13523_v11  ;;  %v7856_v11 = vld [vmem:[#allocation10 + $0x1080] sm:$0xff] }
 0x673   : > { %7764 = vmatprep.subr.bf16.mxu1 %v13514_v42  ;;  %7803 = vmatprep.subr.bf16.mxu0 %v13516_v14  ;;  %v7860_v42 = vld [vmem:[#allocation10 + $0x10a0] sm:$0xff]  ;;  %v7857_v14 = vld [vmem:[#allocation10 + $0x1088] sm:$0xff] }
 0x674   : > { %v13582_v47 = vcombine.high %v7856_v11, %v7860_v42  ;;  %v13581_v19 = vcombine.low %v7856_v11, %v7860_v42  ;;  %v13583_v34 = vcombine.low %v7857_v14, %v7861_v15 }
 0x676   : > { %7765 = vmatpush1.bf16.msra.mxu1 %v13513_v50  ;;  %7804 = vmatpush1.bf16.msra.mxu0 %v13515_v27  ;;  %v13584_v50 = vcombine.high %v7857_v14, %v7861_v15  ;;  %v7848_v27 = vld [vmem:[#allocation10 + $0x1040] sm:$0xff]  ;;  %v7866_v14 = vld [vmem:[#allocation10 + $0x10d0] sm:$0xff] }
 0x677   : > { %7766 = vmatprep.subr.bf16.mxu1 %v13506_v29  ;;  %7805 = vmatprep.subr.bf16.mxu0 %v13508_v48  ;;  %v7852_v29 = vld [vmem:[#allocation10 + $0x1060] sm:$0xff]  ;;  %v7849_v48 = vld [vmem:[#allocation10 + $0x1048] sm:$0xff]  ;;  %v7870_v15 = vld [vmem:[#allocation10 + $0x10f0] sm:$0xff] }
 0x678   : > { %v13574_v20 = vcombine.high %v7848_v27, %v7852_v29  ;;  %v13573_v28 = vcombine.low %v7848_v27, %v7852_v29  ;;  %v13575_v37 = vcombine.low %v7849_v48, %v7853_v51  ;;  %v13594_v27 = vcombine.high %v7866_v14, %v7870_v15 }
 0x67a   : > { %7767 = vmatpush1.bf16.msra.mxu1 %v13505_v36  ;;  %7806 = vmatpush1.bf16.msra.mxu0 %v13507_v39  ;;  %v13576_v36 = vcombine.high %v7849_v48, %v7853_v51  ;;  %v7840_v39 = vld [vmem:[#allocation10 + $0x1000] sm:$0xff]  ;;  %v7858_v48 = vld [vmem:[#allocation10 + $0x1090] sm:$0xff] }
 0x67b   : > { %8224 = vmatprep.subr.bf16.mxu1 %v13622_v45  ;;  %8263 = vmatprep.subr.bf16.mxu0 %v13624_v54  ;;  %v7844_v45 = vld [vmem:[#allocation10 + $0x1020] sm:$0xff]  ;;  %v7841_v54 = vld [vmem:[#allocation10 + $0x1008] sm:$0xff]  ;;  %v7862_v51 = vld [vmem:[#allocation10 + $0x10b0] sm:$0xff] }
 0x67c   : > { %v13566_v40 = vcombine.high %v7840_v39, %v7844_v45  ;;  %v13565_v1 = vcombine.low %v7840_v39, %v7844_v45  ;;  %v13567_v17 = vcombine.low %v7841_v54, %v7845_v59  ;;  %v13586_v39 = vcombine.high %v7858_v48, %v7862_v51 }
 0x67d   : > { %v6136_v5 = vpop.f32.mrf.mxu1  ;;  %v6175_v6 = vpop.f32.mrf.mxu0  ;;  %7785 = vmatmul.mubr.f32.vlgmr.msra.gmra.mxu1 %v16631_v31  ;;  %7824 = vmatmul.mubr.f32.vlgmr.msra.gmra.mxu0 %v16631_v31 }
 0x67e   : > { %v16652_v21 = vadd.f32 %v6136_v5, %v16618_v25  ;;  %v16655_v56 = vadd.f32 %v6175_v6, %v16621_v26  ;;  %8225 = vmatpush1.bf16.msra.mxu1 %v13621_v43  ;;  %8264 = vmatpush1.bf16.msra.mxu0 %v13623_v35  ;;  %v7876_v25 = vld [vmem:[#allocation10 + $0x1120] sm:$0xff]  ;;  %v7877_v26 = vld [vmem:[#allocation10 + $0x1128] sm:$0xff]  ;;  %v13568_v43 = vcombine.high %v7841_v54, %v7845_v59  ;;  %v7898_v35 = vld [vmem:[#allocation10 + $0x11d0] sm:$0xff] }
 0x67f   : > { %v6138_v49 = vpop.f32.mrf.mxu1  ;;  %v6177_v58 = vpop.f32.mrf.mxu0  ;;  %8226 = vmatprep.subr.bf16.mxu1 %v13614_v53  ;;  %8265 = vmatprep.subr.bf16.mxu0 %v13616_v38  ;;  %v13598_v30 = vcombine.high %v7872_v23, %v7876_v25  ;;  %v13600_v55 = vcombine.high %v7873_v61, %v7877_v26  ;;  %v13597_v4 = vcombine.low %v7872_v23, %v7876_v25  ;;  %v7902_v53 = vld [vmem:[#allocation10 + $0x11f0] sm:$0xff]  ;;  %v7899_v38 = vld [vmem:[#allocation10 + $0x11d8] sm:$0xff] }
 0x680   : > { %v16658_v60 = vadd.f32 %v6138_v49, %v16624_v32  ;;  %v16661_v31 = vadd.f32 %v6177_v58, %v16627_v57  ;;  %8256 = vmatprep.mubr.f32.mxu1 %v15514_v16  ;;  %8295 = vmatprep.mubr.f32.mxu0 %v15514_v16  ;;  %v7864_v32 = vld [vmem:[#allocation10 + $0x10c0] sm:$0xff]  ;;  %v7869_v57 = vld [vmem:[#allocation10 + $0x10e8] sm:$0xff]  ;;  %v13599_v7 = vcombine.low %v7873_v61, %v7877_v26  ;;  %v7890_v6 = vld [vmem:[#allocation10 + $0x1190] sm:$0xff] }
 0x681   : > { %v13590_v8 = vcombine.high %v7864_v32, %v7868_v2  ;;  %v13592_v41 = vcombine.high %v7865_v3, %v7869_v57  ;;  %v13589_v18 = vcombine.low %v7864_v32, %v7868_v2  ;;  %v13591_v24 = vcombine.low %v7865_v3, %v7869_v57  ;;  %v7895_v49 = vld [vmem:[#allocation10 + $0x11b8] sm:$0xff]  ;;  %v7882_v61 = vld [vmem:[#allocation10 + $0x1150] sm:$0xff] }
 0x682   : > { %8227 = vmatpush1.bf16.msra.mxu1 %v13613_v9  ;;  %8266 = vmatpush1.bf16.msra.mxu0 %v13615_v10  ;;  %v13626_v46 = vcombine.high %v7898_v35, %v7902_v53  ;;  %v13628_v5 = vcombine.high %v7899_v38, %v7903_v13  ;;  %v7894_v9 = vld [vmem:[#allocation10 + $0x11b0] sm:$0xff]  ;;  %v7891_v10 = vld [vmem:[#allocation10 + $0x1198] sm:$0xff]  ;;  %v13625_v58 = vcombine.low %v7898_v35, %v7902_v53 }
 0x683   : > { %8228 = vmatprep.subr.bf16.mxu1 %v13606_v22  ;;  %8267 = vmatprep.subr.bf16.mxu0 %v13608_v52  ;;  %v13627_v22 = vcombine.low %v7899_v38, %v7903_v13  ;;  %v16665_v52 = vld [vmem:[#allocation2 + $0x8] sm:$0x1]  ;;  %v13618_v23 = vcombine.high %v7890_v6, %v7894_v9  ;;  %v13620_v25 = vcombine.high %v7891_v10, %v7895_v49 }
 0x684   : > { %v7886_v26 = vld [vmem:[#allocation10 + $0x1170] sm:$0xff] }
 0x685   : > { %v13610_v32 = vcombine.high %v7882_v61, %v7886_v26  ;;  %v7874_v3 = vld [vmem:[#allocation10 + $0x1110] sm:$0xff] }
 0x686   : > { %8229 = vmatpush1.bf16.msra.mxu1 %v13605_v62  ;;  %8268 = vmatpush1.bf16.msra.mxu0 %v13607_v0  ;;  %v7883_v62 = vld [vmem:[#allocation10 + $0x1158] sm:$0xff]  ;;  %v7878_v57 = vld [vmem:[#allocation10 + $0x1130] sm:$0xff] }
 0x687   : > { %8230 = vmatprep.subr.bf16.mxu1 %v13598_v30  ;;  %8269 = vmatprep.subr.bf16.mxu0 %v13600_v55  ;;  %v7887_v0 = vld [vmem:[#allocation10 + $0x1178] sm:$0xff]  ;;  %v13617_v30 = vcombine.low %v7890_v6, %v7894_v9  ;;  %v13619_v55 = vcombine.low %v7891_v10, %v7895_v49  ;;  %v13602_v11 = vcombine.high %v7874_v3, %v7878_v57  ;;  %v7850_v54 = vld [vmem:[#allocation10 + $0x1050] sm:$0xff]  ;;  %v8446_v10 = vld [vmem:[#allocation10 + $0x13c0] sm:$0xff] }
 0x688   : > { %v13612_v2 = vcombine.high %v7883_v62, %v7887_v0  ;;  %v7854_v59 = vld [vmem:[#allocation10 + $0x1070] sm:$0xff]  ;;  %v8450_v49 = vld [vmem:[#allocation10 + $0x13e0] sm:$0xff] }
 0x689   : > { %v13578_v35 = vcombine.high %v7850_v54, %v7854_v59  ;;  %v7842_v38 = vld [vmem:[#allocation10 + $0x1010] sm:$0xff] }
 0x68a   : > { %8231 = vmatpush1.bf16.msra.mxu1 %v13597_v4  ;;  %8270 = vmatpush1.bf16.msra.mxu0 %v13599_v7  ;;  %v7875_v4 = vld [vmem:[#allocation10 + $0x1118] sm:$0xff]  ;;  %v7846_v13 = vld [vmem:[#allocation10 + $0x1030] sm:$0xff] }
 0x68b   : > { %8232 = vmatprep.subr.bf16.mxu1 %v13590_v8  ;;  %8271 = vmatprep.subr.bf16.mxu0 %v13592_v41  ;;  %v7879_v7 = vld [vmem:[#allocation10 + $0x1138] sm:$0xff]  ;;  %v13609_v8 = vcombine.low %v7882_v61, %v7886_v26  ;;  %v13611_v41 = vcombine.low %v7883_v62, %v7887_v0  ;;  %v13570_v6 = vcombine.high %v7842_v38, %v7846_v13 }
 0x68c   : > { %v13604_v42 = vcombine.high %v7875_v4, %v7879_v7  ;;  %v13686_v62 = vcombine.high %v8446_v10, %v8450_v49 }
 0x68e   : > { %8233 = vmatpush1.bf16.msra.mxu1 %v13589_v18  ;;  %8272 = vmatpush1.bf16.msra.mxu0 %v13591_v24  ;;  %v7867_v18 = vld [vmem:[#allocation10 + $0x10d8] sm:$0xff] }
 0x68f   : > { %8234 = vmatprep.subr.bf16.mxu1 %v13582_v47  ;;  %8273 = vmatprep.subr.bf16.mxu0 %v13584_v50  ;;  %v7871_v24 = vld [vmem:[#allocation10 + $0x10f8] sm:$0xff]  ;;  %v13601_v47 = vcombine.low %v7874_v3, %v7878_v57  ;;  %v13603_v50 = vcombine.low %v7875_v4, %v7879_v7  ;;  %v13685_v3 = vcombine.low %v8446_v10, %v8450_v49  ;;  %v8398_v49 = vld [vmem:[#allocation10 + $0x1240] sm:$0xff] }
 0x690   : > { %v13596_v29 = vcombine.high %v7867_v18, %v7871_v24 }
 0x692   : > { %8235 = vmatpush1.bf16.msra.mxu1 %v13581_v19  ;;  %8274 = vmatpush1.bf16.msra.mxu0 %v13583_v34  ;;  %v7859_v19 = vld [vmem:[#allocation10 + $0x1098] sm:$0xff] }
 0x693   : > { %8236 = vmatprep.subr.bf16.mxu1 %v13574_v20  ;;  %8275 = vmatprep.subr.bf16.mxu0 %v13576_v36  ;;  %v7863_v34 = vld [vmem:[#allocation10 + $0x10b8] sm:$0xff]  ;;  %v13593_v20 = vcombine.low %v7866_v14, %v7870_v15  ;;  %v13595_v36 = vcombine.low %v7867_v18, %v7871_v24  ;;  %v8431_v14 = vld [vmem:[#allocation10 + $0x1348] sm:$0xff] }
 0x694   : > { %v13588_v45 = vcombine.high %v7859_v19, %v7863_v34  ;;  %v8435_v15 = vld [vmem:[#allocation10 + $0x1368] sm:$0xff] }
 0x696   : > { %8237 = vmatpush1.bf16.msra.mxu1 %v13573_v28  ;;  %8276 = vmatpush1.bf16.msra.mxu0 %v13575_v37  ;;  %v7851_v28 = vld [vmem:[#allocation10 + $0x1058] sm:$0xff] }
 0x697   : > { %8238 = vmatprep.subr.bf16.mxu1 %v13566_v40  ;;  %8277 = vmatprep.subr.bf16.mxu0 %v13568_v43  ;;  %v7855_v37 = vld [vmem:[#allocation10 + $0x1078] sm:$0xff]  ;;  %v13585_v40 = vcombine.low %v7858_v48, %v7862_v51  ;;  %v13587_v43 = vcombine.low %v7859_v19, %v7863_v34  ;;  %v13672_v34 = vcombine.high %v8431_v14, %v8435_v15 }
 0x698   : > { %v13580_v53 = vcombine.high %v7851_v28, %v7855_v37 }
 0x69a   : > { %8239 = vmatpush1.bf16.msra.mxu1 %v13565_v1  ;;  %8278 = vmatpush1.bf16.msra.mxu0 %v13567_v17  ;;  %v7843_v1 = vld [vmem:[#allocation10 + $0x1018] sm:$0xff] }
 0x69b   : > { %8302 = vmatprep.subr.bf16.mxu1 %v13626_v46  ;;  %8341 = vmatprep.subr.bf16.mxu0 %v13628_v5  ;;  %v7847_v17 = vld [vmem:[#allocation10 + $0x1038] sm:$0xff]  ;;  %v13577_v46 = vcombine.low %v7850_v54, %v7854_v59  ;;  %v13579_v5 = vcombine.low %v7851_v28, %v7855_v37  ;;  %v13671_v54 = vcombine.low %v8431_v14, %v8435_v15  ;;  %v8418_v37 = vld [vmem:[#allocation10 + $0x12e0] sm:$0xff]  ;;  %v8452_v14 = vld [vmem:[#allocation10 + $0x13f0] sm:$0xff] }
 0x69c   : > { %v13572_v9 = vcombine.high %v7843_v1, %v7847_v17  ;;  %v8449_v15 = vld [vmem:[#allocation10 + $0x13d8] sm:$0xff] }
 0x69d   : > { %8257 = vmatmul.mubr.f32.vlgmr.msra.gmra.mxu1 %v16665_v52  ;;  %8296 = vmatmul.mubr.f32.vlgmr.msra.gmra.mxu0 %v16665_v52  ;;  %v16671_v61 = vpop.f32.mrf.mxu1  ;;  %v16673_v26 = vpop.f32.mrf.mxu0 }
 0x69e   : > { %8303 = vmatpush1.bf16.msra.mxu1 %v13625_v58  ;;  %8342 = vmatpush1.bf16.msra.mxu0 %v13627_v22  ;;  %v8447_v58 = vld [vmem:[#allocation10 + $0x13c8] sm:$0xff] }
 0x69f   : > { %8304 = vmatprep.subr.bf16.mxu1 %v13618_v23  ;;  %8343 = vmatprep.subr.bf16.mxu0 %v13620_v25  ;;  %v8451_v22 = vld [vmem:[#allocation10 + $0x13e8] sm:$0xff]  ;;  %v13569_v23 = vcombine.low %v7842_v38, %v7846_v13  ;;  %v13571_v25 = vcombine.low %v7843_v1, %v7847_v17  ;;  %v16675_v4 = vpop.f32.mrf.mxu1  ;;  %v16677_v7 = vpop.f32.mrf.mxu0  ;;  %v8406_v13 = vld [vmem:[#allocation10 + $0x1280] sm:$0xff] }
 0x6a0   : > { %8334 = vmatprep.mubr.f32.mxu1 %v15514_v16  ;;  %8373 = vmatprep.mubr.f32.mxu0 %v15514_v16  ;;  %v13688_v0 = vcombine.high %v8447_v58, %v8451_v22  ;;  %v13687_v57 = vcombine.low %v8447_v58, %v8451_v22  ;;  %v8410_v1 = vld [vmem:[#allocation10 + $0x12a0] sm:$0xff]  ;;  %v8407_v17 = vld [vmem:[#allocation10 + $0x1288] sm:$0xff] }
 0x6a1   : > { %v8402_v58 = vld [vmem:[#allocation10 + $0x1260] sm:$0xff]  ;;  %v8399_v22 = vld [vmem:[#allocation10 + $0x1248] sm:$0xff] }
 0x6a2   : > { %8305 = vmatpush1.bf16.msra.mxu1 %v13617_v30  ;;  %8344 = vmatpush1.bf16.msra.mxu0 %v13619_v55  ;;  %v8438_v30 = vld [vmem:[#allocation10 + $0x1380] sm:$0xff] }
 0x6a3   : > { %8306 = vmatprep.subr.bf16.mxu1 %v13610_v32  ;;  %8345 = vmatprep.subr.bf16.mxu0 %v13612_v2  ;;  %v8442_v55 = vld [vmem:[#allocation10 + $0x13a0] sm:$0xff]  ;;  %v8439_v32 = vld [vmem:[#allocation10 + $0x1388] sm:$0xff] }
 0x6a4   : > { %v8443_v2 = vld [vmem:[#allocation10 + $0x13a8] sm:$0xff] }
 0x6a6   : > { %8307 = vmatpush1.bf16.msra.mxu1 %v13609_v8  ;;  %8346 = vmatpush1.bf16.msra.mxu0 %v13611_v41  ;;  %v13678_v8 = vcombine.high %v8438_v30, %v8442_v55  ;;  %v13680_v41 = vcombine.high %v8439_v32, %v8443_v2 }
 0x6a7   : > { %8308 = vmatprep.subr.bf16.mxu1 %v13602_v11  ;;  %8347 = vmatprep.subr.bf16.mxu0 %v13604_v42  ;;  %v8430_v11 = vld [vmem:[#allocation10 + $0x1340] sm:$0xff] }
 0x6a8   : > { %v8434_v42 = vld [vmem:[#allocation10 + $0x1360] sm:$0xff] }
 0x6a9   : > { %v13670_v19 = vcombine.high %v8430_v11, %v8434_v42 }
 0x6aa   : > { %8309 = vmatpush1.bf16.msra.mxu1 %v13601_v47  ;;  %8348 = vmatpush1.bf16.msra.mxu0 %v13603_v50  ;;  %v13677_v47 = vcombine.low %v8438_v30, %v8442_v55  ;;  %v8390_v55 = vld [vmem:[#allocation10 + $0x1200] sm:$0xff] }
 0x6ab   : > { %8310 = vmatprep.subr.bf16.mxu1 %v13594_v27  ;;  %8349 = vmatprep.subr.bf16.mxu0 %v13596_v29  ;;  %v13679_v29 = vcombine.low %v8439_v32, %v8443_v2  ;;  %v8394_v32 = vld [vmem:[#allocation10 + $0x1220] sm:$0xff]  ;;  %v8391_v2 = vld [vmem:[#allocation10 + $0x1208] sm:$0xff] }
 0x6ae   : > { %8311 = vmatpush1.bf16.msra.mxu1 %v13593_v20  ;;  %8350 = vmatpush1.bf16.msra.mxu0 %v13595_v36  ;;  %v8422_v20 = vld [vmem:[#allocation10 + $0x1300] sm:$0xff] }
 0x6af   : > { %8312 = vmatprep.subr.bf16.mxu1 %v13586_v39  ;;  %8351 = vmatprep.subr.bf16.mxu0 %v13588_v45  ;;  %v8423_v39 = vld [vmem:[#allocation10 + $0x1308] sm:$0xff]  ;;  %v13669_v45 = vcombine.low %v8430_v11, %v8434_v42  ;;  %v8448_v42 = vld [vmem:[#allocation10 + $0x13d0] sm:$0xff] }
 0x6b2   : > { %8313 = vmatpush1.bf16.msra.mxu1 %v13585_v40  ;;  %8352 = vmatpush1.bf16.msra.mxu0 %v13587_v43  ;;  %v8415_v40 = vld [vmem:[#allocation10 + $0x12c8] sm:$0xff] }
 0x6b3   : > { %8314 = vmatprep.subr.bf16.mxu1 %v13578_v35  ;;  %8353 = vmatprep.subr.bf16.mxu0 %v13580_v53 }
 0x6b6   : > { %8315 = vmatpush1.bf16.msra.mxu1 %v13577_v46  ;;  %8354 = vmatpush1.bf16.msra.mxu0 %v13579_v5  ;;  %v8411_v46 = vld [vmem:[#allocation10 + $0x12a8] sm:$0xff] }
 0x6b7   : > { %8316 = vmatprep.subr.bf16.mxu1 %v13570_v6  ;;  %8355 = vmatprep.subr.bf16.mxu0 %v13572_v9  ;;  %v13646_v9 = vcombine.high %v8406_v13, %v8410_v1  ;;  %v13648_v10 = vcombine.high %v8407_v17, %v8411_v46 }
 0x6ba   : > { %8317 = vmatpush1.bf16.msra.mxu1 %v13569_v23  ;;  %8356 = vmatpush1.bf16.msra.mxu0 %v13571_v25  ;;  %v8403_v23 = vld [vmem:[#allocation10 + $0x1268] sm:$0xff]  ;;  %v13645_v25 = vcombine.low %v8406_v13, %v8410_v1  ;;  %v8425_v13 = vld [vmem:[#allocation10 + $0x1318] sm:$0xff] }
 0x6bb   : > { %8774 = vmatprep.subr.bf16.mxu1 %v13686_v62  ;;  %8813 = vmatprep.subr.bf16.mxu0 %v13688_v0  ;;  %v13647_v62 = vcombine.low %v8407_v17, %v8411_v46  ;;  %v13638_v0 = vcombine.high %v8398_v49, %v8402_v58  ;;  %v13640_v30 = vcombine.high %v8399_v22, %v8403_v23  ;;  %v8429_v1 = vld [vmem:[#allocation10 + $0x1338] sm:$0xff] }
 0x6bd   : > { %v6686_v18 = vpop.f32.mrf.mxu1  ;;  %v6725_v24 = vpop.f32.mrf.mxu0  ;;  %8335 = vmatmul.mubr.f32.vlgmr.msra.gmra.mxu1 %v16665_v52  ;;  %8374 = vmatmul.mubr.f32.vlgmr.msra.gmra.mxu0 %v16665_v52 }
 0x6be   : > { %v16682_v50 = vadd.f32 %v6686_v18, %v16652_v21  ;;  %v16685_v27 = vadd.f32 %v6725_v24, %v16655_v56  ;;  %8775 = vmatpush1.bf16.msra.mxu1 %v13685_v3  ;;  %8814 = vmatpush1.bf16.msra.mxu0 %v13687_v57  ;;  %v8426_v21 = vld [vmem:[#allocation10 + $0x1320] sm:$0xff]  ;;  %v8427_v56 = vld [vmem:[#allocation10 + $0x1328] sm:$0xff]  ;;  %v13637_v57 = vcombine.low %v8398_v49, %v8402_v58  ;;  %v8453_v18 = vld [vmem:[#allocation10 + $0x13f8] sm:$0xff] }
 0x6bf   : > { %v6688_v48 = vpop.f32.mrf.mxu1  ;;  %v6727_v51 = vpop.f32.mrf.mxu0  ;;  %8776 = vmatprep.subr.bf16.mxu1 %v13678_v8  ;;  %8815 = vmatprep.subr.bf16.mxu0 %v13680_v41  ;;  %v13662_v59 = vcombine.high %v8422_v20, %v8426_v21  ;;  %v13664_v28 = vcombine.high %v8423_v39, %v8427_v56  ;;  %v13661_v43 = vcombine.low %v8422_v20, %v8426_v21  ;;  %v8395_v3 = vld [vmem:[#allocation10 + $0x1228] sm:$0xff]  ;;  %v8445_v20 = vld [vmem:[#allocation10 + $0x13b8] sm:$0xff] }
 0x6c0   : > { %v16688_v36 = vadd.f32 %v6688_v48, %v16658_v60  ;;  %v16691_v52 = vadd.f32 %v6727_v51, %v16661_v31  ;;  %8806 = vmatprep.mubr.f32.mxu1 %v15514_v16  ;;  %8845 = vmatprep.mubr.f32.mxu0 %v15514_v16  ;;  %v8414_v60 = vld [vmem:[#allocation10 + $0x12c0] sm:$0xff]  ;;  %v8419_v31 = vld [vmem:[#allocation10 + $0x12e8] sm:$0xff]  ;;  %v13663_v35 = vcombine.low %v8423_v39, %v8427_v56  ;;  %v8440_v51 = vld [vmem:[#allocation10 + $0x1390] sm:$0xff] }
 0x6c1   : > { %v13654_v53 = vcombine.high %v8414_v60, %v8418_v37  ;;  %v13656_v38 = vcombine.high %v8415_v40, %v8419_v31  ;;  %v13653_v5 = vcombine.low %v8414_v60, %v8418_v37  ;;  %v13655_v6 = vcombine.low %v8415_v40, %v8419_v31  ;;  %v16695_v56 = vld [vmem:[#allocation2 + $0x9] sm:$0x1]  ;;  %v8433_v60 = vld [vmem:[#allocation10 + $0x1358] sm:$0xff] }
 0x6c2   : > { %8777 = vmatpush1.bf16.msra.mxu1 %v13677_v47  ;;  %8816 = vmatpush1.bf16.msra.mxu0 %v13679_v29  ;;  %v13639_v8 = vcombine.low %v8399_v22, %v8403_v23  ;;  %v13630_v41 = vcombine.high %v8390_v55, %v8394_v32  ;;  %v13632_v11 = vcombine.high %v8391_v2, %v8395_v3  ;;  %v8437_v37 = vld [vmem:[#allocation10 + $0x1378] sm:$0xff] }
 0x6c3   : > { %8778 = vmatprep.subr.bf16.mxu1 %v13670_v19  ;;  %8817 = vmatprep.subr.bf16.mxu0 %v13672_v34  ;;  %v13629_v24 = vcombine.low %v8390_v55, %v8394_v32  ;;  %v13631_v47 = vcombine.low %v8391_v2, %v8395_v3  ;;  %v13690_v29 = vcombine.high %v8448_v42, %v8452_v14  ;;  %v8444_v19 = vld [vmem:[#allocation10 + $0x13b0] sm:$0xff]  ;;  %v8441_v34 = vld [vmem:[#allocation10 + $0x1398] sm:$0xff] }
 0x6c4   : > { %v13692_v48 = vcombine.high %v8449_v15, %v8453_v18  ;;  %v13689_v21 = vcombine.low %v8448_v42, %v8452_v14  ;;  %v13691_v39 = vcombine.low %v8449_v15, %v8453_v18  ;;  %v13681_v40 = vcombine.low %v8440_v51, %v8444_v19  ;;  %v8417_v49 = vld [vmem:[#allocation10 + $0x12d8] sm:$0xff] }
 0x6c5   : > { %v13683_v31 = vcombine.low %v8441_v34, %v8445_v20  ;;  %v13675_v46 = vcombine.low %v8433_v60, %v8437_v37  ;;  %v8421_v58 = vld [vmem:[#allocation10 + $0x12f8] sm:$0xff]  ;;  %v13667_v23 = vcombine.low %v8425_v13, %v8429_v1 }
 0x6c6   : > { %8779 = vmatpush1.bf16.msra.mxu1 %v13669_v45  ;;  %8818 = vmatpush1.bf16.msra.mxu0 %v13671_v54  ;;  %v13682_v45 = vcombine.high %v8440_v51, %v8444_v19  ;;  %v13684_v54 = vcombine.high %v8441_v34, %v8445_v20  ;;  %v8409_v55 = vld [vmem:[#allocation10 + $0x1298] sm:$0xff]  ;;  %v13659_v3 = vcombine.low %v8417_v49, %v8421_v58 }
 0x6c7   : > { %8780 = vmatprep.subr.bf16.mxu1 %v13662_v59  ;;  %8819 = vmatprep.subr.bf16.mxu0 %v13664_v28  ;;  %v8432_v59 = vld [vmem:[#allocation10 + $0x1350] sm:$0xff]  ;;  %v8413_v32 = vld [vmem:[#allocation10 + $0x12b8] sm:$0xff] }
 0x6c8   : > { %v8436_v28 = vld [vmem:[#allocation10 + $0x1370] sm:$0xff]  ;;  %v8401_v42 = vld [vmem:[#allocation10 + $0x1258] sm:$0xff]  ;;  %v13651_v18 = vcombine.low %v8409_v55, %v8413_v32 }
 0x6c9   : > { %v13673_v17 = vcombine.low %v8432_v59, %v8436_v28  ;;  %v8405_v14 = vld [vmem:[#allocation10 + $0x1278] sm:$0xff] }
 0x6ca   : > { %8781 = vmatpush1.bf16.msra.mxu1 %v13661_v43  ;;  %8820 = vmatpush1.bf16.msra.mxu0 %v13663_v35  ;;  %v13674_v43 = vcombine.high %v8432_v59, %v8436_v28  ;;  %v13676_v35 = vcombine.high %v8433_v60, %v8437_v37  ;;  %v8393_v51 = vld [vmem:[#allocation10 + $0x1218] sm:$0xff]  ;;  %v13643_v20 = vcombine.low %v8401_v42, %v8405_v14  ;;  %v8997_v59 = vld [vmem:[#allocation10 + $0x15c8] sm:$0xff] }
 0x6cb   : > { %8782 = vmatprep.subr.bf16.mxu1 %v13654_v53  ;;  %8821 = vmatprep.subr.bf16.mxu0 %v13656_v38  ;;  %v8424_v53 = vld [vmem:[#allocation10 + $0x1310] sm:$0xff]  ;;  %v8397_v19 = vld [vmem:[#allocation10 + $0x1238] sm:$0xff]  ;;  %v9001_v28 = vld [vmem:[#allocation10 + $0x15e8] sm:$0xff] }
 0x6cc   : > { %v8428_v38 = vld [vmem:[#allocation10 + $0x1330] sm:$0xff]  ;;  %v13635_v37 = vcombine.low %v8393_v51, %v8397_v19 }
 0x6cd   : > { %v13665_v22 = vcombine.low %v8424_v53, %v8428_v38 }
 0x6ce   : > { %8783 = vmatpush1.bf16.msra.mxu1 %v13653_v5  ;;  %8822 = vmatpush1.bf16.msra.mxu0 %v13655_v6  ;;  %v13666_v5 = vcombine.high %v8424_v53, %v8428_v38  ;;  %v13668_v6 = vcombine.high %v8425_v13, %v8429_v1  ;;  %v8988_v53 = vld [vmem:[#allocation10 + $0x1580] sm:$0xff]  ;;  %v8989_v13 = vld [vmem:[#allocation10 + $0x1588] sm:$0xff] }
 0x6cf   : > { %8784 = vmatprep.subr.bf16.mxu1 %v13646_v9  ;;  %8823 = vmatprep.subr.bf16.mxu0 %v13648_v10  ;;  %v8416_v9 = vld [vmem:[#allocation10 + $0x12d0] sm:$0xff]  ;;  %v8992_v38 = vld [vmem:[#allocation10 + $0x15a0] sm:$0xff]  ;;  %v8993_v1 = vld [vmem:[#allocation10 + $0x15a8] sm:$0xff] }
 0x6d0   : > { %v8420_v10 = vld [vmem:[#allocation10 + $0x12f0] sm:$0xff] }
 0x6d1   : > { %v13657_v2 = vcombine.low %v8416_v9, %v8420_v10 }
 0x6d2   : > { %8785 = vmatpush1.bf16.msra.mxu1 %v13645_v25  ;;  %8824 = vmatpush1.bf16.msra.mxu0 %v13647_v62  ;;  %v13658_v25 = vcombine.high %v8416_v9, %v8420_v10  ;;  %v13660_v62 = vcombine.high %v8417_v49, %v8421_v58  ;;  %v13742_v9 = vcombine.high %v8988_v53, %v8992_v38  ;;  %v8980_v49 = vld [vmem:[#allocation10 + $0x1540] sm:$0xff] }
 0x6d3   : > { %8786 = vmatprep.subr.bf16.mxu1 %v13638_v0  ;;  %8825 = vmatprep.subr.bf16.mxu0 %v13640_v30  ;;  %v8408_v0 = vld [vmem:[#allocation10 + $0x1290] sm:$0xff]  ;;  %v13744_v10 = vcombine.high %v8989_v13, %v8993_v1  ;;  %v8984_v58 = vld [vmem:[#allocation10 + $0x1560] sm:$0xff] }
 0x6d4   : > { %v8412_v30 = vld [vmem:[#allocation10 + $0x12b0] sm:$0xff] }
 0x6d5   : > { %v13649_v15 = vcombine.low %v8408_v0, %v8412_v30 }
 0x6d6   : > { %8787 = vmatpush1.bf16.msra.mxu1 %v13637_v57  ;;  %8826 = vmatpush1.bf16.msra.mxu0 %v13639_v8  ;;  %v13650_v57 = vcombine.high %v8408_v0, %v8412_v30  ;;  %v13652_v8 = vcombine.high %v8409_v55, %v8413_v32  ;;  %v13741_v0 = vcombine.low %v8988_v53, %v8992_v38  ;;  %v8953_v53 = vld [vmem:[#allocation10 + $0x1468] sm:$0xff] }
 0x6d7   : > { %8788 = vmatprep.subr.bf16.mxu1 %v13630_v41  ;;  %8827 = vmatprep.subr.bf16.mxu0 %v13632_v11  ;;  %v8400_v41 = vld [vmem:[#allocation10 + $0x1250] sm:$0xff]  ;;  %v13743_v32 = vcombine.low %v8989_v13, %v8993_v1 }
 0x6d8   : > { %v8404_v11 = vld [vmem:[#allocation10 + $0x1270] sm:$0xff] }
 0x6d9   : > { %v13641_v34 = vcombine.low %v8400_v41, %v8404_v11 }
 0x6da   : > { %8789 = vmatpush1.bf16.msra.mxu1 %v13629_v24  ;;  %8828 = vmatpush1.bf16.msra.mxu0 %v13631_v47  ;;  %v13642_v24 = vcombine.high %v8400_v41, %v8404_v11  ;;  %v13644_v47 = vcombine.high %v8401_v42, %v8405_v14  ;;  %v8972_v41 = vld [vmem:[#allocation10 + $0x1500] sm:$0xff]  ;;  %v8973_v42 = vld [vmem:[#allocation10 + $0x1508] sm:$0xff]  ;;  %v13733_v14 = vcombine.low %v8980_v49, %v8984_v58 }
 0x6db   : > { %8852 = vmatprep.subr.bf16.mxu1 %v13690_v29  ;;  %8891 = vmatprep.subr.bf16.mxu0 %v13692_v48  ;;  %v8392_v29 = vld [vmem:[#allocation10 + $0x1210] sm:$0xff] }
 0x6dc   : > { %v8396_v48 = vld [vmem:[#allocation10 + $0x1230] sm:$0xff] }
 0x6dd   : > { %8807 = vmatmul.mubr.f32.vlgmr.msra.gmra.mxu1 %v16695_v56  ;;  %8846 = vmatmul.mubr.f32.vlgmr.msra.gmra.mxu0 %v16695_v56  ;;  %v13633_v60 = vcombine.low %v8392_v29, %v8396_v48 }
 0x6de   : > { %8853 = vmatpush1.bf16.msra.mxu1 %v13689_v21  ;;  %8892 = vmatpush1.bf16.msra.mxu0 %v13691_v39  ;;  %v13634_v21 = vcombine.high %v8392_v29, %v8396_v48  ;;  %v13636_v39 = vcombine.high %v8393_v51, %v8397_v19  ;;  %v8965_v29 = vld [vmem:[#allocation10 + $0x14c8] sm:$0xff] }
 0x6df   : > { %8854 = vmatprep.subr.bf16.mxu1 %v13682_v45  ;;  %8893 = vmatprep.subr.bf16.mxu0 %v13684_v54  ;;  %v8996_v45 = vld [vmem:[#allocation10 + $0x15c0] sm:$0xff] }
 0x6e0   : > { %8884 = vmatprep.mubr.f32.mxu1 %v15514_v16  ;;  %8923 = vmatprep.mubr.f32.mxu0 %v15514_v16  ;;  %v9000_v54 = vld [vmem:[#allocation10 + $0x15e0] sm:$0xff] }
 0x6e2   : > { %8855 = vmatpush1.bf16.msra.mxu1 %v13681_v40  ;;  %8894 = vmatpush1.bf16.msra.mxu0 %v13683_v31  ;;  %v16701_v40 = vpop.f32.mrf.mxu1  ;;  %v16703_v31 = vpop.f32.mrf.mxu0 }
 0x6e3   : > { %8856 = vmatprep.subr.bf16.mxu1 %v13674_v43  ;;  %8895 = vmatprep.subr.bf16.mxu0 %v13676_v35  ;;  %v13750_v43 = vcombine.high %v8996_v45, %v9000_v54  ;;  %v13752_v35 = vcombine.high %v8997_v59, %v9001_v28 }
 0x6e6   : > { %8857 = vmatpush1.bf16.msra.mxu1 %v13673_v17  ;;  %8896 = vmatpush1.bf16.msra.mxu0 %v13675_v46  ;;  %v13749_v17 = vcombine.low %v8996_v45, %v9000_v54  ;;  %v13751_v46 = vcombine.low %v8997_v59, %v9001_v28  ;;  %v8961_v45 = vld [vmem:[#allocation10 + $0x14a8] sm:$0xff] }
 0x6e7   : > { %8858 = vmatprep.subr.bf16.mxu1 %v13666_v5  ;;  %8897 = vmatprep.subr.bf16.mxu0 %v13668_v6  ;;  %v16705_v5 = vpop.f32.mrf.mxu1  ;;  %v16707_v6 = vpop.f32.mrf.mxu0 }
 0x6ea   : > { %8859 = vmatpush1.bf16.msra.mxu1 %v13665_v22  ;;  %8898 = vmatpush1.bf16.msra.mxu0 %v13667_v23  ;;  %v8981_v22 = vld [vmem:[#allocation10 + $0x1548] sm:$0xff] }
 0x6eb   : > { %8860 = vmatprep.subr.bf16.mxu1 %v13658_v25  ;;  %8899 = vmatprep.subr.bf16.mxu0 %v13660_v62  ;;  %v8985_v23 = vld [vmem:[#allocation10 + $0x1568] sm:$0xff] }
 0x6ee   : > { %8861 = vmatpush1.bf16.msra.mxu1 %v13657_v2  ;;  %8900 = vmatpush1.bf16.msra.mxu0 %v13659_v3 }
 0x6ef   : > { %8862 = vmatprep.subr.bf16.mxu1 %v13650_v57  ;;  %8901 = vmatprep.subr.bf16.mxu0 %v13652_v8  ;;  %v13734_v57 = vcombine.high %v8980_v49, %v8984_v58  ;;  %v13736_v8 = vcombine.high %v8981_v22, %v8985_v23  ;;  %v8945_v49 = vld [vmem:[#allocation10 + $0x1428] sm:$0xff] }
 0x6f2   : > { %8863 = vmatpush1.bf16.msra.mxu1 %v13649_v15  ;;  %8902 = vmatpush1.bf16.msra.mxu0 %v13651_v18  ;;  %v13735_v15 = vcombine.low %v8981_v22, %v8985_v23 }
 0x6f3   : > { %8864 = vmatprep.subr.bf16.mxu1 %v13642_v24  ;;  %8903 = vmatprep.subr.bf16.mxu0 %v13644_v47  ;;  %v8968_v47 = vld [vmem:[#allocation10 + $0x14e0] sm:$0xff] }
 0x6f6   : > { %8865 = vmatpush1.bf16.msra.mxu1 %v13641_v34  ;;  %8904 = vmatpush1.bf16.msra.mxu0 %v13643_v20  ;;  %v8956_v20 = vld [vmem:[#allocation10 + $0x1480] sm:$0xff] }
 0x6f7   : > { %8866 = vmatprep.subr.bf16.mxu1 %v13634_v21  ;;  %8905 = vmatprep.subr.bf16.mxu0 %v13636_v39  ;;  %v8960_v21 = vld [vmem:[#allocation10 + $0x14a0] sm:$0xff]  ;;  %v8957_v39 = vld [vmem:[#allocation10 + $0x1488] sm:$0xff] }
 0x6f8   : > { %v13710_v28 = vcombine.high %v8956_v20, %v8960_v21  ;;  %v13709_v38 = vcombine.low %v8956_v20, %v8960_v21  ;;  %v13711_v13 = vcombine.low %v8957_v39, %v8961_v45 }
 0x6fa   : > { %8867 = vmatpush1.bf16.msra.mxu1 %v13633_v60  ;;  %8906 = vmatpush1.bf16.msra.mxu0 %v13635_v37  ;;  %v13712_v60 = vcombine.high %v8957_v39, %v8961_v45  ;;  %v8948_v37 = vld [vmem:[#allocation10 + $0x1440] sm:$0xff]  ;;  %v8974_v39 = vld [vmem:[#allocation10 + $0x1510] sm:$0xff] }
 0x6fb   : > { %9324 = vmatprep.subr.bf16.mxu1 %v13750_v43  ;;  %9363 = vmatprep.subr.bf16.mxu0 %v13752_v35  ;;  %v8952_v43 = vld [vmem:[#allocation10 + $0x1460] sm:$0xff]  ;;  %v8949_v35 = vld [vmem:[#allocation10 + $0x1448] sm:$0xff]  ;;  %v8978_v45 = vld [vmem:[#allocation10 + $0x1530] sm:$0xff] }
 0x6fc   : > { %v13702_v1 = vcombine.high %v8948_v37, %v8952_v43  ;;  %v13701_v58 = vcombine.low %v8948_v37, %v8952_v43  ;;  %v13703_v22 = vcombine.low %v8949_v35, %v8953_v53  ;;  %v13730_v37 = vcombine.high %v8974_v39, %v8978_v45 }
 0x6fd   : > { %v7236_v25 = vpop.f32.mrf.mxu1  ;;  %v7275_v62 = vpop.f32.mrf.mxu0  ;;  %8885 = vmatmul.mubr.f32.vlgmr.msra.gmra.mxu1 %v16695_v56  ;;  %8924 = vmatmul.mubr.f32.vlgmr.msra.gmra.mxu0 %v16695_v56 }
 0x6fe   : > { %v16712_v30 = vadd.f32 %v7236_v25, %v16682_v50  ;;  %v16715_v55 = vadd.f32 %v7275_v62, %v16685_v27  ;;  %9325 = vmatpush1.bf16.msra.mxu1 %v13749_v17  ;;  %9364 = vmatpush1.bf16.msra.mxu0 %v13751_v46  ;;  %v8976_v50 = vld [vmem:[#allocation10 + $0x1520] sm:$0xff]  ;;  %v8977_v27 = vld [vmem:[#allocation10 + $0x1528] sm:$0xff]  ;;  %v13704_v17 = vcombine.high %v8949_v35, %v8953_v53  ;;  %v8998_v62 = vld [vmem:[#allocation10 + $0x15d0] sm:$0xff] }
 0x6ff   : > { %v7238_v2 = vpop.f32.mrf.mxu1  ;;  %v7277_v3 = vpop.f32.mrf.mxu0  ;;  %9326 = vmatprep.subr.bf16.mxu1 %v13742_v9  ;;  %9365 = vmatprep.subr.bf16.mxu0 %v13744_v10  ;;  %v13726_v18 = vcombine.high %v8972_v41, %v8976_v50  ;;  %v13728_v24 = vcombine.high %v8973_v42, %v8977_v27  ;;  %v13725_v48 = vcombine.low %v8972_v41, %v8976_v50  ;;  %v8940_v46 = vld [vmem:[#allocation10 + $0x1400] sm:$0xff]  ;;  %v8941_v10 = vld [vmem:[#allocation10 + $0x1408] sm:$0xff]  ;;  %v8990_v50 = vld [vmem:[#allocation10 + $0x1590] sm:$0xff] }
 0x700   : > { %v16718_v11 = vadd.f32 %v7238_v2, %v16688_v36  ;;  %v16721_v56 = vadd.f32 %v7277_v3, %v16691_v52  ;;  %9356 = vmatprep.mubr.f32.mxu1 %v15514_v16  ;;  %9395 = vmatprep.mubr.f32.mxu0 %v15514_v16  ;;  %v8964_v36 = vld [vmem:[#allocation10 + $0x14c0] sm:$0xff]  ;;  %v8969_v52 = vld [vmem:[#allocation10 + $0x14e8] sm:$0xff]  ;;  %v13727_v51 = vcombine.low %v8973_v42, %v8977_v27  ;;  %v9003_v2 = vld [vmem:[#allocation10 + $0x15f8] sm:$0xff] }
 0x701   : > { %v13718_v19 = vcombine.high %v8964_v36, %v8968_v47  ;;  %v13720_v34 = vcombine.high %v8965_v29, %v8969_v52  ;;  %v13717_v54 = vcombine.low %v8964_v36, %v8968_v47  ;;  %v13719_v59 = vcombine.low %v8965_v29, %v8969_v52  ;;  %v8944_v9 = vld [vmem:[#allocation10 + $0x1420] sm:$0xff]  ;;  %v8994_v42 = vld [vmem:[#allocation10 + $0x15b0] sm:$0xff]  ;;  %v8991_v27 = vld [vmem:[#allocation10 + $0x1598] sm:$0xff] }
 0x702   : > { %9327 = vmatpush1.bf16.msra.mxu1 %v13741_v0  ;;  %9366 = vmatpush1.bf16.msra.mxu0 %v13743_v32  ;;  %v13694_v23 = vcombine.high %v8940_v46, %v8944_v9  ;;  %v13696_v25 = vcombine.high %v8941_v10, %v8945_v49  ;;  %v9002_v0 = vld [vmem:[#allocation10 + $0x15f0] sm:$0xff]  ;;  %v8999_v32 = vld [vmem:[#allocation10 + $0x15d8] sm:$0xff]  ;;  %v13693_v3 = vcombine.low %v8940_v46, %v8944_v9 }
 0x703   : > { %9328 = vmatprep.subr.bf16.mxu1 %v13734_v57  ;;  %9367 = vmatprep.subr.bf16.mxu0 %v13736_v8  ;;  %v13695_v57 = vcombine.low %v8941_v10, %v8945_v49  ;;  %v13754_v8 = vcombine.high %v8998_v62, %v9002_v0  ;;  %v13756_v41 = vcombine.high %v8999_v32, %v9003_v2  ;;  %v8982_v29 = vld [vmem:[#allocation10 + $0x1550] sm:$0xff] }
 0x704   : > { %v13746_v36 = vcombine.high %v8990_v50, %v8994_v42  ;;  %v8986_v52 = vld [vmem:[#allocation10 + $0x1570] sm:$0xff] }
 0x705   : > { %v13738_v20 = vcombine.high %v8982_v29, %v8986_v52  ;;  %v8966_v35 = vld [vmem:[#allocation10 + $0x14d0] sm:$0xff] }
 0x706   : > { %9329 = vmatpush1.bf16.msra.mxu1 %v13733_v14  ;;  %9368 = vmatpush1.bf16.msra.mxu0 %v13735_v15  ;;  %v8995_v14 = vld [vmem:[#allocation10 + $0x15b8] sm:$0xff]  ;;  %v13753_v15 = vcombine.low %v8998_v62, %v9002_v0  ;;  %v8970_v53 = vld [vmem:[#allocation10 + $0x14f0] sm:$0xff] }
 0x707   : > { %9330 = vmatprep.subr.bf16.mxu1 %v13726_v18  ;;  %9369 = vmatprep.subr.bf16.mxu0 %v13728_v24  ;;  %v13755_v18 = vcombine.low %v8999_v32, %v9003_v2  ;;  %v16725_v24 = vld [vmem:[#allocation2 + $0xa] sm:$0x1]  ;;  %v13748_v47 = vcombine.high %v8991_v27, %v8995_v14  ;;  %v13722_v46 = vcombine.high %v8966_v35, %v8970_v53 }
 0x708   : > { %v8958_v10 = vld [vmem:[#allocation10 + $0x1490] sm:$0xff] }
 0x709   : > { %v8962_v49 = vld [vmem:[#allocation10 + $0x14b0] sm:$0xff] }
 0x70a   : > { %9331 = vmatpush1.bf16.msra.mxu1 %v13725_v48  ;;  %9370 = vmatpush1.bf16.msra.mxu0 %v13727_v51  ;;  %v8983_v48 = vld [vmem:[#allocation10 + $0x1558] sm:$0xff]  ;;  %v13714_v62 = vcombine.high %v8958_v10, %v8962_v49  ;;  %v8950_v32 = vld [vmem:[#allocation10 + $0x1450] sm:$0xff] }
 0x70b   : > { %9332 = vmatprep.subr.bf16.mxu1 %v13718_v19  ;;  %9371 = vmatprep.subr.bf16.mxu0 %v13720_v34  ;;  %v8987_v51 = vld [vmem:[#allocation10 + $0x1578] sm:$0xff]  ;;  %v13745_v19 = vcombine.low %v8990_v50, %v8994_v42  ;;  %v13747_v34 = vcombine.low %v8991_v27, %v8995_v14  ;;  %v8954_v2 = vld [vmem:[#allocation10 + $0x1470] sm:$0xff] }
 0x70c   : > { %v13740_v21 = vcombine.high %v8983_v48, %v8987_v51  ;;  %v13706_v50 = vcombine.high %v8950_v32, %v8954_v2  ;;  %v8942_v27 = vld [vmem:[#allocation10 + $0x1410] sm:$0xff] }
 0x70d   : > { %v8946_v14 = vld [vmem:[#allocation10 + $0x1430] sm:$0xff] }
 0x70e   : > { %9333 = vmatpush1.bf16.msra.mxu1 %v13717_v54  ;;  %9372 = vmatpush1.bf16.msra.mxu0 %v13719_v59  ;;  %v8975_v54 = vld [vmem:[#allocation10 + $0x1518] sm:$0xff] }
 0x70f   : > { %9334 = vmatprep.subr.bf16.mxu1 %v13710_v28  ;;  %9373 = vmatprep.subr.bf16.mxu0 %v13712_v60  ;;  %v8979_v59 = vld [vmem:[#allocation10 + $0x1538] sm:$0xff]  ;;  %v13737_v28 = vcombine.low %v8982_v29, %v8986_v52  ;;  %v13739_v60 = vcombine.low %v8983_v48, %v8987_v51  ;;  %v13698_v29 = vcombine.high %v8942_v27, %v8946_v14  ;;  %v9546_v48 = vld [vmem:[#allocation10 + $0x17c0] sm:$0xff] }
 0x710   : > { %v13732_v43 = vcombine.high %v8975_v54, %v8979_v59  ;;  %v9550_v51 = vld [vmem:[#allocation10 + $0x17e0] sm:$0xff] }
 0x712   : > { %9335 = vmatpush1.bf16.msra.mxu1 %v13709_v38  ;;  %9374 = vmatpush1.bf16.msra.mxu0 %v13711_v13  ;;  %v8967_v38 = vld [vmem:[#allocation10 + $0x14d8] sm:$0xff] }
 0x713   : > { %9336 = vmatprep.subr.bf16.mxu1 %v13702_v1  ;;  %9375 = vmatprep.subr.bf16.mxu0 %v13704_v17  ;;  %v8971_v13 = vld [vmem:[#allocation10 + $0x14f8] sm:$0xff]  ;;  %v13729_v1 = vcombine.low %v8974_v39, %v8978_v45  ;;  %v13731_v17 = vcombine.low %v8975_v54, %v8979_v59  ;;  %v13814_v54 = vcombine.high %v9546_v48, %v9550_v51 }
 0x714   : > { %v13724_v9 = vcombine.high %v8967_v38, %v8971_v13 }
 0x716   : > { %9337 = vmatpush1.bf16.msra.mxu1 %v13701_v58  ;;  %9376 = vmatpush1.bf16.msra.mxu0 %v13703_v22  ;;  %v8959_v58 = vld [vmem:[#allocation10 + $0x1498] sm:$0xff] }
 0x717   : > { %9338 = vmatprep.subr.bf16.mxu1 %v13694_v23  ;;  %9377 = vmatprep.subr.bf16.mxu0 %v13696_v25  ;;  %v8963_v22 = vld [vmem:[#allocation10 + $0x14b8] sm:$0xff]  ;;  %v13721_v23 = vcombine.low %v8966_v35, %v8970_v53  ;;  %v13723_v25 = vcombine.low %v8967_v38, %v8971_v13  ;;  %v13813_v35 = vcombine.low %v9546_v48, %v9550_v51  ;;  %v9506_v51 = vld [vmem:[#allocation10 + $0x1680] sm:$0xff] }
 0x718   : > { %v13716_v0 = vcombine.high %v8959_v58, %v8963_v22 }
 0x71a   : > { %9339 = vmatpush1.bf16.msra.mxu1 %v13693_v3  ;;  %9378 = vmatpush1.bf16.msra.mxu0 %v13695_v57  ;;  %v8951_v3 = vld [vmem:[#allocation10 + $0x1458] sm:$0xff] }
 0x71b   : > { %9402 = vmatprep.subr.bf16.mxu1 %v13754_v8  ;;  %9441 = vmatprep.subr.bf16.mxu0 %v13756_v41  ;;  %v8955_v57 = vld [vmem:[#allocation10 + $0x1478] sm:$0xff]  ;;  %v13713_v8 = vcombine.low %v8958_v10, %v8962_v49  ;;  %v13715_v41 = vcombine.low %v8959_v58, %v8963_v22  ;;  %v9531_v10 = vld [vmem:[#allocation10 + $0x1748] sm:$0xff] }
 0x71c   : > { %v13708_v42 = vcombine.high %v8951_v3, %v8955_v57  ;;  %v9535_v49 = vld [vmem:[#allocation10 + $0x1768] sm:$0xff] }
 0x71d   : > { %9357 = vmatmul.mubr.f32.vlgmr.msra.gmra.mxu1 %v16725_v24  ;;  %9396 = vmatmul.mubr.f32.vlgmr.msra.gmra.mxu0 %v16725_v24  ;;  %v16731_v39 = vpop.f32.mrf.mxu1  ;;  %v16733_v45 = vpop.f32.mrf.mxu0 }
 0x71e   : > { %9403 = vmatpush1.bf16.msra.mxu1 %v13753_v15  ;;  %9442 = vmatpush1.bf16.msra.mxu0 %v13755_v18  ;;  %v8943_v15 = vld [vmem:[#allocation10 + $0x1418] sm:$0xff] }
 0x71f   : > { %9404 = vmatprep.subr.bf16.mxu1 %v13746_v36  ;;  %9443 = vmatprep.subr.bf16.mxu0 %v13748_v47  ;;  %v8947_v18 = vld [vmem:[#allocation10 + $0x1438] sm:$0xff]  ;;  %v13705_v36 = vcombine.low %v8950_v32, %v8954_v2  ;;  %v13707_v47 = vcombine.low %v8951_v3, %v8955_v57  ;;  %v16735_v38 = vpop.f32.mrf.mxu1  ;;  %v16737_v13 = vpop.f32.mrf.mxu0  ;;  %v13800_v57 = vcombine.high %v9531_v10, %v9535_v49 }
 0x720   : > { %9434 = vmatprep.mubr.f32.mxu1 %v15514_v16  ;;  %9473 = vmatprep.mubr.f32.mxu0 %v15514_v16  ;;  %v13700_v52 = vcombine.high %v8943_v15, %v8947_v18 }
 0x722   : > { %9405 = vmatpush1.bf16.msra.mxu1 %v13745_v19  ;;  %9444 = vmatpush1.bf16.msra.mxu0 %v13747_v34  ;;  %v9547_v19 = vld [vmem:[#allocation10 + $0x17c8] sm:$0xff] }
 0x723   : > { %9406 = vmatprep.subr.bf16.mxu1 %v13738_v20  ;;  %9445 = vmatprep.subr.bf16.mxu0 %v13740_v21  ;;  %v9551_v34 = vld [vmem:[#allocation10 + $0x17e8] sm:$0xff]  ;;  %v13697_v20 = vcombine.low %v8942_v27, %v8946_v14  ;;  %v13699_v21 = vcombine.low %v8943_v15, %v8947_v18  ;;  %v13799_v27 = vcombine.low %v9531_v10, %v9535_v49  ;;  %v9518_v18 = vld [vmem:[#allocation10 + $0x16e0] sm:$0xff] }
 0x724   : > { %v13816_v59 = vcombine.high %v9547_v19, %v9551_v34  ;;  %v13815_v53 = vcombine.low %v9547_v19, %v9551_v34  ;;  %v9510_v19 = vld [vmem:[#allocation10 + $0x16a0] sm:$0xff]  ;;  %v9507_v34 = vld [vmem:[#allocation10 + $0x1688] sm:$0xff] }
 0x725   : > { %v9494_v10 = vld [vmem:[#allocation10 + $0x1620] sm:$0xff]  ;;  %v9491_v49 = vld [vmem:[#allocation10 + $0x1608] sm:$0xff] }
 0x726   : > { %9407 = vmatpush1.bf16.msra.mxu1 %v13737_v28  ;;  %9446 = vmatpush1.bf16.msra.mxu0 %v13739_v60  ;;  %v9538_v28 = vld [vmem:[#allocation10 + $0x1780] sm:$0xff] }
 0x727   : > { %9408 = vmatprep.subr.bf16.mxu1 %v13730_v37  ;;  %9447 = vmatprep.subr.bf16.mxu0 %v13732_v43  ;;  %v9542_v60 = vld [vmem:[#allocation10 + $0x17a0] sm:$0xff]  ;;  %v9539_v37 = vld [vmem:[#allocation10 + $0x1788] sm:$0xff] }
 0x728   : > { %v9543_v43 = vld [vmem:[#allocation10 + $0x17a8] sm:$0xff] }
 0x72a   : > { %9409 = vmatpush1.bf16.msra.mxu1 %v13729_v1  ;;  %9448 = vmatpush1.bf16.msra.mxu0 %v13731_v17  ;;  %v13806_v1 = vcombine.high %v9538_v28, %v9542_v60  ;;  %v13808_v17 = vcombine.high %v9539_v37, %v9543_v43 }
 0x72b   : > { %9410 = vmatprep.subr.bf16.mxu1 %v13722_v46  ;;  %9449 = vmatprep.subr.bf16.mxu0 %v13724_v9  ;;  %v9530_v46 = vld [vmem:[#allocation10 + $0x1740] sm:$0xff] }
 0x72c   : > { %v9534_v9 = vld [vmem:[#allocation10 + $0x1760] sm:$0xff] }
 0x72d   : > { %v13798_v3 = vcombine.high %v9530_v46, %v9534_v9 }
 0x72e   : > { %9411 = vmatpush1.bf16.msra.mxu1 %v13721_v23  ;;  %9450 = vmatpush1.bf16.msra.mxu0 %v13723_v25  ;;  %v13805_v23 = vcombine.low %v9538_v28, %v9542_v60  ;;  %v9498_v60 = vld [vmem:[#allocation10 + $0x1640] sm:$0xff] }
 0x72f   : > { %9412 = vmatprep.subr.bf16.mxu1 %v13714_v62  ;;  %9451 = vmatprep.subr.bf16.mxu0 %v13716_v0  ;;  %v13807_v0 = vcombine.low %v9539_v37, %v9543_v43  ;;  %v9502_v37 = vld [vmem:[#allocation10 + $0x1660] sm:$0xff]  ;;  %v9499_v43 = vld [vmem:[#allocation10 + $0x1648] sm:$0xff] }
 0x732   : > { %9413 = vmatpush1.bf16.msra.mxu1 %v13713_v8  ;;  %9452 = vmatpush1.bf16.msra.mxu0 %v13715_v41  ;;  %v9522_v8 = vld [vmem:[#allocation10 + $0x1700] sm:$0xff] }
 0x733   : > { %9414 = vmatprep.subr.bf16.mxu1 %v13706_v50  ;;  %9453 = vmatprep.subr.bf16.mxu0 %v13708_v42  ;;  %v9523_v50 = vld [vmem:[#allocation10 + $0x1708] sm:$0xff]  ;;  %v13797_v42 = vcombine.low %v9530_v46, %v9534_v9  ;;  %v9490_v9 = vld [vmem:[#allocation10 + $0x1600] sm:$0xff] }
 0x736   : > { %9415 = vmatpush1.bf16.msra.mxu1 %v13705_v36  ;;  %9454 = vmatpush1.bf16.msra.mxu0 %v13707_v47  ;;  %v9515_v36 = vld [vmem:[#allocation10 + $0x16c8] sm:$0xff] }
 0x737   : > { %9416 = vmatprep.subr.bf16.mxu1 %v13698_v29  ;;  %9455 = vmatprep.subr.bf16.mxu0 %v13700_v52 }
 0x73a   : > { %9417 = vmatpush1.bf16.msra.mxu1 %v13697_v20  ;;  %9456 = vmatpush1.bf16.msra.mxu0 %v13699_v21  ;;  %v9511_v20 = vld [vmem:[#allocation10 + $0x16a8] sm:$0xff] }
 0x73b   : > { %9874 = vmatprep.subr.bf16.mxu1 %v13814_v54  ;;  %9913 = vmatprep.subr.bf16.mxu0 %v13816_v59  ;;  %v13774_v59 = vcombine.high %v9506_v51, %v9510_v19  ;;  %v13776_v28 = vcombine.high %v9507_v34, %v9511_v20 }
 0x73d   : > { %v7786_v58 = vpop.f32.mrf.mxu1  ;;  %v7825_v22 = vpop.f32.mrf.mxu0  ;;  %9435 = vmatmul.mubr.f32.vlgmr.msra.gmra.mxu1 %v16725_v24  ;;  %9474 = vmatmul.mubr.f32.vlgmr.msra.gmra.mxu0 %v16725_v24 }
 0x73e   : > { %v16742_v25 = vadd.f32 %v7786_v58, %v16712_v30  ;;  %v16745_v62 = vadd.f32 %v7825_v22, %v16715_v55  ;;  %9875 = vmatpush1.bf16.msra.mxu1 %v13813_v35  ;;  %9914 = vmatpush1.bf16.msra.mxu0 %v13815_v53  ;;  %v9526_v30 = vld [vmem:[#allocation10 + $0x1720] sm:$0xff]  ;;  %v9527_v55 = vld [vmem:[#allocation10 + $0x1728] sm:$0xff]  ;;  %v13773_v53 = vcombine.low %v9506_v51, %v9510_v19  ;;  %v9533_v51 = vld [vmem:[#allocation10 + $0x1758] sm:$0xff] }
 0x73f   : > { %v7788_v32 = vpop.f32.mrf.mxu1  ;;  %v7827_v2 = vpop.f32.mrf.mxu0  ;;  %9876 = vmatprep.subr.bf16.mxu1 %v13806_v1  ;;  %9915 = vmatprep.subr.bf16.mxu0 %v13808_v17  ;;  %v13790_v14 = vcombine.high %v9522_v8, %v9526_v30  ;;  %v13792_v15 = vcombine.high %v9523_v50, %v9527_v55  ;;  %v13789_v47 = vcombine.low %v9522_v8, %v9526_v30  ;;  %v9503_v35 = vld [vmem:[#allocation10 + $0x1668] sm:$0xff]  ;;  %v9553_v8 = vld [vmem:[#allocation10 + $0x17f8] sm:$0xff] }
 0x740   : > { %v16748_v41 = vadd.f32 %v7788_v32, %v16718_v11  ;;  %v16751_v24 = vadd.f32 %v7827_v2, %v16721_v56  ;;  %9906 = vmatprep.mubr.f32.mxu1 %v15514_v16  ;;  %9945 = vmatprep.mubr.f32.mxu0 %v15514_v16  ;;  %v9514_v11 = vld [vmem:[#allocation10 + $0x16c0] sm:$0xff]  ;;  %v9519_v56 = vld [vmem:[#allocation10 + $0x16e8] sm:$0xff]  ;;  %v13791_v29 = vcombine.low %v9523_v50, %v9527_v55  ;;  %v9548_v2 = vld [vmem:[#allocation10 + $0x17d0] sm:$0xff] }
 0x741   : > { %v13782_v52 = vcombine.high %v9514_v11, %v9518_v18  ;;  %v13784_v48 = vcombine.high %v9515_v36, %v9519_v56  ;;  %v13781_v21 = vcombine.low %v9514_v11, %v9518_v18  ;;  %v13783_v54 = vcombine.low %v9515_v36, %v9519_v56  ;;  %v9495_v58 = vld [vmem:[#allocation10 + $0x1628] sm:$0xff]  ;;  %v9545_v11 = vld [vmem:[#allocation10 + $0x17b8] sm:$0xff]  ;;  %v16755_v56 = vld [vmem:[#allocation2 + $0xb] sm:$0x1] }
 0x742   : > { %9877 = vmatpush1.bf16.msra.mxu1 %v13805_v23  ;;  %9916 = vmatpush1.bf16.msra.mxu0 %v13807_v0  ;;  %v13775_v1 = vcombine.low %v9507_v34, %v9511_v20  ;;  %v13766_v17 = vcombine.high %v9498_v60, %v9502_v37  ;;  %v13768_v46 = vcombine.high %v9499_v43, %v9503_v35  ;;  %v9537_v19 = vld [vmem:[#allocation10 + $0x1778] sm:$0xff] }
 0x743   : > { %9878 = vmatprep.subr.bf16.mxu1 %v13798_v3  ;;  %9917 = vmatprep.subr.bf16.mxu0 %v13800_v57  ;;  %v13765_v22 = vcombine.low %v9498_v60, %v9502_v37  ;;  %v13767_v23 = vcombine.low %v9499_v43, %v9503_v35  ;;  %v13758_v0 = vcombine.high %v9490_v9, %v9494_v10  ;;  %v9552_v3 = vld [vmem:[#allocation10 + $0x17f0] sm:$0xff]  ;;  %v9549_v57 = vld [vmem:[#allocation10 + $0x17d8] sm:$0xff] }
 0x744   : > { %v13760_v32 = vcombine.high %v9491_v49, %v9495_v58  ;;  %v13757_v30 = vcombine.low %v9490_v9, %v9494_v10  ;;  %v13759_v50 = vcombine.low %v9491_v49, %v9495_v58  ;;  %v13818_v55 = vcombine.high %v9548_v2, %v9552_v3  ;;  %v9525_v60 = vld [vmem:[#allocation10 + $0x1718] sm:$0xff] }
 0x745   : > { %v13817_v18 = vcombine.low %v9548_v2, %v9552_v3  ;;  %v13819_v36 = vcombine.low %v9549_v57, %v9553_v8  ;;  %v9529_v37 = vld [vmem:[#allocation10 + $0x1738] sm:$0xff]  ;;  %v13803_v35 = vcombine.low %v9533_v51, %v9537_v19 }
 0x746   : > { %9879 = vmatpush1.bf16.msra.mxu1 %v13797_v42  ;;  %9918 = vmatpush1.bf16.msra.mxu0 %v13799_v27  ;;  %v13820_v42 = vcombine.high %v9549_v57, %v9553_v8  ;;  %v9540_v27 = vld [vmem:[#allocation10 + $0x1790] sm:$0xff]  ;;  %v9517_v9 = vld [vmem:[#allocation10 + $0x16d8] sm:$0xff]  ;;  %v13795_v58 = vcombine.low %v9525_v60, %v9529_v37 }
 0x747   : > { %9880 = vmatprep.subr.bf16.mxu1 %v13790_v14  ;;  %9919 = vmatprep.subr.bf16.mxu0 %v13792_v15  ;;  %v9544_v14 = vld [vmem:[#allocation10 + $0x17b0] sm:$0xff]  ;;  %v9541_v15 = vld [vmem:[#allocation10 + $0x1798] sm:$0xff] }
 0x748   : > { %v13809_v34 = vcombine.low %v9540_v27, %v9544_v14  ;;  %v13811_v20 = vcombine.low %v9541_v15, %v9545_v11  ;;  %v9521_v10 = vld [vmem:[#allocation10 + $0x16f8] sm:$0xff] }
 0x749   : > { %v9509_v2 = vld [vmem:[#allocation10 + $0x1698] sm:$0xff]  ;;  %v13787_v8 = vcombine.low %v9517_v9, %v9521_v10 }
 0x74a   : > { %9881 = vmatpush1.bf16.msra.mxu1 %v13789_v47  ;;  %9920 = vmatpush1.bf16.msra.mxu0 %v13791_v29  ;;  %v13810_v47 = vcombine.high %v9540_v27, %v9544_v14  ;;  %v13812_v29 = vcombine.high %v9541_v15, %v9545_v11  ;;  %v9513_v3 = vld [vmem:[#allocation10 + $0x16b8] sm:$0xff] }
 0x74b   : > { %9882 = vmatprep.subr.bf16.mxu1 %v13782_v52  ;;  %9921 = vmatprep.subr.bf16.mxu0 %v13784_v48  ;;  %v9532_v52 = vld [vmem:[#allocation10 + $0x1750] sm:$0xff]  ;;  %v9501_v27 = vld [vmem:[#allocation10 + $0x1658] sm:$0xff]  ;;  %v13779_v11 = vcombine.low %v9509_v2, %v9513_v3 }
 0x74c   : > { %v9536_v48 = vld [vmem:[#allocation10 + $0x1770] sm:$0xff]  ;;  %v9505_v14 = vld [vmem:[#allocation10 + $0x1678] sm:$0xff] }
 0x74d   : > { %v13801_v43 = vcombine.low %v9532_v52, %v9536_v48 }
 0x74e   : > { %9883 = vmatpush1.bf16.msra.mxu1 %v13781_v21  ;;  %9922 = vmatpush1.bf16.msra.mxu0 %v13783_v54  ;;  %v13802_v21 = vcombine.high %v9532_v52, %v9536_v48  ;;  %v13804_v54 = vcombine.high %v9533_v51, %v9537_v19  ;;  %v9493_v52 = vld [vmem:[#allocation10 + $0x1618] sm:$0xff]  ;;  %v13771_v19 = vcombine.low %v9501_v27, %v9505_v14 }
 0x74f   : > { %9884 = vmatprep.subr.bf16.mxu1 %v13774_v59  ;;  %9923 = vmatprep.subr.bf16.mxu0 %v13776_v28  ;;  %v9524_v59 = vld [vmem:[#allocation10 + $0x1710] sm:$0xff]  ;;  %v9497_v48 = vld [vmem:[#allocation10 + $0x1638] sm:$0xff] }
 0x750   : > { %v9528_v28 = vld [vmem:[#allocation10 + $0x1730] sm:$0xff] }
 0x751   : > { %v13793_v49 = vcombine.low %v9524_v59, %v9528_v28 }
 0x752   : > { %9885 = vmatpush1.bf16.msra.mxu1 %v13773_v53  ;;  %9924 = vmatpush1.bf16.msra.mxu0 %v13775_v1  ;;  %v13794_v53 = vcombine.high %v9524_v59, %v9528_v28  ;;  %v13796_v1 = vcombine.high %v9525_v60, %v9529_v37  ;;  %v10097_v59 = vld [vmem:[#allocation10 + $0x19c8] sm:$0xff]  ;;  %v13763_v37 = vcombine.low %v9493_v52, %v9497_v48 }
 0x753   : > { %9886 = vmatprep.subr.bf16.mxu1 %v13766_v17  ;;  %9925 = vmatprep.subr.bf16.mxu0 %v13768_v46  ;;  %v9516_v17 = vld [vmem:[#allocation10 + $0x16d0] sm:$0xff]  ;;  %v10101_v28 = vld [vmem:[#allocation10 + $0x19e8] sm:$0xff] }
 0x754   : > { %v9520_v46 = vld [vmem:[#allocation10 + $0x16f0] sm:$0xff] }
 0x755   : > { %v13785_v57 = vcombine.low %v9516_v17, %v9520_v46 }
 0x756   : > { %9887 = vmatpush1.bf16.msra.mxu1 %v13765_v22  ;;  %9926 = vmatpush1.bf16.msra.mxu0 %v13767_v23  ;;  %v13786_v22 = vcombine.high %v9516_v17, %v9520_v46  ;;  %v13788_v23 = vcombine.high %v9517_v9, %v9521_v10  ;;  %v10088_v17 = vld [vmem:[#allocation10 + $0x1980] sm:$0xff]  ;;  %v10089_v9 = vld [vmem:[#allocation10 + $0x1988] sm:$0xff] }
 0x757   : > { %9888 = vmatprep.subr.bf16.mxu1 %v13758_v0  ;;  %9927 = vmatprep.subr.bf16.mxu0 %v13760_v32  ;;  %v9508_v0 = vld [vmem:[#allocation10 + $0x1690] sm:$0xff]  ;;  %v10092_v46 = vld [vmem:[#allocation10 + $0x19a0] sm:$0xff]  ;;  %v10093_v10 = vld [vmem:[#allocation10 + $0x19a8] sm:$0xff] }
 0x758   : > { %v9512_v32 = vld [vmem:[#allocation10 + $0x16b0] sm:$0xff] }
 0x759   : > { %v13777_v15 = vcombine.low %v9508_v0, %v9512_v32 }
 0x75a   : > { %9889 = vmatpush1.bf16.msra.mxu1 %v13757_v30  ;;  %9928 = vmatpush1.bf16.msra.mxu0 %v13759_v50  ;;  %v13778_v30 = vcombine.high %v9508_v0, %v9512_v32  ;;  %v13780_v50 = vcombine.high %v9509_v2, %v9513_v3  ;;  %v13870_v0 = vcombine.high %v10088_v17, %v10092_v46  ;;  %v10080_v2 = vld [vmem:[#allocation10 + $0x1940] sm:$0xff] }
 0x75b   : > { %9952 = vmatprep.subr.bf16.mxu1 %v13818_v55  ;;  %9991 = vmatprep.subr.bf16.mxu0 %v13820_v42  ;;  %v9500_v55 = vld [vmem:[#allocation10 + $0x1650] sm:$0xff]  ;;  %v13872_v32 = vcombine.high %v10089_v9, %v10093_v10  ;;  %v10084_v3 = vld [vmem:[#allocation10 + $0x1960] sm:$0xff] }
 0x75c   : > { %v9504_v42 = vld [vmem:[#allocation10 + $0x1670] sm:$0xff] }
 0x75d   : > { %9907 = vmatmul.mubr.f32.vlgmr.msra.gmra.mxu1 %v16755_v56  ;;  %9946 = vmatmul.mubr.f32.vlgmr.msra.gmra.mxu0 %v16755_v56  ;;  %v13769_v51 = vcombine.low %v9500_v55, %v9504_v42 }
 0x75e   : > { %9953 = vmatpush1.bf16.msra.mxu1 %v13817_v18  ;;  %9992 = vmatpush1.bf16.msra.mxu0 %v13819_v36  ;;  %v13770_v18 = vcombine.high %v9500_v55, %v9504_v42  ;;  %v13772_v36 = vcombine.high %v9501_v27, %v9505_v14  ;;  %v13869_v55 = vcombine.low %v10088_v17, %v10092_v46  ;;  %v10061_v17 = vld [vmem:[#allocation10 + $0x18a8] sm:$0xff] }
 0x75f   : > { %9954 = vmatprep.subr.bf16.mxu1 %v13810_v47  ;;  %9993 = vmatprep.subr.bf16.mxu0 %v13812_v29  ;;  %v9492_v47 = vld [vmem:[#allocation10 + $0x1610] sm:$0xff]  ;;  %v13871_v14 = vcombine.low %v10089_v9, %v10093_v10 }
 0x760   : > { %9984 = vmatprep.mubr.f32.mxu1 %v15514_v16  ;;  %10023 = vmatprep.mubr.f32.mxu0 %v15514_v16  ;;  %v9496_v29 = vld [vmem:[#allocation10 + $0x1630] sm:$0xff] }
 0x761   : > { %v13761_v60 = vcombine.low %v9492_v47, %v9496_v29 }
 0x762   : > { %9955 = vmatpush1.bf16.msra.mxu1 %v13809_v34  ;;  %9994 = vmatpush1.bf16.msra.mxu0 %v13811_v20  ;;  %v13762_v34 = vcombine.high %v9492_v47, %v9496_v29  ;;  %v13764_v20 = vcombine.high %v9493_v52, %v9497_v48  ;;  %v10072_v47 = vld [vmem:[#allocation10 + $0x1900] sm:$0xff]  ;;  %v10073_v52 = vld [vmem:[#allocation10 + $0x1908] sm:$0xff]  ;;  %v13861_v48 = vcombine.low %v10080_v2, %v10084_v3 }
 0x763   : > { %9956 = vmatprep.subr.bf16.mxu1 %v13802_v21  ;;  %9995 = vmatprep.subr.bf16.mxu0 %v13804_v54  ;;  %v10096_v21 = vld [vmem:[#allocation10 + $0x19c0] sm:$0xff] }
 0x764   : > { %v10100_v54 = vld [vmem:[#allocation10 + $0x19e0] sm:$0xff] }
 0x766   : > { %9957 = vmatpush1.bf16.msra.mxu1 %v13801_v43  ;;  %9996 = vmatpush1.bf16.msra.mxu0 %v13803_v35  ;;  %v16761_v43 = vpop.f32.mrf.mxu1  ;;  %v16763_v35 = vpop.f32.mrf.mxu0 }
 0x767   : > { %9958 = vmatprep.subr.bf16.mxu1 %v13794_v53  ;;  %9997 = vmatprep.subr.bf16.mxu0 %v13796_v1  ;;  %v13878_v53 = vcombine.high %v10096_v21, %v10100_v54  ;;  %v13880_v1 = vcombine.high %v10097_v59, %v10101_v28 }
 0x76a   : > { %9959 = vmatpush1.bf16.msra.mxu1 %v13793_v49  ;;  %9998 = vmatpush1.bf16.msra.mxu0 %v13795_v58  ;;  %v13877_v49 = vcombine.low %v10096_v21, %v10100_v54  ;;  %v13879_v58 = vcombine.low %v10097_v59, %v10101_v28  ;;  %v10065_v21 = vld [vmem:[#allocation10 + $0x18c8] sm:$0xff] }
 0x76b   : > { %9960 = vmatprep.subr.bf16.mxu1 %v13786_v22  ;;  %9999 = vmatprep.subr.bf16.mxu0 %v13788_v23  ;;  %v16765_v22 = vpop.f32.mrf.mxu1  ;;  %v16767_v23 = vpop.f32.mrf.mxu0 }
 0x76e   : > { %9961 = vmatpush1.bf16.msra.mxu1 %v13785_v57  ;;  %10000 = vmatpush1.bf16.msra.mxu0 %v13787_v8  ;;  %v10081_v57 = vld [vmem:[#allocation10 + $0x1948] sm:$0xff] }
 0x76f   : > { %9962 = vmatprep.subr.bf16.mxu1 %v13778_v30  ;;  %10001 = vmatprep.subr.bf16.mxu0 %v13780_v50  ;;  %v10085_v8 = vld [vmem:[#allocation10 + $0x1968] sm:$0xff] }
 0x772   : > { %9963 = vmatpush1.bf16.msra.mxu1 %v13777_v15  ;;  %10002 = vmatpush1.bf16.msra.mxu0 %v13779_v11 }
 0x773   : > { %9964 = vmatprep.subr.bf16.mxu1 %v13770_v18  ;;  %10003 = vmatprep.subr.bf16.mxu0 %v13772_v36  ;;  %v13862_v18 = vcombine.high %v10080_v2, %v10084_v3  ;;  %v13864_v36 = vcombine.high %v10081_v57, %v10085_v8  ;;  %v10053_v2 = vld [vmem:[#allocation10 + $0x1868] sm:$0xff] }
 0x776   : > { %9965 = vmatpush1.bf16.msra.mxu1 %v13769_v51  ;;  %10004 = vmatpush1.bf16.msra.mxu0 %v13771_v19  ;;  %v13863_v51 = vcombine.low %v10081_v57, %v10085_v8 }
 0x777   : > { %9966 = vmatprep.subr.bf16.mxu1 %v13762_v34  ;;  %10005 = vmatprep.subr.bf16.mxu0 %v13764_v20  ;;  %v10068_v20 = vld [vmem:[#allocation10 + $0x18e0] sm:$0xff] }
 0x77a   : > { %9967 = vmatpush1.bf16.msra.mxu1 %v13761_v60  ;;  %10006 = vmatpush1.bf16.msra.mxu0 %v13763_v37  ;;  %v10056_v37 = vld [vmem:[#allocation10 + $0x1880] sm:$0xff] }
 0x77b   : > { %10424 = vmatprep.subr.bf16.mxu1 %v13878_v53  ;;  %10463 = vmatprep.subr.bf16.mxu0 %v13880_v1  ;;  %v10060_v53 = vld [vmem:[#allocation10 + $0x18a0] sm:$0xff]  ;;  %v10057_v1 = vld [vmem:[#allocation10 + $0x1888] sm:$0xff] }
 0x77c   : > { %v13838_v10 = vcombine.high %v10056_v37, %v10060_v53  ;;  %v13837_v3 = vcombine.low %v10056_v37, %v10060_v53  ;;  %v13839_v57 = vcombine.low %v10057_v1, %v10061_v17 }
 0x77d   : > { %v8336_v30 = vpop.f32.mrf.mxu1  ;;  %v8375_v50 = vpop.f32.mrf.mxu0  ;;  %9985 = vmatmul.mubr.f32.vlgmr.msra.gmra.mxu1 %v16755_v56  ;;  %10024 = vmatmul.mubr.f32.vlgmr.msra.gmra.mxu0 %v16755_v56 }
 0x77e   : > { %v16772_v42 = vadd.f32 %v8336_v30, %v16742_v25  ;;  %v16775_v27 = vadd.f32 %v8375_v50, %v16745_v62  ;;  %10425 = vmatpush1.bf16.msra.mxu1 %v13877_v49  ;;  %10464 = vmatpush1.bf16.msra.mxu0 %v13879_v58  ;;  %v10076_v25 = vld [vmem:[#allocation10 + $0x1920] sm:$0xff]  ;;  %v10077_v62 = vld [vmem:[#allocation10 + $0x1928] sm:$0xff]  ;;  %v13840_v49 = vcombine.high %v10057_v1, %v10061_v17  ;;  %v10082_v1 = vld [vmem:[#allocation10 + $0x1950] sm:$0xff] }
 0x77f   : > { %v8338_v15 = vpop.f32.mrf.mxu1  ;;  %v8377_v11 = vpop.f32.mrf.mxu0  ;;  %10426 = vmatprep.subr.bf16.mxu1 %v13870_v0  ;;  %10465 = vmatprep.subr.bf16.mxu0 %v13872_v32  ;;  %v13854_v19 = vcombine.high %v10072_v47, %v10076_v25  ;;  %v13856_v34 = vcombine.high %v10073_v52, %v10077_v62  ;;  %v13853_v54 = vcombine.low %v10072_v47, %v10076_v25  ;;  %v10048_v58 = vld [vmem:[#allocation10 + $0x1840] sm:$0xff]  ;;  %v10049_v32 = vld [vmem:[#allocation10 + $0x1848] sm:$0xff]  ;;  %v10098_v25 = vld [vmem:[#allocation10 + $0x19d0] sm:$0xff] }
 0x780   : > { %v16778_v29 = vadd.f32 %v8338_v15, %v16748_v41  ;;  %v16781_v56 = vadd.f32 %v8377_v11, %v16751_v24  ;;  %10456 = vmatprep.mubr.f32.mxu1 %v15514_v16  ;;  %10495 = vmatprep.mubr.f32.mxu0 %v15514_v16  ;;  %v10064_v41 = vld [vmem:[#allocation10 + $0x18c0] sm:$0xff]  ;;  %v10069_v24 = vld [vmem:[#allocation10 + $0x18e8] sm:$0xff]  ;;  %v13855_v59 = vcombine.low %v10073_v52, %v10077_v62  ;;  %v10102_v52 = vld [vmem:[#allocation10 + $0x19f0] sm:$0xff] }
 0x781   : > { %v13846_v28 = vcombine.high %v10064_v41, %v10068_v20  ;;  %v13848_v60 = vcombine.high %v10065_v21, %v10069_v24  ;;  %v13845_v46 = vcombine.low %v10064_v41, %v10068_v20  ;;  %v13847_v9 = vcombine.low %v10065_v21, %v10069_v24  ;;  %v10052_v0 = vld [vmem:[#allocation10 + $0x1860] sm:$0xff]  ;;  %v10045_v15 = vld [vmem:[#allocation10 + $0x1828] sm:$0xff]  ;;  %v10099_v62 = vld [vmem:[#allocation10 + $0x19d8] sm:$0xff] }
 0x782   : > { %10427 = vmatpush1.bf16.msra.mxu1 %v13869_v55  ;;  %10466 = vmatpush1.bf16.msra.mxu0 %v13871_v14  ;;  %v13830_v8 = vcombine.high %v10048_v58, %v10052_v0  ;;  %v13832_v30 = vcombine.high %v10049_v32, %v10053_v2  ;;  %v10040_v50 = vld [vmem:[#allocation10 + $0x1800] sm:$0xff]  ;;  %v10041_v14 = vld [vmem:[#allocation10 + $0x1808] sm:$0xff]  ;;  %v13829_v11 = vcombine.low %v10048_v58, %v10052_v0  ;;  %v10090_v20 = vld [vmem:[#allocation10 + $0x1990] sm:$0xff] }
 0x783   : > { %10428 = vmatprep.subr.bf16.mxu1 %v13862_v18  ;;  %10467 = vmatprep.subr.bf16.mxu0 %v13864_v36  ;;  %v10044_v55 = vld [vmem:[#allocation10 + $0x1820] sm:$0xff]  ;;  %v13831_v18 = vcombine.low %v10049_v32, %v10053_v2  ;;  %v13824_v47 = vcombine.high %v10041_v14, %v10045_v15  ;;  %v10094_v21 = vld [vmem:[#allocation10 + $0x19b0] sm:$0xff]  ;;  %v10091_v24 = vld [vmem:[#allocation10 + $0x1998] sm:$0xff] }
 0x784   : > { %v13822_v36 = vcombine.high %v10040_v50, %v10044_v55  ;;  %v13874_v37 = vcombine.high %v10090_v20, %v10094_v21  ;;  %v10086_v17 = vld [vmem:[#allocation10 + $0x1970] sm:$0xff] }
 0x785   : > { %v13866_v58 = vcombine.high %v10082_v1, %v10086_v17  ;;  %v10074_v32 = vld [vmem:[#allocation10 + $0x1910] sm:$0xff] }
 0x786   : > { %10429 = vmatpush1.bf16.msra.mxu1 %v13861_v48  ;;  %10468 = vmatpush1.bf16.msra.mxu0 %v13863_v51  ;;  %v10103_v48 = vld [vmem:[#allocation10 + $0x19f8] sm:$0xff]  ;;  %v13821_v51 = vcombine.low %v10040_v50, %v10044_v55  ;;  %v10078_v2 = vld [vmem:[#allocation10 + $0x1930] sm:$0xff] }
 0x787   : > { %10430 = vmatprep.subr.bf16.mxu1 %v13854_v19  ;;  %10469 = vmatprep.subr.bf16.mxu0 %v13856_v34  ;;  %v13823_v19 = vcombine.low %v10041_v14, %v10045_v15  ;;  %v13882_v34 = vcombine.high %v10098_v25, %v10102_v52  ;;  %v13884_v41 = vcombine.high %v10099_v62, %v10103_v48  ;;  %v10066_v14 = vld [vmem:[#allocation10 + $0x18d0] sm:$0xff] }
 0x788   : > { %v13858_v50 = vcombine.high %v10074_v32, %v10078_v2  ;;  %v10070_v15 = vld [vmem:[#allocation10 + $0x18f0] sm:$0xff] }
 0x78a   : > { %10431 = vmatpush1.bf16.msra.mxu1 %v13853_v54  ;;  %10470 = vmatpush1.bf16.msra.mxu0 %v13855_v59  ;;  %v10095_v54 = vld [vmem:[#allocation10 + $0x19b8] sm:$0xff]  ;;  %v13881_v59 = vcombine.low %v10098_v25, %v10102_v52  ;;  %v13850_v25 = vcombine.high %v10066_v14, %v10070_v15 }
 0x78b   : > { %10432 = vmatprep.subr.bf16.mxu1 %v13846_v28  ;;  %10471 = vmatprep.subr.bf16.mxu0 %v13848_v60  ;;  %v13883_v28 = vcombine.low %v10099_v62, %v10103_v48  ;;  %v16785_v60 = vld [vmem:[#allocation2 + $0xc] sm:$0x1]  ;;  %v13876_v53 = vcombine.high %v10091_v24, %v10095_v54  ;;  %v10058_v62 = vld [vmem:[#allocation10 + $0x1890] sm:$0xff] }
 0x78c   : > { %v10062_v48 = vld [vmem:[#allocation10 + $0x18b0] sm:$0xff] }
 0x78e   : > { %10433 = vmatpush1.bf16.msra.mxu1 %v13845_v46  ;;  %10472 = vmatpush1.bf16.msra.mxu0 %v13847_v9  ;;  %v10083_v46 = vld [vmem:[#allocation10 + $0x1958] sm:$0xff] }
 0x78f   : > { %10434 = vmatprep.subr.bf16.mxu1 %v13838_v10  ;;  %10473 = vmatprep.subr.bf16.mxu0 %v13840_v49  ;;  %v10087_v9 = vld [vmem:[#allocation10 + $0x1978] sm:$0xff]  ;;  %v13873_v10 = vcombine.low %v10090_v20, %v10094_v21  ;;  %v13875_v49 = vcombine.low %v10091_v24, %v10095_v54  ;;  %v13842_v20 = vcombine.high %v10058_v62, %v10062_v48  ;;  %v10050_v24 = vld [vmem:[#allocation10 + $0x1850] sm:$0xff] }
 0x790   : > { %v13868_v0 = vcombine.high %v10083_v46, %v10087_v9  ;;  %v10054_v54 = vld [vmem:[#allocation10 + $0x1870] sm:$0xff] }
 0x792   : > { %10435 = vmatpush1.bf16.msra.mxu1 %v13837_v3  ;;  %10474 = vmatpush1.bf16.msra.mxu0 %v13839_v57  ;;  %v10075_v3 = vld [vmem:[#allocation10 + $0x1918] sm:$0xff] }
 0x793   : > { %10436 = vmatprep.subr.bf16.mxu1 %v13830_v8  ;;  %10475 = vmatprep.subr.bf16.mxu0 %v13832_v30  ;;  %v10079_v57 = vld [vmem:[#allocation10 + $0x1938] sm:$0xff]  ;;  %v13865_v8 = vcombine.low %v10082_v1, %v10086_v17  ;;  %v13867_v30 = vcombine.low %v10083_v46, %v10087_v9  ;;  %v13834_v1 = vcombine.high %v10050_v24, %v10054_v54  ;;  %v10042_v46 = vld [vmem:[#allocation10 + $0x1810] sm:$0xff] }
 0x794   : > { %v13860_v55 = vcombine.high %v10075_v3, %v10079_v57  ;;  %v10046_v9 = vld [vmem:[#allocation10 + $0x1830] sm:$0xff] }
 0x796   : > { %10437 = vmatpush1.bf16.msra.mxu1 %v13829_v11  ;;  %10476 = vmatpush1.bf16.msra.mxu0 %v13831_v18  ;;  %v10067_v11 = vld [vmem:[#allocation10 + $0x18d8] sm:$0xff] }
 0x797   : > { %10438 = vmatprep.subr.bf16.mxu1 %v13822_v36  ;;  %10477 = vmatprep.subr.bf16.mxu0 %v13824_v47  ;;  %v10071_v18 = vld [vmem:[#allocation10 + $0x18f8] sm:$0xff]  ;;  %v13857_v36 = vcombine.low %v10074_v32, %v10078_v2  ;;  %v13859_v47 = vcombine.low %v10075_v3, %v10079_v57  ;;  %v13826_v32 = vcombine.high %v10042_v46, %v10046_v9  ;;  %v10646_v3 = vld [vmem:[#allocation10 + $0x1bc0] sm:$0xff] }
 0x798   : > { %v13852_v52 = vcombine.high %v10067_v11, %v10071_v18  ;;  %v10650_v57 = vld [vmem:[#allocation10 + $0x1be0] sm:$0xff] }
 0x79a   : > { %10439 = vmatpush1.bf16.msra.mxu1 %v13821_v51  ;;  %10478 = vmatpush1.bf16.msra.mxu0 %v13823_v19  ;;  %v10059_v51 = vld [vmem:[#allocation10 + $0x1898] sm:$0xff] }
 0x79b   : > { %10502 = vmatprep.subr.bf16.mxu1 %v13882_v34  ;;  %10541 = vmatprep.subr.bf16.mxu0 %v13884_v41  ;;  %v10063_v19 = vld [vmem:[#allocation10 + $0x18b8] sm:$0xff]  ;;  %v13849_v34 = vcombine.low %v10066_v14, %v10070_v15  ;;  %v13851_v41 = vcombine.low %v10067_v11, %v10071_v18  ;;  %v13942_v11 = vcombine.high %v10646_v3, %v10650_v57 }
 0x79c   : > { %v13844_v21 = vcombine.high %v10059_v51, %v10063_v19 }
 0x79d   : > { %10457 = vmatmul.mubr.f32.vlgmr.msra.gmra.mxu1 %v16785_v60  ;;  %10496 = vmatmul.mubr.f32.vlgmr.msra.gmra.mxu0 %v16785_v60  ;;  %v16791_v14 = vpop.f32.mrf.mxu1  ;;  %v16793_v15 = vpop.f32.mrf.mxu0 }
 0x79e   : > { %10503 = vmatpush1.bf16.msra.mxu1 %v13881_v59  ;;  %10542 = vmatpush1.bf16.msra.mxu0 %v13883_v28  ;;  %v10051_v59 = vld [vmem:[#allocation10 + $0x1858] sm:$0xff] }
 0x79f   : > { %10504 = vmatprep.subr.bf16.mxu1 %v13874_v37  ;;  %10543 = vmatprep.subr.bf16.mxu0 %v13876_v53  ;;  %v10055_v28 = vld [vmem:[#allocation10 + $0x1878] sm:$0xff]  ;;  %v13841_v37 = vcombine.low %v10058_v62, %v10062_v48  ;;  %v13843_v53 = vcombine.low %v10059_v51, %v10063_v19  ;;  %v13941_v62 = vcombine.low %v10646_v3, %v10650_v57  ;;  %v16795_v51 = vpop.f32.mrf.mxu1  ;;  %v16797_v19 = vpop.f32.mrf.mxu0 }
 0x7a0   : > { %10534 = vmatprep.mubr.f32.mxu1 %v15514_v16  ;;  %10573 = vmatprep.mubr.f32.mxu0 %v15514_v16  ;;  %v13836_v17 = vcombine.high %v10051_v59, %v10055_v28 }
 0x7a2   : > { %10505 = vmatpush1.bf16.msra.mxu1 %v13873_v10  ;;  %10544 = vmatpush1.bf16.msra.mxu0 %v13875_v49  ;;  %v10043_v10 = vld [vmem:[#allocation10 + $0x1818] sm:$0xff] }
 0x7a3   : > { %10506 = vmatprep.subr.bf16.mxu1 %v13866_v58  ;;  %10545 = vmatprep.subr.bf16.mxu0 %v13868_v0  ;;  %v10047_v49 = vld [vmem:[#allocation10 + $0x1838] sm:$0xff]  ;;  %v13833_v58 = vcombine.low %v10050_v24, %v10054_v54  ;;  %v13835_v0 = vcombine.low %v10051_v59, %v10055_v28  ;;  %v10631_v24 = vld [vmem:[#allocation10 + $0x1b48] sm:$0xff] }
 0x7a4   : > { %v13828_v2 = vcombine.high %v10043_v10, %v10047_v49  ;;  %v10635_v54 = vld [vmem:[#allocation10 + $0x1b68] sm:$0xff] }
 0x7a5   : > { %v13927_v3 = vcombine.low %v10631_v24, %v10635_v54 }
 0x7a6   : > { %10507 = vmatpush1.bf16.msra.mxu1 %v13865_v8  ;;  %10546 = vmatpush1.bf16.msra.mxu0 %v13867_v30  ;;  %v10647_v8 = vld [vmem:[#allocation10 + $0x1bc8] sm:$0xff] }
 0x7a7   : > { %10508 = vmatprep.subr.bf16.mxu1 %v13858_v50  ;;  %10547 = vmatprep.subr.bf16.mxu0 %v13860_v55  ;;  %v10651_v30 = vld [vmem:[#allocation10 + $0x1be8] sm:$0xff]  ;;  %v13825_v50 = vcombine.low %v10042_v46, %v10046_v9  ;;  %v13827_v55 = vcombine.low %v10043_v10, %v10047_v49  ;;  %v13928_v49 = vcombine.high %v10631_v24, %v10635_v54  ;;  %v10602_v24 = vld [vmem:[#allocation10 + $0x1a60] sm:$0xff] }
 0x7a8   : > { %v13944_v18 = vcombine.high %v10647_v8, %v10651_v30  ;;  %v13943_v48 = vcombine.low %v10647_v8, %v10651_v30  ;;  %v10618_v30 = vld [vmem:[#allocation10 + $0x1ae0] sm:$0xff]  ;;  %v10599_v54 = vld [vmem:[#allocation10 + $0x1a48] sm:$0xff] }
 0x7aa   : > { %10509 = vmatpush1.bf16.msra.mxu1 %v13857_v36  ;;  %10548 = vmatpush1.bf16.msra.mxu0 %v13859_v47  ;;  %v10638_v36 = vld [vmem:[#allocation10 + $0x1b80] sm:$0xff] }
 0x7ab   : > { %10510 = vmatprep.subr.bf16.mxu1 %v13850_v25  ;;  %10549 = vmatprep.subr.bf16.mxu0 %v13852_v52  ;;  %v10642_v47 = vld [vmem:[#allocation10 + $0x1ba0] sm:$0xff]  ;;  %v10639_v25 = vld [vmem:[#allocation10 + $0x1b88] sm:$0xff] }
 0x7ac   : > { %v10643_v52 = vld [vmem:[#allocation10 + $0x1ba8] sm:$0xff] }
 0x7ae   : > { %10511 = vmatpush1.bf16.msra.mxu1 %v13849_v34  ;;  %10550 = vmatpush1.bf16.msra.mxu0 %v13851_v41  ;;  %v13934_v34 = vcombine.high %v10638_v36, %v10642_v47  ;;  %v13936_v41 = vcombine.high %v10639_v25, %v10643_v52 }
 0x7af   : > { %10512 = vmatprep.subr.bf16.mxu1 %v13842_v20  ;;  %10551 = vmatprep.subr.bf16.mxu0 %v13844_v21  ;;  %v10630_v20 = vld [vmem:[#allocation10 + $0x1b40] sm:$0xff] }
 0x7b0   : > { %v10634_v21 = vld [vmem:[#allocation10 + $0x1b60] sm:$0xff] }
 0x7b1   : > { %v13926_v10 = vcombine.high %v10630_v20, %v10634_v21 }
 0x7b2   : > { %10513 = vmatpush1.bf16.msra.mxu1 %v13841_v37  ;;  %10552 = vmatpush1.bf16.msra.mxu0 %v13843_v53  ;;  %v13933_v37 = vcombine.low %v10638_v36, %v10642_v47  ;;  %v10606_v47 = vld [vmem:[#allocation10 + $0x1a80] sm:$0xff] }
 0x7b3   : > { %10514 = vmatprep.subr.bf16.mxu1 %v13834_v1  ;;  %10553 = vmatprep.subr.bf16.mxu0 %v13836_v17  ;;  %v13935_v17 = vcombine.low %v10639_v25, %v10643_v52  ;;  %v10610_v25 = vld [vmem:[#allocation10 + $0x1aa0] sm:$0xff]  ;;  %v10607_v52 = vld [vmem:[#allocation10 + $0x1a88] sm:$0xff] }
 0x7b6   : > { %10515 = vmatpush1.bf16.msra.mxu1 %v13833_v58  ;;  %10554 = vmatpush1.bf16.msra.mxu0 %v13835_v0  ;;  %v10622_v58 = vld [vmem:[#allocation10 + $0x1b00] sm:$0xff] }
 0x7b7   : > { %10516 = vmatprep.subr.bf16.mxu1 %v13826_v32  ;;  %10555 = vmatprep.subr.bf16.mxu0 %v13828_v2  ;;  %v10623_v32 = vld [vmem:[#allocation10 + $0x1b08] sm:$0xff]  ;;  %v13925_v2 = vcombine.low %v10630_v20, %v10634_v21  ;;  %v10598_v21 = vld [vmem:[#allocation10 + $0x1a40] sm:$0xff] }
 0x7ba   : > { %10517 = vmatpush1.bf16.msra.mxu1 %v13825_v50  ;;  %10556 = vmatpush1.bf16.msra.mxu0 %v13827_v55  ;;  %v10615_v50 = vld [vmem:[#allocation10 + $0x1ac8] sm:$0xff] }
 0x7bb   : > { %10974 = vmatprep.subr.bf16.mxu1 %v13942_v11  ;;  %11013 = vmatprep.subr.bf16.mxu0 %v13944_v18 }
 0x7bd   : > { %v8886_v59 = vpop.f32.mrf.mxu1  ;;  %v8925_v28 = vpop.f32.mrf.mxu0  ;;  %10535 = vmatmul.mubr.f32.vlgmr.msra.gmra.mxu1 %v16785_v60  ;;  %10574 = vmatmul.mubr.f32.vlgmr.msra.gmra.mxu0 %v16785_v60 }
 0x7be   : > { %v16802_v53 = vadd.f32 %v8886_v59, %v16772_v42  ;;  %v16805_v1 = vadd.f32 %v8925_v28, %v16775_v27  ;;  %10975 = vmatpush1.bf16.msra.mxu1 %v13941_v62  ;;  %11014 = vmatpush1.bf16.msra.mxu0 %v13943_v48  ;;  %v10626_v42 = vld [vmem:[#allocation10 + $0x1b20] sm:$0xff]  ;;  %v10627_v27 = vld [vmem:[#allocation10 + $0x1b28] sm:$0xff]  ;;  %v13901_v28 = vcombine.low %v10606_v47, %v10610_v25 }
 0x7bf   : > { %v8888_v46 = vpop.f32.mrf.mxu1  ;;  %v8927_v9 = vpop.f32.mrf.mxu0  ;;  %10976 = vmatprep.subr.bf16.mxu1 %v13934_v34  ;;  %11015 = vmatprep.subr.bf16.mxu0 %v13936_v41  ;;  %v13918_v57 = vcombine.high %v10622_v58, %v10626_v42  ;;  %v13920_v8 = vcombine.high %v10623_v32, %v10627_v27  ;;  %v13917_v55 = vcombine.low %v10622_v58, %v10626_v42  ;;  %v10611_v62 = vld [vmem:[#allocation10 + $0x1aa8] sm:$0xff] }
 0x7c0   : > { %v16808_v0 = vadd.f32 %v8888_v46, %v16778_v29  ;;  %v16811_v60 = vadd.f32 %v8927_v9, %v16781_v56  ;;  %11006 = vmatprep.mubr.f32.mxu1 %v15514_v16  ;;  %11045 = vmatprep.mubr.f32.mxu0 %v15514_v16  ;;  %v10614_v29 = vld [vmem:[#allocation10 + $0x1ac0] sm:$0xff]  ;;  %v10619_v56 = vld [vmem:[#allocation10 + $0x1ae8] sm:$0xff]  ;;  %v13919_v11 = vcombine.low %v10623_v32, %v10627_v27 }
 0x7c1   : > { %v13910_v18 = vcombine.high %v10614_v29, %v10618_v30  ;;  %v13912_v36 = vcombine.high %v10615_v50, %v10619_v56  ;;  %v13909_v48 = vcombine.low %v10614_v29, %v10618_v30  ;;  %v13911_v34 = vcombine.low %v10615_v50, %v10619_v56  ;;  %v10603_v59 = vld [vmem:[#allocation10 + $0x1a68] sm:$0xff]  ;;  %v10590_v9 = vld [vmem:[#allocation10 + $0x1a00] sm:$0xff]  ;;  %v10653_v29 = vld [vmem:[#allocation10 + $0x1bf8] sm:$0xff] }
 0x7c2   : > { %10977 = vmatpush1.bf16.msra.mxu1 %v13933_v37  ;;  %11016 = vmatpush1.bf16.msra.mxu0 %v13935_v17  ;;  %v13902_v41 = vcombine.high %v10606_v47, %v10610_v25  ;;  %v13904_v20 = vcombine.high %v10607_v52, %v10611_v62  ;;  %v13903_v37 = vcombine.low %v10607_v52, %v10611_v62  ;;  %v10595_v58 = vld [vmem:[#allocation10 + $0x1a28] sm:$0xff]  ;;  %v10645_v47 = vld [vmem:[#allocation10 + $0x1bb8] sm:$0xff] }
 0x7c3   : > { %10978 = vmatprep.subr.bf16.mxu1 %v13926_v10  ;;  %11017 = vmatprep.subr.bf16.mxu0 %v13928_v49  ;;  %v13894_v17 = vcombine.high %v10598_v21, %v10602_v24  ;;  %v13896_v46 = vcombine.high %v10599_v54, %v10603_v59  ;;  %v10594_v10 = vld [vmem:[#allocation10 + $0x1a20] sm:$0xff]  ;;  %v10591_v49 = vld [vmem:[#allocation10 + $0x1a08] sm:$0xff]  ;;  %v13893_v42 = vcombine.low %v10598_v21, %v10602_v24  ;;  %v16815_v62 = vld [vmem:[#allocation2 + $0xd] sm:$0x1] }
 0x7c4   : > { %v13895_v32 = vcombine.low %v10599_v54, %v10603_v59  ;;  %v13886_v27 = vcombine.high %v10590_v9, %v10594_v10  ;;  %v13885_v30 = vcombine.low %v10590_v9, %v10594_v10  ;;  %v13887_v50 = vcombine.low %v10591_v49, %v10595_v58  ;;  %v10633_v21 = vld [vmem:[#allocation10 + $0x1b58] sm:$0xff] }
 0x7c5   : > { %v10637_v24 = vld [vmem:[#allocation10 + $0x1b78] sm:$0xff] }
 0x7c6   : > { %10979 = vmatpush1.bf16.msra.mxu1 %v13925_v2  ;;  %11018 = vmatpush1.bf16.msra.mxu0 %v13927_v3  ;;  %v13888_v2 = vcombine.high %v10591_v49, %v10595_v58  ;;  %v10648_v3 = vld [vmem:[#allocation10 + $0x1bd0] sm:$0xff]  ;;  %v10625_v9 = vld [vmem:[#allocation10 + $0x1b18] sm:$0xff]  ;;  %v13931_v58 = vcombine.low %v10633_v21, %v10637_v24 }
 0x7c7   : > { %10980 = vmatprep.subr.bf16.mxu1 %v13918_v57  ;;  %11019 = vmatprep.subr.bf16.mxu0 %v13920_v8  ;;  %v10652_v57 = vld [vmem:[#allocation10 + $0x1bf0] sm:$0xff]  ;;  %v10649_v8 = vld [vmem:[#allocation10 + $0x1bd8] sm:$0xff] }
 0x7c8   : > { %v13946_v56 = vcombine.high %v10648_v3, %v10652_v57  ;;  %v13945_v25 = vcombine.low %v10648_v3, %v10652_v57  ;;  %v13947_v52 = vcombine.low %v10649_v8, %v10653_v29  ;;  %v10629_v10 = vld [vmem:[#allocation10 + $0x1b38] sm:$0xff] }
 0x7c9   : > { %v10617_v3 = vld [vmem:[#allocation10 + $0x1ad8] sm:$0xff] }
 0x7ca   : > { %10981 = vmatpush1.bf16.msra.mxu1 %v13917_v55  ;;  %11020 = vmatpush1.bf16.msra.mxu0 %v13919_v11  ;;  %v13948_v55 = vcombine.high %v10649_v8, %v10653_v29  ;;  %v10640_v11 = vld [vmem:[#allocation10 + $0x1b90] sm:$0xff]  ;;  %v10621_v57 = vld [vmem:[#allocation10 + $0x1af8] sm:$0xff]  ;;  %v13923_v29 = vcombine.low %v10625_v9, %v10629_v10 }
 0x7cb   : > { %10982 = vmatprep.subr.bf16.mxu1 %v13910_v18  ;;  %11021 = vmatprep.subr.bf16.mxu0 %v13912_v36  ;;  %v10644_v18 = vld [vmem:[#allocation10 + $0x1bb0] sm:$0xff]  ;;  %v10641_v36 = vld [vmem:[#allocation10 + $0x1b98] sm:$0xff] }
 0x7cc   : > { %v13937_v54 = vcombine.low %v10640_v11, %v10644_v18  ;;  %v13939_v59 = vcombine.low %v10641_v36, %v10645_v47 }
 0x7ce   : > { %10983 = vmatpush1.bf16.msra.mxu1 %v13909_v48  ;;  %11022 = vmatpush1.bf16.msra.mxu0 %v13911_v34  ;;  %v13938_v48 = vcombine.high %v10640_v11, %v10644_v18  ;;  %v13940_v34 = vcombine.high %v10641_v36, %v10645_v47  ;;  %v10609_v11 = vld [vmem:[#allocation10 + $0x1a98] sm:$0xff]  ;;  %v13915_v47 = vcombine.low %v10617_v3, %v10621_v57 }
 0x7cf   : > { %10984 = vmatprep.subr.bf16.mxu1 %v13902_v41  ;;  %11023 = vmatprep.subr.bf16.mxu0 %v13904_v20  ;;  %v10632_v41 = vld [vmem:[#allocation10 + $0x1b50] sm:$0xff]  ;;  %v10613_v18 = vld [vmem:[#allocation10 + $0x1ab8] sm:$0xff] }
 0x7d0   : > { %v10636_v20 = vld [vmem:[#allocation10 + $0x1b70] sm:$0xff] }
 0x7d1   : > { %v13929_v49 = vcombine.low %v10632_v41, %v10636_v20 }
 0x7d2   : > { %10985 = vmatpush1.bf16.msra.mxu1 %v13901_v28  ;;  %11024 = vmatpush1.bf16.msra.mxu0 %v13903_v37  ;;  %v13930_v28 = vcombine.high %v10632_v41, %v10636_v20  ;;  %v13932_v37 = vcombine.high %v10633_v21, %v10637_v24  ;;  %v10601_v41 = vld [vmem:[#allocation10 + $0x1a58] sm:$0xff]  ;;  %v13907_v24 = vcombine.low %v10609_v11, %v10613_v18 }
 0x7d3   : > { %10986 = vmatprep.subr.bf16.mxu1 %v13894_v17  ;;  %11025 = vmatprep.subr.bf16.mxu0 %v13896_v46  ;;  %v10624_v17 = vld [vmem:[#allocation10 + $0x1b10] sm:$0xff]  ;;  %v10605_v20 = vld [vmem:[#allocation10 + $0x1a78] sm:$0xff] }
 0x7d4   : > { %v10628_v46 = vld [vmem:[#allocation10 + $0x1b30] sm:$0xff] }
 0x7d5   : > { %v13921_v8 = vcombine.low %v10624_v17, %v10628_v46 }
 0x7d6   : > { %10987 = vmatpush1.bf16.msra.mxu1 %v13893_v42  ;;  %11026 = vmatpush1.bf16.msra.mxu0 %v13895_v32  ;;  %v13922_v42 = vcombine.high %v10624_v17, %v10628_v46  ;;  %v13924_v32 = vcombine.high %v10625_v9, %v10629_v10  ;;  %v10593_v17 = vld [vmem:[#allocation10 + $0x1a18] sm:$0xff]  ;;  %v13899_v10 = vcombine.low %v10601_v41, %v10605_v20 }
 0x7d7   : > { %10988 = vmatprep.subr.bf16.mxu1 %v13886_v27  ;;  %11027 = vmatprep.subr.bf16.mxu0 %v13888_v2  ;;  %v10616_v27 = vld [vmem:[#allocation10 + $0x1ad0] sm:$0xff]  ;;  %v10597_v46 = vld [vmem:[#allocation10 + $0x1a38] sm:$0xff] }
 0x7d8   : > { %v10620_v2 = vld [vmem:[#allocation10 + $0x1af0] sm:$0xff] }
 0x7d9   : > { %v13913_v36 = vcombine.low %v10616_v27, %v10620_v2 }
 0x7da   : > { %10989 = vmatpush1.bf16.msra.mxu1 %v13885_v30  ;;  %11028 = vmatpush1.bf16.msra.mxu0 %v13887_v50  ;;  %v13914_v30 = vcombine.high %v10616_v27, %v10620_v2  ;;  %v13916_v50 = vcombine.high %v10617_v3, %v10621_v57  ;;  %v11197_v27 = vld [vmem:[#allocation10 + $0x1dc8] sm:$0xff]  ;;  %v13891_v57 = vcombine.low %v10593_v17, %v10597_v46 }
 0x7db   : > { %11052 = vmatprep.subr.bf16.mxu1 %v13946_v56  ;;  %11091 = vmatprep.subr.bf16.mxu0 %v13948_v55  ;;  %v10608_v56 = vld [vmem:[#allocation10 + $0x1a90] sm:$0xff]  ;;  %v11201_v2 = vld [vmem:[#allocation10 + $0x1de8] sm:$0xff] }
 0x7dc   : > { %v10612_v55 = vld [vmem:[#allocation10 + $0x1ab0] sm:$0xff] }
 0x7dd   : > { %11007 = vmatmul.mubr.f32.vlgmr.msra.gmra.mxu1 %v16815_v62  ;;  %11046 = vmatmul.mubr.f32.vlgmr.msra.gmra.mxu0 %v16815_v62  ;;  %v13905_v21 = vcombine.low %v10608_v56, %v10612_v55 }
 0x7de   : > { %11053 = vmatpush1.bf16.msra.mxu1 %v13945_v25  ;;  %11092 = vmatpush1.bf16.msra.mxu0 %v13947_v52  ;;  %v13906_v25 = vcombine.high %v10608_v56, %v10612_v55  ;;  %v13908_v52 = vcombine.high %v10609_v11, %v10613_v18  ;;  %v11189_v56 = vld [vmem:[#allocation10 + $0x1d88] sm:$0xff]  ;;  %v14007_v18 = vcombine.low %v11197_v27, %v11201_v2 }
 0x7df   : > { %11054 = vmatprep.subr.bf16.mxu1 %v13938_v48  ;;  %11093 = vmatprep.subr.bf16.mxu0 %v13940_v34  ;;  %v10600_v48 = vld [vmem:[#allocation10 + $0x1a50] sm:$0xff]  ;;  %v11193_v55 = vld [vmem:[#allocation10 + $0x1da8] sm:$0xff] }
 0x7e0   : > { %11084 = vmatprep.mubr.f32.mxu1 %v15514_v16  ;;  %11123 = vmatprep.mubr.f32.mxu0 %v15514_v16  ;;  %v10604_v34 = vld [vmem:[#allocation10 + $0x1a70] sm:$0xff] }
 0x7e1   : > { %v13897_v9 = vcombine.low %v10600_v48, %v10604_v34 }
 0x7e2   : > { %11055 = vmatpush1.bf16.msra.mxu1 %v13937_v54  ;;  %11094 = vmatpush1.bf16.msra.mxu0 %v13939_v59  ;;  %v13898_v54 = vcombine.high %v10600_v48, %v10604_v34  ;;  %v13900_v59 = vcombine.high %v10601_v41, %v10605_v20  ;;  %v11181_v48 = vld [vmem:[#allocation10 + $0x1d48] sm:$0xff]  ;;  %v13999_v20 = vcombine.low %v11189_v56, %v11193_v55 }
 0x7e3   : > { %11056 = vmatprep.subr.bf16.mxu1 %v13930_v28  ;;  %11095 = vmatprep.subr.bf16.mxu0 %v13932_v37  ;;  %v10592_v28 = vld [vmem:[#allocation10 + $0x1a10] sm:$0xff]  ;;  %v11185_v34 = vld [vmem:[#allocation10 + $0x1d68] sm:$0xff] }
 0x7e4   : > { %v10596_v37 = vld [vmem:[#allocation10 + $0x1a30] sm:$0xff] }
 0x7e5   : > { %v13889_v3 = vcombine.low %v10592_v28, %v10596_v37 }
 0x7e6   : > { %11057 = vmatpush1.bf16.msra.mxu1 %v13929_v49  ;;  %11096 = vmatpush1.bf16.msra.mxu0 %v13931_v58  ;;  %v13890_v49 = vcombine.high %v10592_v28, %v10596_v37  ;;  %v13892_v58 = vcombine.high %v10593_v17, %v10597_v46  ;;  %v11173_v28 = vld [vmem:[#allocation10 + $0x1d08] sm:$0xff] }
 0x7e7   : > { %11058 = vmatprep.subr.bf16.mxu1 %v13922_v42  ;;  %11097 = vmatprep.subr.bf16.mxu0 %v13924_v32  ;;  %v11196_v42 = vld [vmem:[#allocation10 + $0x1dc0] sm:$0xff]  ;;  %v11177_v37 = vld [vmem:[#allocation10 + $0x1d28] sm:$0xff] }
 0x7e8   : > { %v11200_v32 = vld [vmem:[#allocation10 + $0x1de0] sm:$0xff] }
 0x7e9   : > { %v14005_v11 = vcombine.low %v11196_v42, %v11200_v32 }
 0x7ea   : > { %11059 = vmatpush1.bf16.msra.mxu1 %v13921_v8  ;;  %11098 = vmatpush1.bf16.msra.mxu0 %v13923_v29  ;;  %v14006_v8 = vcombine.high %v11196_v42, %v11200_v32  ;;  %v14008_v29 = vcombine.high %v11197_v27, %v11201_v2  ;;  %v11169_v42 = vld [vmem:[#allocation10 + $0x1ce8] sm:$0xff]  ;;  %v13983_v27 = vcombine.low %v11173_v28, %v11177_v37 }
 0x7eb   : > { %11060 = vmatprep.subr.bf16.mxu1 %v13914_v30  ;;  %11099 = vmatprep.subr.bf16.mxu0 %v13916_v50  ;;  %v11188_v30 = vld [vmem:[#allocation10 + $0x1d80] sm:$0xff] }
 0x7ec   : > { %v11192_v50 = vld [vmem:[#allocation10 + $0x1da0] sm:$0xff] }
 0x7ed   : > { %v13997_v41 = vcombine.low %v11188_v30, %v11192_v50 }
 0x7ee   : > { %11061 = vmatpush1.bf16.msra.mxu1 %v13913_v36  ;;  %11100 = vmatpush1.bf16.msra.mxu0 %v13915_v47  ;;  %v13998_v36 = vcombine.high %v11188_v30, %v11192_v50  ;;  %v14000_v47 = vcombine.high %v11189_v56, %v11193_v55  ;;  %v11161_v30 = vld [vmem:[#allocation10 + $0x1ca8] sm:$0xff] }
 0x7ef   : > { %11062 = vmatprep.subr.bf16.mxu1 %v13906_v25  ;;  %11101 = vmatprep.subr.bf16.mxu0 %v13908_v52  ;;  %v11180_v25 = vld [vmem:[#allocation10 + $0x1d40] sm:$0xff] }
 0x7f0   : > { %v11184_v52 = vld [vmem:[#allocation10 + $0x1d60] sm:$0xff] }
 0x7f1   : > { %v13989_v17 = vcombine.low %v11180_v25, %v11184_v52 }
 0x7f2   : > { %11063 = vmatpush1.bf16.msra.mxu1 %v13905_v21  ;;  %11102 = vmatpush1.bf16.msra.mxu0 %v13907_v24  ;;  %v13990_v21 = vcombine.high %v11180_v25, %v11184_v52  ;;  %v13992_v24 = vcombine.high %v11181_v48, %v11185_v34  ;;  %v11153_v25 = vld [vmem:[#allocation10 + $0x1c68] sm:$0xff] }
 0x7f3   : > { %11064 = vmatprep.subr.bf16.mxu1 %v13898_v54  ;;  %11103 = vmatprep.subr.bf16.mxu0 %v13900_v59  ;;  %v11172_v54 = vld [vmem:[#allocation10 + $0x1d00] sm:$0xff] }
 0x7f4   : > { %v11176_v59 = vld [vmem:[#allocation10 + $0x1d20] sm:$0xff] }
 0x7f5   : > { %v13982_v46 = vcombine.high %v11172_v54, %v11176_v59  ;;  %v13981_v32 = vcombine.low %v11172_v54, %v11176_v59  ;;  %v11145_v54 = vld [vmem:[#allocation10 + $0x1c28] sm:$0xff] }
 0x7f6   : > { %11065 = vmatpush1.bf16.msra.mxu1 %v13897_v9  ;;  %11104 = vmatpush1.bf16.msra.mxu0 %v13899_v10  ;;  %v13984_v9 = vcombine.high %v11173_v28, %v11177_v37  ;;  %v11164_v10 = vld [vmem:[#allocation10 + $0x1cc0] sm:$0xff] }
 0x7f7   : > { %11066 = vmatprep.subr.bf16.mxu1 %v13890_v49  ;;  %11105 = vmatprep.subr.bf16.mxu0 %v13892_v58  ;;  %v11168_v49 = vld [vmem:[#allocation10 + $0x1ce0] sm:$0xff]  ;;  %v11165_v58 = vld [vmem:[#allocation10 + $0x1cc8] sm:$0xff] }
 0x7f8   : > { %v13974_v2 = vcombine.high %v11164_v10, %v11168_v49  ;;  %v13973_v50 = vcombine.low %v11164_v10, %v11168_v49  ;;  %v13975_v56 = vcombine.low %v11165_v58, %v11169_v42  ;;  %v11203_v10 = vld [vmem:[#allocation10 + $0x1df8] sm:$0xff] }
 0x7fa   : > { %11067 = vmatpush1.bf16.msra.mxu1 %v13889_v3  ;;  %11106 = vmatpush1.bf16.msra.mxu0 %v13891_v57  ;;  %v13976_v3 = vcombine.high %v11165_v58, %v11169_v42  ;;  %v11156_v57 = vld [vmem:[#allocation10 + $0x1c80] sm:$0xff] }
 0x7fb   : > { %11524 = vmatprep.subr.bf16.mxu1 %v14006_v8  ;;  %11563 = vmatprep.subr.bf16.mxu0 %v14008_v29  ;;  %v11160_v8 = vld [vmem:[#allocation10 + $0x1ca0] sm:$0xff]  ;;  %v11157_v29 = vld [vmem:[#allocation10 + $0x1c88] sm:$0xff] }
 0x7fc   : > { %v13966_v55 = vcombine.high %v11156_v57, %v11160_v8  ;;  %v13965_v52 = vcombine.low %v11156_v57, %v11160_v8  ;;  %v11195_v57 = vld [vmem:[#allocation10 + $0x1db8] sm:$0xff] }
 0x7fd   : > { %11085 = vmatmul.mubr.f32.vlgmr.msra.gmra.mxu1 %v16815_v62  ;;  %11124 = vmatmul.mubr.f32.vlgmr.msra.gmra.mxu0 %v16815_v62  ;;  %v13991_v62 = vcombine.low %v11181_v48, %v11185_v34  ;;  %v13967_v48 = vcombine.low %v11157_v29, %v11161_v30 }
 0x7fe   : > { %11525 = vmatpush1.bf16.msra.mxu1 %v14005_v11  ;;  %11564 = vmatpush1.bf16.msra.mxu0 %v14007_v18  ;;  %v13968_v11 = vcombine.high %v11157_v29, %v11161_v30  ;;  %v11148_v18 = vld [vmem:[#allocation10 + $0x1c40] sm:$0xff]  ;;  %v16825_v30 = vld [vmem:[#allocation2 + $0xe] sm:$0x1] }
 0x7ff   : > { %11526 = vmatprep.subr.bf16.mxu1 %v13998_v36  ;;  %11565 = vmatprep.subr.bf16.mxu0 %v14000_v47  ;;  %v11152_v36 = vld [vmem:[#allocation10 + $0x1c60] sm:$0xff]  ;;  %v11149_v47 = vld [vmem:[#allocation10 + $0x1c48] sm:$0xff] }
 0x800   : > { %11556 = vmatprep.mubr.f32.mxu1 %v15514_v16  ;;  %11595 = vmatprep.mubr.f32.mxu0 %v15514_v16  ;;  %v13958_v34 = vcombine.high %v11148_v18, %v11152_v36  ;;  %v13957_v59 = vcombine.low %v11148_v18, %v11152_v36  ;;  %v13959_v28 = vcombine.low %v11149_v47, %v11153_v25  ;;  %v11183_v18 = vld [vmem:[#allocation10 + $0x1d58] sm:$0xff] }
 0x801   : > { %v11187_v36 = vld [vmem:[#allocation10 + $0x1d78] sm:$0xff] }
 0x802   : > { %11527 = vmatpush1.bf16.msra.mxu1 %v13997_v41  ;;  %11566 = vmatpush1.bf16.msra.mxu0 %v13999_v20  ;;  %v13960_v41 = vcombine.high %v11149_v47, %v11153_v25  ;;  %v11140_v20 = vld [vmem:[#allocation10 + $0x1c00] sm:$0xff] }
 0x803   : > { %11528 = vmatprep.subr.bf16.mxu1 %v13990_v21  ;;  %11567 = vmatprep.subr.bf16.mxu0 %v13992_v24  ;;  %v11144_v21 = vld [vmem:[#allocation10 + $0x1c20] sm:$0xff]  ;;  %v11141_v24 = vld [vmem:[#allocation10 + $0x1c08] sm:$0xff] }
 0x804   : > { %v13950_v37 = vcombine.high %v11140_v20, %v11144_v21  ;;  %v13949_v49 = vcombine.low %v11140_v20, %v11144_v21  ;;  %v13951_v58 = vcombine.low %v11141_v24, %v11145_v54  ;;  %v11175_v20 = vld [vmem:[#allocation10 + $0x1d18] sm:$0xff] }
 0x805   : > { %v11179_v21 = vld [vmem:[#allocation10 + $0x1d38] sm:$0xff] }
 0x806   : > { %11529 = vmatpush1.bf16.msra.mxu1 %v13989_v17  ;;  %11568 = vmatpush1.bf16.msra.mxu0 %v13991_v62  ;;  %v13952_v17 = vcombine.high %v11141_v24, %v11145_v54  ;;  %v11198_v62 = vld [vmem:[#allocation10 + $0x1dd0] sm:$0xff]  ;;  %v13995_v54 = vcombine.low %v11183_v18, %v11187_v36 }
 0x807   : > { %11530 = vmatprep.subr.bf16.mxu1 %v13982_v46  ;;  %11569 = vmatprep.subr.bf16.mxu0 %v13984_v9  ;;  %v11202_v46 = vld [vmem:[#allocation10 + $0x1df0] sm:$0xff]  ;;  %v11199_v9 = vld [vmem:[#allocation10 + $0x1dd8] sm:$0xff] }
 0x808   : > { %v14010_v42 = vcombine.high %v11198_v62, %v11202_v46  ;;  %v14009_v8 = vcombine.low %v11198_v62, %v11202_v46  ;;  %v14011_v29 = vcombine.low %v11199_v9, %v11203_v10  ;;  %v11167_v62 = vld [vmem:[#allocation10 + $0x1cd8] sm:$0xff] }
 0x809   : > { %v11171_v46 = vld [vmem:[#allocation10 + $0x1cf8] sm:$0xff] }
 0x80a   : > { %11531 = vmatpush1.bf16.msra.mxu1 %v13981_v32  ;;  %11570 = vmatpush1.bf16.msra.mxu0 %v13983_v27  ;;  %v14012_v32 = vcombine.high %v11199_v9, %v11203_v10  ;;  %v11190_v27 = vld [vmem:[#allocation10 + $0x1d90] sm:$0xff]  ;;  %v13987_v10 = vcombine.low %v11175_v20, %v11179_v21 }
 0x80b   : > { %11532 = vmatprep.subr.bf16.mxu1 %v13974_v2  ;;  %11571 = vmatprep.subr.bf16.mxu0 %v13976_v3  ;;  %v11194_v2 = vld [vmem:[#allocation10 + $0x1db0] sm:$0xff]  ;;  %v11191_v3 = vld [vmem:[#allocation10 + $0x1d98] sm:$0xff] }
 0x80c   : > { %v14001_v47 = vcombine.low %v11190_v27, %v11194_v2  ;;  %v14003_v25 = vcombine.low %v11191_v3, %v11195_v57 }
 0x80e   : > { %11533 = vmatpush1.bf16.msra.mxu1 %v13973_v50  ;;  %11572 = vmatpush1.bf16.msra.mxu0 %v13975_v56  ;;  %v14002_v50 = vcombine.high %v11190_v27, %v11194_v2  ;;  %v14004_v56 = vcombine.high %v11191_v3, %v11195_v57  ;;  %v11159_v27 = vld [vmem:[#allocation10 + $0x1c98] sm:$0xff]  ;;  %v13979_v57 = vcombine.low %v11167_v62, %v11171_v46 }
 0x80f   : > { %11534 = vmatprep.subr.bf16.mxu1 %v13966_v55  ;;  %11573 = vmatprep.subr.bf16.mxu0 %v13968_v11  ;;  %v11182_v55 = vld [vmem:[#allocation10 + $0x1d50] sm:$0xff]  ;;  %v11163_v2 = vld [vmem:[#allocation10 + $0x1cb8] sm:$0xff] }
 0x810   : > { %v11186_v11 = vld [vmem:[#allocation10 + $0x1d70] sm:$0xff] }
 0x811   : > { %v13993_v24 = vcombine.low %v11182_v55, %v11186_v11 }
 0x812   : > { %11535 = vmatpush1.bf16.msra.mxu1 %v13965_v52  ;;  %11574 = vmatpush1.bf16.msra.mxu0 %v13967_v48  ;;  %v13994_v52 = vcombine.high %v11182_v55, %v11186_v11  ;;  %v13996_v48 = vcombine.high %v11183_v18, %v11187_v36  ;;  %v11151_v55 = vld [vmem:[#allocation10 + $0x1c58] sm:$0xff]  ;;  %v13971_v36 = vcombine.low %v11159_v27, %v11163_v2 }
 0x813   : > { %11536 = vmatprep.subr.bf16.mxu1 %v13958_v34  ;;  %11575 = vmatprep.subr.bf16.mxu0 %v13960_v41  ;;  %v11174_v34 = vld [vmem:[#allocation10 + $0x1d10] sm:$0xff]  ;;  %v11155_v11 = vld [vmem:[#allocation10 + $0x1c78] sm:$0xff] }
 0x814   : > { %v11178_v41 = vld [vmem:[#allocation10 + $0x1d30] sm:$0xff] }
 0x815   : > { %v13985_v9 = vcombine.low %v11174_v34, %v11178_v41 }
 0x816   : > { %11537 = vmatpush1.bf16.msra.mxu1 %v13957_v59  ;;  %11576 = vmatpush1.bf16.msra.mxu0 %v13959_v28  ;;  %v13986_v59 = vcombine.high %v11174_v34, %v11178_v41  ;;  %v13988_v28 = vcombine.high %v11175_v20, %v11179_v21  ;;  %v11143_v34 = vld [vmem:[#allocation10 + $0x1c18] sm:$0xff]  ;;  %v13963_v21 = vcombine.low %v11151_v55, %v11155_v11 }
 0x817   : > { %11538 = vmatprep.subr.bf16.mxu1 %v13950_v37  ;;  %11577 = vmatprep.subr.bf16.mxu0 %v13952_v17  ;;  %v11166_v37 = vld [vmem:[#allocation10 + $0x1cd0] sm:$0xff]  ;;  %v11147_v41 = vld [vmem:[#allocation10 + $0x1c38] sm:$0xff] }
 0x818   : > { %v11170_v17 = vld [vmem:[#allocation10 + $0x1cf0] sm:$0xff] }
 0x819   : > { %v13977_v3 = vcombine.low %v11166_v37, %v11170_v17 }
 0x81a   : > { %11539 = vmatpush1.bf16.msra.mxu1 %v13949_v49  ;;  %11578 = vmatpush1.bf16.msra.mxu0 %v13951_v58  ;;  %v13978_v49 = vcombine.high %v11166_v37, %v11170_v17  ;;  %v13980_v58 = vcombine.high %v11167_v62, %v11171_v46  ;;  %v11747_v37 = vld [vmem:[#allocation10 + $0x1fc8] sm:$0xff]  ;;  %v13955_v46 = vcombine.low %v11143_v34, %v11147_v41 }
 0x81b   : > { %11602 = vmatprep.subr.bf16.mxu1 %v14010_v42  ;;  %11641 = vmatprep.subr.bf16.mxu0 %v14012_v32  ;;  %v11158_v42 = vld [vmem:[#allocation10 + $0x1c90] sm:$0xff]  ;;  %v11751_v17 = vld [vmem:[#allocation10 + $0x1fe8] sm:$0xff] }
 0x81c   : > { %v11162_v32 = vld [vmem:[#allocation10 + $0x1cb0] sm:$0xff] }
 0x81d   : > { %11557 = vmatmul.mubr.f32.vlgmr.msra.gmra.mxu1 %v16825_v30  ;;  %11596 = vmatmul.mubr.f32.vlgmr.msra.gmra.mxu0 %v16825_v30  ;;  %v13969_v18 = vcombine.low %v11158_v42, %v11162_v32 }
 0x81e   : > { %11603 = vmatpush1.bf16.msra.mxu1 %v14009_v8  ;;  %11642 = vmatpush1.bf16.msra.mxu0 %v14011_v29  ;;  %v13970_v8 = vcombine.high %v11158_v42, %v11162_v32  ;;  %v13972_v29 = vcombine.high %v11159_v27, %v11163_v2  ;;  %v11739_v42 = vld [vmem:[#allocation10 + $0x1f88] sm:$0xff]  ;;  %v14071_v2 = vcombine.low %v11747_v37, %v11751_v17 }
 0x81f   : > { %11604 = vmatprep.subr.bf16.mxu1 %v14002_v50  ;;  %11643 = vmatprep.subr.bf16.mxu0 %v14004_v56  ;;  %v11150_v50 = vld [vmem:[#allocation10 + $0x1c50] sm:$0xff]  ;;  %v11743_v32 = vld [vmem:[#allocation10 + $0x1fa8] sm:$0xff] }
 0x820   : > { %11634 = vmatprep.mubr.f32.mxu1 %v15514_v16  ;;  %11673 = vmatprep.mubr.f32.mxu0 %v15514_v16  ;;  %v11154_v56 = vld [vmem:[#allocation10 + $0x1c70] sm:$0xff] }
 0x821   : > { %v13961_v20 = vcombine.low %v11150_v50, %v11154_v56 }
 0x822   : > { %11605 = vmatpush1.bf16.msra.mxu1 %v14001_v47  ;;  %11644 = vmatpush1.bf16.msra.mxu0 %v14003_v25  ;;  %v13962_v47 = vcombine.high %v11150_v50, %v11154_v56  ;;  %v13964_v25 = vcombine.high %v11151_v55, %v11155_v11  ;;  %v11731_v50 = vld [vmem:[#allocation10 + $0x1f48] sm:$0xff]  ;;  %v14063_v11 = vcombine.low %v11739_v42, %v11743_v32 }
 0x823   : > { %11606 = vmatprep.subr.bf16.mxu1 %v13994_v52  ;;  %11645 = vmatprep.subr.bf16.mxu0 %v13996_v48  ;;  %v11142_v52 = vld [vmem:[#allocation10 + $0x1c10] sm:$0xff]  ;;  %v11735_v56 = vld [vmem:[#allocation10 + $0x1f68] sm:$0xff] }
 0x824   : > { %v11146_v48 = vld [vmem:[#allocation10 + $0x1c30] sm:$0xff] }
 0x825   : > { %v13953_v62 = vcombine.low %v11142_v52, %v11146_v48 }
 0x826   : > { %11607 = vmatpush1.bf16.msra.mxu1 %v13993_v24  ;;  %11646 = vmatpush1.bf16.msra.mxu0 %v13995_v54  ;;  %v13954_v24 = vcombine.high %v11142_v52, %v11146_v48  ;;  %v13956_v54 = vcombine.high %v11143_v34, %v11147_v41  ;;  %v11723_v52 = vld [vmem:[#allocation10 + $0x1f08] sm:$0xff] }
 0x827   : > { %11608 = vmatprep.subr.bf16.mxu1 %v13986_v59  ;;  %11647 = vmatprep.subr.bf16.mxu0 %v13988_v28  ;;  %v11746_v59 = vld [vmem:[#allocation10 + $0x1fc0] sm:$0xff]  ;;  %v11727_v48 = vld [vmem:[#allocation10 + $0x1f28] sm:$0xff] }
 0x828   : > { %v11750_v28 = vld [vmem:[#allocation10 + $0x1fe0] sm:$0xff] }
 0x829   : > { %v14069_v27 = vcombine.low %v11746_v59, %v11750_v28 }
 0x82a   : > { %11609 = vmatpush1.bf16.msra.mxu1 %v13985_v9  ;;  %11648 = vmatpush1.bf16.msra.mxu0 %v13987_v10  ;;  %v14070_v9 = vcombine.high %v11746_v59, %v11750_v28  ;;  %v14072_v10 = vcombine.high %v11747_v37, %v11751_v17  ;;  %v11719_v59 = vld [vmem:[#allocation10 + $0x1ee8] sm:$0xff]  ;;  %v14047_v37 = vcombine.low %v11723_v52, %v11727_v48 }
 0x82b   : > { %11610 = vmatprep.subr.bf16.mxu1 %v13978_v49  ;;  %11649 = vmatprep.subr.bf16.mxu0 %v13980_v58  ;;  %v11738_v49 = vld [vmem:[#allocation10 + $0x1f80] sm:$0xff] }
 0x82c   : > { %v11742_v58 = vld [vmem:[#allocation10 + $0x1fa0] sm:$0xff] }
 0x82d   : > { %v14061_v55 = vcombine.low %v11738_v49, %v11742_v58 }
 0x82e   : > { %11611 = vmatpush1.bf16.msra.mxu1 %v13977_v3  ;;  %11650 = vmatpush1.bf16.msra.mxu0 %v13979_v57  ;;  %v14062_v3 = vcombine.high %v11738_v49, %v11742_v58  ;;  %v14064_v57 = vcombine.high %v11739_v42, %v11743_v32  ;;  %v11711_v49 = vld [vmem:[#allocation10 + $0x1ea8] sm:$0xff] }
 0x82f   : > { %11612 = vmatprep.subr.bf16.mxu1 %v13970_v8  ;;  %11651 = vmatprep.subr.bf16.mxu0 %v13972_v29  ;;  %v11730_v8 = vld [vmem:[#allocation10 + $0x1f40] sm:$0xff] }
 0x830   : > { %v11734_v29 = vld [vmem:[#allocation10 + $0x1f60] sm:$0xff] }
 0x831   : > { %v14053_v34 = vcombine.low %v11730_v8, %v11734_v29 }
 0x832   : > { %11613 = vmatpush1.bf16.msra.mxu1 %v13969_v18  ;;  %11652 = vmatpush1.bf16.msra.mxu0 %v13971_v36  ;;  %v14054_v18 = vcombine.high %v11730_v8, %v11734_v29  ;;  %v14056_v36 = vcombine.high %v11731_v50, %v11735_v56  ;;  %v11703_v8 = vld [vmem:[#allocation10 + $0x1e68] sm:$0xff] }
 0x833   : > { %11614 = vmatprep.subr.bf16.mxu1 %v13962_v47  ;;  %11653 = vmatprep.subr.bf16.mxu0 %v13964_v25  ;;  %v11722_v47 = vld [vmem:[#allocation10 + $0x1f00] sm:$0xff] }
 0x834   : > { %v11726_v25 = vld [vmem:[#allocation10 + $0x1f20] sm:$0xff] }
 0x835   : > { %v14046_v41 = vcombine.high %v11722_v47, %v11726_v25  ;;  %v14045_v28 = vcombine.low %v11722_v47, %v11726_v25  ;;  %v11695_v47 = vld [vmem:[#allocation10 + $0x1e28] sm:$0xff] }
 0x836   : > { %11615 = vmatpush1.bf16.msra.mxu1 %v13961_v20  ;;  %11654 = vmatpush1.bf16.msra.mxu0 %v13963_v21  ;;  %v14048_v20 = vcombine.high %v11723_v52, %v11727_v48  ;;  %v11714_v21 = vld [vmem:[#allocation10 + $0x1ec0] sm:$0xff] }
 0x837   : > { %11616 = vmatprep.subr.bf16.mxu1 %v13954_v24  ;;  %11655 = vmatprep.subr.bf16.mxu0 %v13956_v54  ;;  %v11718_v24 = vld [vmem:[#allocation10 + $0x1ee0] sm:$0xff]  ;;  %v11715_v54 = vld [vmem:[#allocation10 + $0x1ec8] sm:$0xff] }
 0x838   : > { %v14038_v17 = vcombine.high %v11714_v21, %v11718_v24  ;;  %v14037_v58 = vcombine.low %v11714_v21, %v11718_v24  ;;  %v14039_v42 = vcombine.low %v11715_v54, %v11719_v59  ;;  %v11753_v21 = vld [vmem:[#allocation10 + $0x1ff8] sm:$0xff] }
 0x83a   : > { %11617 = vmatpush1.bf16.msra.mxu1 %v13953_v62  ;;  %11656 = vmatpush1.bf16.msra.mxu0 %v13955_v46  ;;  %v14040_v62 = vcombine.high %v11715_v54, %v11719_v59  ;;  %v11706_v46 = vld [vmem:[#allocation10 + $0x1e80] sm:$0xff] }
 0x83b   : > { %12074 = vmatprep.subr.bf16.mxu1 %v14070_v9  ;;  %12113 = vmatprep.subr.bf16.mxu0 %v14072_v10  ;;  %v11710_v9 = vld [vmem:[#allocation10 + $0x1ea0] sm:$0xff]  ;;  %v11707_v10 = vld [vmem:[#allocation10 + $0x1e88] sm:$0xff] }
 0x83c   : > { %v14030_v32 = vcombine.high %v11706_v46, %v11710_v9  ;;  %v14029_v29 = vcombine.low %v11706_v46, %v11710_v9  ;;  %v11745_v46 = vld [vmem:[#allocation10 + $0x1fb8] sm:$0xff] }
 0x83d   : > { %11635 = vmatmul.mubr.f32.vlgmr.msra.gmra.mxu1 %v16825_v30  ;;  %11674 = vmatmul.mubr.f32.vlgmr.msra.gmra.mxu0 %v16825_v30  ;;  %v14055_v30 = vcombine.low %v11731_v50, %v11735_v56  ;;  %v14031_v50 = vcombine.low %v11707_v10, %v11711_v49 }
 0x83e   : > { %12075 = vmatpush1.bf16.msra.mxu1 %v14069_v27  ;;  %12114 = vmatpush1.bf16.msra.mxu0 %v14071_v2  ;;  %v14032_v27 = vcombine.high %v11707_v10, %v11711_v49  ;;  %v11698_v2 = vld [vmem:[#allocation10 + $0x1e40] sm:$0xff]  ;;  %v16835_v49 = vld [vmem:[#allocation2 + $0xf] sm:$0x1] }
 0x83f   : > { %12076 = vmatprep.subr.bf16.mxu1 %v14062_v3  ;;  %12115 = vmatprep.subr.bf16.mxu0 %v14064_v57  ;;  %v11702_v3 = vld [vmem:[#allocation10 + $0x1e60] sm:$0xff]  ;;  %v11699_v57 = vld [vmem:[#allocation10 + $0x1e48] sm:$0xff] }
 0x840   : > { %12106 = vmatprep.mubr.f32.mxu1 %v15514_v16  ;;  %12145 = vmatprep.mubr.f32.mxu0 %v15514_v16  ;;  %v14022_v56 = vcombine.high %v11698_v2, %v11702_v3  ;;  %v14021_v25 = vcombine.low %v11698_v2, %v11702_v3  ;;  %v14023_v52 = vcombine.low %v11699_v57, %v11703_v8  ;;  %v11733_v2 = vld [vmem:[#allocation10 + $0x1f58] sm:$0xff] }
 0x841   : > { %v11737_v3 = vld [vmem:[#allocation10 + $0x1f78] sm:$0xff] }
 0x842   : > { %12077 = vmatpush1.bf16.msra.mxu1 %v14061_v55  ;;  %12116 = vmatpush1.bf16.msra.mxu0 %v14063_v11  ;;  %v14024_v55 = vcombine.high %v11699_v57, %v11703_v8  ;;  %v11690_v11 = vld [vmem:[#allocation10 + $0x1e00] sm:$0xff] }
 0x843   : > { %12078 = vmatprep.subr.bf16.mxu1 %v14054_v18  ;;  %12117 = vmatprep.subr.bf16.mxu0 %v14056_v36  ;;  %v11694_v18 = vld [vmem:[#allocation10 + $0x1e20] sm:$0xff]  ;;  %v11691_v36 = vld [vmem:[#allocation10 + $0x1e08] sm:$0xff] }
 0x844   : > { %v14014_v48 = vcombine.high %v11690_v11, %v11694_v18  ;;  %v14013_v24 = vcombine.low %v11690_v11, %v11694_v18  ;;  %v14015_v54 = vcombine.low %v11691_v36, %v11695_v47  ;;  %v11725_v11 = vld [vmem:[#allocation10 + $0x1f18] sm:$0xff] }
 0x845   : > { %v11729_v18 = vld [vmem:[#allocation10 + $0x1f38] sm:$0xff] }
 0x846   : > { %12079 = vmatpush1.bf16.msra.mxu1 %v14053_v34  ;;  %12118 = vmatpush1.bf16.msra.mxu0 %v14055_v30  ;;  %v14016_v34 = vcombine.high %v11691_v36, %v11695_v47  ;;  %v11748_v30 = vld [vmem:[#allocation10 + $0x1fd0] sm:$0xff]  ;;  %v14059_v47 = vcombine.low %v11733_v2, %v11737_v3 }
 0x847   : > { %12080 = vmatprep.subr.bf16.mxu1 %v14046_v41  ;;  %12119 = vmatprep.subr.bf16.mxu0 %v14048_v20  ;;  %v11752_v41 = vld [vmem:[#allocation10 + $0x1ff0] sm:$0xff]  ;;  %v11749_v20 = vld [vmem:[#allocation10 + $0x1fd8] sm:$0xff] }
 0x848   : > { %v14074_v59 = vcombine.high %v11748_v30, %v11752_v41  ;;  %v14073_v9 = vcombine.low %v11748_v30, %v11752_v41  ;;  %v14075_v10 = vcombine.low %v11749_v20, %v11753_v21  ;;  %v11717_v30 = vld [vmem:[#allocation10 + $0x1ed8] sm:$0xff] }
 0x849   : > { %v11721_v41 = vld [vmem:[#allocation10 + $0x1ef8] sm:$0xff] }
 0x84a   : > { %12081 = vmatpush1.bf16.msra.mxu1 %v14045_v28  ;;  %12120 = vmatpush1.bf16.msra.mxu0 %v14047_v37  ;;  %v14076_v28 = vcombine.high %v11749_v20, %v11753_v21  ;;  %v11740_v37 = vld [vmem:[#allocation10 + $0x1f90] sm:$0xff]  ;;  %v14051_v21 = vcombine.low %v11725_v11, %v11729_v18 }
 0x84b   : > { %12082 = vmatprep.subr.bf16.mxu1 %v14038_v17  ;;  %12121 = vmatprep.subr.bf16.mxu0 %v14040_v62  ;;  %v11744_v17 = vld [vmem:[#allocation10 + $0x1fb0] sm:$0xff]  ;;  %v11741_v62 = vld [vmem:[#allocation10 + $0x1f98] sm:$0xff] }
 0x84c   : > { %v14065_v57 = vcombine.low %v11740_v37, %v11744_v17  ;;  %v14067_v8 = vcombine.low %v11741_v62, %v11745_v46 }
 0x84e   : > { %12083 = vmatpush1.bf16.msra.mxu1 %v14037_v58  ;;  %12122 = vmatpush1.bf16.msra.mxu0 %v14039_v42  ;;  %v14066_v58 = vcombine.high %v11740_v37, %v11744_v17  ;;  %v14068_v42 = vcombine.high %v11741_v62, %v11745_v46  ;;  %v11713_v37 = vld [vmem:[#allocation10 + $0x1eb8] sm:$0xff]  ;;  %v14043_v62 = vcombine.low %v11717_v30, %v11721_v41 }
 0x84f   : > { %12084 = vmatprep.subr.bf16.mxu1 %v14030_v32  ;;  %12123 = vmatprep.subr.bf16.mxu0 %v14032_v27  ;;  %v11732_v32 = vld [vmem:[#allocation10 + $0x1f50] sm:$0xff] }
 0x850   : > { %v11736_v27 = vld [vmem:[#allocation10 + $0x1f70] sm:$0xff] }
 0x851   : > { %v14057_v36 = vcombine.low %v11732_v32, %v11736_v27 }
 0x852   : > { %12085 = vmatpush1.bf16.msra.mxu1 %v14029_v29  ;;  %12124 = vmatpush1.bf16.msra.mxu0 %v14031_v50  ;;  %v14058_v29 = vcombine.high %v11732_v32, %v11736_v27  ;;  %v14060_v50 = vcombine.high %v11733_v2, %v11737_v3  ;;  %v11705_v32 = vld [vmem:[#allocation10 + $0x1e78] sm:$0xff] }
 0x853   : > { %12086 = vmatprep.subr.bf16.mxu1 %v14022_v56  ;;  %12125 = vmatprep.subr.bf16.mxu0 %v14024_v55  ;;  %v11724_v56 = vld [vmem:[#allocation10 + $0x1f10] sm:$0xff] }
 0x854   : > { %v11728_v55 = vld [vmem:[#allocation10 + $0x1f30] sm:$0xff] }
 0x855   : > { %v14049_v20 = vcombine.low %v11724_v56, %v11728_v55 }
 0x856   : > { %12087 = vmatpush1.bf16.msra.mxu1 %v14021_v25  ;;  %12126 = vmatpush1.bf16.msra.mxu0 %v14023_v52  ;;  %v14050_v25 = vcombine.high %v11724_v56, %v11728_v55  ;;  %v14052_v52 = vcombine.high %v11725_v11, %v11729_v18  ;;  %v11697_v56 = vld [vmem:[#allocation10 + $0x1e38] sm:$0xff] }
 0x857   : > { %12088 = vmatprep.subr.bf16.mxu1 %v14014_v48  ;;  %12127 = vmatprep.subr.bf16.mxu0 %v14016_v34  ;;  %v11716_v48 = vld [vmem:[#allocation10 + $0x1ed0] sm:$0xff] }
 0x858   : > { %v11720_v34 = vld [vmem:[#allocation10 + $0x1ef0] sm:$0xff] }
 0x859   : > { %v14041_v17 = vcombine.low %v11716_v48, %v11720_v34 }
 0x85a   : > { %12089 = vmatpush1.bf16.msra.mxu1 %v14013_v24  ;;  %12128 = vmatpush1.bf16.msra.mxu0 %v14015_v54  ;;  %v14042_v24 = vcombine.high %v11716_v48, %v11720_v34  ;;  %v11708_v54 = vld [vmem:[#allocation10 + $0x1e90] sm:$0xff]  ;;  %v12375_v48 = vld [vmem:[%s17350_s8 + $0x1f8] sm:$0xff] }
 0x85b   : > { %12152 = vmatprep.subr.bf16.mxu1 %v14074_v59  ;;  %12191 = vmatprep.subr.bf16.mxu0 %v14076_v28  ;;  %v11712_v59 = vld [vmem:[#allocation10 + $0x1eb0] sm:$0xff]  ;;  %v11709_v28 = vld [vmem:[#allocation10 + $0x1e98] sm:$0xff]  ;;  %v12327_v34 = vld [vmem:[%s17350_s8 + $0x78] sm:$0xff] }
 0x85c   : > { %v14034_v46 = vcombine.high %v11708_v54, %v11712_v59  ;;  %v14033_v27 = vcombine.low %v11708_v54, %v11712_v59  ;;  %v14035_v2 = vcombine.low %v11709_v28, %v11713_v37  ;;  %v12325_v54 = vld [vmem:[%s17350_s8 + $0x68] sm:$0xff] }
 0x85d   : > { %12107 = vmatmul.mubr.f32.vlgmr.msra.gmra.mxu1 %v16835_v49  ;;  %12146 = vmatmul.mubr.f32.vlgmr.msra.gmra.mxu0 %v16835_v49  ;;  %v12357_v59 = vld [vmem:[%s17350_s8 + $0x168] sm:$0xff] }
 0x85e   : > { %12153 = vmatpush1.bf16.msra.mxu1 %v14073_v9  ;;  %12192 = vmatpush1.bf16.msra.mxu0 %v14075_v10  ;;  %v14036_v9 = vcombine.high %v11709_v28, %v11713_v37  ;;  %v11700_v10 = vld [vmem:[#allocation10 + $0x1e50] sm:$0xff] }
 0x85f   : > { %12154 = vmatprep.subr.bf16.mxu1 %v14066_v58  ;;  %12193 = vmatprep.subr.bf16.mxu0 %v14068_v42  ;;  %v11704_v58 = vld [vmem:[#allocation10 + $0x1e70] sm:$0xff]  ;;  %v11701_v42 = vld [vmem:[#allocation10 + $0x1e58] sm:$0xff] }
 0x860   : > { %12184 = vmatprep.mubr.f32.mxu1 %v15514_v16  ;;  %12223 = vmatprep.mubr.f32.mxu0 %v15514_v16  ;;  %v14044_v16 = vcombine.high %v11717_v30, %v11721_v41  ;;  %v14026_v3 = vcombine.high %v11700_v10, %v11704_v58  ;;  %v14025_v55 = vcombine.low %v11700_v10, %v11704_v58  ;;  %v12359_v30 = vld [vmem:[%s17350_s8 + $0x178] sm:$0xff]  ;;  %v12374_v41 = vld [vmem:[%s17350_s8 + $0x1f0] sm:$0xff]  ;;  %v12340_v28 = vld [vmem:[%s17350_s8 + $0xe0] sm:$0xff] }
 0x861   : > { %v14027_v11 = vcombine.low %v11701_v42, %v11705_v32  ;;  %v12372_v37 = vld [vmem:[%s17350_s8 + $0x1e0] sm:$0xff]  ;;  %v12323_v10 = vld [vmem:[%s17350_s8 + $0x58] sm:$0xff] }
 0x862   : > { %12155 = vmatpush1.bf16.msra.mxu1 %v14065_v57  ;;  %12194 = vmatpush1.bf16.msra.mxu0 %v14067_v8  ;;  %v14028_v57 = vcombine.high %v11701_v42, %v11705_v32  ;;  %v11692_v8 = vld [vmem:[#allocation10 + $0x1e10] sm:$0xff]  ;;  %v12355_v58 = vld [vmem:[%s17350_s8 + $0x158] sm:$0xff]  ;;  %v12338_v42 = vld [vmem:[%s17350_s8 + $0xd0] sm:$0xff] }
 0x863   : > { %12156 = vmatprep.subr.bf16.mxu1 %v14058_v29  ;;  %12195 = vmatprep.subr.bf16.mxu0 %v14060_v50  ;;  %v11696_v29 = vld [vmem:[#allocation10 + $0x1e30] sm:$0xff]  ;;  %v11693_v50 = vld [vmem:[#allocation10 + $0x1e18] sm:$0xff] }
 0x864   : > { %v14018_v18 = vcombine.high %v11692_v8, %v11696_v29  ;;  %v12370_v32 = vld [vmem:[%s17350_s8 + $0x1d0] sm:$0xff] }
 0x866   : > { %12157 = vmatpush1.bf16.msra.mxu1 %v14057_v36  ;;  %12196 = vmatpush1.bf16.msra.mxu0 %v14059_v47  ;;  %v14020_v36 = vcombine.high %v11693_v50, %v11697_v56  ;;  %v14017_v47 = vcombine.low %v11692_v8, %v11696_v29  ;;  %v12321_v8 = vld [vmem:[%s17350_s8 + $0x48] sm:$0xff] }
 0x867   : > { %12158 = vmatprep.subr.bf16.mxu1 %v14050_v25  ;;  %12197 = vmatprep.subr.bf16.mxu0 %v14052_v52  ;;  %v14019_v25 = vcombine.low %v11693_v50, %v11697_v56  ;;  %v12343_v52 = vld [vmem:[%s17350_s8 + $0xf8] sm:$0xff]  ;;  %v12353_v29 = vld [vmem:[%s17350_s8 + $0x148] sm:$0xff]  ;;  %v12336_v50 = vld [vmem:[%s17350_s8 + $0xc0] sm:$0xff] }
 0x868   : > { %v12368_v56 = vld [vmem:[%s17350_s8 + $0x1c0] sm:$0xff] }
 0x86a   : > { %12159 = vmatpush1.bf16.msra.mxu1 %v14049_v20  ;;  %12198 = vmatpush1.bf16.msra.mxu0 %v14051_v21  ;;  %v12326_v20 = vld [vmem:[%s17350_s8 + $0x70] sm:$0xff] }
 0x86b   : > { %12160 = vmatprep.subr.bf16.mxu1 %v14042_v24  ;;  %12199 = vmatprep.subr.bf16.mxu0 %v14044_v16  ;;  %v12358_v21 = vld [vmem:[%s17350_s8 + $0x170] sm:$0xff]  ;;  %v12341_v24 = vld [vmem:[%s17350_s8 + $0xe8] sm:$0xff] }
 0x86c   : > { %v12373_v16 = vld [vmem:[%s17350_s8 + $0x1e8] sm:$0xff] }
 0x86e   : > { %12161 = vmatpush1.bf16.msra.mxu1 %v14041_v17  ;;  %12200 = vmatpush1.bf16.msra.mxu0 %v14043_v62  ;;  %v12324_v17 = vld [vmem:[%s17350_s8 + $0x60] sm:$0xff] }
 0x86f   : > { %12162 = vmatprep.subr.bf16.mxu1 %v14034_v46  ;;  %12201 = vmatprep.subr.bf16.mxu0 %v14036_v9  ;;  %v12356_v62 = vld [vmem:[%s17350_s8 + $0x160] sm:$0xff]  ;;  %v12339_v46 = vld [vmem:[%s17350_s8 + $0xd8] sm:$0xff] }
 0x870   : > { %v12371_v9 = vld [vmem:[%s17350_s8 + $0x1d8] sm:$0xff] }
 0x872   : > { %12163 = vmatpush1.bf16.msra.mxu1 %v14033_v27  ;;  %12202 = vmatpush1.bf16.msra.mxu0 %v14035_v2  ;;  %v12322_v27 = vld [vmem:[%s17350_s8 + $0x50] sm:$0xff] }
 0x873   : > { %12164 = vmatprep.subr.bf16.mxu1 %v14026_v3  ;;  %12203 = vmatprep.subr.bf16.mxu0 %v14028_v57  ;;  %v12354_v2 = vld [vmem:[%s17350_s8 + $0x150] sm:$0xff]  ;;  %v12337_v3 = vld [vmem:[%s17350_s8 + $0xc8] sm:$0xff] }
 0x874   : > { %v12369_v57 = vld [vmem:[%s17350_s8 + $0x1c8] sm:$0xff] }
 0x876   : > { %12165 = vmatpush1.bf16.msra.mxu1 %v14025_v55  ;;  %12204 = vmatpush1.bf16.msra.mxu0 %v14027_v11  ;;  %v12320_v55 = vld [vmem:[%s17350_s8 + $0x40] sm:$0xff] }
 0x877   : > { %12166 = vmatprep.subr.bf16.mxu1 %v14018_v18  ;;  %12205 = vmatprep.subr.bf16.mxu0 %v14020_v36  ;;  %v12352_v11 = vld [vmem:[%s17350_s8 + $0x140] sm:$0xff]  ;;  %v12335_v18 = vld [vmem:[%s17350_s8 + $0xb8] sm:$0xff] }
 0x878   : > { %v12367_v36 = vld [vmem:[%s17350_s8 + $0x1b8] sm:$0xff] }
 0x87a   : > { %12167 = vmatpush1.bf16.msra.mxu1 %v14017_v47  ;;  %12206 = vmatpush1.bf16.msra.mxu0 %v14019_v25  ;;  %v12319_v47 = vld [vmem:[%s17350_s8 + $0x38] sm:$0xff] }
 0x87b   : > { %14400 = vmatprep.subr.mxu1 %v12343_v52  ;;  %14435 = vmatprep.subr.mxu0 %v12375_v48  ;;  %v12351_v25 = vld [vmem:[%s17350_s8 + $0x138] sm:$0xff]  ;;  %v12334_v52 = vld [vmem:[%s17350_s8 + $0xb0] sm:$0xff] }
 0x87c   : > { %v12366_v48 = vld [vmem:[%s17350_s8 + $0x1b0] sm:$0xff] }
 0x87d   : > { %12185 = vmatmul.mubr.f32.vlgmr.msra.gmra.mxu1 %v16835_v49  ;;  %12224 = vmatmul.mubr.f32.vlgmr.msra.gmra.mxu0 %v16835_v49  ;;  %v12342_v49 = vld [vmem:[%s17350_s8 + $0xf0] sm:$0xff] }
 0x87e   : > { %14401 = vmatpush3.msra.mxu1 %v12327_v34  ;;  %14436 = vmatpush3.msra.mxu0 %v12359_v30  ;;  %v12318_v34 = vld [vmem:[%s17350_s8 + $0x30] sm:$0xff] }
 0x87f   : > { %14402 = vmatprep.subr.mxu1 %v12342_v49  ;;  %14437 = vmatprep.subr.mxu0 %v12374_v41  ;;  %v12350_v30 = vld [vmem:[%s17350_s8 + $0x130] sm:$0xff]  ;;  %v12333_v49 = vld [vmem:[%s17350_s8 + $0xa8] sm:$0xff] }
 0x880   : > { %14403 = vmatpush3.msra.mxu1 %v12326_v20  ;;  %14438 = vmatpush3.msra.mxu0 %v12358_v21  ;;  %v12365_v41 = vld [vmem:[%s17350_s8 + $0x1a8] sm:$0xff] }
 0x881   : > { %14404 = vmatprep.subr.mxu1 %v12341_v24  ;;  %14439 = vmatprep.subr.mxu0 %v12373_v16  ;;  %v12317_v20 = vld [vmem:[%s17350_s8 + $0x28] sm:$0xff]  ;;  %v12332_v24 = vld [vmem:[%s17350_s8 + $0xa0] sm:$0xff] }
 0x882   : > { %14405 = vmatpush3.msra.mxu1 %v12325_v54  ;;  %14440 = vmatpush3.msra.mxu0 %v12357_v59  ;;  %v12349_v21 = vld [vmem:[%s17350_s8 + $0x128] sm:$0xff]  ;;  %v12364_v16 = vld [vmem:[%s17350_s8 + $0x1a0] sm:$0xff] }
 0x883   : > { %14406 = vmatprep.subr.mxu1 %v12340_v28  ;;  %14441 = vmatprep.subr.mxu0 %v12372_v37  ;;  %v12316_v54 = vld [vmem:[%s17350_s8 + $0x20] sm:$0xff]  ;;  %v12331_v28 = vld [vmem:[%s17350_s8 + $0x98] sm:$0xff] }
 0x884   : > { %14407 = vmatpush3.msra.mxu1 %v12324_v17  ;;  %14442 = vmatpush3.msra.mxu0 %v12356_v62  ;;  %v12348_v59 = vld [vmem:[%s17350_s8 + $0x120] sm:$0xff]  ;;  %v12363_v37 = vld [vmem:[%s17350_s8 + $0x198] sm:$0xff] }
 0x885   : > { %14408 = vmatprep.subr.mxu1 %v12339_v46  ;;  %14443 = vmatprep.subr.mxu0 %v12371_v9  ;;  %v12315_v17 = vld [vmem:[%s17350_s8 + $0x18] sm:$0xff]  ;;  %v12330_v46 = vld [vmem:[%s17350_s8 + $0x90] sm:$0xff] }
 0x886   : > { %14409 = vmatpush3.msra.mxu1 %v12323_v10  ;;  %14444 = vmatpush3.msra.mxu0 %v12355_v58  ;;  %v12347_v62 = vld [vmem:[%s17350_s8 + $0x118] sm:$0xff]  ;;  %v12362_v9 = vld [vmem:[%s17350_s8 + $0x190] sm:$0xff] }
 0x887   : > { %14410 = vmatprep.subr.mxu1 %v12338_v42  ;;  %14445 = vmatprep.subr.mxu0 %v12370_v32  ;;  %v12314_v10 = vld [vmem:[%s17350_s8 + $0x10] sm:$0xff]  ;;  %v12329_v42 = vld [vmem:[%s17350_s8 + $0x88] sm:$0xff] }
 0x888   : > { %14411 = vmatpush3.msra.mxu1 %v12322_v27  ;;  %14446 = vmatpush3.msra.mxu0 %v12354_v2  ;;  %v12346_v58 = vld [vmem:[%s17350_s8 + $0x110] sm:$0xff]  ;;  %v12361_v32 = vld [vmem:[%s17350_s8 + $0x188] sm:$0xff] }
 0x889   : > { %14412 = vmatprep.subr.mxu1 %v12337_v3  ;;  %14447 = vmatprep.subr.mxu0 %v12369_v57  ;;  %v12313_v27 = vld [vmem:[%s17350_s8 + $0x8] sm:$0xff]  ;;  %v12328_v3 = vld [vmem:[%s17350_s8 + $0x80] sm:$0xff] }
 0x88a   : > { %14413 = vmatpush3.msra.mxu1 %v12321_v8  ;;  %14448 = vmatpush3.msra.mxu0 %v12353_v29  ;;  %v12345_v2 = vld [vmem:[%s17350_s8 + $0x108] sm:$0xff]  ;;  %v12360_v57 = vld [vmem:[%s17350_s8 + $0x180] sm:$0xff] }
 0x88b   : > { %14414 = vmatprep.subr.mxu1 %v12336_v50  ;;  %14449 = vmatprep.subr.mxu0 %v12368_v56  ;;  %v12312_v8 = vld [vmem:[%s17350_s8] sm:$0xff]  ;;  %v12407_v50 = vld [vmem:[%s17350_s8 + $0x2f8] sm:$0xff] }
 0x88c   : > { %14415 = vmatpush3.msra.mxu1 %v12320_v55  ;;  %14450 = vmatpush3.msra.mxu0 %v12352_v11  ;;  %v12344_v29 = vld [vmem:[%s17350_s8 + $0x100] sm:$0xff]  ;;  %v12439_v56 = vld [vmem:[%s17350_s8 + $0x3f8] sm:$0xff]  ;;  %v9358_v55 = vpop.f32.mrf.mxu1  ;;  %v9397_v11 = vpop.f32.mrf.mxu0 }
 0x88d   : > { %14416 = vmatprep.subr.mxu1 %v12335_v18  ;;  %14451 = vmatprep.subr.mxu0 %v12367_v36 }
 0x88e   : > { %14417 = vmatpush3.msra.mxu1 %v12319_v47  ;;  %14452 = vmatpush3.msra.mxu0 %v12351_v25  ;;  %v9360_v18 = vpop.f32.mrf.mxu1  ;;  %v9399_v36 = vpop.f32.mrf.mxu0 }
 0x88f   : > { %14418 = vmatprep.subr.mxu1 %v12334_v52  ;;  %14453 = vmatprep.subr.mxu0 %v12366_v48 }
 0x890   : > { %14419 = vmatpush3.msra.mxu1 %v12318_v34  ;;  %14454 = vmatpush3.msra.mxu0 %v12350_v30  ;;  %v17041_v47 = vpop.f32.mrf.mxu1  ;;  %v17043_v25 = vpop.f32.mrf.mxu0 }
 0x891   : > { %14420 = vmatprep.subr.mxu1 %v12333_v49  ;;  %14455 = vmatprep.subr.mxu0 %v12365_v41 }
 0x892   : > { %14421 = vmatpush3.msra.mxu1 %v12317_v20  ;;  %14456 = vmatpush3.msra.mxu0 %v12349_v21  ;;  %v17045_v52 = vpop.f32.mrf.mxu1  ;;  %v17047_v48 = vpop.f32.mrf.mxu0 }
 0x893   : > { %14422 = vmatprep.subr.mxu1 %v12332_v24  ;;  %14457 = vmatprep.subr.mxu0 %v12364_v16 }
 0x894   : > { %14423 = vmatpush3.msra.mxu1 %v12316_v54  ;;  %14458 = vmatpush3.msra.mxu0 %v12348_v59  ;;  %v9908_v34 = vpop.f32.mrf.mxu1  ;;  %v9947_v30 = vpop.f32.mrf.mxu0 }
 0x895   : > { %14424 = vmatprep.subr.mxu1 %v12331_v28  ;;  %14459 = vmatprep.subr.mxu0 %v12363_v37 }
 0x896   : > { %14425 = vmatpush3.msra.mxu1 %v12315_v17  ;;  %14460 = vmatpush3.msra.mxu0 %v12347_v62  ;;  %v9910_v49 = vpop.f32.mrf.mxu1  ;;  %v9949_v41 = vpop.f32.mrf.mxu0 }
 0x897   : > { %14426 = vmatprep.subr.mxu1 %v12330_v46  ;;  %14461 = vmatprep.subr.mxu0 %v12362_v9 }
 0x898   : > { %14427 = vmatpush3.msra.mxu1 %v12314_v10  ;;  %14462 = vmatpush3.msra.mxu0 %v12346_v58  ;;  %v17049_v20 = vpop.f32.mrf.mxu1  ;;  %v17051_v21 = vpop.f32.mrf.mxu0 }
 0x899   : > { %14428 = vmatprep.subr.mxu1 %v12329_v42  ;;  %14463 = vmatprep.subr.mxu0 %v12361_v32 }
 0x89a   : > { %14429 = vmatpush3.msra.mxu1 %v12313_v27  ;;  %14464 = vmatpush3.msra.mxu0 %v12345_v2  ;;  %v17053_v24 = vpop.f32.mrf.mxu1  ;;  %v17055_v16 = vpop.f32.mrf.mxu0  ;;  %v6730_v27 = vadd.f32 %v16671_v61, %v16636_v44  ;;  %v6732_v2 = vadd.f32 %v16673_v26, %v16639_v33 }
 0x89b   : > { %14430 = vmatprep.subr.mxu1 %v12328_v3  ;;  %14465 = vmatprep.subr.mxu0 %v12360_v57  ;;  %v6731_v3 = vadd.f32 %v16675_v4, %v16642_v63  ;;  %v6733_v57 = vadd.f32 %v16677_v7, %v16645_v12 }
 0x89c   : > { %14431 = vmatpush3.msra.mxu1 %v12312_v8  ;;  %14466 = vmatpush3.msra.mxu0 %v12344_v29  ;;  %v10458_v54 = vpop.f32.mrf.mxu1  ;;  %v10497_v59 = vpop.f32.mrf.mxu0 }
 0x89d   : > { %14470 = vmatprep.subr.mxu1 %v12407_v50  ;;  %14505 = vmatprep.subr.mxu0 %v12439_v56  ;;  %v7280_v50 = vadd.f32 %v16701_v40, %v6730_v27  ;;  %v7282_v56 = vadd.f32 %v16703_v31, %v6732_v2  ;;  %v7283_v44 = vadd.f32 %v16707_v6, %v6733_v57  ;;  %v12240_v31 = vlaneseq }
 0x89e   : > { %v10460_v28 = vpop.f32.mrf.mxu1  ;;  %v10499_v37 = vpop.f32.mrf.mxu0 }
 0x89f   : > { %v7830_v33 = vadd.f32 %v16731_v39, %v7280_v50  ;;  %v7832_v61 = vadd.f32 %v16733_v45, %v7282_v56  ;;  %v7833_v12 = vadd.f32 %v16737_v13, %v7283_v44 }
 0x8a0   : > { %v17057_v17 = vpop.f32.mrf.mxu1  ;;  %v17059_v62 = vpop.f32.mrf.mxu0 }
 0x8a1   : > { %v8380_v7 = vadd.f32 %v16761_v43, %v7830_v33  ;;  %v8382_v40 = vadd.f32 %v16763_v35, %v7832_v61  ;;  %v8383_v6 = vadd.f32 %v16767_v23, %v7833_v12  ;;  %v17097_v43 = vshrl.u32 %v12240_v31, 7 }
 0x8a2   : > { %v17061_v46 = vpop.f32.mrf.mxu1  ;;  %v17063_v9 = vpop.f32.mrf.mxu0 }
 0x8a3   : > { %17356 = vst [vmem:[#allocation18_spill] sm:$0xff] %v17063_v9  ;;  %v7281_v9 = vadd.f32 %v16705_v5, %v6731_v3  ;;  %v8930_v45 = vadd.f32 %v16791_v14, %v8380_v7 }
 0x8a4   : > { %v11008_v10 = vpop.f32.mrf.mxu1  ;;  %v11047_v58 = vpop.f32.mrf.mxu0 }
 0x8a5   : > { %v7831_v63 = vadd.f32 %v16735_v38, %v7281_v9  ;;  %v8932_v38 = vadd.f32 %v16793_v15, %v8382_v40  ;;  %v8933_v9 = vadd.f32 %v16797_v19, %v8383_v6  ;;  %v9480_v2 = vadd.f32 %v9358_v55, %v8930_v45 }
 0x8a6   : > { %v11010_v42 = vpop.f32.mrf.mxu1  ;;  %v11049_v32 = vpop.f32.mrf.mxu0  ;;  %v12242_v19 = vsub.s32 0, %v17097_v43  ;;  %v12250_v55 = vsub.s32 2, %v17097_v43 }
 0x8a7   : > { %v8381_v5 = vadd.f32 %v16765_v22, %v7831_v63  ;;  %v9482_v3 = vadd.f32 %v9397_v11, %v8932_v38  ;;  %v9483_v57 = vadd.f32 %v9399_v36, %v8933_v9  ;;  %v10030_v56 = vadd.f32 %v9908_v34, %v9480_v2 }
 0x8a8   : > { %v12246_v36 = vsub.s32 1, %v17097_v43 }
 0x8a9   : > { %v8931_v13 = vadd.f32 %v16795_v51, %v8381_v5  ;;  %v10032_v23 = vadd.f32 %v9947_v30, %v9482_v3  ;;  %v10033_v33 = vadd.f32 %v9949_v41, %v9483_v57  ;;  %v10580_v15 = vadd.f32 %v10458_v54, %v10030_v56 }
 0x8aa   : > { %v12254_v54 = vsub.s32 3, %v17097_v43 }
 0x8ab   : > { %v9481_v35 = vadd.f32 %v9360_v18, %v8931_v13  ;;  %v10582_v51 = vadd.f32 %v10497_v59, %v10032_v23  ;;  %v10583_v63 = vadd.f32 %v10499_v37, %v10033_v33  ;;  %v17105_v18 = vld [vmem:[#allocation11] sm:$0xff]  ;;  %v11130_v34 = vadd.f32 %v11008_v10, %v10580_v15 }
 0x8ac   : > { %v12243_v31 = vrot.slane %v17105_v18, %v12242_v19  ;;  %v12247_v6 = vrot.slane %v17105_v18, %v12246_v36  ;;  %v12255_v13 = vrot.slane %v17105_v18, %v12254_v54  ;;  %v12406_v19 = vld [vmem:[%s17350_s8 + $0x2f0] sm:$0xff]  ;;  %v12404_v54 = vld [vmem:[%s17350_s8 + $0x2e0] sm:$0xff] }
 0x8ad   : > { %v10031_v44 = vadd.f32 %v9910_v49, %v9481_v35  ;;  %v11132_v30 = vadd.f32 %v11047_v58, %v10582_v51  ;;  %v11133_v41 = vadd.f32 %v11049_v32, %v10583_v63  ;;  %v12423_v51 = vld [vmem:[%s17350_s8 + $0x378] sm:$0xff]  ;;  %v12390_v63 = vld [vmem:[%s17350_s8 + $0x270] sm:$0xff] }
 0x8ae   : > { %v12422_v36 = vld [vmem:[%s17350_s8 + $0x370] sm:$0xff] }
 0x8af   : > { %v10581_v11 = vadd.f32 %v10460_v28, %v10031_v44  ;;  %v12251_v28 = vrot.slane %v17105_v18, %v12250_v55  ;;  %v12391_v44 = vld [vmem:[%s17350_s8 + $0x278] sm:$0xff] }
 0x8b1   : > { %v11131_v49 = vadd.f32 %v11010_v42, %v10581_v11  ;;  %v12438_v11 = vld [vmem:[%s17350_s8 + $0x3f0] sm:$0xff] }
 0x8bd   : > { %v17073_v8 = vpop.f32.mrf.mxu1  ;;  %v17075_v29 = vpop.f32.mrf.mxu0 }
 0x8bf   : > { %v17085_v26 = vpop.f32.mrf.mxu1  ;;  %v17087_v4 = vpop.f32.mrf.mxu0 }
 0x8dd   : > { %v11558_v39 = vpop.f32.mrf.mxu1  ;;  %v11597_v27 = vpop.f32.mrf.mxu0 }
 0x8de   : > { %v11680_v59 = vadd.f32 %v11558_v39, %v11130_v34  ;;  %v11682_v40 = vadd.f32 %v11597_v27, %v11132_v30  ;;  %v12405_v34 = vld [vmem:[%s17350_s8 + $0x2e8] sm:$0xff] }
 0x8df   : > { %v11560_v50 = vpop.f32.mrf.mxu1  ;;  %v11599_v22 = vpop.f32.mrf.mxu0  ;;  %v12437_v30 = vld [vmem:[%s17350_s8 + $0x3e8] sm:$0xff] }
 0x8e0   : > { %v11681_v10 = vadd.f32 %v11560_v50, %v11131_v49  ;;  %v11683_v58 = vadd.f32 %v11599_v22, %v11133_v41  ;;  %v12389_v49 = vld [vmem:[%s17350_s8 + $0x268] sm:$0xff] }
 0x8e1   : > { %v12421_v41 = vld [vmem:[%s17350_s8 + $0x368] sm:$0xff] }
 0x8fd   : > { %v17099_v61 = vpop.f32.mrf.mxu1  ;;  %v17101_v14 = vpop.f32.mrf.mxu0 }
 0x8ff   : > { %v17108_v12 = vpop.f32.mrf.mxu1  ;;  %v17110_v7 = vpop.f32.mrf.mxu0 }
 0x91d   : > { %v12108_v37 = vpop.f32.mrf.mxu1  ;;  %v12147_v5 = vpop.f32.mrf.mxu0 }
 0x91e   : > { %v12230_v42 = vadd.f32 %v12108_v37, %v11680_v59  ;;  %v12232_v32 = vadd.f32 %v12147_v5, %v11682_v40  ;;  %v12436_v59 = vld [vmem:[%s17350_s8 + $0x3e0] sm:$0xff]  ;;  %v12435_v37 = vld [vmem:[%s17350_s8 + $0x3d8] sm:$0xff] }
 0x91f   : > { %v12110_v45 = vpop.f32.mrf.mxu1  ;;  %v12149_v38 = vpop.f32.mrf.mxu0  ;;  %v12388_v40 = vld [vmem:[%s17350_s8 + $0x260] sm:$0xff]  ;;  %v12387_v5 = vld [vmem:[%s17350_s8 + $0x258] sm:$0xff] }
 0x920   : > { %v12280_v9 = vadd.f32 %v12243_v31, %v12230_v42  ;;  %v12282_v2 = vadd.f32 %v12251_v28, %v12232_v32  ;;  %v12231_v39 = vadd.f32 %v12110_v45, %v11681_v10  ;;  %v12233_v27 = vadd.f32 %v12149_v38, %v11683_v58  ;;  %v12420_v31 = vld [vmem:[%s17350_s8 + $0x360] sm:$0xff]  ;;  %v12403_v28 = vld [vmem:[%s17350_s8 + $0x2d8] sm:$0xff]  ;;  %v12402_v10 = vld [vmem:[%s17350_s8 + $0x2d0] sm:$0xff] }
 0x921   : > { %v12434_v58 = vld [vmem:[%s17350_s8 + $0x3d0] sm:$0xff]  ;;  %v12401_v45 = vld [vmem:[%s17350_s8 + $0x2c8] sm:$0xff] }
 0x922   : > { %v12281_v3 = vadd.f32 %v12247_v6, %v12231_v39  ;;  %v12296_v35 = vmul.f32 0.01, %v12280_v9  ;;  %v12283_v57 = vadd.f32 %v12255_v13, %v12233_v27  ;;  %vm12288_vm12 = vcmp.ge.f32.partialorder %v12280_v9, 0.0  ;;  %v12419_v6 = vld [vmem:[%s17350_s8 + $0x358] sm:$0xff]  ;;  %v12386_v42 = vld [vmem:[%s17350_s8 + $0x250] sm:$0xff]  ;;  %v12433_v38 = vld [vmem:[%s17350_s8 + $0x3c8] sm:$0xff] }
 0x923   : > { %v12298_v56 = vmul.f32 0.01, %v12282_v2  ;;  %vm12290_vm15 = vcmp.ge.f32.partialorder %v12282_v2, 0.0  ;;  %v12418_v32 = vld [vmem:[%s17350_s8 + $0x350] sm:$0xff]  ;;  %v12385_v13 = vld [vmem:[%s17350_s8 + $0x248] sm:$0xff]  ;;  %v9484_v39 = vadd.f32 %v17041_v47, %v16802_v53  ;;  %v9486_v27 = vadd.f32 %v17043_v25, %v16805_v1  ;;  %v12416_v53 = vld [vmem:[%s17350_s8 + $0x340] sm:$0xff] }
 0x924   : > { %vm12289_vm13 = vcmp.ge.f32.partialorder %v12281_v3, 0.0  ;;  %v12297_v23 = vmul.f32 0.01, %v12281_v3  ;;  %vm12291_vm14 = vcmp.ge.f32.partialorder %v12283_v57, 0.0  ;;  %v12299_v50 = vmul.f32 0.01, %v12283_v57 }
 0x925   : > { %v12304_v15 = vsel %vm12288_vm12, %v12280_v9, %v12296_v35  ;;  %v12306_v55 = vsel %vm12290_vm15, %v12282_v2, %v12298_v56  ;;  %v12417_v9 = vld [vmem:[%s17350_s8 + $0x348] sm:$0xff]  ;;  %v12400_v2 = vld [vmem:[%s17350_s8 + $0x2c0] sm:$0xff]  ;;  %v9487_v56 = vadd.f32 %v17047_v48, %v16811_v60  ;;  %v12399_v1 = vld [vmem:[%s17350_s8 + $0x2b8] sm:$0xff]  ;;  %v10034_v47 = vadd.f32 %v17049_v20, %v9484_v39 }
 0x926   : > { %v12305_v22 = vsel %vm12289_vm13, %v12281_v3, %v12297_v23  ;;  %v12307_v33 = vsel %vm12291_vm14, %v12283_v57, %v12299_v50  ;;  %v12432_v3 = vld [vmem:[%s17350_s8 + $0x3c0] sm:$0xff]  ;;  %v9485_v57 = vadd.f32 %v17045_v52, %v16808_v0  ;;  %v10036_v25 = vadd.f32 %v17051_v21, %v9486_v27  ;;  %v12431_v0 = vld [vmem:[%s17350_s8 + $0x3b8] sm:$0xff]  ;;  %v12398_v21 = vld [vmem:[%s17350_s8 + $0x2b0] sm:$0xff] }
 0x927   : > { %12505 = vmatprep.mubr.f32.mxu1 %v12305_v22  ;;  %12575 = vmatprep.mubr.f32.mxu0 %v12307_v33  ;;  %v12384_v35 = vld [vmem:[%s17350_s8 + $0x240] sm:$0xff]  ;;  %v12383_v60 = vld [vmem:[%s17350_s8 + $0x238] sm:$0xff]  ;;  %v10037_v48 = vadd.f32 %v17055_v16, %v9487_v56  ;;  %v10584_v23 = vadd.f32 %v17057_v17, %v10034_v47  ;;  %v12382_v16 = vld [vmem:[%s17350_s8 + $0x230] sm:$0xff]  ;;  %v12258_v22 = vsub.s32 4, %v17097_v43 }
 0x928   : > { %12506 = vmatmul.mubr.f32.vlgmr.msra.gmra.mxu1 %v12304_v15  ;;  %12576 = vmatmul.mubr.f32.vlgmr.msra.gmra.mxu0 %v12306_v55  ;;  %v10035_v52 = vadd.f32 %v17053_v24, %v9485_v57  ;;  %v12415_v20 = vld [vmem:[%s17350_s8 + $0x338] sm:$0xff]  ;;  %v10586_v50 = vadd.f32 %v17059_v62, %v10036_v25  ;;  %v12430_v24 = vld [vmem:[%s17350_s8 + $0x3b0] sm:$0xff]  ;;  %v12397_v62 = vld [vmem:[%s17350_s8 + $0x2a8] sm:$0xff] }
 0x929   : > { %14471 = vmatpush3.msra.mxu1 %v12391_v44  ;;  %14506 = vmatpush3.msra.mxu0 %v12423_v51  ;;  %v17357_v33 = vld [vmem:[#allocation18_spill] sm:$0xff]  ;;  %v12414_v17 = vld [vmem:[%s17350_s8 + $0x330] sm:$0xff]  ;;  %v12266_v51 = vsub.s32 6, %v17097_v43  ;;  %v11134_v55 = vadd.f32 %v17073_v8, %v10584_v23  ;;  %v12413_v8 = vld [vmem:[%s17350_s8 + $0x328] sm:$0xff] }
 0x92a   : > { %14472 = vmatprep.subr.mxu1 %v12406_v19  ;;  %14507 = vmatprep.subr.mxu0 %v12438_v11  ;;  %v10585_v44 = vadd.f32 %v17061_v46, %v10035_v52  ;;  %v10587_v15 = vadd.f32 %v17357_v33, %v10037_v48  ;;  %v12262_v19 = vsub.s32 5, %v17097_v43  ;;  %v11136_v46 = vadd.f32 %v17075_v29, %v10586_v50  ;;  %v12429_v11 = vld [vmem:[%s17350_s8 + $0x3a8] sm:$0xff]  ;;  %v12396_v29 = vld [vmem:[%s17350_s8 + $0x2a0] sm:$0xff]  ;;  %v12378_v39 = vld [vmem:[%s17350_s8 + $0x210] sm:$0xff] }
 0x92b   : > { %14473 = vmatpush3.msra.mxu1 %v12390_v63  ;;  %14508 = vmatpush3.msra.mxu0 %v12422_v36  ;;  %v12381_v63 = vld [vmem:[%s17350_s8 + $0x228] sm:$0xff]  ;;  %v12410_v27 = vld [vmem:[%s17350_s8 + $0x310] sm:$0xff]  ;;  %v12392_v47 = vld [vmem:[%s17350_s8 + $0x280] sm:$0xff] }
 0x92c   : > { %14474 = vmatprep.subr.mxu1 %v12405_v34  ;;  %14509 = vmatprep.subr.mxu0 %v12437_v30  ;;  %v11135_v36 = vadd.f32 %v17085_v26, %v10585_v44  ;;  %v11137_v34 = vadd.f32 %v17087_v4, %v10587_v15  ;;  %v12270_v30 = vsub.s32 7, %v17097_v43  ;;  %v12259_v26 = vrot.slane %v17105_v18, %v12258_v22  ;;  %v12428_v4 = vld [vmem:[%s17350_s8 + $0x3a0] sm:$0xff]  ;;  %v12425_v57 = vld [vmem:[%s17350_s8 + $0x388] sm:$0xff] }
 0x92d   : > { %14475 = vmatpush3.msra.mxu1 %v12389_v49  ;;  %14510 = vmatpush3.msra.mxu0 %v12421_v41  ;;  %v11684_v49 = vadd.f32 %v17099_v61, %v11134_v55  ;;  %v11686_v41 = vadd.f32 %v17101_v14, %v11136_v46  ;;  %v12267_v61 = vrot.slane %v17105_v18, %v12266_v51  ;;  %v12376_v48 = vld [vmem:[%s17350_s8 + $0x200] sm:$0xff] }
 0x92e   : > { %14476 = vmatprep.subr.mxu1 %v12404_v54  ;;  %14511 = vmatprep.subr.mxu0 %v12436_v59  ;;  %v12380_v54 = vld [vmem:[%s17350_s8 + $0x220] sm:$0xff]  ;;  %v11685_v59 = vadd.f32 %v17108_v12, %v11135_v36  ;;  %v12263_v14 = vrot.slane %v17105_v18, %v12262_v19  ;;  %v12395_v12 = vld [vmem:[%s17350_s8 + $0x298] sm:$0xff] }
 0x92f   : > { %14477 = vmatpush3.msra.mxu1 %v12388_v40  ;;  %14512 = vmatpush3.msra.mxu0 %v12420_v31  ;;  %v12412_v31 = vld [vmem:[%s17350_s8 + $0x320] sm:$0xff] }
 0x930   : > { %14478 = vmatprep.subr.mxu1 %v12403_v28  ;;  %14513 = vmatprep.subr.mxu0 %v12435_v37  ;;  %v11687_v28 = vadd.f32 %v17110_v7, %v11137_v34  ;;  %v12379_v7 = vld [vmem:[%s17350_s8 + $0x218] sm:$0xff]  ;;  %v12408_v23 = vld [vmem:[%s17350_s8 + $0x300] sm:$0xff] }
 0x931   : > { %14479 = vmatpush3.msra.mxu1 %v12387_v5  ;;  %14514 = vmatpush3.msra.mxu0 %v12419_v6  ;;  %v12427_v6 = vld [vmem:[%s17350_s8 + $0x398] sm:$0xff] }
 0x932   : > { %14480 = vmatprep.subr.mxu1 %v12402_v10  ;;  %14515 = vmatprep.subr.mxu0 %v12434_v58 }
 0x933   : > { %14481 = vmatpush3.msra.mxu1 %v12386_v42  ;;  %14516 = vmatpush3.msra.mxu0 %v12418_v32  ;;  %v12271_v42 = vrot.slane %v17105_v18, %v12270_v30  ;;  %v12411_v32 = vld [vmem:[%s17350_s8 + $0x318] sm:$0xff]  ;;  %v12426_v18 = vld [vmem:[%s17350_s8 + $0x390] sm:$0xff] }
 0x934   : > { %14482 = vmatprep.subr.mxu1 %v12401_v45  ;;  %14517 = vmatprep.subr.mxu0 %v12433_v38 }
 0x935   : > { %14483 = vmatpush3.msra.mxu1 %v12385_v13  ;;  %14518 = vmatpush3.msra.mxu0 %v12417_v9  ;;  %v12394_v9 = vld [vmem:[%s17350_s8 + $0x290] sm:$0xff] }
 0x936   : > { %14484 = vmatprep.subr.mxu1 %v12400_v2  ;;  %14519 = vmatprep.subr.mxu0 %v12432_v3 }
 0x937   : > { %14485 = vmatpush3.msra.mxu1 %v12384_v35  ;;  %14520 = vmatpush3.msra.mxu0 %v12416_v53  ;;  %v12393_v35 = vld [vmem:[%s17350_s8 + $0x288] sm:$0xff] }
 0x938   : > { %14486 = vmatprep.subr.mxu1 %v12399_v1  ;;  %14521 = vmatprep.subr.mxu0 %v12431_v0  ;;  %v12377_v53 = vld [vmem:[%s17350_s8 + $0x208] sm:$0xff]  ;;  %v12424_v0 = vld [vmem:[%s17350_s8 + $0x380] sm:$0xff] }
 0x939   : > { %14487 = vmatpush3.msra.mxu1 %v12383_v60  ;;  %14522 = vmatpush3.msra.mxu0 %v12415_v20  ;;  %v12409_v1 = vld [vmem:[%s17350_s8 + $0x308] sm:$0xff] }
 0x93a   : > { %14488 = vmatprep.subr.mxu1 %v12398_v21  ;;  %14523 = vmatprep.subr.mxu0 %v12430_v24 }
 0x93b   : > { %14489 = vmatpush3.msra.mxu1 %v12382_v16  ;;  %14524 = vmatpush3.msra.mxu0 %v12414_v17  ;;  %v12440_v17 = vld [vmem:[#allocation13] sm:$0x1] }
 0x93c   : > { %14490 = vmatprep.subr.mxu1 %v12397_v62  ;;  %14525 = vmatprep.subr.mxu0 %v12429_v11 }
 0x93d   : > { %v12186_v43 = vpop.f32.mrf.mxu1  ;;  %v12225_v40 = vpop.f32.mrf.mxu0  ;;  %14491 = vmatpush3.msra.mxu1 %v12381_v63  ;;  %14526 = vmatpush3.msra.mxu0 %v12413_v8 }
 0x93e   : > { %v12234_v37 = vadd.f32 %v12186_v43, %v11684_v49  ;;  %v12236_v5 = vadd.f32 %v12225_v40, %v11686_v41  ;;  %14492 = vmatprep.subr.mxu1 %v12396_v29  ;;  %14527 = vmatprep.subr.mxu0 %v12428_v4 }
 0x93f   : > { %v12188_v10 = vpop.f32.mrf.mxu1  ;;  %v12227_v58 = vpop.f32.mrf.mxu0  ;;  %14493 = vmatpush3.msra.mxu1 %v12380_v54  ;;  %14528 = vmatpush3.msra.mxu0 %v12412_v31 }
 0x940   : > { %v12284_v45 = vadd.f32 %v12259_v26, %v12234_v37  ;;  %v12235_v38 = vadd.f32 %v12188_v10, %v11685_v59  ;;  %v12237_v13 = vadd.f32 %v12227_v58, %v11687_v28  ;;  %v12286_v2 = vadd.f32 %v12267_v61, %v12236_v5  ;;  %14494 = vmatprep.subr.mxu1 %v12395_v12 }
 0x941   : > { %14529 = vmatprep.subr.mxu0 %v12427_v6  ;;  %14495 = vmatpush3.msra.mxu1 %v12379_v7 }
 0x942   : > { %v12285_v3 = vadd.f32 %v12263_v14, %v12235_v38  ;;  %14530 = vmatpush3.msra.mxu0 %v12411_v32  ;;  %v12287_v56 = vadd.f32 %v12271_v42, %v12237_v13  ;;  %14496 = vmatprep.subr.mxu1 %v12394_v9  ;;  %v12300_v25 = vmul.f32 0.01, %v12284_v45  ;;  %v12302_v52 = vmul.f32 0.01, %v12286_v2 }
 0x943   : > { %14531 = vmatprep.subr.mxu0 %v12426_v18  ;;  %14497 = vmatpush3.msra.mxu1 %v12378_v39  ;;  %vm12292_vm2 = vcmp.ge.f32.partialorder %v12284_v45, 0.0  ;;  %vm12294_vm3 = vcmp.ge.f32.partialorder %v12286_v2, 0.0 }
 0x944   : > { %14532 = vmatpush3.msra.mxu0 %v12410_v27  ;;  %vm12293_vm0 = vcmp.ge.f32.partialorder %v12285_v3, 0.0  ;;  %v12301_v60 = vmul.f32 0.01, %v12285_v3  ;;  %14498 = vmatprep.subr.mxu1 %v12393_v35  ;;  %vm12295_vm1 = vcmp.ge.f32.partialorder %v12287_v56, 0.0  ;;  %v12303_v20 = vmul.f32 0.01, %v12287_v56 }
 0x945   : > { %14533 = vmatprep.subr.mxu0 %v12425_v57  ;;  %14499 = vmatpush3.msra.mxu1 %v12377_v53  ;;  %v12308_v24 = vsel %vm12292_vm2, %v12284_v45, %v12300_v25  ;;  %v12310_v16 = vsel %vm12294_vm3, %v12286_v2, %v12302_v52 }
 0x946   : > { %14534 = vmatpush3.msra.mxu0 %v12409_v1  ;;  %v12309_v21 = vsel %vm12293_vm0, %v12285_v3, %v12301_v60  ;;  %14500 = vmatprep.subr.mxu1 %v12392_v47  ;;  %v12311_v50 = vsel %vm12295_vm1, %v12287_v56, %v12303_v20 }
 0x947   : > { %14535 = vmatprep.subr.mxu0 %v12424_v0  ;;  %14501 = vmatpush3.msra.mxu1 %v12376_v48 }
 0x948   : > { %12645 = vmatprep.mubr.f32.mxu1 %v12309_v21  ;;  %14536 = vmatpush3.msra.mxu0 %v12408_v23 }
 0x949   : > { %12715 = vmatprep.mubr.f32.mxu0 %v12311_v50  ;;  %12646 = vmatmul.mubr.f32.vlgmr.msra.gmra.mxu1 %v12308_v24 }
 0x94a   : > { %12716 = vmatmul.mubr.f32.vlgmr.msra.gmra.mxu0 %v12310_v16 }
 0x9e8   : > { %v14432_v22 = vpop.f32.mrf.mxu1  ;;  %v14467_v33 = vpop.f32.mrf.mxu0 }
 0x9ea   : > { %v14433_v44 = vpop.f32.mrf.mxu1  ;;  %v14468_v62 = vpop.f32.mrf.mxu0 }
 0x9eb   : > { %v14434_v15 = vadd.f32 %v14433_v44, %v14432_v22  ;;  %v14469_v46 = vadd.f32 %v14468_v62, %v14467_v33 }
 0x9ed   : > { %v12508_v51 = vadd.f32 %v14434_v15, %v12440_v17 }
 0x9ef   : > { %v12578_v36 = vadd.f32 %v14469_v46, %v12508_v51 }
 0xa09   : > { %v14502_v19 = vpop.f32.mrf.mxu1 }
 0xa0a   : > { %v14537_v55 = vpop.f32.mrf.mxu0 }
 0xa0b   : > { %v14503_v11 = vpop.f32.mrf.mxu1 }
 0xa0c   : > { %v14538_v63 = vpop.f32.mrf.mxu0  ;;  %v14504_v34 = vadd.f32 %v14503_v11, %v14502_v19 }
 0xa0d   : > { %v14539_v29 = vadd.f32 %v14538_v63, %v14537_v55 }
 0xa0e   : > { %v12648_v8 = vadd.f32 %v14504_v34, %v12578_v36 }
 0xa10   : > { %v12718_v30 = vadd.f32 %v14539_v29, %v12648_v8 }
 0xa12   : > { %12721 = vst [vmem:[%s449_s29] sm:$0x1] %v12718_v30 }
 0xa13 PF: > { %s24_s13 = sadd.s32 1, %s15499_s13  }
 0xa14   : > { %p21_p2 = scmp.ge.s32.totalorder %s24_s13, 4  }
 0xa16   :  { %23 = sbr.rel (!%p21_p2) target bundleno = 4 (0x4), region = 164 }
 0xa1b   :  { %12739 = vsyncpa [#allocation4], 1 }
 0xa1c   :  { %12741 = vsyncpa [#allocation4 + $0x1], 1 }
 0xa1d   :  { %12742 = vsyncpa [#allocation6], 1 }
 0xa1e   :  { %12743 = vsyncpa [#allocation9], 1 }
 0xa1f   :  { %12744 = vsyncpa [#allocation12], 1 }

</bundles_post_ra>
